<compile_context>
chip_gen: v6e
topology: v6e:2x2x1
jax: 0.10.0
libtpu: 0.0.40
codegen_flags: <defaults>
</compile_context>

<pallas_src>
import jax
import jax.numpy as jnp
import numpy as np
from jax.experimental import pallas as pl
from jax.experimental.pallas import tpu as pltpu

C = 256   # fixed by the module definition (ConvTranspose2d(256, 256, ...))
K = 3     # 3x3 transpose-conv kernel


def _wcat_bf16(x):
    """(tb, R, W, Cin) f32 -> (tb, R, W, 3*Cin) bf16 partial im2col over the W axis.

    Channel block kw holds x[..., w + kw - 1, :] (zero outside the image).  The two W-shifted
    copies are cast to bf16 before the lane-axis concatenate, so no f32 (M, 3C) temporary is
    materialized and the MXU operand is stored half-width."""
    tb, r, w, cin = x.shape
    zcol = jnp.zeros((tb, r, 1, cin), x.dtype)
    x_wm1 = jnp.concatenate([zcol, x[:, :, :w - 1, :]], axis=2)    # x[.., w-1, :]
    x_wp1 = jnp.concatenate([x[:, :, 1:, :], zcol], axis=2)        # x[.., w+1, :]
    return jnp.concatenate([x_wm1.astype(jnp.bfloat16),
                            x.astype(jnp.bfloat16),
                            x_wp1.astype(jnp.bfloat16)], axis=3)


def _residual_block_kernel(x_ref, halo_ref, w1_ref, b1_ref, w2_ref, b2_ref, o_ref):
    """One (batch-tile, H-strip) block: out = x + relu(relu(tconv3x3(x)) @ W2 + b2)."""
    TB, SH, W, Cin = x_ref.shape          # static block shape
    M = TB * SH * W

    x = x_ref[...]                        # (TB, SH, W, C) f32 strip (also the residual input)
    halo = halo_ref[...]                  # (TB, 2, W, C) f32: rows just above / below the strip

    xcat = _wcat_bf16(x)                  # (TB, SH, W, 3C) bf16
    hcat = _wcat_bf16(halo)               # (TB, 2,  W, 3C) bf16

    # out[h] = xcat[h-1] @ slab0 + xcat[h] @ slab1 + xcat[h+1] @ slab2   (global rows).
    # Fold the +-1 row shift into the operands via outer-axis concat with the halo rows, so the
    # three MXU outputs are already row-aligned and accumulation is a plain add (no scratch).
    op_up = jnp.concatenate([hcat[:, 0:1], xcat[:, :SH - 1]], axis=1)   # xcat at row h-1
    op_dn = jnp.concatenate([xcat[:, 1:], hcat[:, 1:2]], axis=1)        # xcat at row h+1

    acc = jnp.dot(xcat.reshape(M, 3 * Cin), w1_ref[1], preferred_element_type=jnp.float32)
    acc = acc + jnp.dot(op_up.reshape(M, 3 * Cin), w1_ref[0], preferred_element_type=jnp.float32)
    acc = acc + jnp.dot(op_dn.reshape(M, 3 * Cin), w1_ref[2], preferred_element_type=jnp.float32)

    # bias1 + ReLU + bf16 cast fused into one pass; the 1x1 transpose conv is a pointwise matmul.
    h1 = jnp.maximum(acc + b1_ref[...], 0.0).astype(jnp.bfloat16)
    h2 = jnp.dot(h1, w2_ref[...], preferred_element_type=jnp.float32)
    h2 = jnp.maximum(h2 + b2_ref[...], 0.0)
    o_ref[...] = x + h2.reshape(TB, SH, W, Cin)


def _vmem_limit_bytes():
    """Generation-aware scoped-VMEM budget: leave headroom on v7x (64 MiB/core), allow larger
    tiles on v5e/v6e (128 MiB)."""
    cap = 128 * 1024 * 1024
    try:
        cap = getattr(pltpu.get_tpu_info(), "vmem_capacity_bytes", cap)
    except Exception:
        pass
    return (40 if cap <= 64 * 1024 * 1024 else 64) * 1024 * 1024


def _pick_tiles(B, H, W, target_m=2048):
    """Pick (batch_tile, strip_height).  SH divides H; prefer >=2 strips (DMA/compute
    pipelining + v7x's two TensorCores) while keeping tb*SH*W around target_m matmul rows per
    grid step to amortize the ~0.35us/step overhead and MXU fill/drain."""
    divs = [d for d in range(2, H + 1) if H % d == 0]
    strip_divs = [d for d in divs if H // d >= 2]
    cands = [d for d in strip_divs if d * W <= target_m]
    if cands:
        sh = max(cands)
    elif strip_divs:
        sh = min(strip_divs)
    else:
        sh = H                                   # single strip (halo is all zeros then)
    tb = 1
    for d in range(1, B + 1):
        if B % d == 0 and d * sh * W <= target_m:
            tb = d
    return tb, sh


def residual_transpose_block_nhwc(x_nhwc, w1_t, b1, w2_t, b2, *, batch_tile=None, strip=None):
    """NHWC-native forward (use this when stacking blocks: no per-block layout transposes).

    x_nhwc: (B, H, W, 256) f32.  Weights in PyTorch ConvTranspose2d layout (in, out, kH, kW)."""
    B, H, W, Cin = x_nhwc.shape
    assert Cin == C and H >= 2 and W >= 2

    x = x_nhwc.astype(jnp.float32)

    # ConvTranspose2d(k,s=1,p=1) == "same" conv with flipped & in/out-swapped weights:
    #   w1k[kh, kw, i, o] = W_t[i, o, K-1-kh, K-1-kw]
    w1k = jnp.transpose(jnp.flip(w1_t, axis=(2, 3)), (2, 3, 0, 1))     # (K, K, Cin, Cout)
    w1g = w1k.reshape(K, K * C, C).astype(jnp.bfloat16)                # per-row (3C, C) slabs
    w2k = w2_t[:, :, 0, 0].astype(jnp.bfloat16)                        # (Cin, Cout)
    b1r = b1.reshape(1, C).astype(jnp.float32)
    b2r = b2.reshape(1, C).astype(jnp.float32)

    tb, sh = _pick_tiles(B, H, W)
    if batch_tile is not None:
        tb = batch_tile
    if strip is not None:
        sh = strip
    assert B % tb == 0 and H % sh == 0 and sh >= 2
    n_strips = H // sh

    # 2-row halo per strip (the rows just above / below it, zero at the image border), built
    # once in HBM (only 2/SH extra activation traffic) so every BlockSpec stays plainly blocked.
    # TODO(synk): element-offset BlockSpecs or a manual-DMA halo would avoid this small extra
    # HBM array entirely.
    xpad_h = jnp.pad(x, ((0, 0), (1, 1), (0, 0), (0, 0)))              # (B, H+2, W, C)
    above = xpad_h[:, 0:H:sh]                                          # x[:, s*sh - 1]
    below = xpad_h[:, sh + 1:H + 2:sh]                                 # x[:, (s+1)*sh]
    halo = jnp.stack([above, below], axis=2).reshape(B, 2 * n_strips, W, C)

    return pl.pallas_call(
        _residual_block_kernel,
        out_shape=jax.ShapeDtypeStruct((B, H, W, C), jnp.float32),
        grid_spec=pltpu.PrefetchScalarGridSpec(
            num_scalar_prefetch=0,
            grid=(B // tb, n_strips),
            in_specs=[
                pl.BlockSpec((tb, sh, W, C), lambda b, s: (b, s, 0, 0)),    # strip (+ residual)
                pl.BlockSpec((tb, 2, W, C), lambda b, s: (b, s, 0, 0)),     # halo rows
                # Constant-index weight/bias blocks are fetched once and stay resident.
                # TODO(synk): pipeline_mode=pl.Buffered(1) on these would drop ~1.3 MB of
                # redundant double-buffering (mainly v7x VMEM headroom).
                pl.BlockSpec((K, K * C, C), lambda b, s: (0, 0, 0)),        # 3x3 slabs (bf16)
                pl.BlockSpec((1, C), lambda b, s: (0, 0)),                  # bias 1
                pl.BlockSpec((C, C), lambda b, s: (0, 0)),                  # 1x1 weights (bf16)
                pl.BlockSpec((1, C), lambda b, s: (0, 0)),                  # bias 2
            ],
            out_specs=pl.BlockSpec((tb, sh, W, C), lambda b, s: (b, s, 0, 0)),
        ),
        compiler_params=pltpu.CompilerParams(
            dimension_semantics=("parallel", "parallel"),
            vmem_limit_bytes=_vmem_limit_bytes(),
        ),
    )(x, halo, w1g, b1r, w2k, b2r)


def residual_transpose_block(x_nchw, w1_t, b1, w2_t, b2, **kw):
    """NCHW adapter matching the PyTorch module I/O.  When the block is stacked, call
    residual_transpose_block_nhwc directly and pay the layout change once at network
    entry/exit instead of per block."""
    x = jnp.transpose(x_nchw, (0, 2, 3, 1))
    out = residual_transpose_block_nhwc(x, w1_t, b1, w2_t, b2, **kw)
    return jnp.transpose(out, (0, 3, 1, 2))


def _reference(x_nchw, w1_t, b1, w2_t, b2):
    """Pure-JAX f32 reference.  Indexes the raw (in, out, kh, kw) ConvTranspose2d weights with
    the adjoint formula out[h, w] = sum_kh_kw x[h - kh + 1, w - kw + 1] * W[:, :, kh, kw], so it
    is independent of the kernel's flip/transpose weight transform."""
    x = jnp.transpose(x_nchw, (0, 2, 3, 1)).astype(jnp.float32)        # NHWC
    B, H, W, _ = x.shape
    xpad = jnp.pad(x, ((0, 0), (1, 1), (1, 1), (0, 0)))
    y = jnp.zeros((B, H, W, C), jnp.float32)
    for kh in range(K):
        for kw in range(K):
            y = y + jnp.einsum('bhwi,io->bhwo',
                               xpad[:, 2 - kh:2 - kh + H, 2 - kw:2 - kw + W, :],
                               w1_t[:, :, kh, kw])
    y = jnp.maximum(y + b1, 0.0)
    y = jnp.maximum(jnp.einsum('bhwi,io->bhwo', y, w2_t[:, :, 0, 0]) + b2, 0.0)
    return jnp.transpose(x + y, (0, 3, 1, 2))


if __name__ == "__main__":
    key = jax.random.PRNGKey(0)
    k1, k2, k3, k4, k5 = jax.random.split(key, 5)

    B, H, W = 2, 16, 16               # channels fixed at 256 by the module
    x = jax.random.normal(k1, (B, C, H, W), jnp.float32)

    # Deterministic synthetic parameters in PyTorch ConvTranspose2d layout (in, out, kH, kW).
    w1 = jax.random.normal(k2, (C, C, 3, 3), jnp.float32) * 0.02
    b1 = jax.random.normal(k3, (C,), jnp.float32) * 0.02
    w2 = jax.random.normal(k4, (C, C, 1, 1), jnp.float32) * 0.02
    b2 = jax.random.normal(k5, (C,), jnp.float32) * 0.02

    fwd = jax.jit(residual_transpose_block)
    out = jax.block_until_ready(fwd(x, w1, b1, w2, b2))
    ref = jax.block_until_ready(_reference(x, w1, b1, w2, b2))

    # Kernel matmuls run in bf16 on the MXU (f32 accumulation); tolerance covers bf16 operand
    # rounding vs the f32 reference (expected max |err| ~1e-2 at these scales).
    np.testing.assert_allclose(np.asarray(out), np.asarray(ref), rtol=5e-2, atol=5e-2)

    print("KERNEL_OK")
</pallas_src>

<mosaic_0001>
module attributes {stable_mosaic.version = 11 : i64} {
  func.func @_residual_block_kernel(%arg0: i32, %arg1: i32, %arg2: memref<2x8x16x256xf32, #tpu.memory_space<vmem>>, %arg3: memref<2x2x16x256xf32, #tpu.memory_space<vmem>>, %arg4: memref<3x768x256xbf16, #tpu.memory_space<vmem>>, %arg5: memref<1x256xf32, #tpu.memory_space<vmem>>, %arg6: memref<256x256xbf16, #tpu.memory_space<vmem>>, %arg7: memref<1x256xf32, #tpu.memory_space<vmem>>, %arg8: memref<2x8x16x256xf32, #tpu.memory_space<vmem>>) attributes {dimension_semantics = [#tpu.dimension_semantics<parallel>, #tpu.dimension_semantics<parallel>], iteration_bounds = array<i64: 1, 2>, scalar_prefetch = 0 : i64, scratch_operands = 0 : i64, tpu.core_type = #tpu.core_type<tc>, window_params = [{transform_indices = @transform_0, window_bounds = array<i64: 2, 8, 16, 256>}, {transform_indices = @transform_1, window_bounds = array<i64: 2, 2, 16, 256>}, {pipeline_mode = #tpu.pipeline_mode<synchronous>, transform_indices = @transform_2, window_bounds = array<i64: 3, 768, 256>}, {pipeline_mode = #tpu.pipeline_mode<synchronous>, transform_indices = @transform_3, window_bounds = array<i64: 1, 256>}, {pipeline_mode = #tpu.pipeline_mode<synchronous>, transform_indices = @transform_4, window_bounds = array<i64: 256, 256>}, {pipeline_mode = #tpu.pipeline_mode<synchronous>, transform_indices = @transform_5, window_bounds = array<i64: 1, 256>}, {transform_indices = @transform_6, window_bounds = array<i64: 2, 8, 16, 256>}]} {
    %c0 = arith.constant 0 : index
    %c0_0 = arith.constant 0 : index
    %c0_1 = arith.constant 0 : index
    %c0_2 = arith.constant 0 : index
    %0 = vector.load %arg2[%c0, %c0_0, %c0_1, %c0_2] : memref<2x8x16x256xf32, #tpu.memory_space<vmem>>, vector<2x8x16x256xf32>
    %c0_3 = arith.constant 0 : index
    %c0_4 = arith.constant 0 : index
    %c0_5 = arith.constant 0 : index
    %c0_6 = arith.constant 0 : index
    %1 = vector.load %arg3[%c0_3, %c0_4, %c0_5, %c0_6] : memref<2x2x16x256xf32, #tpu.memory_space<vmem>>, vector<2x2x16x256xf32>
    %cst = arith.constant 0.000000e+00 : f32
    %2 = vector.broadcast %cst : f32 to vector<2x8x1x256xf32>
    %3 = vector.extract_strided_slice %0 {offsets = [0, 0, 0, 0], sizes = [2, 8, 15, 256], strides = [1, 1, 1, 1]} : vector<2x8x16x256xf32> to vector<2x8x15x256xf32>
    %4 = tpu.concatenate %2, %3 in 2 : vector<2x8x1x256xf32>, vector<2x8x15x256xf32> -> vector<2x8x16x256xf32>
    %5 = vector.extract_strided_slice %0 {offsets = [0, 0, 1, 0], sizes = [2, 8, 15, 256], strides = [1, 1, 1, 1]} : vector<2x8x16x256xf32> to vector<2x8x15x256xf32>
    %6 = tpu.concatenate %5, %2 in 2 : vector<2x8x15x256xf32>, vector<2x8x1x256xf32> -> vector<2x8x16x256xf32>
    %7 = arith.truncf %4 : vector<2x8x16x256xf32> to vector<2x8x16x256xbf16>
    %8 = arith.truncf %0 : vector<2x8x16x256xf32> to vector<2x8x16x256xbf16>
    %9 = arith.truncf %6 : vector<2x8x16x256xf32> to vector<2x8x16x256xbf16>
    %10 = tpu.concatenate %7, %8, %9 in 3 : vector<2x8x16x256xbf16>, vector<2x8x16x256xbf16>, vector<2x8x16x256xbf16> -> vector<2x8x16x768xbf16>
    %cst_7 = arith.constant 0.000000e+00 : f32
    %11 = vector.broadcast %cst_7 : f32 to vector<2x2x1x256xf32>
    %12 = vector.extract_strided_slice %1 {offsets = [0, 0, 0, 0], sizes = [2, 2, 15, 256], strides = [1, 1, 1, 1]} : vector<2x2x16x256xf32> to vector<2x2x15x256xf32>
    %13 = tpu.concatenate %11, %12 in 2 : vector<2x2x1x256xf32>, vector<2x2x15x256xf32> -> vector<2x2x16x256xf32>
    %14 = vector.extract_strided_slice %1 {offsets = [0, 0, 1, 0], sizes = [2, 2, 15, 256], strides = [1, 1, 1, 1]} : vector<2x2x16x256xf32> to vector<2x2x15x256xf32>
    %15 = tpu.concatenate %14, %11 in 2 : vector<2x2x15x256xf32>, vector<2x2x1x256xf32> -> vector<2x2x16x256xf32>
    %16 = arith.truncf %13 : vector<2x2x16x256xf32> to vector<2x2x16x256xbf16>
    %17 = arith.truncf %1 : vector<2x2x16x256xf32> to vector<2x2x16x256xbf16>
    %18 = arith.truncf %15 : vector<2x2x16x256xf32> to vector<2x2x16x256xbf16>
    %19 = tpu.concatenate %16, %17, %18 in 3 : vector<2x2x16x256xbf16>, vector<2x2x16x256xbf16>, vector<2x2x16x256xbf16> -> vector<2x2x16x768xbf16>
    %20 = vector.extract_strided_slice %19 {offsets = [0, 0, 0, 0], sizes = [2, 1, 16, 768], strides = [1, 1, 1, 1]} : vector<2x2x16x768xbf16> to vector<2x1x16x768xbf16>
    %21 = vector.extract_strided_slice %10 {offsets = [0, 0, 0, 0], sizes = [2, 7, 16, 768], strides = [1, 1, 1, 1]} : vector<2x8x16x768xbf16> to vector<2x7x16x768xbf16>
    %22 = tpu.concatenate %20, %21 in 1 : vector<2x1x16x768xbf16>, vector<2x7x16x768xbf16> -> vector<2x8x16x768xbf16>
    %23 = vector.extract_strided_slice %10 {offsets = [0, 1, 0, 0], sizes = [2, 7, 16, 768], strides = [1, 1, 1, 1]} : vector<2x8x16x768xbf16> to vector<2x7x16x768xbf16>
    %24 = vector.extract_strided_slice %19 {offsets = [0, 1, 0, 0], sizes = [2, 1, 16, 768], strides = [1, 1, 1, 1]} : vector<2x2x16x768xbf16> to vector<2x1x16x768xbf16>
    %25 = tpu.concatenate %23, %24 in 1 : vector<2x7x16x768xbf16>, vector<2x1x16x768xbf16> -> vector<2x8x16x768xbf16>
    %26 = vector.shape_cast %10 : vector<2x8x16x768xbf16> to vector<256x768xbf16>
    %c1 = arith.constant 1 : index
    %c0_8 = arith.constant 0 : index
    %c0_9 = arith.constant 0 : index
    %27 = vector.load %arg4[%c1, %c0_8, %c0_9] : memref<3x768x256xbf16, #tpu.memory_space<vmem>>, vector<1x768x256xbf16>
    %28 = vector.shape_cast %27 : vector<1x768x256xbf16> to vector<768x256xbf16>
    %cst_10 = arith.constant dense<0.000000e+00> : vector<256x256xf32>
    %29 = tpu.matmul %26, %28, %cst_10 {dimension_numbers = #tpu.dot_dimension_numbers<[1], [0], [0], [1], [0, 0, 1, 1], [], []>} : vector<256x768xbf16>, vector<768x256xbf16>, vector<256x256xf32> -> vector<256x256xf32>
    %30 = vector.shape_cast %22 : vector<2x8x16x768xbf16> to vector<256x768xbf16>
    %c0_11 = arith.constant 0 : index
    %c0_12 = arith.constant 0 : index
    %c0_13 = arith.constant 0 : index
    %31 = vector.load %arg4[%c0_11, %c0_12, %c0_13] : memref<3x768x256xbf16, #tpu.memory_space<vmem>>, vector<1x768x256xbf16>
    %32 = vector.shape_cast %31 : vector<1x768x256xbf16> to vector<768x256xbf16>
    %cst_14 = arith.constant dense<0.000000e+00> : vector<256x256xf32>
    %33 = tpu.matmul %30, %32, %cst_14 {dimension_numbers = #tpu.dot_dimension_numbers<[1], [0], [0], [1], [0, 0, 1, 1], [], []>} : vector<256x768xbf16>, vector<768x256xbf16>, vector<256x256xf32> -> vector<256x256xf32>
    %34 = arith.addf %29, %33 : vector<256x256xf32>
    %35 = vector.shape_cast %25 : vector<2x8x16x768xbf16> to vector<256x768xbf16>
    %c2 = arith.constant 2 : index
    %c0_15 = arith.constant 0 : index
    %c0_16 = arith.constant 0 : index
    %36 = vector.load %arg4[%c2, %c0_15, %c0_16] : memref<3x768x256xbf16, #tpu.memory_space<vmem>>, vector<1x768x256xbf16>
    %37 = vector.shape_cast %36 : vector<1x768x256xbf16> to vector<768x256xbf16>
    %cst_17 = arith.constant dense<0.000000e+00> : vector<256x256xf32>
    %38 = tpu.matmul %35, %37, %cst_17 {dimension_numbers = #tpu.dot_dimension_numbers<[1], [0], [0], [1], [0, 0, 1, 1], [], []>} : vector<256x768xbf16>, vector<768x256xbf16>, vector<256x256xf32> -> vector<256x256xf32>
    %39 = arith.addf %34, %38 : vector<256x256xf32>
    %c0_18 = arith.constant 0 : index
    %c0_19 = arith.constant 0 : index
    %40 = vector.load %arg5[%c0_18, %c0_19] : memref<1x256xf32, #tpu.memory_space<vmem>>, vector<1x256xf32>
    %41 = vector.broadcast %40 : vector<1x256xf32> to vector<256x256xf32>
    %42 = arith.addf %39, %41 : vector<256x256xf32>
    %cst_20 = arith.constant 0.000000e+00 : f32
    %43 = vector.broadcast %cst_20 : f32 to vector<256x256xf32>
    %44 = arith.maximumf %42, %43 : vector<256x256xf32>
    %45 = arith.truncf %44 : vector<256x256xf32> to vector<256x256xbf16>
    %c0_21 = arith.constant 0 : index
    %c0_22 = arith.constant 0 : index
    %46 = vector.load %arg6[%c0_21, %c0_22] : memref<256x256xbf16, #tpu.memory_space<vmem>>, vector<256x256xbf16>
    %cst_23 = arith.constant dense<0.000000e+00> : vector<256x256xf32>
    %47 = tpu.matmul %45, %46, %cst_23 {dimension_numbers = #tpu.dot_dimension_numbers<[1], [0], [0], [1], [0, 0, 1, 1], [], []>} : vector<256x256xbf16>, vector<256x256xbf16>, vector<256x256xf32> -> vector<256x256xf32>
    %c0_24 = arith.constant 0 : index
    %c0_25 = arith.constant 0 : index
    %48 = vector.load %arg7[%c0_24, %c0_25] : memref<1x256xf32, #tpu.memory_space<vmem>>, vector<1x256xf32>
    %49 = vector.broadcast %48 : vector<1x256xf32> to vector<256x256xf32>
    %50 = arith.addf %47, %49 : vector<256x256xf32>
    %cst_26 = arith.constant 0.000000e+00 : f32
    %51 = vector.broadcast %cst_26 : f32 to vector<256x256xf32>
    %52 = arith.maximumf %50, %51 : vector<256x256xf32>
    %53 = vector.shape_cast %52 : vector<256x256xf32> to vector<2x8x16x256xf32>
    %54 = arith.addf %0, %53 : vector<2x8x16x256xf32>
    %c0_27 = arith.constant 0 : index
    %c0_28 = arith.constant 0 : index
    %c0_29 = arith.constant 0 : index
    %c0_30 = arith.constant 0 : index
    %55 = vector.load %arg8[%c0_27, %c0_28, %c0_29, %c0_30] : memref<2x8x16x256xf32, #tpu.memory_space<vmem>>, vector<2x8x16x256xf32>
    tpu.vector_store %arg8[%c0_27, %c0_28, %c0_29, %c0_30], %54 {strides = array<i32>} : memref<2x8x16x256xf32, #tpu.memory_space<vmem>>, vector<2x8x16x256xf32>,
    return
  }
  func.func @transform_0(%arg0: i32, %arg1: i32) -> (i32, i32, i32, i32) {
    %c0_i32 = arith.constant 0 : i32
    %c0_i32_0 = arith.constant 0 : i32
    %c0_i32_1 = arith.constant 0 : i32
    return %arg0, %arg1, %c0_i32, %c0_i32_0 : i32, i32, i32, i32
  }
  func.func @transform_1(%arg0: i32, %arg1: i32) -> (i32, i32, i32, i32) {
    %c0_i32 = arith.constant 0 : i32
    %c0_i32_0 = arith.constant 0 : i32
    %c0_i32_1 = arith.constant 0 : i32
    return %arg0, %arg1, %c0_i32, %c0_i32_0 : i32, i32, i32, i32
  }
  func.func @transform_2(%arg0: i32, %arg1: i32) -> (i32, i32, i32) {
    %c0_i32 = arith.constant 0 : i32
    %c0_i32_0 = arith.constant 0 : i32
    %c0_i32_1 = arith.constant 0 : i32
    %c0_i32_2 = arith.constant 0 : i32
    return %c0_i32, %c0_i32_0, %c0_i32_1 : i32, i32, i32
  }
  func.func @transform_3(%arg0: i32, %arg1: i32) -> (i32, i32) {
    %c0_i32 = arith.constant 0 : i32
    %c0_i32_0 = arith.constant 0 : i32
    %c0_i32_1 = arith.constant 0 : i32
    return %c0_i32, %c0_i32_0 : i32, i32
  }
  func.func @transform_4(%arg0: i32, %arg1: i32) -> (i32, i32) {
    %c0_i32 = arith.constant 0 : i32
    %c0_i32_0 = arith.constant 0 : i32
    %c0_i32_1 = arith.constant 0 : i32
    return %c0_i32, %c0_i32_0 : i32, i32
  }
  func.func @transform_5(%arg0: i32, %arg1: i32) -> (i32, i32) {
    %c0_i32 = arith.constant 0 : i32
    %c0_i32_0 = arith.constant 0 : i32
    %c0_i32_1 = arith.constant 0 : i32
    return %c0_i32, %c0_i32_0 : i32, i32
  }
  func.func @transform_6(%arg0: i32, %arg1: i32) -> (i32, i32, i32, i32) {
    %c0_i32 = arith.constant 0 : i32
    %c0_i32_0 = arith.constant 0 : i32
    %c0_i32_1 = arith.constant 0 : i32
    return %arg0, %arg1, %c0_i32, %c0_i32_0 : i32, i32, i32, i32
  }
}

</mosaic_0001>

<bundles_post_ra>
// kernel: residual_transpose_block.1
= control target key start
LH: loop header
LB: loop body
LE: loop exit
PB: predicated region body
PF: predicated region fallthrough
CT: control target
= control target key end

     0   :  { %11 = vsyncpa [#allocation5], 0  ;;  %s11426_s0 = inlined_call_operand.vmem [shape: f32[2,16,16,256], index: 0, kind: input, shape index: {}]   ;;  %s11427_s1 = inlined_call_operand.vmem [shape: f32[2,4,16,256], index: 1, kind: input, shape index: {}]   ;;  %s11428_s2 = inlined_call_operand.vmem [shape: bf16[3,768,256], index: 2, kind: input, shape index: {}]   ;;  %s11429_s3 = inlined_call_operand.vmem [shape: f32[1,256], index: 3, kind: input, shape index: {}]   ;;  %s11430_s4 = inlined_call_operand.vmem [shape: bf16[256,256], index: 4, kind: input, shape index: {}]   ;;  %s11431_s5 = inlined_call_operand.vmem [shape: f32[1,256], index: 5, kind: input, shape index: {}]   ;;  %s11432_s6 = inlined_call_operand.hbm [shape: f32[2,16,16,256], index: 6, kind: output, shape index: {}]  }
   0x1   :  { %13 = vsyncpa [#allocation5 + $0x1], 0  ;;  %s7652_s21 = smov 0   ;;  %s7654_s22 = smov 0  }
   0x2   :  { %s7656_s23 = smov 0   ;;  %s7658_s24 = smov 0  }
   0x3   :  { %s7660_s25 = smov 0   ;;  %s7662_s26 = smov 0  }
   0x4 LB: > { %s5696_s27 = sadd.s32 4294967295, %s7608_s26   ;;  %s5697_s28 = sadd.s32 4294967294, %s7608_s26   ;;  %s7608_s26 = sphi %s7662_s26, %s19_s26   ;;  %s7604_s25 = sphi %s7660_s25, %s12160_s25   ;;  %s7600_s24 = sphi %s7658_s24, %s12159_s24   ;;  %s7596_s23 = sphi %s7656_s23, %s12158_s23   ;;  %s7592_s22 = sphi %s7654_s22, %s12157_s22   ;;  %s7588_s21 = sphi %s7652_s21, %s12156_s21  }
   0x5   : > { %s28_s29 = sadd.s32 1, %s7604_s25  ;;  %s40_s30 = sadd.s32 1, %s7596_s23 }
   0x6   : > { %p29_p0 = scmp.ge.s32.totalorder %s28_s29, 2  ;;  %p47_p1 = scmp.ne.s32.totalorder %s7596_s23, %s7592_s22 }
   0x7   : > { %p48_p2 = scmp.eq.s32.totalorder %s7608_s26, 0  ;;  %p191_p3 = scmp.eq.s32.totalorder %s5696_s27, 1 }
   0x8   : > { %s12162_s29 = smov (%p29_p0, %s28_s29), 0  ;;  %p196_p6 = scmp.ne.s32.totalorder %s7592_s22, %s7588_s21 }
   0x9   : > { %p7691_p4 = por %p48_p2, %p47_p1  ;;  %p7695_p5 = por %p191_p3, %p47_p1 }
   0xa   : > { %s36_s9 = ssub.s32 %s7604_s25, %s12162_s29  ;;  %p197_p8 = scmp.eq.s32.totalorder %s5697_s28, 1 }
   0xb   : > { %p38_p7 = scmp.eq.s32.totalorder %s36_s9, 0  ;;  %p5699_p10 = scmp.ge.s32.totalorder %s7608_s26, 2 }
   0xc   : > { %p7706_p9 = por %p197_p8, %p196_p6 }
   0xd   : > { %s7704_s10 = scalar_select %p38_p7, %s7596_s23, %s40_s30  }
   0xe   : > { %225 = sbr.rel (%p5699_p10) target bundleno = 67 (0x43), region = 32 }
  0x13   : > { %228 = sbr.rel (!%p7691_p4) target bundleno = 55 (0x37), region = 36  ;;  %s230_s12 = sand.u32 (%p7691_p4), 1, %s7596_s23  }
  0x14   : > { %s6903_s13 = sshll.u32 (%p7691_p4), %s7604_s25, 8  ;;  %s5700_s14 = sshll.u32 (%p7691_p4), %s230_s12, 9 }
  0x15   : > { %s7720_s17 = scalar_lea.vmem (%p7691_p4), %s11426_s0, %s6903_s13  ;;  %s7725_s18 = scalar_lea.vmem (%p7691_p4), [#allocation2], %s5700_s14 }
  0x16   : > { %v252_v0 = vld [vmem:[%s7720_s17] sm:$0xff] (%p7691_p4)  ;;  %v254_v1 = vld [vmem:[%s7720_s17 + $0x8] sm:$0xff] (%p7691_p4)  ;;  %v256_v2 = vld [vmem:[%s7720_s17 + $0x10] sm:$0xff] (%p7691_p4) }
  0x17   : > { %253 = vst [vmem:[%s7725_s18] sm:$0xff] (%p7691_p4), %v252_v0  ;;  %255 = vst [vmem:[%s7725_s18 + $0x8] sm:$0xff] (%p7691_p4), %v254_v1  ;;  %v258_v3 = vld [vmem:[%s7720_s17 + $0x18] sm:$0xff] (%p7691_p4)  ;;  %v260_v4 = vld [vmem:[%s7720_s17 + $0x20] sm:$0xff] (%p7691_p4) }
  0x18   : > { %257 = vst [vmem:[%s7725_s18 + $0x10] sm:$0xff] %v256_v2  ;;  %v262_v5 = vld [vmem:[%s7720_s17 + $0x28] sm:$0xff]  ;;  %259 = vst [vmem:[%s7725_s18 + $0x18] sm:$0xff] %v258_v3  ;;  %v264_v6 = vld [vmem:[%s7720_s17 + $0x30] sm:$0xff] }
  0x19   : > { %261 = vst [vmem:[%s7725_s18 + $0x20] sm:$0xff] %v260_v4  ;;  %263 = vst [vmem:[%s7725_s18 + $0x28] sm:$0xff] %v262_v5  ;;  %v266_v7 = vld [vmem:[%s7720_s17 + $0x38] sm:$0xff]  ;;  %v268_v8 = vld [vmem:[%s7720_s17 + $0x40] sm:$0xff] }
  0x1a   : > { %265 = vst [vmem:[%s7725_s18 + $0x30] sm:$0xff] %v264_v6  ;;  %267 = vst [vmem:[%s7725_s18 + $0x38] sm:$0xff] %v266_v7  ;;  %v270_v9 = vld [vmem:[%s7720_s17 + $0x48] sm:$0xff]  ;;  %v272_v10 = vld [vmem:[%s7720_s17 + $0x50] sm:$0xff] }
  0x1b   : > { %269 = vst [vmem:[%s7725_s18 + $0x40] sm:$0xff] %v268_v8  ;;  %v274_v11 = vld [vmem:[%s7720_s17 + $0x58] sm:$0xff]  ;;  %271 = vst [vmem:[%s7725_s18 + $0x48] sm:$0xff] %v270_v9  ;;  %v276_v12 = vld [vmem:[%s7720_s17 + $0x60] sm:$0xff] }
  0x1c   : > { %273 = vst [vmem:[%s7725_s18 + $0x50] sm:$0xff] %v272_v10  ;;  %275 = vst [vmem:[%s7725_s18 + $0x58] sm:$0xff] %v274_v11  ;;  %v278_v13 = vld [vmem:[%s7720_s17 + $0x68] sm:$0xff]  ;;  %v280_v14 = vld [vmem:[%s7720_s17 + $0x70] sm:$0xff] }
  0x1d   : > { %277 = vst [vmem:[%s7725_s18 + $0x60] sm:$0xff] %v276_v12  ;;  %279 = vst [vmem:[%s7725_s18 + $0x68] sm:$0xff] %v278_v13  ;;  %v282_v15 = vld [vmem:[%s7720_s17 + $0x78] sm:$0xff]  ;;  %v284_v16 = vld [vmem:[%s7720_s17 + $0x80] sm:$0xff] }
  0x1e   : > { %281 = vst [vmem:[%s7725_s18 + $0x70] sm:$0xff] %v280_v14  ;;  %v286_v17 = vld [vmem:[%s7720_s17 + $0x88] sm:$0xff]  ;;  %283 = vst [vmem:[%s7725_s18 + $0x78] sm:$0xff] %v282_v15  ;;  %v288_v18 = vld [vmem:[%s7720_s17 + $0x90] sm:$0xff] }
  0x1f   : > { %285 = vst [vmem:[%s7725_s18 + $0x80] sm:$0xff] %v284_v16  ;;  %287 = vst [vmem:[%s7725_s18 + $0x88] sm:$0xff] %v286_v17  ;;  %v290_v19 = vld [vmem:[%s7720_s17 + $0x98] sm:$0xff]  ;;  %v292_v20 = vld [vmem:[%s7720_s17 + $0xa0] sm:$0xff] }
  0x20   : > { %289 = vst [vmem:[%s7725_s18 + $0x90] sm:$0xff] %v288_v18  ;;  %291 = vst [vmem:[%s7725_s18 + $0x98] sm:$0xff] %v290_v19  ;;  %v294_v21 = vld [vmem:[%s7720_s17 + $0xa8] sm:$0xff]  ;;  %v296_v22 = vld [vmem:[%s7720_s17 + $0xb0] sm:$0xff] }
  0x21   : > { %293 = vst [vmem:[%s7725_s18 + $0xa0] sm:$0xff] %v292_v20  ;;  %v298_v23 = vld [vmem:[%s7720_s17 + $0xb8] sm:$0xff]  ;;  %295 = vst [vmem:[%s7725_s18 + $0xa8] sm:$0xff] %v294_v21  ;;  %v300_v24 = vld [vmem:[%s7720_s17 + $0xc0] sm:$0xff] }
  0x22   : > { %297 = vst [vmem:[%s7725_s18 + $0xb0] sm:$0xff] %v296_v22  ;;  %299 = vst [vmem:[%s7725_s18 + $0xb8] sm:$0xff] %v298_v23  ;;  %v302_v25 = vld [vmem:[%s7720_s17 + $0xc8] sm:$0xff]  ;;  %v304_v26 = vld [vmem:[%s7720_s17 + $0xd0] sm:$0xff] }
  0x23   : > { %301 = vst [vmem:[%s7725_s18 + $0xc0] sm:$0xff] %v300_v24  ;;  %303 = vst [vmem:[%s7725_s18 + $0xc8] sm:$0xff] %v302_v25  ;;  %v306_v27 = vld [vmem:[%s7720_s17 + $0xd8] sm:$0xff]  ;;  %v308_v28 = vld [vmem:[%s7720_s17 + $0xe0] sm:$0xff] }
  0x24   : > { %305 = vst [vmem:[%s7725_s18 + $0xd0] sm:$0xff] %v304_v26  ;;  %v310_v29 = vld [vmem:[%s7720_s17 + $0xe8] sm:$0xff]  ;;  %307 = vst [vmem:[%s7725_s18 + $0xd8] sm:$0xff] %v306_v27  ;;  %v312_v30 = vld [vmem:[%s7720_s17 + $0xf0] sm:$0xff] }
  0x25   : > { %309 = vst [vmem:[%s7725_s18 + $0xe0] sm:$0xff] %v308_v28  ;;  %311 = vst [vmem:[%s7725_s18 + $0xe8] sm:$0xff] %v310_v29  ;;  %v314_v31 = vld [vmem:[%s7720_s17 + $0xf8] sm:$0xff]  ;;  %v316_v32 = vld [vmem:[%s7720_s17 + $0x200] sm:$0xff] }
  0x26   : > { %313 = vst [vmem:[%s7725_s18 + $0xf0] sm:$0xff] %v312_v30  ;;  %315 = vst [vmem:[%s7725_s18 + $0xf8] sm:$0xff] %v314_v31  ;;  %v318_v33 = vld [vmem:[%s7720_s17 + $0x208] sm:$0xff]  ;;  %v320_v34 = vld [vmem:[%s7720_s17 + $0x210] sm:$0xff] }
  0x27   : > { %317 = vst [vmem:[%s7725_s18 + $0x100] sm:$0xff] %v316_v32  ;;  %v322_v35 = vld [vmem:[%s7720_s17 + $0x218] sm:$0xff]  ;;  %319 = vst [vmem:[%s7725_s18 + $0x108] sm:$0xff] %v318_v33  ;;  %v324_v36 = vld [vmem:[%s7720_s17 + $0x220] sm:$0xff] }
  0x28   : > { %321 = vst [vmem:[%s7725_s18 + $0x110] sm:$0xff] %v320_v34  ;;  %323 = vst [vmem:[%s7725_s18 + $0x118] sm:$0xff] %v322_v35  ;;  %v326_v37 = vld [vmem:[%s7720_s17 + $0x228] sm:$0xff]  ;;  %v328_v38 = vld [vmem:[%s7720_s17 + $0x230] sm:$0xff] }
  0x29   : > { %325 = vst [vmem:[%s7725_s18 + $0x120] sm:$0xff] %v324_v36  ;;  %327 = vst [vmem:[%s7725_s18 + $0x128] sm:$0xff] %v326_v37  ;;  %v330_v39 = vld [vmem:[%s7720_s17 + $0x238] sm:$0xff]  ;;  %v332_v40 = vld [vmem:[%s7720_s17 + $0x240] sm:$0xff] }
  0x2a   : > { %329 = vst [vmem:[%s7725_s18 + $0x130] sm:$0xff] %v328_v38  ;;  %v334_v41 = vld [vmem:[%s7720_s17 + $0x248] sm:$0xff]  ;;  %331 = vst [vmem:[%s7725_s18 + $0x138] sm:$0xff] %v330_v39  ;;  %v336_v42 = vld [vmem:[%s7720_s17 + $0x250] sm:$0xff] }
  0x2b   : > { %333 = vst [vmem:[%s7725_s18 + $0x140] sm:$0xff] %v332_v40  ;;  %335 = vst [vmem:[%s7725_s18 + $0x148] sm:$0xff] %v334_v41  ;;  %v338_v43 = vld [vmem:[%s7720_s17 + $0x258] sm:$0xff]  ;;  %v340_v44 = vld [vmem:[%s7720_s17 + $0x260] sm:$0xff] }
  0x2c   : > { %337 = vst [vmem:[%s7725_s18 + $0x150] sm:$0xff] %v336_v42  ;;  %339 = vst [vmem:[%s7725_s18 + $0x158] sm:$0xff] %v338_v43  ;;  %v342_v45 = vld [vmem:[%s7720_s17 + $0x268] sm:$0xff]  ;;  %v344_v46 = vld [vmem:[%s7720_s17 + $0x270] sm:$0xff] }
  0x2d   : > { %341 = vst [vmem:[%s7725_s18 + $0x160] sm:$0xff] %v340_v44  ;;  %v346_v47 = vld [vmem:[%s7720_s17 + $0x278] sm:$0xff]  ;;  %343 = vst [vmem:[%s7725_s18 + $0x168] sm:$0xff] %v342_v45  ;;  %v348_v48 = vld [vmem:[%s7720_s17 + $0x280] sm:$0xff] }
  0x2e   : > { %345 = vst [vmem:[%s7725_s18 + $0x170] sm:$0xff] %v344_v46  ;;  %347 = vst [vmem:[%s7725_s18 + $0x178] sm:$0xff] %v346_v47  ;;  %v350_v49 = vld [vmem:[%s7720_s17 + $0x288] sm:$0xff]  ;;  %v352_v50 = vld [vmem:[%s7720_s17 + $0x290] sm:$0xff] }
  0x2f   : > { %349 = vst [vmem:[%s7725_s18 + $0x180] sm:$0xff] %v348_v48  ;;  %351 = vst [vmem:[%s7725_s18 + $0x188] sm:$0xff] %v350_v49  ;;  %v354_v51 = vld [vmem:[%s7720_s17 + $0x298] sm:$0xff]  ;;  %v356_v52 = vld [vmem:[%s7720_s17 + $0x2a0] sm:$0xff] }
  0x30   : > { %353 = vst [vmem:[%s7725_s18 + $0x190] sm:$0xff] %v352_v50  ;;  %v358_v53 = vld [vmem:[%s7720_s17 + $0x2a8] sm:$0xff]  ;;  %355 = vst [vmem:[%s7725_s18 + $0x198] sm:$0xff] %v354_v51  ;;  %v360_v54 = vld [vmem:[%s7720_s17 + $0x2b0] sm:$0xff] }
  0x31   : > { %357 = vst [vmem:[%s7725_s18 + $0x1a0] sm:$0xff] %v356_v52  ;;  %359 = vst [vmem:[%s7725_s18 + $0x1a8] sm:$0xff] %v358_v53  ;;  %v362_v55 = vld [vmem:[%s7720_s17 + $0x2b8] sm:$0xff]  ;;  %v364_v56 = vld [vmem:[%s7720_s17 + $0x2c0] sm:$0xff] }
  0x32   : > { %361 = vst [vmem:[%s7725_s18 + $0x1b0] sm:$0xff] %v360_v54  ;;  %363 = vst [vmem:[%s7725_s18 + $0x1b8] sm:$0xff] %v362_v55  ;;  %v366_v57 = vld [vmem:[%s7720_s17 + $0x2c8] sm:$0xff]  ;;  %v368_v58 = vld [vmem:[%s7720_s17 + $0x2d0] sm:$0xff] }
  0x33   : > { %365 = vst [vmem:[%s7725_s18 + $0x1c0] sm:$0xff] %v364_v56  ;;  %v370_v59 = vld [vmem:[%s7720_s17 + $0x2d8] sm:$0xff]  ;;  %367 = vst [vmem:[%s7725_s18 + $0x1c8] sm:$0xff] %v366_v57  ;;  %v372_v60 = vld [vmem:[%s7720_s17 + $0x2e0] sm:$0xff] }
  0x34   : > { %369 = vst [vmem:[%s7725_s18 + $0x1d0] sm:$0xff] %v368_v58  ;;  %371 = vst [vmem:[%s7725_s18 + $0x1d8] sm:$0xff] %v370_v59  ;;  %v374_v61 = vld [vmem:[%s7720_s17 + $0x2e8] sm:$0xff]  ;;  %v376_v62 = vld [vmem:[%s7720_s17 + $0x2f0] sm:$0xff] }
  0x35   : > { %373 = vst [vmem:[%s7725_s18 + $0x1e0] sm:$0xff] %v372_v60  ;;  %375 = vst [vmem:[%s7725_s18 + $0x1e8] sm:$0xff] %v374_v61  ;;  %v378_v63 = vld [vmem:[%s7720_s17 + $0x2f8] sm:$0xff] }
  0x36   : > { %377 = vst [vmem:[%s7725_s18 + $0x1f0] sm:$0xff] %v376_v62  ;;  %379 = vst [vmem:[%s7725_s18 + $0x1f8] sm:$0xff] %v378_v63 }
  0x37 PF: > { %385 = sbr.rel (!%p7691_p4) target bundleno = 67 (0x43), region = 59  ;;  %s387_s19 = sand.u32 (%p7691_p4), 1, %s7596_s23  }
  0x38   : > { %s6905_s20 = sshll.u32 (%p7691_p4), %s7604_s25, 6  ;;  %s5704_s27 = sshll.u32 (%p7691_p4), %s387_s19, 7 }
  0x39   : > { %s7859_s9 = scalar_lea.vmem (%p7691_p4), %s11427_s1, %s6905_s20  ;;  %s389_s7 = scalar_lea.vmem (%p7691_p4), [#allocation3], %s5704_s27 }
  0x3a   : > { %v409_v0 = vld [vmem:[%s7859_s9] sm:$0xff] (%p7691_p4)  ;;  %v411_v1 = vld [vmem:[%s7859_s9 + $0x8] sm:$0xff] (%p7691_p4)  ;;  %v413_v2 = vld [vmem:[%s7859_s9 + $0x10] sm:$0xff] (%p7691_p4) }
  0x3b   : > { %410 = vst [vmem:[%s389_s7] sm:$0xff] (%p7691_p4), %v409_v0  ;;  %412 = vst [vmem:[%s389_s7 + $0x8] sm:$0xff] (%p7691_p4), %v411_v1  ;;  %v415_v3 = vld [vmem:[%s7859_s9 + $0x18] sm:$0xff] (%p7691_p4)  ;;  %v417_v4 = vld [vmem:[%s7859_s9 + $0x20] sm:$0xff] (%p7691_p4) }
  0x3c   : > { %414 = vst [vmem:[%s389_s7 + $0x10] sm:$0xff] %v413_v2  ;;  %v419_v5 = vld [vmem:[%s7859_s9 + $0x28] sm:$0xff]  ;;  %416 = vst [vmem:[%s389_s7 + $0x18] sm:$0xff] %v415_v3  ;;  %v421_v6 = vld [vmem:[%s7859_s9 + $0x30] sm:$0xff] }
  0x3d   : > { %418 = vst [vmem:[%s389_s7 + $0x20] sm:$0xff] %v417_v4  ;;  %420 = vst [vmem:[%s389_s7 + $0x28] sm:$0xff] %v419_v5  ;;  %v423_v7 = vld [vmem:[%s7859_s9 + $0x38] sm:$0xff]  ;;  %v425_v8 = vld [vmem:[%s7859_s9 + $0x80] sm:$0xff] }
  0x3e   : > { %422 = vst [vmem:[%s389_s7 + $0x30] sm:$0xff] %v421_v6  ;;  %424 = vst [vmem:[%s389_s7 + $0x38] sm:$0xff] %v423_v7  ;;  %v427_v9 = vld [vmem:[%s7859_s9 + $0x88] sm:$0xff]  ;;  %v429_v10 = vld [vmem:[%s7859_s9 + $0x90] sm:$0xff] }
  0x3f   : > { %426 = vst [vmem:[%s389_s7 + $0x40] sm:$0xff] %v425_v8  ;;  %v431_v11 = vld [vmem:[%s7859_s9 + $0x98] sm:$0xff]  ;;  %428 = vst [vmem:[%s389_s7 + $0x48] sm:$0xff] %v427_v9  ;;  %v433_v12 = vld [vmem:[%s7859_s9 + $0xa0] sm:$0xff] }
  0x40   : > { %430 = vst [vmem:[%s389_s7 + $0x50] sm:$0xff] %v429_v10  ;;  %432 = vst [vmem:[%s389_s7 + $0x58] sm:$0xff] %v431_v11  ;;  %v435_v13 = vld [vmem:[%s7859_s9 + $0xa8] sm:$0xff]  ;;  %v437_v14 = vld [vmem:[%s7859_s9 + $0xb0] sm:$0xff] }
  0x41   : > { %434 = vst [vmem:[%s389_s7 + $0x60] sm:$0xff] %v433_v12  ;;  %436 = vst [vmem:[%s389_s7 + $0x68] sm:$0xff] %v435_v13  ;;  %v439_v15 = vld [vmem:[%s7859_s9 + $0xb8] sm:$0xff] }
  0x42   : > { %438 = vst [vmem:[%s389_s7 + $0x70] sm:$0xff] %v437_v14  ;;  %440 = vst [vmem:[%s389_s7 + $0x78] sm:$0xff] %v439_v15 }
  0x43 PF: > { %p5708_p11 = scmp.ge.s32.totalorder %s7608_s26, 1  ;;  %p445_p12 = scmp.lt.s32.totalorder %s7608_s26, 3 }
  0x45   : > { %p446_p13 = pnand %p5708_p11, %p445_p12 }
  0x47   : > { %449 = sbr.rel (%p446_p13) target bundleno = 1199 (0x4af), region = 82 }
  0x4c   : > { %v6976_v16 = vld [vmem:[%s11428_s2 + $0x74] ss:$8 sps:$4 sm:$0xff]   ;;  %v6980_v18 = vld [vmem:[%s11428_s2 + $0x70] ss:$8 sps:$4 sm:$0xff]   ;;  %s7892_s20 = sand.u32 1, %s7592_s22   ;;  %vm642_vm0 = vcmask 1040384  }
  0x4d   : > { %v6978_v17 = vld [vmem:[%s11428_s2 + $0x174] ss:$8 sps:$4 sm:$0xff]   ;;  %1933 = vmatprep.subr.bf16.mxu0 %v6976_v16  ;;  %v6981_v19 = vld [vmem:[%s11428_s2 + $0x170] ss:$8 sps:$4 sm:$0xff]   ;;  %v6982_v20 = vld [vmem:[%s11428_s2 + $0x64] ss:$8 sps:$4 sm:$0xff]  }
  0x4e   : > { %2126 = vmatprep.subr.bf16.mxu1 %v6978_v17  ;;  %1934 = vmatpush1.bf16.msra.mxu0 %v6980_v18  ;;  %v6984_v21 = vld [vmem:[%s11428_s2 + $0x164] ss:$8 sps:$4 sm:$0xff]   ;;  %v6986_v22 = vld [vmem:[%s11428_s2 + $0x60] ss:$8 sps:$4 sm:$0xff]   ;;  %v6988_v24 = vld [vmem:[%s11428_s2 + $0x54] ss:$8 sps:$4 sm:$0xff]  }
  0x4f   : > { %2127 = vmatpush1.bf16.msra.mxu1 %v6981_v19  ;;  %1935 = vmatprep.subr.bf16.mxu0 %v6982_v20  ;;  %v6987_v23 = vld [vmem:[%s11428_s2 + $0x160] ss:$8 sps:$4 sm:$0xff]   ;;  %v6990_v25 = vld [vmem:[%s11428_s2 + $0x154] ss:$8 sps:$4 sm:$0xff]   ;;  %v6992_v26 = vld [vmem:[%s11428_s2 + $0x50] ss:$8 sps:$4 sm:$0xff]  }
  0x50   : > { %2128 = vmatprep.subr.bf16.mxu1 %v6984_v21  ;;  %v6993_v27 = vld [vmem:[%s11428_s2 + $0x150] ss:$8 sps:$4 sm:$0xff]   ;;  %v6994_v28 = vld [vmem:[%s11428_s2 + $0x44] ss:$8 sps:$4 sm:$0xff]   ;;  %v6998_v30 = vld [vmem:[%s11428_s2 + $0x40] ss:$8 sps:$4 sm:$0xff]  }
  0x51   : > { %v6996_v29 = vld [vmem:[%s11428_s2 + $0x144] ss:$8 sps:$4 sm:$0xff]   ;;  %v6999_v31 = vld [vmem:[%s11428_s2 + $0x140] ss:$8 sps:$4 sm:$0xff]   ;;  %v7000_v32 = vld [vmem:[%s11428_s2 + $0x34] ss:$8 sps:$4 sm:$0xff]  }
  0x52   : > { %1936 = vmatpush1.bf16.msra.mxu0 %v6986_v22  ;;  %v7002_v33 = vld [vmem:[%s11428_s2 + $0x134] ss:$8 sps:$4 sm:$0xff]   ;;  %v7004_v34 = vld [vmem:[%s11428_s2 + $0x30] ss:$8 sps:$4 sm:$0xff]   ;;  %v7006_v36 = vld [vmem:[%s11428_s2 + $0x24] ss:$8 sps:$4 sm:$0xff]  }
  0x53   : > { %2129 = vmatpush1.bf16.msra.mxu1 %v6987_v23  ;;  %1937 = vmatprep.subr.bf16.mxu0 %v6988_v24  ;;  %v7005_v35 = vld [vmem:[%s11428_s2 + $0x130] ss:$8 sps:$4 sm:$0xff]   ;;  %v7008_v37 = vld [vmem:[%s11428_s2 + $0x124] ss:$8 sps:$4 sm:$0xff]   ;;  %v7010_v38 = vld [vmem:[%s11428_s2 + $0x20] ss:$8 sps:$4 sm:$0xff]  }
  0x54   : > { %2130 = vmatprep.subr.bf16.mxu1 %v6990_v25  ;;  %v7011_v39 = vld [vmem:[%s11428_s2 + $0x120] ss:$8 sps:$4 sm:$0xff]   ;;  %v7012_v40 = vld [vmem:[%s11428_s2 + $0x14] ss:$8 sps:$4 sm:$0xff]   ;;  %v7016_v42 = vld [vmem:[%s11428_s2 + $0x10] ss:$8 sps:$4 sm:$0xff]  }
  0x55   : > { %v7014_v41 = vld [vmem:[%s11428_s2 + $0x114] ss:$8 sps:$4 sm:$0xff]   ;;  %v7017_v43 = vld [vmem:[%s11428_s2 + $0x110] ss:$8 sps:$4 sm:$0xff]   ;;  %v7018_v44 = vld [vmem:[%s11428_s2 + $0x4] ss:$8 sps:$4 sm:$0xff]  }
  0x56   : > { %1938 = vmatpush1.bf16.msra.mxu0 %v6992_v26  ;;  %v7020_v45 = vld [vmem:[%s11428_s2 + $0x104] ss:$8 sps:$4 sm:$0xff]   ;;  %v7022_v46 = vld [vmem:[%s11428_s2] ss:$8 sps:$4 sm:$0xff]   ;;  %v7024_v48 = vld [vmem:[%s11428_s2 + $0xf4] ss:$8 sps:$4 sm:$0xff]  }
  0x57   : > { %2131 = vmatpush1.bf16.msra.mxu1 %v6993_v27  ;;  %1939 = vmatprep.subr.bf16.mxu0 %v6994_v28  ;;  %v7023_v47 = vld [vmem:[%s11428_s2 + $0x100] ss:$8 sps:$4 sm:$0xff]   ;;  %v7026_v49 = vld [vmem:[%s11428_s2 + $0x1f4] ss:$8 sps:$4 sm:$0xff]   ;;  %v7028_v50 = vld [vmem:[%s11428_s2 + $0xf0] ss:$8 sps:$4 sm:$0xff]  }
  0x58   : > { %2132 = vmatprep.subr.bf16.mxu1 %v6996_v29  ;;  %v7029_v51 = vld [vmem:[%s11428_s2 + $0x1f0] ss:$8 sps:$4 sm:$0xff]   ;;  %v7030_v52 = vld [vmem:[%s11428_s2 + $0xe4] ss:$8 sps:$4 sm:$0xff]   ;;  %v7034_v54 = vld [vmem:[%s11428_s2 + $0xe0] ss:$8 sps:$4 sm:$0xff]  }
  0x59   : > { %v7032_v53 = vld [vmem:[%s11428_s2 + $0x1e4] ss:$8 sps:$4 sm:$0xff]   ;;  %v7035_v55 = vld [vmem:[%s11428_s2 + $0x1e0] ss:$8 sps:$4 sm:$0xff]   ;;  %v7036_v56 = vld [vmem:[%s11428_s2 + $0xd4] ss:$8 sps:$4 sm:$0xff]  }
  0x5a   : > { %1940 = vmatpush1.bf16.msra.mxu0 %v6998_v30  ;;  %s5710_s16 = sshll.u32 %s7892_s20, 7  ;;  %v7038_v57 = vld [vmem:[%s11428_s2 + $0x1d4] ss:$8 sps:$4 sm:$0xff]   ;;  %v7040_v58 = vld [vmem:[%s11428_s2 + $0xd0] ss:$8 sps:$4 sm:$0xff]   ;;  %vm5904_vm1 = vmneg %vm642_vm0  ;;  %vm7610_vm2 = vmmov 1  }
  0x5b   : > { %2133 = vmatpush1.bf16.msra.mxu1 %v6999_v31  ;;  %1941 = vmatprep.subr.bf16.mxu0 %v7000_v32  ;;  %v7041_v59 = vld [vmem:[%s11428_s2 + $0x1d0] ss:$8 sps:$4 sm:$0xff]   ;;  %v7042_v60 = vld [vmem:[%s11428_s2 + $0xc4] ss:$8 sps:$4 sm:$0xff]   ;;  %s8021_s14 = scalar_lea.vmem [#allocation3], %s5710_s16  ;;  %vm8048_vm3 = vmpackc.low %vm7610_vm2, %vm5904_vm1  ;;  %s5709_s15 = sshll.u32 %s7892_s20, 9 }
  0x5c   : > { %2134 = vmatprep.subr.bf16.mxu1 %v7002_v33  ;;  %v7044_v61 = vld [vmem:[%s11428_s2 + $0x1c4] ss:$8 sps:$4 sm:$0xff]   ;;  %v7046_v63 = vld [vmem:[%s11428_s2 + $0xc0] ss:$8 sps:$4 sm:$0xff]   ;;  %v8030_v0 = vld [vmem:[%s8021_s14 + $0x18] sm:$0xff]  ;;  %s8087_s18 = scalar_lea.vmem [#allocation2], %s5709_s15 }
  0x5d   : > { %v8024_v62 = vld [vmem:[%s8021_s14 + $0x8] sm:$0xff]  ;;  %v1144_v3 = vrot.slane %v8030_v0, 7  ;;  %v7048_v5 = vld [vmem:[%s11428_s2 + $0xb4] ss:$8 sps:$4 sm:$0xff]   ;;  %v7052_v10 = vld [vmem:[%s11428_s2 + $0xb0] ss:$8 sps:$4 sm:$0xff]  }
  0x5e   : > { %1942 = vmatpush1.bf16.msra.mxu0 %v7004_v34  ;;  %v1141_v1 = vrot.slane %v8024_v62, 7  ;;  %v7047_v2 = vld [vmem:[%s11428_s2 + $0x1c0] ss:$8 sps:$4 sm:$0xff]   ;;  %v1245_v4 = vpack.c.bf16 %v8030_v0, %v8024_v62  ;;  %v7050_v6 = vld [vmem:[%s11428_s2 + $0x1b4] ss:$8 sps:$4 sm:$0xff]   ;;  %v1191_v32 = vrot.slane %v8024_v62, 1 }
  0x5f   : > { %2135 = vmatpush1.bf16.msra.mxu1 %v7005_v35  ;;  %1943 = vmatprep.subr.bf16.mxu0 %v7006_v36  ;;  %v7053_v11 = vld [vmem:[%s11428_s2 + $0x1b0] ss:$8 sps:$4 sm:$0xff]   ;;  %v7054_v12 = vld [vmem:[%s11428_s2 + $0xa4] ss:$8 sps:$4 sm:$0xff]   ;;  %v7058_v14 = vld [vmem:[%s11428_s2 + $0xa0] ss:$8 sps:$4 sm:$0xff]  }
  0x60   : > { %2136 = vmatprep.subr.bf16.mxu1 %v7008_v37  ;;  %v1145_v7 = vsel %vm642_vm0, %v1141_v1, %v1144_v3  ;;  %2158 = vmatprep.mubr.bf16.mxu1 %v1245_v4  ;;  %v7056_v13 = vld [vmem:[%s11428_s2 + $0x1a4] ss:$8 sps:$4 sm:$0xff]   ;;  %v7059_v15 = vld [vmem:[%s11428_s2 + $0x1a0] ss:$8 sps:$4 sm:$0xff]   ;;  %v7060_v16 = vld [vmem:[%s11428_s2 + $0x94] ss:$8 sps:$4 sm:$0xff]  }
  0x61   : > { %v5906_v9 = vpack.c.bf16 %v1145_v7, %v1141_v1  ;;  %v7062_v17 = vld [vmem:[%s11428_s2 + $0x194] ss:$8 sps:$4 sm:$0xff]   ;;  %v8080_v18 = vld [vmem:[%s8021_s14] sm:$0xff]  ;;  %v499_v20 = vld [vmem:[%s8087_s18 + $0x8] sm:$0xff]  ;;  %vm835_vm4 = vcmask 1046528   ;;  %s11193_s28 = scalar_lea.vmem [#allocation4], %s5709_s15 }
  0x62   : > { %1944 = vmatpush1.bf16.msra.mxu0 %v7010_v38  ;;  %v8083_v19 = vld [vmem:[%s8021_s14 + $0x10] sm:$0xff]  ;;  %v501_v21 = vld [vmem:[%s8087_s18 + $0x18] sm:$0xff]  ;;  %v1140_v24 = vrot.slane %v8080_v18, 7  ;;  %v7066_v26 = vld [vmem:[%s11428_s2 + $0x84] ss:$8 sps:$4 sm:$0xff]   ;;  %v644_v28 = vrot.slane %v499_v20, 7 }
  0x63   : > { %2137 = vmatpush1.bf16.msra.mxu1 %v7011_v39  ;;  %1945 = vmatprep.subr.bf16.mxu0 %v7012_v40  ;;  %v7064_v22 = vld [vmem:[%s11428_s2 + $0x90] ss:$8 sps:$4 sm:$0xff]   ;;  %v1142_v25 = vrot.slane %v8083_v19, 7  ;;  %v7068_v27 = vld [vmem:[%s11428_s2 + $0x184] ss:$8 sps:$4 sm:$0xff]   ;;  %v647_v29 = vrot.slane %v501_v21, 7  ;;  %vm8736_vm5 = vmpackc.low %vm835_vm4, %vm7610_vm2 }
  0x64   : > { %2138 = vmatprep.subr.bf16.mxu1 %v7014_v41  ;;  %5907 = vmatprep.mubr.msk.bf16.mxu0 %vm8048_vm3, %v5906_v9  ;;  %v7065_v23 = vld [vmem:[%s11428_s2 + $0x190] ss:$8 sps:$4 sm:$0xff]   ;;  %v7070_v30 = vld [vmem:[%s11428_s2 + $0x80] ss:$8 sps:$4 sm:$0xff]   ;;  %v7074_v34 = vld [vmem:[%s11428_s2 + $0x274] ss:$8 sps:$4 sm:$0xff]  }
  0x65   : > { %v7071_v31 = vld [vmem:[%s11428_s2 + $0x180] ss:$8 sps:$4 sm:$0xff]   ;;  %v1143_v33 = vsel %vm642_vm0, %v1140_v24, %v1142_v25  ;;  %v648_v35 = vsel %vm642_vm0, %v644_v28, %v647_v29  ;;  %v500_v37 = vld [vmem:[%s8087_s18 + $0x10] sm:$0xff]  ;;  %v1192_v39 = vrot.slane %v8030_v0, 1  ;;  %v505_v40 = vld [vmem:[%s8087_s18 + $0x38] sm:$0xff]  ;;  %s5553_s15 = scalar_lea.sflag [#allocation5], %s7892_s20 }
  0x66   : > { %1946 = vmatpush1.bf16.msra.mxu0 %v7016_v42  ;;  %v498_v36 = vld [vmem:[%s8087_s18] sm:$0xff]  ;;  %v503_v38 = vld [vmem:[%s8087_s18 + $0x28] sm:$0xff]  ;;  %v5910_v41 = vpack.c.bf16 %v1143_v33, %v1140_v24  ;;  %v1244_v42 = vpack.c.bf16 %v8083_v19, %v8080_v18  ;;  %v509_v62 = vld [vmem:[%s8087_s18 + $0x58] sm:$0xff] }
  0x67   : > { %2139 = vmatpush1.bf16.msra.mxu1 %v7017_v43  ;;  %1947 = vmatprep.subr.bf16.mxu0 %v7018_v44  ;;  %v7072_v43 = vld [vmem:[%s11428_s2 + $0x270] ss:$8 sps:$4 sm:$0xff]   ;;  %v8127_v44 = vpack.c.bf16 %v648_v35, %v644_v28  ;;  %v8165_v3 = vpack.c.bf16 %v505_v40, %v503_v38  ;;  %v7086_v24 = vld [vmem:[%s11428_s2 + $0x234] ss:$8 sps:$4 sm:$0xff]   ;;  %v7089_v35 = vld [vmem:[%s11428_s2 + $0x224] ss:$8 sps:$4 sm:$0xff]  }
  0x68   : > { %2140 = vmatprep.subr.bf16.mxu1 %v7020_v45  ;;  %v643_v45 = vrot.slane %v498_v36, 7  ;;  %v7099_v0 = vld [vmem:[%s11428_s2 + $0x370] ss:$8 sps:$4 sm:$0xff]   ;;  %v7425_v8 = vld [vmem:[%s11430_s4 + $0x24] ss:$8 sps:$4 sm:$0xff]  }
  0x69   : > { %11563 = vst [vmem:[#allocation11_spill] sm:$0xff] %v8165_v3  ;;  %v7108_v25 = vld [vmem:[%s11428_s2 + $0x350] ss:$8 sps:$4 sm:$0xff]  }
  0x6a   : > { %1948 = vmatpush1.bf16.msra.mxu0 %v7022_v46  ;;  %v645_v46 = vrot.slane %v500_v37, 7  ;;  %v7084_v33 = vld [vmem:[%s11428_s2 + $0x230] ss:$8 sps:$4 sm:$0xff]  }
  0x6b   : > { %2141 = vmatpush1.bf16.msra.mxu1 %v7023_v47  ;;  %1949 = vmatprep.subr.bf16.mxu0 %v7024_v48  ;;  %v1193_v47 = vsel %vm835_vm4, %v1191_v32, %v1192_v39  ;;  %v8130_v48 = vpack.c.bf16 %v501_v21, %v499_v20  ;;  %v7081_v21 = vld [vmem:[%s11428_s2 + $0x240] ss:$8 sps:$4 sm:$0xff]  }
  0x6c   : > { %2142 = vmatprep.subr.bf16.mxu1 %v7026_v49  ;;  %v7077_v49 = vld [vmem:[%s11428_s2 + $0x264] ss:$8 sps:$4 sm:$0xff]  }
  0x6d   : > { %11561 = vst [vmem:[#allocation9_spill] sm:$0xff] %v8130_v48 }
  0x6e   : > { %1950 = vmatpush2.bf16.msra.mxu0 %v7028_v50  ;;  %v650_v50 = vrot.slane %v503_v38, 7  ;;  %v510_v38 = vld [vmem:[%s8087_s18 + $0x60] sm:$0xff] }
  0x6f   : > { %2143 = vmatpush2.bf16.msra.mxu1 %v7029_v51  ;;  %1951 = vmatprep.subr.bf16.mxu0 %v7030_v52  ;;  %v653_v51 = vrot.slane %v505_v40, 7  ;;  %v1188_v52 = vrot.slane %v8080_v18, 1  ;;  %v508_v18 = vld [vmem:[%s8087_s18 + $0x50] sm:$0xff] }
  0x70   : > { %2144 = vmatprep.subr.bf16.mxu1 %v7032_v53  ;;  %v1189_v53 = vrot.slane %v8083_v19, 1  ;;  %v7110_v19 = vld [vmem:[%s11428_s2 + $0x354] ss:$8 sps:$4 sm:$0xff]  }
  0x71   : > { %v7119_v40 = vld [vmem:[%s11428_s2 + $0x334] ss:$8 sps:$4 sm:$0xff]  }
  0x72   : > { %1952 = vmatpush2.bf16.msra.mxu0 %v7034_v54  ;;  %v7075_v54 = vld [vmem:[%s11428_s2 + $0x260] ss:$8 sps:$4 sm:$0xff]   ;;  %v1190_v1 = vsel %vm835_vm4, %v1188_v52, %v1189_v53 }
  0x73   : > { %2145 = vmatpush2.bf16.msra.mxu1 %v7035_v55  ;;  %1953 = vmatprep.subr.bf16.mxu0 %v7036_v56  ;;  %v502_v55 = vld [vmem:[%s8087_s18 + $0x20] sm:$0xff]  ;;  %v8143_v56 = vpack.c.bf16 %v1192_v39, %v1193_v47  ;;  %v512_v39 = vld [vmem:[%s8087_s18 + $0x70] sm:$0xff] }
  0x74   : > { %2146 = vmatprep.subr.bf16.mxu1 %v7038_v57  ;;  %v646_v57 = vsel %vm642_vm0, %v643_v45, %v645_v46  ;;  %v649_v4 = vrot.slane %v502_v55, 7  ;;  %v7087_v46 = vld [vmem:[%s11428_s2 + $0x220] ss:$8 sps:$4 sm:$0xff]   ;;  %v7092_v47 = vld [vmem:[%s11428_s2 + $0x214] ss:$8 sps:$4 sm:$0xff]  }
  0x76   : > { %1954 = vmatpush2.bf16.msra.mxu0 %v7040_v58  ;;  %v504_v58 = vld [vmem:[%s8087_s18 + $0x30] sm:$0xff] }
  0x77   : > { %2147 = vmatpush2.bf16.msra.mxu1 %v7041_v59  ;;  %1955 = vmatprep.subr.bf16.mxu0 %v7042_v60  ;;  %v654_v59 = vsel %vm642_vm0, %v650_v50, %v653_v51  ;;  %v7080_v60 = vld [vmem:[%s11428_s2 + $0x254] ss:$8 sps:$4 sm:$0xff]   ;;  %v651_v9 = vrot.slane %v504_v58, 7 }
  0x78   : > { %2148 = vmatprep.subr.bf16.mxu1 %v7044_v61  ;;  %v507_v61 = vld [vmem:[%s8087_s18 + $0x48] sm:$0xff]  ;;  %v8172_v7 = vpack.c.bf16 %v654_v59, %v650_v50  ;;  %v7090_v59 = vld [vmem:[%s11428_s2 + $0x210] ss:$8 sps:$4 sm:$0xff]  }
  0x79   : > { %v8216_v28 = vpack.c.bf16 %v509_v62, %v507_v61 }
  0x7a   : > { %1956 = vmatpush2.bf16.msra.mxu0 %v7046_v63  ;;  %v8157_v63 = vpack.c.bf16 %v500_v37, %v498_v36  ;;  %11564 = vst [vmem:[#allocation12_spill] sm:$0xff] %v8172_v7  ;;  %v7113_v36 = vld [vmem:[%s11428_s2 + $0x344] ss:$8 sps:$4 sm:$0xff]   ;;  %v7111_v37 = vld [vmem:[%s11428_s2 + $0x340] ss:$8 sps:$4 sm:$0xff]  }
  0x7b   : > { %2149 = vmatpush2.bf16.msra.mxu1 %v7047_v2  ;;  %1957 = vmatprep.subr.bf16.mxu0 %v7048_v5  ;;  %v8163_v2 = vpack.c.bf16 %v646_v57, %v643_v45  ;;  %v7101_v5 = vld [vmem:[%s11428_s2 + $0x374] ss:$8 sps:$4 sm:$0xff]   ;;  %11567 = vst [vmem:[#allocation15_spill] sm:$0xff] %v8216_v28 }
  0x7c   : > { %2150 = vmatprep.subr.bf16.mxu1 %v7050_v6  ;;  %11562 = vst [vmem:[#allocation10_spill] sm:$0xff] %v8157_v63  ;;  %v8170_v6 = vpack.c.bf16 %v1189_v53, %v1190_v1  ;;  %v661_v53 = vrot.slane %v510_v38, 7 }
  0x7e   : > { %1958 = vmatpush2.bf16.msra.mxu0 %v7052_v10  ;;  %v7078_v10 = vld [vmem:[%s11428_s2 + $0x250] ss:$8 sps:$4 sm:$0xff]  }
  0x7f   : > { %2151 = vmatpush2.bf16.msra.mxu1 %v7053_v11  ;;  %1959 = vmatprep.subr.bf16.mxu0 %v7054_v12  ;;  %v656_v11 = vrot.slane %v507_v61, 7  ;;  %v659_v12 = vrot.slane %v509_v62, 7  ;;  %v7120_v61 = vld [vmem:[%s11428_s2 + $0x320] ss:$8 sps:$4 sm:$0xff]   ;;  %v7122_v62 = vld [vmem:[%s11428_s2 + $0x324] ss:$8 sps:$4 sm:$0xff]  }
  0x80   : > { %2152 = vmatprep.subr.bf16.mxu1 %v7056_v13  ;;  %v7083_v13 = vld [vmem:[%s11428_s2 + $0x244] ss:$8 sps:$4 sm:$0xff]  }
  0x81   : > { %v660_v20 = vsel %vm642_vm0, %v656_v11, %v659_v12  ;;  %v521_v12 = vld [vmem:[%s8087_s18 + $0xb8] sm:$0xff] }
  0x82   : > { %1960 = vmatpush2.bf16.msra.mxu0 %v7058_v14  ;;  %v7102_v14 = vld [vmem:[%s11428_s2 + $0x360] ss:$8 sps:$4 sm:$0xff]   ;;  %v8218_v29 = vpack.c.bf16 %v660_v20, %v656_v11 }
  0x83   : > { %2153 = vmatpush2.bf16.msra.mxu1 %v7059_v15  ;;  %1961 = vmatprep.subr.bf16.mxu0 %v7060_v16  ;;  %v7104_v15 = vld [vmem:[%s11428_s2 + $0x364] ss:$8 sps:$4 sm:$0xff]   ;;  %v7093_v11 = vld [vmem:[%s11428_s2 + $0x200] ss:$8 sps:$4 sm:$0xff]  }
  0x84   : > { %2154 = vmatprep.subr.bf16.mxu1 %v7062_v17  ;;  %v506_v16 = vld [vmem:[%s8087_s18 + $0x40] sm:$0xff]  ;;  %v652_v17 = vsel %vm642_vm0, %v649_v4, %v651_v9  ;;  %11568 = vst [vmem:[#allocation16_spill] sm:$0xff] %v8218_v29 }
  0x85   : > { %v8260_v51 = vpack.c.bf16 %v508_v18, %v506_v16 }
  0x86   : > { %1962 = vmatpush2.bf16.msra.mxu0 %v7064_v22  ;;  %v511_v22 = vld [vmem:[%s8087_s18 + $0x68] sm:$0xff] }
  0x87   : > { %2155 = vmatpush2.bf16.msra.mxu1 %v7065_v23  ;;  %1963 = vmatprep.subr.bf16.mxu0 %v7066_v26  ;;  %v513_v23 = vld [vmem:[%s8087_s18 + $0x78] sm:$0xff]  ;;  %v8212_v26 = vpack.c.bf16 %v652_v17, %v649_v4  ;;  %v662_v32 = vrot.slane %v511_v22, 7  ;;  %11570 = vst [vmem:[#allocation18_spill] sm:$0xff] %v8260_v51  ;;  %v514_v4 = vld [vmem:[%s8087_s18 + $0x80] sm:$0xff] }
  0x88   : > { %2156 = vmatprep.subr.bf16.mxu1 %v7068_v27  ;;  %v8214_v27 = vpack.c.bf16 %v504_v58, %v502_v55  ;;  %v8262_v52 = vpack.c.bf16 %v513_v23, %v511_v22  ;;  %v663_v55 = vrot.slane %v512_v39, 7  ;;  %v7096_v22 = vld [vmem:[%s11428_s2 + $0x2f0] ss:$8 sps:$4 sm:$0xff]  }
  0x89   : > { %11565 = vst [vmem:[#allocation13_spill] sm:$0xff] %v8212_v26 }
  0x8a   : > { %1964 = vmatpush2.bf16.msra.mxu0 %v7070_v30  ;;  %11566 = vst [vmem:[#allocation14_spill] sm:$0xff] %v8214_v27  ;;  %v655_v30 = vrot.slane %v506_v16, 7  ;;  %11571 = vst [vmem:[#allocation19_spill] sm:$0xff] %v8262_v52  ;;  %v664_v1 = vsel %vm642_vm0, %v661_v53, %v663_v55  ;;  %v8306_v16 = vpack.c.bf16 %v512_v39, %v510_v38  ;;  %v7105_v38 = vld [vmem:[%s11428_s2 + $0x2e0] ss:$8 sps:$4 sm:$0xff]  }
  0x8b   : > { %2157 = vmatpush2.bf16.msra.mxu1 %v7071_v31  ;;  %2319 = vmatprep.subr.bf16.mxu0 %v7074_v34  ;;  %v657_v31 = vrot.slane %v508_v18, 7  ;;  %v665_v34 = vrot.slane %v513_v23, 7  ;;  %v677_v23 = vrot.slane %v521_v12, 7  ;;  %v7116_v39 = vld [vmem:[%s11428_s2 + $0x2d4] ss:$8 sps:$4 sm:$0xff]  }
  0x8c   : > { %2992 = vmatprep.subr.bf16.mxu1 %v7101_v5  ;;  %v516_v5 = vld [vmem:[%s8087_s18 + $0x90] sm:$0xff]  ;;  %11574 = vst [vmem:[#allocation22_spill] sm:$0xff] %v8306_v16 }
  0x8d   : > { %5911 = vmatmul.mubr.msk.bf16.vlgmr.msra.gmra.mxu0 %vm8048_vm3, %v5910_v41  ;;  %v658_v41 = vsel %vm642_vm0, %v655_v30, %v657_v31  ;;  %v666_v45 = vsel %vm642_vm0, %v662_v32, %v665_v34  ;;  %v669_v20 = vrot.slane %v516_v5, 7  ;;  %v518_v31 = vld [vmem:[%s8087_s18 + $0xa0] sm:$0xff]  ;;  %v7114_v55 = vld [vmem:[%s11428_s2 + $0x2d0] ss:$8 sps:$4 sm:$0xff]  }
  0x8e   : > { %2159 = vmatmul.mubr.bf16.vlgmr.msra.gmra.mxu1 %v1244_v42  ;;  %2320 = vmatpush1.bf16.msra.mxu0 %v7072_v43  ;;  %v515_v42 = vld [vmem:[%s8087_s18 + $0x88] sm:$0xff]  ;;  %v517_v43 = vld [vmem:[%s8087_s18 + $0x98] sm:$0xff]  ;;  %v8258_v50 = vpack.c.bf16 %v658_v41, %v655_v30 }
  0x8f   : > { %5915 = vmatprep.mubr.msk.bf16.mxu0 %vm8048_vm3, %v8127_v44  ;;  %2168 = vmatprep.mubr.bf16.mxu1 %v8130_v48  ;;  %v668_v57 = vrot.slane %v515_v42, 7  ;;  %v671_v58 = vrot.slane %v517_v43, 7  ;;  %v8308_v17 = vpack.c.bf16 %v517_v43, %v515_v42  ;;  %v7129_v30 = vld [vmem:[%s11428_s2 + $0x300] ss:$8 sps:$4 sm:$0xff]   ;;  %v8352_v42 = vpack.c.bf16 %v516_v5, %v514_v4 }
  0x90   : > { %2321 = vmatprep.subr.bf16.mxu0 %v7077_v49  ;;  %2993 = vmatpush1.bf16.msra.mxu1 %v7099_v0  ;;  %v7117_v49 = vld [vmem:[%s11428_s2 + $0x330] ss:$8 sps:$4 sm:$0xff]   ;;  %11569 = vst [vmem:[#allocation17_spill] sm:$0xff] %v8258_v50  ;;  %v7128_v0 = vld [vmem:[%s11428_s2 + $0x314] ss:$8 sps:$4 sm:$0xff]  }
  0x91   : > { %2994 = vmatprep.subr.bf16.mxu1 %v7104_v15  ;;  %v672_v9 = vsel %vm642_vm0, %v668_v57, %v671_v58  ;;  %v8304_v15 = vpack.c.bf16 %v664_v1, %v661_v53  ;;  %11575 = vst [vmem:[#allocation23_spill] sm:$0xff] %v8308_v17  ;;  %11578 = vst [vmem:[#allocation26_spill] sm:$0xff] %v8352_v42  ;;  %v7138_v58 = vld [vmem:[%s11428_s2 + $0x3e0] ss:$8 sps:$4 sm:$0xff]  }
  0x92   : > { %2322 = vmatpush1.bf16.msra.mxu0 %v7075_v54  ;;  %v8264_v54 = vpack.c.bf16 %v666_v45, %v662_v32  ;;  %v8310_v18 = vpack.c.bf16 %v672_v9, %v668_v57  ;;  %v520_v32 = vld [vmem:[%s8087_s18 + $0xb0] sm:$0xff]  ;;  %v673_v45 = vrot.slane %v518_v31, 7  ;;  %v7125_v57 = vld [vmem:[%s11428_s2 + $0x2c4] ss:$8 sps:$4 sm:$0xff]   ;;  %v7123_v9 = vld [vmem:[%s11428_s2 + $0x2c0] ss:$8 sps:$4 sm:$0xff]  }
  0x93   : > { %2323 = vmatprep.subr.bf16.mxu0 %v7080_v60  ;;  %v7095_v60 = vld [vmem:[%s11428_s2 + $0x204] ss:$8 sps:$4 sm:$0xff]   ;;  %11573 = vst [vmem:[#allocation21_spill] sm:$0xff] %v8304_v15 }
  0x94   : > { %2995 = vmatpush1.bf16.msra.mxu1 %v7102_v14  ;;  %11572 = vst [vmem:[#allocation20_spill] sm:$0xff] %v8264_v54  ;;  %v7126_v14 = vld [vmem:[%s11428_s2 + $0x310] ss:$8 sps:$4 sm:$0xff]   ;;  %11576 = vst [vmem:[#allocation24_spill] sm:$0xff] %v8310_v18  ;;  %v8385_v1 = vld [vmem:[%s8021_s14 + $0x48] sm:$0xff] }
  0x95   : > { %5919 = vmatmul.mubr.msk.bf16.gmra.mxu0 %vm8048_vm3, %v8163_v2  ;;  %2996 = vmatprep.subr.bf16.mxu1 %v7110_v19  ;;  %v667_v19 = vrot.slane %v514_v4, 7  ;;  %v8388_v4 = vld [vmem:[%s8021_s14 + $0x58] sm:$0xff] }
  0x96   : > { %2169 = vmatmul.mubr.bf16.gmra.mxu1 %v8157_v63  ;;  %5923 = vmatprep.mubr.msk.bf16.mxu0 %vm8048_vm3, %v8172_v7  ;;  %v7461_v63 = vld [vmem:[%s8087_s18 + $0x38] sm:$0xff] }
  0x97   : > { %2178 = vmatprep.mubr.bf16.mxu1 %v8165_v3  ;;  %2324 = vmatpush1.bf16.msra.mxu0 %v7078_v10  ;;  %v519_v10 = vld [vmem:[%s8087_s18 + $0xa8] sm:$0xff]  ;;  %v670_v34 = vsel %vm642_vm0, %v667_v19, %v669_v20  ;;  %v846_v48 = vrot.slane %v7461_v63, 1 }
  0x98   : > { %2325 = vmatprep.subr.bf16.mxu0 %v7083_v13  ;;  %2997 = vmatpush1.bf16.msra.mxu1 %v7108_v25  ;;  %v7098_v13 = vld [vmem:[%s11428_s2 + $0x2f4] ss:$8 sps:$4 sm:$0xff]   ;;  %v7131_v25 = vld [vmem:[%s11428_s2 + $0x304] ss:$8 sps:$4 sm:$0xff]   ;;  %v8350_v41 = vpack.c.bf16 %v670_v34, %v667_v19  ;;  %v8354_v43 = vpack.c.bf16 %v521_v12, %v519_v10 }
  0x99   : > { %2998 = vmatprep.subr.bf16.mxu1 %v7113_v36  ;;  %v525_v36 = vld [vmem:[%s8087_s18 + $0xd8] sm:$0xff]  ;;  %v7460_v3 = vld [vmem:[%s8087_s18 + $0x28] sm:$0xff] }
  0x9a   : > { %11577 = vst [vmem:[#allocation25_spill] sm:$0xff] %v8350_v41  ;;  %11579 = vst [vmem:[#allocation27_spill] sm:$0xff] %v8354_v43  ;;  %v683_v53 = vrot.slane %v525_v36, 7  ;;  %v7155_v34 = vld [vmem:[%s11428_s2 + $0x3b4] ss:$8 sps:$4 sm:$0xff]  }
  0x9b   : > { %2326 = vmatpush1.bf16.msra.mxu0 %v7081_v21  ;;  %v674_v21 = vrot.slane %v519_v10, 7  ;;  %v7134_v10 = vld [vmem:[%s11428_s2 + $0x2b4] ss:$8 sps:$4 sm:$0xff]  }
  0x9c   : > { %2327 = vmatprep.subr.bf16.mxu0 %v7086_v24  ;;  %2999 = vmatpush1.bf16.msra.mxu1 %v7111_v37  ;;  %v7107_v24 = vld [vmem:[%s11428_s2 + $0x2e4] ss:$8 sps:$4 sm:$0xff]  }
  0x9d   : > { %5927 = vmatmul.mubr.msk.bf16.gmra.mxu0 %vm8048_vm3, %v8212_v26  ;;  %3000 = vmatprep.subr.bf16.mxu1 %v7119_v40  ;;  %v678_v37 = vsel %vm642_vm0, %v674_v21, %v677_v23  ;;  %v7135_v40 = vld [vmem:[%s11428_s2 + $0x3f0] ss:$8 sps:$4 sm:$0xff]  }
  0x9e   : > { %2179 = vmatmul.mubr.bf16.gmra.mxu1 %v8214_v27  ;;  %5931 = vmatprep.mubr.msk.bf16.mxu0 %vm8048_vm3, %v8218_v29  ;;  %v7132_v23 = vld [vmem:[%s11428_s2 + $0x2b0] ss:$8 sps:$4 sm:$0xff]  }
  0x9f   : > { %2188 = vmatprep.mubr.bf16.mxu1 %v8216_v28  ;;  %2328 = vmatpush1.bf16.msra.mxu0 %v7084_v33  ;;  %v7137_v33 = vld [vmem:[%s11428_s2 + $0x3f4] ss:$8 sps:$4 sm:$0xff]  }
  0xa0   : > { %2329 = vmatprep.subr.bf16.mxu0 %v7089_v35  ;;  %3001 = vmatpush1.bf16.msra.mxu1 %v7117_v49  ;;  %v523_v35 = vld [vmem:[%s8087_s18 + $0xc8] sm:$0xff]  ;;  %v7459_v27 = vld [vmem:[%s8087_s18 + $0x10] sm:$0xff] }
  0xa1   : > { %3002 = vmatprep.subr.bf16.mxu1 %v7122_v62  ;;  %v680_v49 = vrot.slane %v523_v35, 7  ;;  %v7146_v62 = vld [vmem:[%s11428_s2 + $0x3d4] ss:$8 sps:$4 sm:$0xff]  }
  0xa3   : > { %2330 = vmatpush1.bf16.msra.mxu0 %v7087_v46  ;;  %v8356_v46 = vpack.c.bf16 %v678_v37, %v674_v21  ;;  %v684_v5 = vsel %vm642_vm0, %v680_v49, %v683_v53  ;;  %v533_v37 = vld [vmem:[%s8087_s18 + $0x118] sm:$0xff] }
  0xa4   : > { %2331 = vmatprep.subr.bf16.mxu0 %v7092_v47  ;;  %3003 = vmatpush1.bf16.msra.mxu1 %v7120_v61  ;;  %v675_v47 = vrot.slane %v520_v32, 7  ;;  %v524_v61 = vld [vmem:[%s8087_s18 + $0xd0] sm:$0xff]  ;;  %v8406_v19 = vpack.c.bf16 %v684_v5, %v680_v49  ;;  %v695_v5 = vrot.slane %v533_v37, 7 }
  0xa5   : > { %5935 = vmatmul.mubr.msk.bf16.gmra.mxu0 %vm8048_vm3, %v8258_v50  ;;  %3004 = vmatprep.subr.bf16.mxu1 %v7128_v0  ;;  %11580 = vst [vmem:[#allocation28_spill] sm:$0xff] %v8356_v46  ;;  %v681_v21 = vrot.slane %v524_v61, 7 }
  0xa6   : > { %2189 = vmatmul.mubr.bf16.gmra.mxu1 %v8260_v51  ;;  %5939 = vmatprep.mubr.msk.bf16.mxu0 %vm8048_vm3, %v8264_v54  ;;  %v676_v0 = vsel %vm642_vm0, %v673_v45, %v675_v47  ;;  %11584 = vst [vmem:[#allocation32_spill] sm:$0xff] %v8406_v19 }
  0xa7   : > { %2198 = vmatprep.mubr.bf16.mxu1 %v8262_v52  ;;  %2332 = vmatpush1.bf16.msra.mxu0 %v7090_v59  ;;  %v7140_v59 = vld [vmem:[%s11428_s2 + $0x3e4] ss:$8 sps:$4 sm:$0xff]   ;;  %v8400_v12 = vpack.c.bf16 %v676_v0, %v673_v45  ;;  %v7153_v45 = vld [vmem:[%s11428_s2 + $0x3b0] ss:$8 sps:$4 sm:$0xff]  }
  0xa8   : > { %2333 = vmatprep.subr.bf16.mxu0 %v7095_v60  ;;  %3005 = vmatpush1.bf16.msra.mxu1 %v7126_v14  ;;  %v522_v60 = vld [vmem:[%s8087_s18 + $0xc0] sm:$0xff]  ;;  %v8404_v14 = vpack.c.bf16 %v525_v36, %v523_v35  ;;  %v531_v36 = vld [vmem:[%s8087_s18 + $0x108] sm:$0xff] }
  0xa9   : > { %3006 = vmatprep.subr.bf16.mxu1 %v7131_v25  ;;  %11581 = vst [vmem:[#allocation29_spill] sm:$0xff] %v8400_v12  ;;  %v679_v20 = vrot.slane %v522_v60, 7  ;;  %v7143_v25 = vld [vmem:[%s11428_s2 + $0x2a4] ss:$8 sps:$4 sm:$0xff]   ;;  %v8454_v49 = vpack.c.bf16 %v524_v61, %v522_v60  ;;  %v7156_v60 = vld [vmem:[%s11428_s2 + $0x3a0] ss:$8 sps:$4 sm:$0xff]  }
  0xaa   : > { %11583 = vst [vmem:[#allocation31_spill] sm:$0xff] %v8404_v14  ;;  %v7158_v61 = vld [vmem:[%s11428_s2 + $0x3a4] ss:$8 sps:$4 sm:$0xff]   ;;  %v692_v0 = vrot.slane %v531_v36, 7 }
  0xab   : > { %2334 = vmatpush1.bf16.msra.mxu0 %v7093_v11  ;;  %v7144_v11 = vld [vmem:[%s11428_s2 + $0x3d0] ss:$8 sps:$4 sm:$0xff]   ;;  %v682_v35 = vsel %vm642_vm0, %v679_v20, %v681_v21  ;;  %11586 = vst [vmem:[#allocation34_spill] sm:$0xff] %v8454_v49  ;;  %v1203_v21 = vrot.slane %v8385_v1, 1 }
  0xac   : > { %2335 = vmatprep.subr.bf16.mxu0 %v7098_v13  ;;  %3007 = vmatpush1.bf16.msra.mxu1 %v7129_v30  ;;  %v8402_v13 = vpack.c.bf16 %v520_v32, %v518_v31  ;;  %v7149_v30 = vld [vmem:[%s11428_s2 + $0x3c4] ss:$8 sps:$4 sm:$0xff]   ;;  %v7147_v32 = vld [vmem:[%s11428_s2 + $0x3c0] ss:$8 sps:$4 sm:$0xff]   ;;  %v8452_v47 = vpack.c.bf16 %v682_v35, %v679_v20  ;;  %v7164_v20 = vld [vmem:[%s11428_s2 + $0x394] ss:$8 sps:$4 sm:$0xff]  }
  0xad   : > { %5943 = vmatmul.mubr.msk.bf16.gmra.mxu0 %vm8048_vm3, %v8304_v15  ;;  %3008 = vmatprep.subr.bf16.mxu1 %v7137_v33  ;;  %v8420_v31 = vld [vmem:[%s8021_s14 + $0x40] sm:$0xff]  ;;  %v8430_v33 = vld [vmem:[%s8021_s14 + $0x50] sm:$0xff] }
  0xae   : > { %2199 = vmatmul.mubr.bf16.gmra.mxu1 %v8306_v16  ;;  %5947 = vmatprep.mubr.msk.bf16.mxu0 %vm8048_vm3, %v8310_v18  ;;  %11582 = vst [vmem:[#allocation30_spill] sm:$0xff] %v8402_v13  ;;  %11585 = vst [vmem:[#allocation33_spill] sm:$0xff] %v8452_v47  ;;  %v1152_v53 = vrot.slane %v8420_v31, 7  ;;  %v1200_v35 = vrot.slane %v8420_v31, 1 }
  0xaf   : > { %2208 = vmatprep.mubr.bf16.mxu1 %v8308_v17  ;;  %2336 = vmatpush2.bf16.msra.mxu0 %v7096_v22  ;;  %v1153_v22 = vrot.slane %v8385_v1, 7 }
  0xb0   : > { %2337 = vmatprep.subr.bf16.mxu0 %v7107_v24  ;;  %3009 = vmatpush2.bf16.msra.mxu1 %v7135_v40  ;;  %v1156_v24 = vrot.slane %v8388_v4, 7  ;;  %v7152_v40 = vld [vmem:[%s11428_s2 + $0x294] ss:$8 sps:$4 sm:$0xff]  }
  0xb1   : > { %3010 = vmatprep.subr.bf16.mxu1 %v7140_v59  ;;  %v1154_v59 = vrot.slane %v8430_v33, 7 }
  0xb3   : > { %2338 = vmatpush2.bf16.msra.mxu0 %v7105_v38  ;;  %v1157_v38 = vsel %vm642_vm0, %v1153_v22, %v1156_v24  ;;  %v535_v24 = vld [vmem:[%s8087_s18 + $0x128] sm:$0xff] }
  0xb4   : > { %2339 = vmatprep.subr.bf16.mxu0 %v7116_v39  ;;  %3011 = vmatpush2.bf16.msra.mxu1 %v7138_v58  ;;  %v7141_v39 = vld [vmem:[%s11428_s2 + $0x2a0] ss:$8 sps:$4 sm:$0xff]   ;;  %v1249_v58 = vpack.c.bf16 %v8388_v4, %v8385_v1  ;;  %v696_v1 = vsel %vm642_vm0, %v692_v0, %v695_v5 }
  0xb5   : > { %5951 = vmatmul.mubr.msk.bf16.gmra.mxu0 %vm8048_vm3, %v8350_v41  ;;  %3012 = vmatprep.subr.bf16.mxu1 %v7146_v62  ;;  %v7161_v62 = vld [vmem:[%s11428_s2 + $0x284] ss:$8 sps:$4 sm:$0xff]  }
  0xb6   : > { %2209 = vmatmul.mubr.bf16.gmra.mxu1 %v8352_v42  ;;  %5955 = vmatprep.mubr.msk.bf16.mxu0 %vm8048_vm3, %v8356_v46 }
  0xb7   : > { %2218 = vmatprep.mubr.bf16.mxu1 %v8354_v43  ;;  %2340 = vmatpush2.bf16.msra.mxu0 %v7114_v55  ;;  %v7150_v55 = vld [vmem:[%s11428_s2 + $0x290] ss:$8 sps:$4 sm:$0xff]  }
  0xb8   : > { %2341 = vmatprep.subr.bf16.mxu0 %v7125_v57  ;;  %3013 = vmatpush2.bf16.msra.mxu1 %v7144_v11  ;;  %v5970_v57 = vpack.c.bf16 %v1157_v38, %v1153_v22  ;;  %v7159_v11 = vld [vmem:[%s11428_s2 + $0x280] ss:$8 sps:$4 sm:$0xff]   ;;  %v1204_v22 = vrot.slane %v8388_v4, 1  ;;  %v1201_v38 = vrot.slane %v8430_v33, 1 }
  0xb9   : > { %3014 = vmatprep.subr.bf16.mxu1 %v7149_v30  ;;  %v7162_v30 = vld [vmem:[%s11428_s2 + $0x390] ss:$8 sps:$4 sm:$0xff]  }
  0xba   : > { %v1205_v4 = vsel %vm835_vm4, %v1203_v21, %v1204_v22 }
  0xbb   : > { %2342 = vmatpush2.bf16.msra.mxu0 %v7123_v9  ;;  %v530_v9 = vld [vmem:[%s8087_s18 + $0x100] sm:$0xff] }
  0xbc   : > { %2343 = vmatprep.subr.bf16.mxu0 %v7134_v10  ;;  %3015 = vmatpush2.bf16.msra.mxu1 %v7147_v32  ;;  %v532_v10 = vld [vmem:[%s8087_s18 + $0x110] sm:$0xff] }
  0xbd   : > { %5959 = vmatmul.mubr.msk.bf16.gmra.mxu0 %vm8048_vm3, %v8400_v12  ;;  %3016 = vmatprep.subr.bf16.mxu1 %v7155_v34  ;;  %v7170_v32 = vld [vmem:[%s11428_s2 + $0x474] ss:$8 sps:$4 sm:$0xff]   ;;  %v8499_v34 = vpack.c.bf16 %v1204_v22, %v1205_v4  ;;  %v8535_v22 = vpack.c.bf16 %v532_v10, %v530_v9 }
  0xbe   : > { %2219 = vmatmul.mubr.bf16.gmra.mxu1 %v8402_v13  ;;  %5963 = vmatprep.mubr.msk.bf16.mxu0 %vm8048_vm3, %v8406_v19 }
  0xbf   : > { %2228 = vmatprep.mubr.bf16.mxu1 %v8404_v14  ;;  %2344 = vmatpush2.bf16.msra.mxu0 %v7132_v23  ;;  %v1155_v23 = vsel %vm642_vm0, %v1152_v53, %v1154_v59  ;;  %v7165_v59 = vld [vmem:[%s11428_s2 + $0x380] ss:$8 sps:$4 sm:$0xff]   ;;  %11588 = vst [vmem:[#allocation36_spill] sm:$0xff] %v8535_v22  ;;  %v8671_v14 = vld [vmem:[%s8087_s18 + $0x1d8] sm:$0xff] }
  0xc0   : > { %2345 = vmatprep.subr.bf16.mxu0 %v7143_v25  ;;  %3017 = vmatpush2.bf16.msra.mxu1 %v7153_v45  ;;  %v537_v25 = vld [vmem:[%s8087_s18 + $0x138] sm:$0xff]  ;;  %v8505_v45 = vpack.c.bf16 %v533_v37, %v531_v36  ;;  %v731_v17 = vrot.slane %v8671_v14, 7 }
  0xc1   : > { %3018 = vmatprep.subr.bf16.mxu1 %v7158_v61  ;;  %v698_v61 = vrot.slane %v535_v24, 7  ;;  %v7197_v36 = vld [vmem:[%s11428_s2 + $0x574] ss:$8 sps:$4 sm:$0xff]  }
  0xc2   : > { %11587 = vst [vmem:[#allocation35_spill] sm:$0xff] %v8505_v45 }
  0xc3   : > { %2346 = vmatpush2.bf16.msra.mxu0 %v7141_v39  ;;  %v5974_v39 = vpack.c.bf16 %v1155_v23, %v1152_v53  ;;  %v701_v53 = vrot.slane %v537_v25, 7 }
  0xc4   : > { %2347 = vmatprep.subr.bf16.mxu0 %v7152_v40  ;;  %3019 = vmatpush2.bf16.msra.mxu1 %v7156_v60  ;;  %v1248_v40 = vpack.c.bf16 %v8430_v33, %v8420_v31  ;;  %v1202_v60 = vsel %vm835_vm4, %v1200_v35, %v1201_v38  ;;  %v7167_v31 = vld [vmem:[%s11428_s2 + $0x384] ss:$8 sps:$4 sm:$0xff]  }
  0xc5   : > { %5967 = vmatmul.mubr.msk.bf16.gmra.mxu0 %vm8048_vm3, %v8452_v47  ;;  %3020 = vmatprep.subr.bf16.mxu1 %v7164_v20  ;;  %v8516_v33 = vpack.c.bf16 %v1201_v38, %v1202_v60  ;;  %v702_v5 = vsel %vm642_vm0, %v698_v61, %v701_v53  ;;  %v541_v20 = vld [vmem:[%s8087_s18 + $0x158] sm:$0xff]  ;;  %v8558_v38 = vld [vmem:[%s8087_s18 + $0x168] sm:$0xff] }
  0xc6   : > { %2229 = vmatmul.mubr.bf16.gmra.mxu1 %v8454_v49  ;;  %5971 = vmatprep.mubr.msk.bf16.mxu0 %vm8048_vm3, %v5970_v57  ;;  %v8507_v57 = vpack.c.bf16 %v696_v1, %v692_v0  ;;  %v536_v0 = vld [vmem:[%s8087_s18 + $0x130] sm:$0xff]  ;;  %v8537_v23 = vpack.c.bf16 %v702_v5, %v698_v61  ;;  %v707_v35 = vrot.slane %v541_v20, 7  ;;  %v710_v53 = vrot.slane %v8558_v38, 7  ;;  %v8592_v5 = vld [vmem:[%s8087_s18 + $0x188] sm:$0xff] }
  0xc7   : > { %2238 = vmatprep.mubr.bf16.mxu1 %v1249_v58  ;;  %2348 = vmatpush2.bf16.msra.mxu0 %v7150_v55  ;;  %v691_v55 = vrot.slane %v530_v9, 7  ;;  %v693_v58 = vrot.slane %v532_v10, 7  ;;  %v699_v1 = vrot.slane %v536_v0, 7  ;;  %v8551_v10 = vld [vmem:[%s8087_s18 + $0x140] sm:$0xff]  ;;  %v8668_v49 = vld [vmem:[%s8087_s18 + $0x1c8] sm:$0xff] }
  0xc8   : > { %2349 = vmatprep.subr.bf16.mxu0 %v7161_v62  ;;  %3021 = vmatpush2.bf16.msra.mxu1 %v7162_v30  ;;  %v534_v62 = vld [vmem:[%s8087_s18 + $0x120] sm:$0xff]  ;;  %11589 = vst [vmem:[#allocation37_spill] sm:$0xff] %v8537_v23  ;;  %v8539_v30 = vpack.c.bf16 %v537_v25, %v535_v24  ;;  %v8554_v24 = vld [vmem:[%s8087_s18 + $0x150] sm:$0xff]  ;;  %v703_v60 = vrot.slane %v8551_v10, 7  ;;  %v728_v42 = vrot.slane %v8668_v49, 7 }
  0xc9   : > { %v694_v37 = vsel %vm642_vm0, %v691_v55, %v693_v58  ;;  %3022 = vmatprep.subr.bf16.mxu1 %v7167_v31  ;;  %v705_v61 = vrot.slane %v8554_v24, 7 }
  0xca   : > { %v8533_v21 = vpack.c.bf16 %v694_v37, %v691_v55  ;;  %11590 = vst [vmem:[#allocation38_spill] sm:$0xff] %v8539_v30  ;;  %v8565_v55 = vpack.c.bf16 %v536_v0, %v534_v62  ;;  %v8585_v37 = vld [vmem:[%s8087_s18 + $0x160] sm:$0xff] }
  0xcb   : > { %2350 = vmatpush2.bf16.msra.mxu0 %v7159_v11  ;;  %v539_v11 = vld [vmem:[%s8087_s18 + $0x148] sm:$0xff] }
  0xcc   : > { %3185 = vmatprep.subr.bf16.mxu0 %v7170_v32  ;;  %3023 = vmatpush2.bf16.msra.mxu1 %v7165_v59  ;;  %v697_v32 = vrot.slane %v534_v62, 7  ;;  %v704_v4 = vrot.slane %v539_v11, 7  ;;  %11592 = vst [vmem:[#allocation40_spill] sm:$0xff] %v8565_v55  ;;  %v8569_v59 = vpack.c.bf16 %v541_v20, %v539_v11  ;;  %v8588_v62 = vld [vmem:[%s8087_s18 + $0x170] sm:$0xff]  ;;  %v8595_v11 = vld [vmem:[%s8087_s18 + $0x198] sm:$0xff] }
  0xcd   : > { %5975 = vmatmul.mubr.msk.bf16.gmra.mxu0 %vm8048_vm3, %v5974_v39  ;;  %3378 = vmatprep.subr.bf16.mxu1 %v7197_v36  ;;  %v8561_v39 = vld [vmem:[%s8087_s18 + $0x178] sm:$0xff]  ;;  %v706_v36 = vsel %vm642_vm0, %v703_v60, %v705_v61 }
  0xce   : > { %2239 = vmatmul.mubr.bf16.gmra.mxu1 %v1248_v40  ;;  %5979 = vmatprep.mubr.msk.bf16.mxu0 %vm8048_vm3, %v8507_v57  ;;  %v700_v9 = vsel %vm642_vm0, %v697_v32, %v699_v1  ;;  %v708_v25 = vsel %vm642_vm0, %v704_v4, %v707_v35  ;;  %11594 = vst [vmem:[#allocation42_spill] sm:$0xff] %v8569_v59  ;;  %v713_v31 = vrot.slane %v8561_v39, 7  ;;  %v709_v35 = vrot.slane %v8585_v37, 7 }
  0xcf   : > { %2248 = vmatprep.mubr.bf16.mxu1 %v8505_v45  ;;  %v8563_v40 = vpack.c.bf16 %v700_v9, %v697_v32  ;;  %v8567_v58 = vpack.c.bf16 %v708_v25, %v704_v4  ;;  %v8597_v20 = vpack.c.bf16 %v706_v36, %v703_v60  ;;  %v8601_v32 = vpack.c.bf16 %v8554_v24, %v8551_v10 }
  0xd0   : > { %v714_v0 = vsel %vm642_vm0, %v710_v53, %v713_v31  ;;  %v8607_v4 = vpack.c.bf16 %v8561_v39, %v8558_v38  ;;  %v711_v9 = vrot.slane %v8588_v62, 7  ;;  %v716_v25 = vrot.slane %v8592_v5, 7  ;;  %v8626_v31 = vld [vmem:[%s8087_s18 + $0x190] sm:$0xff] }
  0xd1   : > { %11591 = vst [vmem:[#allocation39_spill] sm:$0xff] %v8563_v40  ;;  %11593 = vst [vmem:[#allocation41_spill] sm:$0xff] %v8567_v58  ;;  %v8603_v1 = vpack.c.bf16 %v714_v0, %v710_v53  ;;  %v719_v60 = vrot.slane %v8595_v11, 7  ;;  %v8623_v53 = vld [vmem:[%s8087_s18 + $0x180] sm:$0xff]  ;;  %v8630_v0 = vld [vmem:[%s8087_s18 + $0x1a8] sm:$0xff] }
  0xd2   : > { %11595 = vst [vmem:[#allocation43_spill] sm:$0xff] %v8597_v20  ;;  %11596 = vst [vmem:[#allocation44_spill] sm:$0xff] %v8601_v32  ;;  %v712_v61 = vsel %vm642_vm0, %v709_v35, %v711_v9  ;;  %v8677_v13 = vpack.c.bf16 %v8626_v31, %v8623_v53 }
  0xd3   : > { %11597 = vst [vmem:[#allocation45_spill] sm:$0xff] %v8603_v1  ;;  %11598 = vst [vmem:[#allocation46_spill] sm:$0xff] %v8607_v4  ;;  %v720_v36 = vsel %vm642_vm0, %v716_v25, %v719_v60  ;;  %v715_v60 = vrot.slane %v8623_v53, 7 }
  0xd4   : > { %v8641_v9 = vpack.c.bf16 %v720_v36, %v716_v25  ;;  %v8664_v36 = vld [vmem:[%s8087_s18 + $0x1b0] sm:$0xff]  ;;  %11604 = vst [vmem:[#allocation52_spill] sm:$0xff] %v8677_v13 }
  0xd5   : > { %5983 = vmatmul.mubr.msk.bf16.gmra.mxu0 %vm8048_vm3, %v8533_v21  ;;  %v723_v43 = vrot.slane %v8664_v36, 7 }
  0xd6   : > { %2249 = vmatmul.mubr.bf16.gmra.mxu1 %v8535_v22  ;;  %5987 = vmatprep.mubr.msk.bf16.mxu0 %vm8048_vm3, %v8537_v23  ;;  %11601 = vst [vmem:[#allocation49_spill] sm:$0xff] %v8641_v9  ;;  %v722_v22 = vrot.slane %v8630_v0, 7 }
  0xd7   : > { %2258 = vmatprep.mubr.bf16.mxu1 %v8539_v30  ;;  %v717_v30 = vrot.slane %v8626_v31, 7 }
  0xd9   : > { %v718_v25 = vsel %vm642_vm0, %v715_v60, %v717_v30 }
  0xdd   : > { %5991 = vmatmul.mubr.msk.bf16.gmra.mxu0 %vm8048_vm3, %v8563_v40 }
  0xde   : > { %2259 = vmatmul.mubr.bf16.gmra.mxu1 %v8565_v55  ;;  %5995 = vmatprep.mubr.msk.bf16.mxu0 %vm8048_vm3, %v8567_v58  ;;  %v8645_v55 = vpack.c.bf16 %v8595_v11, %v8592_v5 }
  0xdf   : > { %2268 = vmatprep.mubr.bf16.mxu1 %v8569_v59  ;;  %v8633_v59 = vld [vmem:[%s8087_s18 + $0x1b8] sm:$0xff] }
  0xe0   : > { %11602 = vst [vmem:[#allocation50_spill] sm:$0xff] %v8645_v55  ;;  %v8683_v30 = vpack.c.bf16 %v8633_v59, %v8630_v0 }
  0xe2   : > { %11606 = vst [vmem:[#allocation54_spill] sm:$0xff] %v8683_v30 }
  0xe5   : > { %5999 = vmatmul.mubr.msk.bf16.gmra.mxu0 %vm8048_vm3, %v8597_v20 }
  0xe6   : > { %2269 = vmatmul.mubr.bf16.gmra.mxu1 %v8601_v32  ;;  %6003 = vmatprep.mubr.msk.bf16.mxu0 %vm8048_vm3, %v8603_v1  ;;  %v8635_v32 = vpack.c.bf16 %v712_v61, %v709_v35  ;;  %v725_v35 = vrot.slane %v8633_v59, 7  ;;  %v8661_v61 = vld [vmem:[%s8087_s18 + $0x1a0] sm:$0xff] }
  0xe7   : > { %2278 = vmatprep.mubr.bf16.mxu1 %v8607_v4  ;;  %v8639_v4 = vpack.c.bf16 %v8588_v62, %v8585_v37 }
  0xe8   : > { %11599 = vst [vmem:[#allocation47_spill] sm:$0xff] %v8635_v32  ;;  %v726_v45 = vsel %vm642_vm0, %v722_v22, %v725_v35  ;;  %v721_v35 = vrot.slane %v8661_v61, 7 }
  0xe9   : > { %11600 = vst [vmem:[#allocation48_spill] sm:$0xff] %v8639_v4 }
  0xed   : > { %6007 = vmatmul.mubr.msk.bf16.gmra.mxu0 %vm8048_vm3, %v8635_v32 }
  0xee   : > { %2279 = vmatmul.mubr.bf16.gmra.mxu1 %v8639_v4  ;;  %6011 = vmatprep.mubr.msk.bf16.mxu0 %vm8048_vm3, %v8641_v9  ;;  %v8673_v4 = vpack.c.bf16 %v718_v25, %v715_v60  ;;  %v732_v60 = vsel %vm642_vm0, %v728_v42, %v731_v17  ;;  %v8703_v25 = vld [vmem:[%s8087_s18 + $0x1d0] sm:$0xff] }
  0xef   : > { %2288 = vmatprep.mubr.bf16.mxu1 %v8645_v55  ;;  %v8679_v55 = vpack.c.bf16 %v726_v45, %v722_v22  ;;  %v724_v45 = vsel %vm642_vm0, %v721_v35, %v723_v43  ;;  %v8699_v22 = vld [vmem:[%s8087_s18 + $0x1c0] sm:$0xff]  ;;  %11608 = vst [vmem:[#allocation56_spill] sm:$0xff] %v8703_v25  ;;  %v8711_v52 = vpack.c.bf16 %v732_v60, %v728_v42  ;;  %v729_v17 = vrot.slane %v8703_v25, 7 }
  0xf0   : > { %11603 = vst [vmem:[#allocation51_spill] sm:$0xff] %v8673_v4  ;;  %11607 = vst [vmem:[#allocation55_spill] sm:$0xff] %v8699_v22  ;;  %v8705_v16 = vpack.c.bf16 %v724_v45, %v721_v35  ;;  %v727_v43 = vrot.slane %v8699_v22, 7  ;;  %v8732_v45 = vpack.c.bf16 %v8703_v25, %v8699_v22  ;;  %v7174_v25 = vld [vmem:[%s11428_s2 + $0x450] ss:$8 sps:$4 sm:$0xff]  }
  0xf1   : > { %11605 = vst [vmem:[#allocation53_spill] sm:$0xff] %v8679_v55  ;;  %11611 = vst [vmem:[#allocation59_spill] sm:$0xff] %v8711_v52  ;;  %v7465_v22 = vld [vmem:[%s8087_s18 + $0x58] sm:$0xff] }
  0xf2   : > { %11609 = vst [vmem:[#allocation57_spill] sm:$0xff] %v8705_v16  ;;  %v730_v42 = vsel %vm642_vm0, %v727_v43, %v729_v17  ;;  %11614 = vst [vmem:[#allocation62_spill] sm:$0xff] %v8732_v45 }
  0xf3   : > { %v8728_v35 = vpack.c.bf16 %v730_v42, %v727_v43  ;;  %v7173_v43 = vld [vmem:[%s11428_s2 + $0x464] ss:$8 sps:$4 sm:$0xff]  }
  0xf4   : > { %v7458_v42 = vld [vmem:[%s8087_s18] sm:$0xff] }
  0xf5   : > { %6015 = vmatmul.mubr.msk.bf16.gmra.mxu0 %vm8048_vm3, %v8673_v4  ;;  %11613 = vst [vmem:[#allocation61_spill] sm:$0xff] %v8728_v35 }
  0xf6   : > { %2289 = vmatmul.mubr.bf16.gmra.mxu1 %v8677_v13  ;;  %6019 = vmatprep.mubr.msk.bf16.mxu0 %vm8048_vm3, %v8679_v55  ;;  %v8709_v13 = vpack.c.bf16 %v8664_v36, %v8661_v61 }
  0xf7   : > { %2298 = vmatprep.mubr.bf16.mxu1 %v8683_v30  ;;  %v8715_v30 = vpack.c.bf16 %v8671_v14, %v8668_v49 }
  0xf8   : > { %11610 = vst [vmem:[#allocation58_spill] sm:$0xff] %v8709_v13 }
  0xf9   : > { %11612 = vst [vmem:[#allocation60_spill] sm:$0xff] %v8715_v30 }
  0xfd   : > { %6023 = vmatmul.mubr.msk.bf16.gmra.mxu0 %vm8048_vm3, %v8705_v16 }
  0xfe   : > { %2299 = vmatmul.mubr.bf16.gmra.mxu1 %v8709_v13  ;;  %6027 = vmatprep.mubr.msk.bf16.mxu0 %vm8048_vm3, %v8711_v52  ;;  %v7456_v13 = vld [vmem:[%s8087_s18 + $0x8] sm:$0xff] }
  0xff   : > { %2308 = vmatprep.mubr.bf16.mxu1 %v8715_v30  ;;  %v839_v51 = vrot.slane %v7456_v13, 1  ;;  %v7457_v30 = vld [vmem:[%s8087_s18 + $0x18] sm:$0xff] }
 0x100   : > { %v840_v28 = vrot.slane %v7457_v30, 1  ;;  %v7168_v30 = vld [vmem:[%s11428_s2 + $0x470] ss:$8 sps:$4 sm:$0xff]  }
 0x102   : > { %v841_v13 = vsel %vm835_vm4, %v839_v51, %v840_v28  ;;  %v845_v51 = vrot.slane %v7460_v3, 1  ;;  %v7176_v3 = vld [vmem:[%s11428_s2 + $0x454] ss:$8 sps:$4 sm:$0xff]  }
 0x103   : > { %v8759_v17 = vpack.c.bf16 %v840_v28, %v841_v13  ;;  %v7171_v28 = vld [vmem:[%s11428_s2 + $0x460] ss:$8 sps:$4 sm:$0xff]  }
 0x104   : > { %v7462_v13 = vld [vmem:[%s8087_s18 + $0x20] sm:$0xff] }
 0x105   : > { %6031 = vmatmul.mubr.msk.bf16.gmra.mxu0 %vm8048_vm3, %v8728_v35  ;;  %11617 = vst [vmem:[#allocation63_spill] sm:$0xff] %v8759_v17  ;;  %v7200_v35 = vld [vmem:[%s11428_s2 + $0x564] ss:$8 sps:$4 sm:$0xff]  }
 0x106   : > { %2309 = vmatmul.mubr.bf16.gmra.mxu1 %v8732_v45  ;;  %6034 = vmatprep.mubr.msk.bf16.mxu0 %vm8736_vm5, %v8143_v56  ;;  %v836_v45 = vrot.slane %v7458_v42, 1  ;;  %v837_v56 = vrot.slane %v7459_v27, 1  ;;  %v7463_v42 = vld [vmem:[%s8087_s18 + $0x30] sm:$0xff] }
 0x107   : > { %6227 = vmatprep.mubr.msk.bf16.mxu1 %vm8048_vm3, %v8127_v44  ;;  %v7195_v44 = vld [vmem:[%s11428_s2 + $0x570] ss:$8 sps:$4 sm:$0xff]  }
 0x108   : > { %v838_v63 = vsel %vm835_vm4, %v836_v45, %v837_v56 }
 0x109   : > { %v8794_v27 = vpack.c.bf16 %v837_v56, %v838_v63  ;;  %v7204_v56 = vld [vmem:[%s11428_s2 + $0x550] ss:$8 sps:$4 sm:$0xff]   ;;  %v7182_v63 = vld [vmem:[%s11428_s2 + $0x434] ss:$8 sps:$4 sm:$0xff]  }
 0x10d   : > { %6037 = vmatmul.mubr.msk.bf16.vlgmr.msra.gmra.mxu0 %vm8736_vm5, %v8170_v6  ;;  %v7198_v6 = vld [vmem:[%s11428_s2 + $0x560] ss:$8 sps:$4 sm:$0xff]  }
 0x10e   : > { %6231 = vmatmul.mubr.msk.bf16.vlgmr.msra.gmra.mxu1 %vm8048_vm3, %v8163_v2  ;;  %3186 = vmatpush1.bf16.msra.mxu0 %v7168_v30  ;;  %v847_v2 = vsel %vm835_vm4, %v845_v51, %v846_v48  ;;  %v842_v30 = vrot.slane %v7462_v13, 1  ;;  %v852_v51 = vrot.slane %v7465_v22, 1 }
 0x10f   : > { %6040 = vmatprep.mubr.msk.bf16.mxu0 %vm8736_vm5, %v8759_v17  ;;  %6235 = vmatprep.mubr.msk.bf16.mxu1 %vm8048_vm3, %v8172_v7  ;;  %v8796_v45 = vpack.c.bf16 %v846_v48, %v847_v2  ;;  %v843_v17 = vrot.slane %v7463_v42, 1  ;;  %v7464_v7 = vld [vmem:[%s8087_s18 + $0x48] sm:$0xff]  ;;  %v7466_v2 = vld [vmem:[%s8087_s18 + $0x40] sm:$0xff] }
 0x110   : > { %3187 = vmatprep.subr.bf16.mxu0 %v7173_v43  ;;  %3379 = vmatpush1.bf16.msra.mxu1 %v7195_v44  ;;  %v851_v43 = vrot.slane %v7464_v7, 1  ;;  %v7179_v48 = vld [vmem:[%s11428_s2 + $0x444] ss:$8 sps:$4 sm:$0xff]   ;;  %v848_v13 = vrot.slane %v7466_v2, 1  ;;  %v7216_v2 = vld [vmem:[%s11428_s2 + $0x520] ss:$8 sps:$4 sm:$0xff]  }
 0x111   : > { %3380 = vmatprep.subr.bf16.mxu1 %v7200_v35  ;;  %11618 = vst [vmem:[#allocation64_spill] sm:$0xff] %v8796_v45  ;;  %v7206_v35 = vld [vmem:[%s11428_s2 + $0x554] ss:$8 sps:$4 sm:$0xff]   ;;  %v7209_v7 = vld [vmem:[%s11428_s2 + $0x544] ss:$8 sps:$4 sm:$0xff]   ;;  %v844_v22 = vsel %vm835_vm4, %v842_v30, %v843_v17 }
 0x112   : > { %3188 = vmatpush1.bf16.msra.mxu0 %v7171_v28  ;;  %v853_v44 = vsel %vm835_vm4, %v851_v43, %v852_v51  ;;  %v7177_v28 = vld [vmem:[%s11428_s2 + $0x440] ss:$8 sps:$4 sm:$0xff]   ;;  %v7467_v30 = vld [vmem:[%s8087_s18 + $0x50] sm:$0xff] }
 0x113   : > { %3189 = vmatprep.subr.bf16.mxu0 %v7176_v3  ;;  %v7207_v3 = vld [vmem:[%s11428_s2 + $0x540] ss:$8 sps:$4 sm:$0xff]   ;;  %v849_v42 = vrot.slane %v7467_v30, 1 }
 0x114   : > { %3381 = vmatpush1.bf16.msra.mxu1 %v7198_v6  ;;  %v8842_v6 = vpack.c.bf16 %v852_v51, %v853_v44  ;;  %v7468_v43 = vld [vmem:[%s8087_s18 + $0x68] sm:$0xff] }
 0x115   : > { %6043 = vmatmul.mubr.msk.bf16.gmra.mxu0 %vm8736_vm5, %v8794_v27  ;;  %3382 = vmatprep.subr.bf16.mxu1 %v7206_v35  ;;  %v857_v35 = vrot.slane %v7468_v43, 1  ;;  %v7185_v51 = vld [vmem:[%s11428_s2 + $0x424] ss:$8 sps:$4 sm:$0xff]   ;;  %v850_v44 = vsel %vm835_vm4, %v848_v13, %v849_v42 }
 0x116   : > { %6239 = vmatmul.mubr.msk.bf16.gmra.mxu1 %vm8048_vm3, %v8212_v26  ;;  %6046 = vmatprep.mubr.msk.bf16.mxu0 %vm8736_vm5, %v8796_v45  ;;  %11620 = vst [vmem:[#allocation66_spill] sm:$0xff] %v8842_v6  ;;  %v8886_v13 = vpack.c.bf16 %v849_v42, %v850_v44  ;;  %v7470_v43 = vld [vmem:[%s8087_s18 + $0x60] sm:$0xff]  ;;  %v7224_v42 = vld [vmem:[%s11428_s2 + $0x514] ss:$8 sps:$4 sm:$0xff]  }
 0x117   : > { %6243 = vmatprep.mubr.msk.bf16.mxu1 %vm8048_vm3, %v8218_v29  ;;  %3190 = vmatpush1.bf16.msra.mxu0 %v7174_v25  ;;  %v8840_v25 = vpack.c.bf16 %v843_v17, %v844_v22  ;;  %v7215_v17 = vld [vmem:[%s11428_s2 + $0x534] ss:$8 sps:$4 sm:$0xff]   ;;  %v7218_v22 = vld [vmem:[%s11428_s2 + $0x524] ss:$8 sps:$4 sm:$0xff]  }
 0x118   : > { %3191 = vmatprep.subr.bf16.mxu0 %v7179_v48  ;;  %3383 = vmatpush1.bf16.msra.mxu1 %v7204_v56  ;;  %v7469_v48 = vld [vmem:[%s8087_s18 + $0x78] sm:$0xff]  ;;  %11621 = vst [vmem:[#allocation67_spill] sm:$0xff] %v8886_v13 }
 0x119   : > { %11619 = vst [vmem:[#allocation65_spill] sm:$0xff] %v8840_v25  ;;  %3384 = vmatprep.subr.bf16.mxu1 %v7209_v7  ;;  %v858_v29 = vrot.slane %v7469_v48, 1  ;;  %v7180_v56 = vld [vmem:[%s11428_s2 + $0x430] ss:$8 sps:$4 sm:$0xff]  }
 0x11a   : > { %v7213_v7 = vld [vmem:[%s11428_s2 + $0x530] ss:$8 sps:$4 sm:$0xff]  }
 0x11b   : > { %3192 = vmatpush1.bf16.msra.mxu0 %v7177_v28  ;;  %v859_v28 = vsel %vm835_vm4, %v857_v35, %v858_v29  ;;  %v854_v35 = vrot.slane %v7470_v43, 1  ;;  %v7471_v48 = vld [vmem:[%s8087_s18 + $0x70] sm:$0xff]  ;;  %v7481_v26 = vld [vmem:[%s8087_s18 + $0xd8] sm:$0xff] }
 0x11c   : > { %3193 = vmatprep.subr.bf16.mxu0 %v7182_v63  ;;  %3385 = vmatpush1.bf16.msra.mxu1 %v7207_v3  ;;  %v7183_v63 = vld [vmem:[%s11428_s2 + $0x420] ss:$8 sps:$4 sm:$0xff]   ;;  %v7188_v3 = vld [vmem:[%s11428_s2 + $0x414] ss:$8 sps:$4 sm:$0xff]   ;;  %v8888_v30 = vpack.c.bf16 %v858_v29, %v859_v28  ;;  %v7191_v29 = vld [vmem:[%s11428_s2 + $0x404] ss:$8 sps:$4 sm:$0xff]  }
 0x11d   : > { %6049 = vmatmul.mubr.msk.bf16.gmra.mxu0 %vm8736_vm5, %v8840_v25  ;;  %3386 = vmatprep.subr.bf16.mxu1 %v7215_v17  ;;  %v7472_v17 = vld [vmem:[%s8087_s18 + $0x88] sm:$0xff] }
 0x11e   : > { %6247 = vmatmul.mubr.msk.bf16.gmra.mxu1 %vm8048_vm3, %v8258_v50  ;;  %6052 = vmatprep.mubr.msk.bf16.mxu0 %vm8736_vm5, %v8842_v6  ;;  %11622 = vst [vmem:[#allocation68_spill] sm:$0xff] %v8888_v30 }
 0x11f   : > { %6251 = vmatprep.mubr.msk.bf16.mxu1 %vm8048_vm3, %v8264_v54  ;;  %3194 = vmatpush1.bf16.msra.mxu0 %v7180_v56  ;;  %v855_v56 = vrot.slane %v7471_v48, 1  ;;  %v7473_v54 = vld [vmem:[%s8087_s18 + $0x98] sm:$0xff]  ;;  %v7474_v48 = vld [vmem:[%s8087_s18 + $0x80] sm:$0xff] }
 0x120   : > { %3195 = vmatprep.subr.bf16.mxu0 %v7185_v51  ;;  %3387 = vmatpush1.bf16.msra.mxu1 %v7213_v7  ;;  %v863_v51 = vrot.slane %v7472_v17, 1  ;;  %v864_v50 = vrot.slane %v7473_v54, 1  ;;  %v7186_v7 = vld [vmem:[%s11428_s2 + $0x410] ss:$8 sps:$4 sm:$0xff]   ;;  %v7227_v54 = vld [vmem:[%s11428_s2 + $0x504] ss:$8 sps:$4 sm:$0xff]  }
 0x121   : > { %3388 = vmatprep.subr.bf16.mxu1 %v7218_v22  ;;  %v7222_v22 = vld [vmem:[%s11428_s2 + $0x510] ss:$8 sps:$4 sm:$0xff]   ;;  %v856_v44 = vsel %vm835_vm4, %v854_v35, %v855_v56  ;;  %v860_v17 = vrot.slane %v7474_v48, 1  ;;  %v7212_v48 = vld [vmem:[%s11428_s2 + $0x4d4] ss:$8 sps:$4 sm:$0xff]  }
 0x122   : > { %v865_v28 = vsel %vm835_vm4, %v863_v51, %v864_v50  ;;  %v8932_v43 = vpack.c.bf16 %v855_v56, %v856_v44  ;;  %v7475_v51 = vld [vmem:[%s8087_s18 + $0x90] sm:$0xff] }
 0x123   : > { %3196 = vmatpush1.bf16.msra.mxu0 %v7183_v63  ;;  %v7189_v63 = vld [vmem:[%s11428_s2 + $0x400] ss:$8 sps:$4 sm:$0xff]   ;;  %v8934_v35 = vpack.c.bf16 %v864_v50, %v865_v28  ;;  %v7233_v56 = vld [vmem:[%s11428_s2 + $0x5f4] ss:$8 sps:$4 sm:$0xff]   ;;  %v7203_v50 = vld [vmem:[%s11428_s2 + $0x4e4] ss:$8 sps:$4 sm:$0xff]  }
 0x124   : > { %3197 = vmatprep.subr.bf16.mxu0 %v7188_v3  ;;  %3389 = vmatpush1.bf16.msra.mxu1 %v7216_v2  ;;  %v7194_v3 = vld [vmem:[%s11428_s2 + $0x4f4] ss:$8 sps:$4 sm:$0xff]   ;;  %v7225_v2 = vld [vmem:[%s11428_s2 + $0x500] ss:$8 sps:$4 sm:$0xff]   ;;  %11623 = vst [vmem:[#allocation69_spill] sm:$0xff] %v8932_v43 }
 0x125   : > { %6055 = vmatmul.mubr.msk.bf16.gmra.mxu0 %vm8736_vm5, %v8886_v13  ;;  %3390 = vmatprep.subr.bf16.mxu1 %v7224_v42  ;;  %11624 = vst [vmem:[#allocation70_spill] sm:$0xff] %v8934_v35  ;;  %v7476_v42 = vld [vmem:[%s8087_s18 + $0xa8] sm:$0xff] }
 0x126   : > { %6255 = vmatmul.mubr.msk.bf16.gmra.mxu1 %vm8048_vm3, %v8304_v15  ;;  %6058 = vmatprep.mubr.msk.bf16.mxu0 %vm8736_vm5, %v8888_v30 }
 0x127   : > { %6259 = vmatprep.mubr.msk.bf16.mxu1 %vm8048_vm3, %v8310_v18  ;;  %3198 = vmatpush1.bf16.msra.mxu0 %v7186_v7  ;;  %v861_v7 = vrot.slane %v7475_v51, 1  ;;  %v7477_v18 = vld [vmem:[%s8087_s18 + $0xb8] sm:$0xff] }
 0x128   : > { %3199 = vmatprep.subr.bf16.mxu0 %v7191_v29  ;;  %3391 = vmatpush1.bf16.msra.mxu1 %v7222_v22  ;;  %v869_v29 = vrot.slane %v7476_v42, 1  ;;  %v870_v15 = vrot.slane %v7477_v18, 1  ;;  %v7192_v22 = vld [vmem:[%s11428_s2 + $0x4f0] ss:$8 sps:$4 sm:$0xff]   ;;  %v7478_v42 = vld [vmem:[%s8087_s18 + $0xa0] sm:$0xff] }
 0x129   : > { %3392 = vmatprep.subr.bf16.mxu1 %v7227_v54  ;;  %v7231_v18 = vld [vmem:[%s11428_s2 + $0x5f0] ss:$8 sps:$4 sm:$0xff]   ;;  %v7236_v54 = vld [vmem:[%s11428_s2 + $0x5e4] ss:$8 sps:$4 sm:$0xff]   ;;  %v862_v44 = vsel %vm835_vm4, %v860_v17, %v861_v7  ;;  %v7234_v17 = vld [vmem:[%s11428_s2 + $0x5e0] ss:$8 sps:$4 sm:$0xff]  }
 0x12a   : > { %v871_v28 = vsel %vm835_vm4, %v869_v29, %v870_v15  ;;  %v8984_v51 = vpack.c.bf16 %v861_v7, %v862_v44  ;;  %v866_v29 = vrot.slane %v7478_v42, 1  ;;  %v7210_v7 = vld [vmem:[%s11428_s2 + $0x4d0] ss:$8 sps:$4 sm:$0xff]   ;;  %v7219_v42 = vld [vmem:[%s11428_s2 + $0x4c0] ss:$8 sps:$4 sm:$0xff]  }
 0x12b   : > { %3200 = vmatpush1.bf16.msra.mxu0 %v7189_v63  ;;  %v8970_v63 = vld [vmem:[%s8087_s18 + $0xe8] sm:$0xff] }
 0x12c   : > { %3201 = vmatprep.subr.bf16.mxu0 %v7194_v3  ;;  %3393 = vmatpush1.bf16.msra.mxu1 %v7225_v2  ;;  %11625 = vst [vmem:[#allocation71_spill] sm:$0xff] %v8970_v63  ;;  %v7201_v3 = vld [vmem:[%s11428_s2 + $0x4e0] ss:$8 sps:$4 sm:$0xff]   ;;  %v8976_v2 = vld [vmem:[%s8087_s18 + $0xf8] sm:$0xff]  ;;  %11627 = vst [vmem:[#allocation73_spill] sm:$0xff] %v8984_v51 }
 0x12d   : > { %6061 = vmatmul.mubr.msk.bf16.gmra.mxu0 %vm8736_vm5, %v8932_v43  ;;  %3394 = vmatprep.subr.bf16.mxu1 %v7233_v56  ;;  %11626 = vst [vmem:[#allocation72_spill] sm:$0xff] %v8976_v2  ;;  %v7479_v56 = vld [vmem:[%s8087_s18 + $0xb0] sm:$0xff]  ;;  %v686_v43 = vrot.slane %v8970_v63, 7 }
 0x12e   : > { %6263 = vmatmul.mubr.msk.bf16.gmra.mxu1 %vm8048_vm3, %v8350_v41  ;;  %6064 = vmatprep.mubr.msk.bf16.mxu0 %vm8736_vm5, %v8934_v35  ;;  %v7480_v41 = vld [vmem:[%s8087_s18 + $0xc8] sm:$0xff]  ;;  %v876_v35 = vrot.slane %v7481_v26, 1 }
 0x12f   : > { %6267 = vmatprep.mubr.msk.bf16.mxu1 %vm8048_vm3, %v8356_v46  ;;  %3202 = vmatpush2.bf16.msra.mxu0 %v7192_v22  ;;  %v8987_v22 = vpack.c.bf16 %v870_v15, %v871_v28  ;;  %v867_v46 = vrot.slane %v7479_v56, 1  ;;  %v7242_v15 = vld [vmem:[%s11428_s2 + $0x5d4] ss:$8 sps:$4 sm:$0xff]   ;;  %v7221_v26 = vld [vmem:[%s11428_s2 + $0x4c4] ss:$8 sps:$4 sm:$0xff]  }
 0x130   : > { %3203 = vmatprep.subr.bf16.mxu0 %v7203_v50  ;;  %3395 = vmatpush2.bf16.msra.mxu1 %v7231_v18  ;;  %v875_v50 = vrot.slane %v7480_v41, 1  ;;  %v689_v18 = vrot.slane %v8976_v2, 7  ;;  %v7240_v41 = vld [vmem:[%s11428_s2 + $0x5d0] ss:$8 sps:$4 sm:$0xff]   ;;  %v7230_v56 = vld [vmem:[%s11428_s2 + $0x4b4] ss:$8 sps:$4 sm:$0xff]  }
 0x131   : > { %3396 = vmatprep.subr.bf16.mxu1 %v7236_v54  ;;  %11628 = vst [vmem:[#allocation74_spill] sm:$0xff] %v8987_v22  ;;  %v7245_v54 = vld [vmem:[%s11428_s2 + $0x5c4] ss:$8 sps:$4 sm:$0xff]   ;;  %v868_v44 = vsel %vm835_vm4, %v866_v29, %v867_v46  ;;  %v7243_v29 = vld [vmem:[%s11428_s2 + $0x5c0] ss:$8 sps:$4 sm:$0xff]  }
 0x132   : > { %v877_v28 = vsel %vm835_vm4, %v875_v50, %v876_v35  ;;  %v9039_v50 = vpack.c.bf16 %v867_v46, %v868_v44  ;;  %v7251_v46 = vld [vmem:[%s11428_s2 + $0x5b4] ss:$8 sps:$4 sm:$0xff]  }
 0x133   : > { %3204 = vmatpush2.bf16.msra.mxu0 %v7201_v3  ;;  %v690_v3 = vsel %vm642_vm0, %v686_v43, %v689_v18  ;;  %v7482_v18 = vld [vmem:[%s8087_s18 + $0xc0] sm:$0xff]  ;;  %v9043_v2 = vpack.c.bf16 %v876_v35, %v877_v28 }
 0x134   : > { %3205 = vmatprep.subr.bf16.mxu0 %v7212_v48  ;;  %3397 = vmatpush2.bf16.msra.mxu1 %v7234_v17  ;;  %v9025_v48 = vld [vmem:[%s8087_s18 + $0xe0] sm:$0xff]  ;;  %v9028_v17 = vld [vmem:[%s8087_s18 + $0xf0] sm:$0xff]  ;;  %11629 = vst [vmem:[#allocation75_spill] sm:$0xff] %v9039_v50 }
 0x135   : > { %6067 = vmatmul.mubr.msk.bf16.gmra.mxu0 %vm8736_vm5, %v8984_v51  ;;  %3398 = vmatprep.subr.bf16.mxu1 %v7242_v15  ;;  %11630 = vst [vmem:[#allocation76_spill] sm:$0xff] %v9043_v2  ;;  %v9045_v15 = vpack.c.bf16 %v690_v3, %v686_v43  ;;  %v687_v63 = vrot.slane %v9028_v17, 7  ;;  %v7239_v35 = vld [vmem:[%s11428_s2 + $0x4a4] ss:$8 sps:$4 sm:$0xff]   ;;  %v7249_v43 = vld [vmem:[%s11428_s2 + $0x5b0] ss:$8 sps:$4 sm:$0xff]  }
 0x136   : > { %6271 = vmatmul.mubr.msk.bf16.gmra.mxu1 %vm8048_vm3, %v8400_v12  ;;  %6070 = vmatprep.mubr.msk.bf16.mxu0 %vm8736_vm5, %v8987_v22  ;;  %v7237_v3 = vld [vmem:[%s11428_s2 + $0x4a0] ss:$8 sps:$4 sm:$0xff]  }
 0x137   : > { %6275 = vmatprep.mubr.msk.bf16.mxu1 %vm8048_vm3, %v8406_v19  ;;  %3206 = vmatpush2.bf16.msra.mxu0 %v7210_v7  ;;  %v872_v19 = vrot.slane %v7482_v18, 1  ;;  %v7483_v7 = vld [vmem:[%s8087_s18 + $0xd0] sm:$0xff]  ;;  %11631 = vst [vmem:[#allocation77_spill] sm:$0xff] %v9045_v15 }
 0x138   : > { %3207 = vmatprep.subr.bf16.mxu0 %v7221_v26  ;;  %3399 = vmatpush2.bf16.msra.mxu1 %v7240_v41  ;;  %v873_v12 = vrot.slane %v7483_v7, 1  ;;  %v685_v26 = vrot.slane %v9025_v48, 7  ;;  %v7228_v41 = vld [vmem:[%s11428_s2 + $0x4b0] ss:$8 sps:$4 sm:$0xff]  }
 0x139   : > { %3400 = vmatprep.subr.bf16.mxu1 %v7245_v54  ;;  %v7254_v54 = vld [vmem:[%s11428_s2 + $0x5a4] ss:$8 sps:$4 sm:$0xff]   ;;  %v7485_v7 = vld [vmem:[%s8087_s18 + $0x118] sm:$0xff] }
 0x13a   : > { %v874_v44 = vsel %vm835_vm4, %v872_v19, %v873_v12  ;;  %v688_v28 = vsel %vm642_vm0, %v685_v26, %v687_v63  ;;  %v7484_v63 = vld [vmem:[%s8087_s18 + $0x108] sm:$0xff] }
 0x13b   : > { %3208 = vmatpush2.bf16.msra.mxu0 %v7219_v42  ;;  %v7248_v42 = vld [vmem:[%s11428_s2 + $0x494] ss:$8 sps:$4 sm:$0xff]   ;;  %v9089_v19 = vpack.c.bf16 %v688_v28, %v685_v26  ;;  %v887_v18 = vrot.slane %v7484_v63, 1  ;;  %v7258_v26 = vld [vmem:[%s11428_s2 + $0x590] ss:$8 sps:$4 sm:$0xff]  }
 0x13c   : > { %3209 = vmatprep.subr.bf16.mxu0 %v7230_v56  ;;  %3401 = vmatpush2.bf16.msra.mxu1 %v7243_v29  ;;  %v7252_v56 = vld [vmem:[%s11428_s2 + $0x5a0] ss:$8 sps:$4 sm:$0xff]   ;;  %v9087_v29 = vpack.c.bf16 %v873_v12, %v874_v44  ;;  %v7257_v12 = vld [vmem:[%s11428_s2 + $0x484] ss:$8 sps:$4 sm:$0xff]   ;;  %v7266_v28 = vld [vmem:[%s11428_s2 + $0x674] ss:$8 sps:$4 sm:$0xff]  }
 0x13d   : > { %6073 = vmatmul.mubr.msk.bf16.gmra.mxu0 %vm8736_vm5, %v9039_v50  ;;  %3402 = vmatprep.subr.bf16.mxu1 %v7251_v46  ;;  %11633 = vst [vmem:[#allocation79_spill] sm:$0xff] %v9089_v19  ;;  %v7246_v46 = vld [vmem:[%s11428_s2 + $0x490] ss:$8 sps:$4 sm:$0xff]   ;;  %v7255_v44 = vld [vmem:[%s11428_s2 + $0x480] ss:$8 sps:$4 sm:$0xff]  }
 0x13e   : > { %6279 = vmatmul.mubr.msk.bf16.gmra.mxu1 %vm8048_vm3, %v8452_v47  ;;  %6076 = vmatprep.mubr.msk.bf16.mxu0 %vm8736_vm5, %v9043_v2  ;;  %11632 = vst [vmem:[#allocation78_spill] sm:$0xff] %v9087_v29  ;;  %v7492_v47 = vld [vmem:[%s8087_s18 + $0x148] sm:$0xff] }
 0x13f   : > { %6283 = vmatprep.mubr.msk.bf16.mxu1 %vm8048_vm3, %v9045_v15  ;;  %3210 = vmatpush2.bf16.msra.mxu0 %v7228_v41  ;;  %v888_v41 = vrot.slane %v7485_v7, 1 }
 0x140   : > { %3211 = vmatprep.subr.bf16.mxu0 %v7239_v35  ;;  %3403 = vmatpush2.bf16.msra.mxu1 %v7249_v43  ;;  %v7260_v35 = vld [vmem:[%s11428_s2 + $0x594] ss:$8 sps:$4 sm:$0xff]   ;;  %v7263_v43 = vld [vmem:[%s11428_s2 + $0x584] ss:$8 sps:$4 sm:$0xff]  }
 0x141   : > { %3404 = vmatprep.subr.bf16.mxu1 %v7254_v54  ;;  %v889_v54 = vsel %vm835_vm4, %v887_v18, %v888_v41  ;;  %v7488_v18 = vld [vmem:[%s8087_s18 + $0x128] sm:$0xff] }
 0x142   : > { %v893_v7 = vrot.slane %v7488_v18, 1  ;;  %v7490_v18 = vld [vmem:[%s8087_s18 + $0x120] sm:$0xff] }
 0x143   : > { %3212 = vmatpush2.bf16.msra.mxu0 %v7237_v3  ;;  %v7486_v3 = vld [vmem:[%s8087_s18 + $0x100] sm:$0xff] }
 0x144   : > { %3213 = vmatprep.subr.bf16.mxu0 %v7248_v42  ;;  %3405 = vmatpush2.bf16.msra.mxu1 %v7252_v56  ;;  %v884_v42 = vrot.slane %v7486_v3, 1  ;;  %v7487_v56 = vld [vmem:[%s8087_s18 + $0x110] sm:$0xff] }
 0x145   : > { %6079 = vmatmul.mubr.msk.bf16.gmra.mxu0 %vm8736_vm5, %v9087_v29  ;;  %3406 = vmatprep.subr.bf16.mxu1 %v7260_v35  ;;  %v885_v63 = vrot.slane %v7487_v56, 1 }
 0x146   : > { %6287 = vmatmul.mubr.msk.bf16.gmra.mxu1 %vm8048_vm3, %v9089_v19  ;;  %6082 = vmatprep.mubr.msk.bf16.mxu0 %vm8736_vm5, %v8499_v34  ;;  %v7261_v34 = vld [vmem:[%s11428_s2 + $0x580] ss:$8 sps:$4 sm:$0xff]  }
 0x147   : > { %6291 = vmatprep.mubr.msk.bf16.mxu1 %vm8048_vm3, %v8507_v57  ;;  %3214 = vmatpush2.bf16.msra.mxu0 %v7246_v46  ;;  %v9130_v57 = vpack.c.bf16 %v888_v41, %v889_v54  ;;  %v7489_v46 = vld [vmem:[%s8087_s18 + $0x138] sm:$0xff] }
 0x148   : > { %3215 = vmatprep.subr.bf16.mxu0 %v7257_v12  ;;  %3407 = vmatpush2.bf16.msra.mxu1 %v7258_v26  ;;  %v894_v35 = vrot.slane %v7489_v46, 1  ;;  %v7293_v12 = vld [vmem:[%s11428_s2 + $0x774] ss:$8 sps:$4 sm:$0xff]   ;;  %v890_v46 = vrot.slane %v7490_v18, 1  ;;  %v896_v18 = vrot.slane %v8551_v10, 1 }
 0x149   : > { %3408 = vmatprep.subr.bf16.mxu1 %v7263_v43  ;;  %v886_v43 = vsel %vm835_vm4, %v884_v42, %v885_v63  ;;  %v7491_v42 = vld [vmem:[%s8087_s18 + $0x130] sm:$0xff] }
 0x14b   : > { %3216 = vmatpush2.bf16.msra.mxu0 %v7255_v44  ;;  %v895_v44 = vsel %vm835_vm4, %v893_v7, %v894_v35  ;;  %v899_v7 = vrot.slane %v7492_v47, 1 }
 0x14c   : > { %3409 = vmatpush2.bf16.msra.mxu1 %v7261_v34  ;;  %4148 = vmatprep.subr.bf16.mxu0 %v7266_v28  ;;  %v9157_v28 = vpack.c.bf16 %v885_v63, %v886_v43  ;;  %v9161_v56 = vpack.c.bf16 %v894_v35, %v895_v44 }
 0x14d   : > { %v1967_v26 = vpop.f32.mrf.mxu0  ;;  %6085 = vmatmul.mubr.msk.bf16.gmra.mxu0 %vm8736_vm5, %v8516_v33  ;;  %4341 = vmatprep.subr.bf16.mxu1 %v7293_v12 }
 0x14e   : > { %v2160_v19 = vpop.f32.mrf.mxu1  ;;  %6295 = vmatmul.mubr.msk.bf16.gmra.mxu1 %vm8048_vm3, %v8533_v21  ;;  %6088 = vmatprep.mubr.msk.bf16.mxu0 %vm8736_vm5, %v9130_v57  ;;  %11636 = vst [vmem:[#allocation82_spill] sm:$0xff] %v9161_v56 }
 0x14f   : > { %v9145_v41 = vadd.f32 %v2160_v19, %v1967_v26  ;;  %6299 = vmatprep.mubr.msk.bf16.mxu1 %vm8048_vm3, %v8537_v23  ;;  %v1969_v54 = vpop.f32.mrf.mxu0  ;;  %v891_v26 = vrot.slane %v7491_v42, 1  ;;  %v897_v42 = vrot.slane %v8554_v24, 1 }
 0x150   : > { %v2162_v33 = vpop.f32.mrf.mxu1 }
 0x151   : > { %11634 = vst [vmem:[#allocation80_spill] sm:$0xff] %v9145_v41  ;;  %v9155_v21 = vadd.f32 %v2162_v33, %v1969_v54  ;;  %v1971_v19 = vpop.f32.mrf.mxu0  ;;  %v7493_v41 = vld [vmem:[%s8087_s18 + $0x158] sm:$0xff]  ;;  %v892_v47 = vsel %vm835_vm4, %v890_v46, %v891_v26  ;;  %v898_v24 = vsel %vm835_vm4, %v896_v18, %v897_v42 }
 0x152   : > { %v2164_v34 = vpop.f32.mrf.mxu1  ;;  %v900_v12 = vrot.slane %v7493_v41, 1 }
 0x153   : > { %11635 = vst [vmem:[#allocation81_spill] sm:$0xff] %v9155_v21  ;;  %v9159_v3 = vadd.f32 %v2164_v34, %v1971_v19  ;;  %v1973_v23 = vpop.f32.mrf.mxu0 }
 0x154   : > { %v2166_v15 = vpop.f32.mrf.mxu1  ;;  %v901_v35 = vsel %vm835_vm4, %v899_v7, %v900_v12  ;;  %v906_v7 = vrot.slane %v8561_v39, 1 }
 0x155   : > { %v9167_v54 = vadd.f32 %v2166_v15, %v1973_v23  ;;  %v1977_v33 = vpop.f32.mrf.mxu0  ;;  %6091 = vmatmul.mubr.msk.bf16.gmra.mxu0 %vm8736_vm5, %v9157_v28  ;;  %v9191_v34 = vpack.c.bf16 %v900_v12, %v901_v35 }
 0x156   : > { %v2170_v21 = vpop.f32.mrf.mxu1  ;;  %6303 = vmatmul.mubr.msk.bf16.gmra.mxu1 %vm8048_vm3, %v8563_v40  ;;  %6094 = vmatprep.mubr.msk.bf16.mxu0 %vm8736_vm5, %v9161_v56 }
 0x157   : > { %v9175_v63 = vadd.f32 %v2170_v21, %v1977_v33  ;;  %6307 = vmatprep.mubr.msk.bf16.mxu1 %vm8048_vm3, %v8567_v58  ;;  %v1979_v23 = vpop.f32.mrf.mxu0  ;;  %v9187_v21 = vpack.c.bf16 %v891_v26, %v892_v47  ;;  %11638 = vst [vmem:[#allocation84_spill] sm:$0xff] %v9191_v34  ;;  %v905_v58 = vrot.slane %v8558_v38, 1 }
 0x158   : > { %v2172_v15 = vpop.f32.mrf.mxu1 }
 0x159   : > { %v9185_v41 = vadd.f32 %v2172_v15, %v1979_v23  ;;  %v1981_v43 = vpop.f32.mrf.mxu0  ;;  %11637 = vst [vmem:[#allocation83_spill] sm:$0xff] %v9187_v21  ;;  %v907_v26 = vsel %vm835_vm4, %v905_v58, %v906_v7  ;;  %v912_v58 = vrot.slane %v8595_v11, 1 }
 0x15a   : > { %v2174_v44 = vpop.f32.mrf.mxu1 }
 0x15b   : > { %v9189_v19 = vadd.f32 %v2174_v44, %v1981_v43  ;;  %v1983_v33 = vpop.f32.mrf.mxu0  ;;  %v9221_v44 = vpack.c.bf16 %v906_v7, %v907_v26 }
 0x15c   : > { %v2176_v46 = vpop.f32.mrf.mxu1 }
 0x15d   : > { %v9197_v23 = vadd.f32 %v2176_v46, %v1983_v33  ;;  %v1987_v15 = vpop.f32.mrf.mxu0  ;;  %6097 = vmatmul.mubr.msk.bf16.gmra.mxu0 %vm8736_vm5, %v9187_v21  ;;  %11640 = vst [vmem:[#allocation86_spill] sm:$0xff] %v9221_v44  ;;  %v902_v33 = vrot.slane %v8585_v37, 1  ;;  %v903_v46 = vrot.slane %v8588_v62, 1 }
 0x15e   : > { %v2180_v40 = vpop.f32.mrf.mxu1  ;;  %6311 = vmatmul.mubr.msk.bf16.gmra.mxu1 %vm8048_vm3, %v8597_v20  ;;  %6100 = vmatprep.mubr.msk.bf16.mxu0 %vm8736_vm5, %v9191_v34 }
 0x15f   : > { %v9205_v10 = vadd.f32 %v2180_v40, %v1987_v15  ;;  %6315 = vmatprep.mubr.msk.bf16.mxu1 %vm8048_vm3, %v8603_v1  ;;  %v1989_v38 = vpop.f32.mrf.mxu0  ;;  %v9217_v40 = vpack.c.bf16 %v897_v42, %v898_v24  ;;  %v911_v1 = vrot.slane %v8592_v5, 1  ;;  %v904_v62 = vsel %vm835_vm4, %v902_v33, %v903_v46 }
 0x160   : > { %v2182_v39 = vpop.f32.mrf.mxu1 }
 0x161   : > { %v9215_v12 = vadd.f32 %v2182_v39, %v1989_v38  ;;  %v1991_v47 = vpop.f32.mrf.mxu0  ;;  %11639 = vst [vmem:[#allocation85_spill] sm:$0xff] %v9217_v40  ;;  %v913_v42 = vsel %vm835_vm4, %v911_v1, %v912_v58  ;;  %v918_v1 = vrot.slane %v8633_v59, 1 }
 0x162   : > { %v2184_v35 = vpop.f32.mrf.mxu1 }
 0x163   : > { %v9219_v43 = vadd.f32 %v2184_v35, %v1991_v47  ;;  %v1993_v15 = vpop.f32.mrf.mxu0  ;;  %v9251_v35 = vpack.c.bf16 %v912_v58, %v913_v42  ;;  %v9278_v42 = vld [vmem:[%s8087_s18 + $0x1e8] sm:$0xff] }
 0x164   : > { %v2186_v18 = vpop.f32.mrf.mxu1  ;;  %11644 = vst [vmem:[#allocation90_spill] sm:$0xff] %v9278_v42 }
 0x165   : > { %v9227_v38 = vadd.f32 %v2186_v18, %v1993_v15  ;;  %v1997_v39 = vpop.f32.mrf.mxu0  ;;  %6103 = vmatmul.mubr.msk.bf16.gmra.mxu0 %vm8736_vm5, %v9217_v40  ;;  %11642 = vst [vmem:[#allocation88_spill] sm:$0xff] %v9251_v35  ;;  %v908_v15 = vrot.slane %v8623_v53, 1  ;;  %v909_v18 = vrot.slane %v8626_v31, 1 }
 0x166   : > { %v2190_v20 = vpop.f32.mrf.mxu1  ;;  %6319 = vmatmul.mubr.msk.bf16.gmra.mxu1 %vm8048_vm3, %v8635_v32  ;;  %6106 = vmatprep.mubr.msk.bf16.mxu0 %vm8736_vm5, %v9221_v44  ;;  %v734_v32 = vrot.slane %v9278_v42, 7 }
 0x167   : > { %v9235_v37 = vadd.f32 %v2190_v20, %v1997_v39  ;;  %6323 = vmatprep.mubr.msk.bf16.mxu1 %vm8048_vm3, %v8641_v9  ;;  %v1999_v5 = vpop.f32.mrf.mxu0  ;;  %v9247_v20 = vpack.c.bf16 %v903_v46, %v904_v62  ;;  %v917_v9 = vrot.slane %v8630_v0, 1  ;;  %v910_v59 = vsel %vm835_vm4, %v908_v15, %v909_v18 }
 0x168   : > { %v2192_v11 = vpop.f32.mrf.mxu1  ;;  %v914_v15 = vrot.slane %v8661_v61, 1  ;;  %v9313_v61 = vld [vmem:[%s8087_s18 + $0x1e0] sm:$0xff] }
 0x169   : > { %v9245_v7 = vadd.f32 %v2192_v11, %v1999_v5  ;;  %v2001_v24 = vpop.f32.mrf.mxu0  ;;  %11641 = vst [vmem:[#allocation87_spill] sm:$0xff] %v9247_v20  ;;  %v919_v58 = vsel %vm835_vm4, %v917_v9, %v918_v1  ;;  %v733_v42 = vrot.slane %v9313_v61, 7 }
 0x16a   : > { %v2194_v26 = vpop.f32.mrf.mxu1 }
 0x16b   : > { %v9249_v47 = vadd.f32 %v2194_v26, %v2001_v24  ;;  %v2003_v39 = vpop.f32.mrf.mxu0  ;;  %v9281_v24 = vld [vmem:[%s8087_s18 + $0x1f8] sm:$0xff] }
 0x16c   : > { %v2196_v33 = vpop.f32.mrf.mxu1  ;;  %11645 = vst [vmem:[#allocation91_spill] sm:$0xff] %v9281_v24 }
 0x16d   : > { %v9257_v5 = vadd.f32 %v2196_v33, %v2003_v39  ;;  %v2007_v46 = vpop.f32.mrf.mxu0  ;;  %6109 = vmatmul.mubr.msk.bf16.gmra.mxu0 %vm8736_vm5, %v9247_v20  ;;  %v9283_v33 = vpack.c.bf16 %v909_v18, %v910_v59  ;;  %v737_v18 = vrot.slane %v9281_v24, 7  ;;  %v11654_v24 = vld [vmem:[#allocation56_spill] sm:$0xff] }
 0x16e   : > { %v2200_v62 = vpop.f32.mrf.mxu1  ;;  %6327 = vmatmul.mubr.msk.bf16.gmra.mxu1 %vm8048_vm3, %v8673_v4  ;;  %6112 = vmatprep.mubr.msk.bf16.mxu0 %vm8736_vm5, %v9251_v35  ;;  %v924_v4 = vrot.slane %v8671_v14, 1 }
 0x16f   : > { %v9265_v53 = vadd.f32 %v2200_v62, %v2007_v46  ;;  %6331 = vmatprep.mubr.msk.bf16.mxu1 %vm8048_vm3, %v8679_v55  ;;  %v2009_v31 = vpop.f32.mrf.mxu0  ;;  %11646 = vst [vmem:[#allocation92_spill] sm:$0xff] %v9283_v33  ;;  %v9287_v62 = vpack.c.bf16 %v918_v1, %v919_v58  ;;  %v915_v55 = vrot.slane %v8664_v36, 1 }
 0x170   : > { %v2202_v0 = vpop.f32.mrf.mxu1 }
 0x171   : > { %v9275_v11 = vadd.f32 %v2202_v0, %v2009_v31  ;;  %v2011_v26 = vpop.f32.mrf.mxu0  ;;  %11648 = vst [vmem:[#allocation94_spill] sm:$0xff] %v9287_v62  ;;  %v923_v0 = vrot.slane %v8668_v49, 1  ;;  %v916_v14 = vsel %vm835_vm4, %v914_v15, %v915_v55  ;;  %v921_v15 = vrot.slane %v11654_v24, 1  ;;  %v11658_v24 = vld [vmem:[#allocation61_spill] sm:$0xff] }
 0x172   : > { %v2204_v39 = vpop.f32.mrf.mxu1 }
 0x173   : > { %11643 = vst [vmem:[#allocation89_spill] sm:$0xff] %v9275_v11  ;;  %v9285_v46 = vadd.f32 %v2204_v39, %v2011_v26  ;;  %v2013_v9 = vpop.f32.mrf.mxu0  ;;  %v925_v39 = vsel %vm835_vm4, %v923_v0, %v924_v4 }
 0x174   : > { %v2206_v31 = vpop.f32.mrf.mxu1  ;;  %v9329_v11 = vpack.c.bf16 %v924_v4, %v925_v39 }
 0x175   : > { %11647 = vst [vmem:[#allocation93_spill] sm:$0xff] %v9285_v46  ;;  %v9295_v59 = vadd.f32 %v2206_v31, %v2013_v9  ;;  %v2017_v1 = vpop.f32.mrf.mxu0  ;;  %6115 = vmatmul.mubr.msk.bf16.gmra.mxu0 %vm8736_vm5, %v9283_v33  ;;  %v738_v9 = vsel %vm642_vm0, %v734_v32, %v737_v18  ;;  %v9318_v31 = vld [vmem:[%s8087_s18 + $0x1f0] sm:$0xff] }
 0x176   : > { %v2210_v58 = vpop.f32.mrf.mxu1  ;;  %6335 = vmatmul.mubr.msk.bf16.gmra.mxu1 %vm8048_vm3, %v8705_v16  ;;  %6118 = vmatprep.mubr.msk.bf16.mxu0 %vm8736_vm5, %v9287_v62  ;;  %v9331_v0 = vpack.c.bf16 %v738_v9, %v734_v32  ;;  %v735_v18 = vrot.slane %v9318_v31, 7 }
 0x177   : > { %11649 = vst [vmem:[#allocation95_spill] sm:$0xff] %v9295_v59  ;;  %v9303_v49 = vadd.f32 %v2210_v58, %v2017_v1  ;;  %6339 = vmatprep.mubr.msk.bf16.mxu1 %vm8048_vm3, %v8711_v52  ;;  %v2019_v36 = vpop.f32.mrf.mxu0  ;;  %v11653_v59 = vld [vmem:[#allocation55_spill] sm:$0xff] }
 0x178   : > { %v2212_v26 = vpop.f32.mrf.mxu1  ;;  %v920_v52 = vrot.slane %v11653_v59, 1  ;;  %11655 = vst [vmem:[#allocation55_spill] sm:$0xff] %v9329_v11  ;;  %11656 = vst [vmem:[#allocation56_spill] sm:$0xff] %v9331_v0  ;;  %v736_v4 = vsel %vm642_vm0, %v733_v42, %v735_v18  ;;  %v11663_v18 = vld [vmem:[#allocation63_spill] sm:$0xff] }
 0x179   : > { %11650 = vst [vmem:[#allocation96_spill] sm:$0xff] %v9303_v49  ;;  %v9320_v1 = vadd.f32 %v2212_v26, %v2019_v36  ;;  %v2021_v58 = vpop.f32.mrf.mxu0  ;;  %v9322_v49 = vpack.c.bf16 %v915_v55, %v916_v14 }
 0x17a   : > { %v2214_v16 = vpop.f32.mrf.mxu1  ;;  %v922_v32 = vsel %vm835_vm4, %v920_v52, %v921_v15 }
 0x17b   : > { %11651 = vst [vmem:[#allocation97_spill] sm:$0xff] %v9320_v1  ;;  %11652 = vst [vmem:[#allocation98_spill] sm:$0xff] %v9322_v49  ;;  %v9327_v46 = vadd.f32 %v2214_v16, %v2021_v58  ;;  %v2023_v36 = vpop.f32.mrf.mxu0 }
 0x17c   : > { %v2216_v26 = vpop.f32.mrf.mxu1 }
 0x17d   : > { %v9334_v1 = vadd.f32 %v2216_v26, %v2023_v36  ;;  %v2027_v55 = vpop.f32.mrf.mxu0  ;;  %6121 = vmatmul.mubr.msk.bf16.gmra.mxu0 %vm8736_vm5, %v9322_v49  ;;  %v9354_v26 = vpack.c.bf16 %v921_v15, %v922_v32 }
 0x17e   : > { %v2220_v14 = vpop.f32.mrf.mxu1  ;;  %6343 = vmatmul.mubr.msk.bf16.gmra.mxu1 %vm8048_vm3, %v11658_v24  ;;  %6124 = vmatprep.mubr.msk.bf16.mxu0 %vm8736_vm5, %v9329_v11 }
 0x17f   : > { %11657 = vst [vmem:[#allocation99_spill] sm:$0xff] %v9334_v1  ;;  %v9342_v16 = vadd.f32 %v2220_v14, %v2027_v55  ;;  %6347 = vmatprep.mubr.msk.bf16.mxu1 %vm8048_vm3, %v9331_v0  ;;  %v2029_v59 = vpop.f32.mrf.mxu0  ;;  %11660 = vst [vmem:[#allocation101_spill] sm:$0xff] %v9354_v26  ;;  %v9356_v55 = vpack.c.bf16 %v736_v4, %v733_v42  ;;  %v11662_v42 = vld [vmem:[#allocation9_spill] sm:$0xff] }
 0x180   : > { %v2222_v39 = vpop.f32.mrf.mxu1 }
 0x181   : > { %11659 = vst [vmem:[#allocation100_spill] sm:$0xff] %v9342_v16  ;;  %v9352_v9 = vadd.f32 %v2222_v39, %v2029_v59  ;;  %v2031_v58 = vpop.f32.mrf.mxu0  ;;  %11661 = vst [vmem:[#allocation102_spill] sm:$0xff] %v9356_v55 }
 0x182   : > { %v2224_v36 = vpop.f32.mrf.mxu1 }
 0x183   : > { %v9358_v14 = vadd.f32 %v2224_v36, %v2031_v58  ;;  %v2033_v24 = vpop.f32.mrf.mxu0  ;;  %v7264_v58 = vld [vmem:[%s11428_s2 + $0x670] ss:$8 sps:$4 sm:$0xff]  }
 0x184   : > { %v2226_v16 = vpop.f32.mrf.mxu1 }
 0x185   : > { %v9360_v1 = vadd.f32 %v2226_v16, %v2033_v24  ;;  %v2037_v0 = vpop.f32.mrf.mxu0  ;;  %6127 = vmatmul.mubr.msk.bf16.gmra.mxu0 %vm8736_vm5, %v9354_v26 }
 0x186   : > { %v2230_v52 = vpop.f32.mrf.mxu1  ;;  %6351 = vmatmul.mubr.msk.bf16.gmra.mxu1 %vm8048_vm3, %v9356_v55  ;;  %3217 = vmatprep.mubr.bf16.mxu0 %v11662_v42 }
 0x187   : > { %v9368_v15 = vadd.f32 %v2230_v52, %v2037_v0  ;;  %6354 = vmatprep.mubr.msk.bf16.mxu1 %vm8736_vm5, %v11663_v18  ;;  %v2039_v24 = vpop.f32.mrf.mxu0  ;;  %v7269_v52 = vld [vmem:[%s11428_s2 + $0x664] ss:$8 sps:$4 sm:$0xff]   ;;  %v7291_v18 = vld [vmem:[%s11428_s2 + $0x770] ss:$8 sps:$4 sm:$0xff]  }
 0x188   : > { %v2232_v16 = vpop.f32.mrf.mxu1 }
 0x189   : > { %v9374_v32 = vadd.f32 %v2232_v16, %v2039_v24  ;;  %v2041_v4 = vpop.f32.mrf.mxu0 }
 0x18a   : > { %v2234_v59 = vpop.f32.mrf.mxu1 }
 0x18b   : > { %11664 = vst [vmem:[#allocation9_spill] sm:$0xff] %v9374_v32  ;;  %v9376_v39 = vadd.f32 %v2234_v59, %v2041_v4  ;;  %v2043_v0 = vpop.f32.mrf.mxu0  ;;  %v11667_v4 = vld [vmem:[#allocation10_spill] sm:$0xff] }
 0x18c   : > { %v2236_v36 = vpop.f32.mrf.mxu1  ;;  %v7296_v59 = vld [vmem:[%s11428_s2 + $0x764] ss:$8 sps:$4 sm:$0xff]  }
 0x18d   : > { %11665 = vst [vmem:[#allocation63_spill] sm:$0xff] %v9376_v39  ;;  %v9384_v42 = vadd.f32 %v2236_v36, %v2043_v0  ;;  %v2047_v24 = vpop.f32.mrf.mxu0  ;;  %3218 = vmatmul.mubr.bf16.vlgmr.msra.gmra.mxu0 %v11667_v4  ;;  %v11669_v0 = vld [vmem:[#allocation11_spill] sm:$0xff]  ;;  %v7267_v36 = vld [vmem:[%s11428_s2 + $0x660] ss:$8 sps:$4 sm:$0xff]  }
 0x18e   : > { %v2240_v16 = vpop.f32.mrf.mxu1  ;;  %6357 = vmatmul.mubr.msk.bf16.vlgmr.msra.gmra.mxu1 %vm8736_vm5, %v8794_v27  ;;  %4149 = vmatpush1.bf16.msra.mxu0 %v7264_v58  ;;  %v7272_v27 = vld [vmem:[%s11428_s2 + $0x654] ss:$8 sps:$4 sm:$0xff]   ;;  %v7294_v58 = vld [vmem:[%s11428_s2 + $0x760] ss:$8 sps:$4 sm:$0xff]  }
 0x18f   : > { %11666 = vst [vmem:[#allocation103_spill] sm:$0xff] %v9384_v42  ;;  %v9396_v55 = vadd.f32 %v2240_v16, %v2047_v24  ;;  %3227 = vmatprep.mubr.bf16.mxu0 %v11669_v0  ;;  %v2049_v42 = vpop.f32.mrf.mxu0  ;;  %6360 = vmatprep.mubr.msk.bf16.mxu1 %vm8736_vm5, %v8796_v45 }
 0x190   : > { %v2242_v39 = vpop.f32.mrf.mxu1  ;;  %4150 = vmatprep.subr.bf16.mxu0 %v7269_v52  ;;  %4342 = vmatpush1.bf16.msra.mxu1 %v7291_v18  ;;  %v7270_v52 = vld [vmem:[%s11428_s2 + $0x650] ss:$8 sps:$4 sm:$0xff]   ;;  %v7275_v18 = vld [vmem:[%s11428_s2 + $0x644] ss:$8 sps:$4 sm:$0xff]  }
 0x191   : > { %11668 = vst [vmem:[#allocation10_spill] sm:$0xff] %v9396_v55  ;;  %v9408_v24 = vadd.f32 %v2242_v39, %v2049_v42  ;;  %v2051_v16 = vpop.f32.mrf.mxu0  ;;  %4343 = vmatprep.subr.bf16.mxu1 %v7296_v59  ;;  %v7302_v39 = vld [vmem:[%s11428_s2 + $0x754] ss:$8 sps:$4 sm:$0xff]   ;;  %v7300_v59 = vld [vmem:[%s11428_s2 + $0x750] ss:$8 sps:$4 sm:$0xff]  }
 0x192   : > { %v2244_v4 = vpop.f32.mrf.mxu1  ;;  %4151 = vmatpush1.bf16.msra.mxu0 %v7267_v36 }
 0x193   : > { %11670 = vst [vmem:[#allocation11_spill] sm:$0xff] %v9408_v24  ;;  %v9413_v55 = vadd.f32 %v2244_v4, %v2051_v16  ;;  %v2053_v32 = vpop.f32.mrf.mxu0  ;;  %4152 = vmatprep.subr.bf16.mxu0 %v7272_v27  ;;  %v11673_v4 = vld [vmem:[#allocation14_spill] sm:$0xff]  ;;  %v11675_v27 = vld [vmem:[#allocation15_spill] sm:$0xff] }
 0x194   : > { %v2246_v45 = vpop.f32.mrf.mxu1  ;;  %4344 = vmatpush1.bf16.msra.mxu1 %v7294_v58 }
 0x195   : > { %11671 = vst [vmem:[#allocation104_spill] sm:$0xff] %v9413_v55  ;;  %v9421_v42 = vadd.f32 %v2246_v45, %v2053_v32  ;;  %v2057_v36 = vpop.f32.mrf.mxu0  ;;  %3228 = vmatmul.mubr.bf16.gmra.mxu0 %v11673_v4  ;;  %v7305_v45 = vld [vmem:[%s11428_s2 + $0x744] ss:$8 sps:$4 sm:$0xff]   ;;  %v7273_v55 = vld [vmem:[%s11428_s2 + $0x640] ss:$8 sps:$4 sm:$0xff]   ;;  %4345 = vmatprep.subr.bf16.mxu1 %v7302_v39 }
 0x196   : > { %v2250_v16 = vpop.f32.mrf.mxu1  ;;  %6363 = vmatmul.mubr.msk.bf16.gmra.mxu1 %vm8736_vm5, %v8840_v25  ;;  %3237 = vmatprep.mubr.bf16.mxu0 %v11675_v27  ;;  %v7276_v39 = vld [vmem:[%s11428_s2 + $0x630] ss:$8 sps:$4 sm:$0xff]  }
 0x197   : > { %11672 = vst [vmem:[#allocation105_spill] sm:$0xff] %v9421_v42  ;;  %v9436_v32 = vadd.f32 %v2250_v16, %v2057_v36  ;;  %6366 = vmatprep.mubr.msk.bf16.mxu1 %vm8736_vm5, %v8842_v6  ;;  %v2059_v58 = vpop.f32.mrf.mxu0  ;;  %4153 = vmatpush1.bf16.msra.mxu0 %v7270_v52  ;;  %v7278_v36 = vld [vmem:[%s11428_s2 + $0x634] ss:$8 sps:$4 sm:$0xff]   ;;  %v7303_v16 = vld [vmem:[%s11428_s2 + $0x740] ss:$8 sps:$4 sm:$0xff]  }
 0x198   : > { %v2252_v42 = vpop.f32.mrf.mxu1  ;;  %4154 = vmatprep.subr.bf16.mxu0 %v7275_v18  ;;  %4346 = vmatpush1.bf16.msra.mxu1 %v7300_v59  ;;  %v7281_v59 = vld [vmem:[%s11428_s2 + $0x624] ss:$8 sps:$4 sm:$0xff]  }
 0x199   : > { %11674 = vst [vmem:[#allocation14_spill] sm:$0xff] %v9436_v32  ;;  %v9445_v25 = vadd.f32 %v2252_v42, %v2059_v58  ;;  %v2061_v6 = vpop.f32.mrf.mxu0  ;;  %4347 = vmatprep.subr.bf16.mxu1 %v7305_v45  ;;  %v7311_v42 = vld [vmem:[%s11428_s2 + $0x734] ss:$8 sps:$4 sm:$0xff]  }
 0x19a   : > { %v2254_v32 = vpop.f32.mrf.mxu1  ;;  %v11681_v58 = vld [vmem:[#allocation19_spill] sm:$0xff] }
 0x19b   : > { %11676 = vst [vmem:[#allocation106_spill] sm:$0xff] %v9445_v25  ;;  %v9453_v52 = vadd.f32 %v2254_v32, %v2061_v6  ;;  %v2063_v24 = vpop.f32.mrf.mxu0  ;;  %4155 = vmatpush1.bf16.msra.mxu0 %v7273_v55  ;;  %v7309_v6 = vld [vmem:[%s11428_s2 + $0x730] ss:$8 sps:$4 sm:$0xff]   ;;  %v11679_v32 = vld [vmem:[#allocation18_spill] sm:$0xff] }
 0x19c   : > { %v2256_v27 = vpop.f32.mrf.mxu1  ;;  %4156 = vmatprep.subr.bf16.mxu0 %v7278_v36  ;;  %4348 = vmatpush1.bf16.msra.mxu1 %v7303_v16 }
 0x19d   : > { %11677 = vst [vmem:[#allocation107_spill] sm:$0xff] %v9453_v52  ;;  %v9461_v18 = vadd.f32 %v2256_v27, %v2063_v24  ;;  %v2067_v55 = vpop.f32.mrf.mxu0  ;;  %3238 = vmatmul.mubr.bf16.gmra.mxu0 %v11679_v32  ;;  %v7314_v24 = vld [vmem:[%s11428_s2 + $0x724] ss:$8 sps:$4 sm:$0xff]   ;;  %4349 = vmatprep.subr.bf16.mxu1 %v7311_v42  ;;  %v7282_v42 = vld [vmem:[%s11428_s2 + $0x610] ss:$8 sps:$4 sm:$0xff]  }
 0x19e   : > { %v2260_v45 = vpop.f32.mrf.mxu1  ;;  %6369 = vmatmul.mubr.msk.bf16.gmra.mxu1 %vm8736_vm5, %v8886_v13  ;;  %3247 = vmatprep.mubr.bf16.mxu0 %v11681_v58 }
 0x19f   : > { %11678 = vst [vmem:[#allocation108_spill] sm:$0xff] %v9461_v18  ;;  %v9476_v27 = vadd.f32 %v2260_v45, %v2067_v55  ;;  %6372 = vmatprep.mubr.msk.bf16.mxu1 %vm8736_vm5, %v8888_v30  ;;  %v2069_v36 = vpop.f32.mrf.mxu0  ;;  %4157 = vmatpush1.bf16.msra.mxu0 %v7276_v39  ;;  %v7279_v18 = vld [vmem:[%s11428_s2 + $0x620] ss:$8 sps:$4 sm:$0xff]   ;;  %v7284_v55 = vld [vmem:[%s11428_s2 + $0x614] ss:$8 sps:$4 sm:$0xff]  }
 0x1a0   : > { %v2262_v16 = vpop.f32.mrf.mxu1  ;;  %4158 = vmatprep.subr.bf16.mxu0 %v7281_v59  ;;  %4350 = vmatpush1.bf16.msra.mxu1 %v7309_v6  ;;  %v7312_v45 = vld [vmem:[%s11428_s2 + $0x720] ss:$8 sps:$4 sm:$0xff]   ;;  %v7320_v59 = vld [vmem:[%s11428_s2 + $0x714] ss:$8 sps:$4 sm:$0xff]  }
 0x1a1   : > { %11680 = vst [vmem:[#allocation18_spill] sm:$0xff] %v9476_v27  ;;  %v9485_v13 = vadd.f32 %v2262_v16, %v2069_v36  ;;  %v2071_v30 = vpop.f32.mrf.mxu0  ;;  %4351 = vmatprep.subr.bf16.mxu1 %v7314_v24  ;;  %v7287_v24 = vld [vmem:[%s11428_s2 + $0x604] ss:$8 sps:$4 sm:$0xff]  }
 0x1a2   : > { %v2264_v27 = vpop.f32.mrf.mxu1  ;;  %v11685_v36 = vld [vmem:[#allocation22_spill] sm:$0xff]  ;;  %v11686_v16 = vld [vmem:[#allocation69_spill] sm:$0xff] }
 0x1a3   : > { %11682 = vst [vmem:[#allocation19_spill] sm:$0xff] %v9485_v13  ;;  %v9493_v39 = vadd.f32 %v2264_v27, %v2071_v30  ;;  %v2073_v52 = vpop.f32.mrf.mxu0  ;;  %4159 = vmatpush1.bf16.msra.mxu0 %v7279_v18  ;;  %v7318_v30 = vld [vmem:[%s11428_s2 + $0x710] ss:$8 sps:$4 sm:$0xff]   ;;  %v7285_v13 = vld [vmem:[%s11428_s2 + $0x600] ss:$8 sps:$4 sm:$0xff]  }
 0x1a4   : > { %v2266_v25 = vpop.f32.mrf.mxu1  ;;  %4160 = vmatprep.subr.bf16.mxu0 %v7284_v55  ;;  %4352 = vmatpush1.bf16.msra.mxu1 %v7312_v45  ;;  %v11688_v55 = vld [vmem:[#allocation23_spill] sm:$0xff]  ;;  %v11689_v45 = vld [vmem:[#allocation70_spill] sm:$0xff] }
 0x1a5   : > { %11683 = vst [vmem:[#allocation109_spill] sm:$0xff] %v9493_v39  ;;  %v9501_v6 = vadd.f32 %v2266_v25, %v2073_v52  ;;  %v2077_v18 = vpop.f32.mrf.mxu0  ;;  %3248 = vmatmul.mubr.bf16.gmra.mxu0 %v11685_v36  ;;  %v7323_v25 = vld [vmem:[%s11428_s2 + $0x704] ss:$8 sps:$4 sm:$0xff]   ;;  %4353 = vmatprep.subr.bf16.mxu1 %v7320_v59  ;;  %v7329_v59 = vld [vmem:[%s11428_s2 + $0x7f4] ss:$8 sps:$4 sm:$0xff]  }
 0x1a6   : > { %v2270_v27 = vpop.f32.mrf.mxu1  ;;  %6375 = vmatmul.mubr.msk.bf16.gmra.mxu1 %vm8736_vm5, %v11686_v16  ;;  %3257 = vmatprep.mubr.bf16.mxu0 %v11688_v55 }
 0x1a7   : > { %11684 = vst [vmem:[#allocation110_spill] sm:$0xff] %v9501_v6  ;;  %v9516_v52 = vadd.f32 %v2270_v27, %v2077_v18  ;;  %6378 = vmatprep.mubr.msk.bf16.mxu1 %vm8736_vm5, %v11689_v45  ;;  %v2079_v6 = vpop.f32.mrf.mxu0  ;;  %4161 = vmatpush1.bf16.msra.mxu0 %v7282_v42  ;;  %v7290_v18 = vld [vmem:[%s11428_s2 + $0x6f4] ss:$8 sps:$4 sm:$0xff]   ;;  %v7321_v27 = vld [vmem:[%s11428_s2 + $0x700] ss:$8 sps:$4 sm:$0xff]  }
 0x1a8   : > { %v2272_v39 = vpop.f32.mrf.mxu1  ;;  %4162 = vmatprep.subr.bf16.mxu0 %v7287_v24  ;;  %4354 = vmatpush1.bf16.msra.mxu1 %v7318_v30  ;;  %v7299_v24 = vld [vmem:[%s11428_s2 + $0x6e4] ss:$8 sps:$4 sm:$0xff]  }
 0x1a9   : > { %11687 = vst [vmem:[#allocation111_spill] sm:$0xff] %v9516_v52  ;;  %v9525_v16 = vadd.f32 %v2272_v39, %v2079_v6  ;;  %v2081_v45 = vpop.f32.mrf.mxu0  ;;  %4355 = vmatprep.subr.bf16.mxu1 %v7323_v25  ;;  %v7288_v39 = vld [vmem:[%s11428_s2 + $0x6f0] ss:$8 sps:$4 sm:$0xff]  }
 0x1aa   : > { %v2274_v52 = vpop.f32.mrf.mxu1 }
 0x1ab   : > { %11690 = vst [vmem:[#allocation112_spill] sm:$0xff] %v9525_v16  ;;  %v9533_v42 = vadd.f32 %v2274_v52, %v2081_v45  ;;  %v2083_v55 = vpop.f32.mrf.mxu0  ;;  %4163 = vmatpush1.bf16.msra.mxu0 %v7285_v13  ;;  %v7327_v13 = vld [vmem:[%s11428_s2 + $0x7f0] ss:$8 sps:$4 sm:$0xff]   ;;  %v11693_v52 = vld [vmem:[#allocation26_spill] sm:$0xff] }
 0x1ac   : > { %v2276_v36 = vpop.f32.mrf.mxu1  ;;  %4164 = vmatprep.subr.bf16.mxu0 %v7290_v18  ;;  %4356 = vmatpush1.bf16.msra.mxu1 %v7321_v27  ;;  %v11695_v45 = vld [vmem:[#allocation27_spill] sm:$0xff] }
 0x1ad   : > { %11691 = vst [vmem:[#allocation113_spill] sm:$0xff] %v9533_v42  ;;  %v9541_v6 = vadd.f32 %v2276_v36, %v2083_v55  ;;  %v2087_v30 = vpop.f32.mrf.mxu0  ;;  %3258 = vmatmul.mubr.bf16.gmra.mxu0 %v11693_v52  ;;  %v7332_v36 = vld [vmem:[%s11428_s2 + $0x7e4] ss:$8 sps:$4 sm:$0xff]   ;;  %4357 = vmatprep.subr.bf16.mxu1 %v7329_v59  ;;  %v11698_v59 = vld [vmem:[#allocation71_spill] sm:$0xff] }
 0x1ae   : > { %v2280_v25 = vpop.f32.mrf.mxu1  ;;  %6381 = vmatmul.mubr.msk.bf16.gmra.mxu1 %vm8736_vm5, %v8984_v51  ;;  %3267 = vmatprep.mubr.bf16.mxu0 %v11695_v45 }
 0x1af   : > { %11692 = vst [vmem:[#allocation114_spill] sm:$0xff] %v9541_v6  ;;  %v9556_v55 = vadd.f32 %v2280_v25, %v2087_v30  ;;  %6384 = vmatprep.mubr.msk.bf16.mxu1 %vm8736_vm5, %v8987_v22  ;;  %v2089_v18 = vpop.f32.mrf.mxu0  ;;  %4165 = vmatpush2.bf16.msra.mxu0 %v7288_v39  ;;  %v7297_v6 = vld [vmem:[%s11428_s2 + $0x6e0] ss:$8 sps:$4 sm:$0xff]   ;;  %v7308_v30 = vld [vmem:[%s11428_s2 + $0x6d4] ss:$8 sps:$4 sm:$0xff]  }
 0x1b0   : > { %v2282_v27 = vpop.f32.mrf.mxu1  ;;  %4166 = vmatprep.subr.bf16.mxu0 %v7299_v24  ;;  %4358 = vmatpush2.bf16.msra.mxu1 %v7327_v13  ;;  %v7330_v25 = vld [vmem:[%s11428_s2 + $0x7e0] ss:$8 sps:$4 sm:$0xff]   ;;  %v7306_v13 = vld [vmem:[%s11428_s2 + $0x6d0] ss:$8 sps:$4 sm:$0xff]  }
 0x1b1   : > { %11694 = vst [vmem:[#allocation115_spill] sm:$0xff] %v9556_v55  ;;  %v9565_v51 = vadd.f32 %v2282_v27, %v2089_v18  ;;  %v2091_v22 = vpop.f32.mrf.mxu0  ;;  %4359 = vmatprep.subr.bf16.mxu1 %v7332_v36  ;;  %v881_v18 = vrot.slane %v11698_v59, 1  ;;  %v11699_v27 = vld [vmem:[#allocation72_spill] sm:$0xff] }
 0x1b2   : > { %v2284_v55 = vpop.f32.mrf.mxu1  ;;  %v882_v24 = vrot.slane %v11699_v27, 1 }
 0x1b3   : > { %11696 = vst [vmem:[#allocation116_spill] sm:$0xff] %v9565_v51  ;;  %v9573_v39 = vadd.f32 %v2284_v55, %v2091_v22  ;;  %v2093_v42 = vpop.f32.mrf.mxu0  ;;  %4167 = vmatpush2.bf16.msra.mxu0 %v7297_v6  ;;  %v7338_v51 = vld [vmem:[%s11428_s2 + $0x7d4] ss:$8 sps:$4 sm:$0xff]   ;;  %v7317_v22 = vld [vmem:[%s11428_s2 + $0x6c4] ss:$8 sps:$4 sm:$0xff]  }
 0x1b4   : > { %v2286_v16 = vpop.f32.mrf.mxu1  ;;  %4168 = vmatprep.subr.bf16.mxu0 %v7308_v30  ;;  %4360 = vmatpush2.bf16.msra.mxu1 %v7330_v25  ;;  %v7336_v6 = vld [vmem:[%s11428_s2 + $0x7d0] ss:$8 sps:$4 sm:$0xff]  }
 0x1b5   : > { %11697 = vst [vmem:[#allocation117_spill] sm:$0xff] %v9573_v39  ;;  %v9583_v45 = vadd.f32 %v2286_v16, %v2093_v42  ;;  %v2097_v36 = vpop.f32.mrf.mxu0  ;;  %v11701_v39 = vld [vmem:[#allocation30_spill] sm:$0xff]  ;;  %v11703_v30 = vld [vmem:[#allocation31_spill] sm:$0xff]  ;;  %4361 = vmatprep.subr.bf16.mxu1 %v7338_v51  ;;  %v9621_v51 = vpack.c.bf16 %v11699_v27, %v11698_v59 }
 0x1b6   : > { %v2290_v55 = vpop.f32.mrf.mxu1  ;;  %3268 = vmatmul.mubr.bf16.gmra.mxu0 %v11701_v39  ;;  %6387 = vmatmul.mubr.msk.bf16.gmra.mxu1 %vm8736_vm5, %v9039_v50  ;;  %v7341_v16 = vld [vmem:[%s11428_s2 + $0x7c4] ss:$8 sps:$4 sm:$0xff]   ;;  %v883_v39 = vsel %vm835_vm4, %v881_v18, %v882_v24  ;;  %v7315_v50 = vld [vmem:[%s11428_s2 + $0x6c0] ss:$8 sps:$4 sm:$0xff]  }
 0x1b7   : > { %11700 = vst [vmem:[#allocation71_spill] sm:$0xff] %v9583_v45  ;;  %v9598_v42 = vadd.f32 %v2290_v55, %v2097_v36  ;;  %3277 = vmatprep.mubr.bf16.mxu0 %v11703_v30  ;;  %6390 = vmatprep.mubr.msk.bf16.mxu1 %vm8736_vm5, %v9043_v2  ;;  %v2099_v25 = vpop.f32.mrf.mxu0  ;;  %v7326_v36 = vld [vmem:[%s11428_s2 + $0x6b4] ss:$8 sps:$4 sm:$0xff]   ;;  %v7339_v55 = vld [vmem:[%s11428_s2 + $0x7c0] ss:$8 sps:$4 sm:$0xff]  }
 0x1b8   : > { %v2292_v45 = vpop.f32.mrf.mxu1  ;;  %4169 = vmatpush2.bf16.msra.mxu0 %v7306_v13  ;;  %4362 = vmatpush2.bf16.msra.mxu1 %v7336_v6  ;;  %v878_v13 = vrot.slane %v9025_v48, 1 }
 0x1b9   : > { %11702 = vst [vmem:[#allocation72_spill] sm:$0xff] %v9598_v42  ;;  %v9608_v52 = vadd.f32 %v2292_v45, %v2099_v25  ;;  %4170 = vmatprep.subr.bf16.mxu0 %v7317_v22  ;;  %v2101_v2 = vpop.f32.mrf.mxu0  ;;  %4363 = vmatprep.subr.bf16.mxu1 %v7341_v16  ;;  %v9623_v45 = vpack.c.bf16 %v882_v24, %v883_v39  ;;  %v879_v22 = vrot.slane %v9028_v17, 1  ;;  %v7335_v39 = vld [vmem:[%s11428_s2 + $0x6a4] ss:$8 sps:$4 sm:$0xff]  }
 0x1ba   : > { %v2294_v18 = vpop.f32.mrf.mxu1  ;;  %v11707_v24 = vld [vmem:[#allocation34_spill] sm:$0xff] }
 0x1bb   : > { %11704 = vst [vmem:[#allocation31_spill] sm:$0xff] %v9608_v52  ;;  %v9617_v42 = vadd.f32 %v2294_v18, %v2101_v2  ;;  %11705 = vst [vmem:[#allocation118_spill] sm:$0xff] %v9623_v45  ;;  %v2103_v6 = vpop.f32.mrf.mxu0  ;;  %v7324_v52 = vld [vmem:[%s11428_s2 + $0x6b0] ss:$8 sps:$4 sm:$0xff]   ;;  %v7347_v2 = vld [vmem:[%s11428_s2 + $0x7b4] ss:$8 sps:$4 sm:$0xff]  }
 0x1bc   : > { %v2296_v25 = vpop.f32.mrf.mxu1  ;;  %4171 = vmatpush2.bf16.msra.mxu0 %v7315_v50  ;;  %4364 = vmatpush2.bf16.msra.mxu1 %v7339_v55  ;;  %v7345_v50 = vld [vmem:[%s11428_s2 + $0x7b0] ss:$8 sps:$4 sm:$0xff]   ;;  %v880_v55 = vsel %vm835_vm4, %v878_v13, %v879_v22  ;;  %v7348_v13 = vld [vmem:[%s11428_s2 + $0x7a0] ss:$8 sps:$4 sm:$0xff]  }
 0x1bd   : > { %v9632_v16 = vadd.f32 %v2296_v25, %v2103_v6  ;;  %4172 = vmatprep.subr.bf16.mxu0 %v7326_v36  ;;  %v2107_v59 = vpop.f32.mrf.mxu0  ;;  %v7350_v36 = vld [vmem:[%s11428_s2 + $0x7a4] ss:$8 sps:$4 sm:$0xff]   ;;  %4365 = vmatprep.subr.bf16.mxu1 %v7347_v2 }
 0x1be   : > { %v2300_v27 = vpop.f32.mrf.mxu1  ;;  %3278 = vmatmul.mubr.bf16.gmra.mxu0 %v11707_v24  ;;  %6393 = vmatmul.mubr.msk.bf16.gmra.mxu1 %vm8736_vm5, %v9087_v29  ;;  %v7333_v29 = vld [vmem:[%s11428_s2 + $0x6a0] ss:$8 sps:$4 sm:$0xff]  }
 0x1bf   : > { %11706 = vst [vmem:[#allocation119_spill] sm:$0xff] %v9632_v16  ;;  %v9647_v18 = vadd.f32 %v2300_v27, %v2107_v59  ;;  %3287 = vmatprep.mubr.bf16.mxu0 %v9621_v51  ;;  %6396 = vmatprep.mubr.msk.bf16.mxu1 %vm8736_vm5, %v9623_v45  ;;  %v2109_v6 = vpop.f32.mrf.mxu0  ;;  %v7344_v59 = vld [vmem:[%s11428_s2 + $0x694] ss:$8 sps:$4 sm:$0xff]  }
 0x1c0   : > { %v2302_v25 = vpop.f32.mrf.mxu1  ;;  %4173 = vmatpush2.bf16.msra.mxu0 %v7324_v52  ;;  %4366 = vmatpush2.bf16.msra.mxu1 %v7345_v50  ;;  %v9667_v52 = vpack.c.bf16 %v9028_v17, %v9025_v48  ;;  %v7342_v50 = vld [vmem:[%s11428_s2 + $0x690] ss:$8 sps:$4 sm:$0xff]   ;;  %v7353_v48 = vld [vmem:[%s11428_s2 + $0x684] ss:$8 sps:$4 sm:$0xff]  }
 0x1c1   : > { %11708 = vst [vmem:[#allocation34_spill] sm:$0xff] %v9647_v18  ;;  %v9657_v16 = vadd.f32 %v2302_v25, %v2109_v6  ;;  %4174 = vmatprep.subr.bf16.mxu0 %v7335_v39  ;;  %v2111_v27 = vpop.f32.mrf.mxu0  ;;  %v9669_v18 = vpack.c.bf16 %v879_v22, %v880_v55  ;;  %4367 = vmatprep.subr.bf16.mxu1 %v7350_v36  ;;  %v7356_v25 = vld [vmem:[%s11428_s2 + $0x794] ss:$8 sps:$4 sm:$0xff]   ;;  %v7354_v17 = vld [vmem:[%s11428_s2 + $0x790] ss:$8 sps:$4 sm:$0xff]  }
 0x1c2   : > { %v2304_v45 = vpop.f32.mrf.mxu1  ;;  %v7359_v22 = vld [vmem:[%s11428_s2 + $0x784] ss:$8 sps:$4 sm:$0xff]   ;;  %v11712_v55 = vld [vmem:[#allocation35_spill] sm:$0xff] }
 0x1c3   : > { %11709 = vst [vmem:[#allocation120_spill] sm:$0xff] %v9657_v16  ;;  %11710 = vst [vmem:[#allocation121_spill] sm:$0xff] %v9669_v18  ;;  %v9671_v2 = vadd.f32 %v2304_v45, %v2111_v27  ;;  %v2113_v39 = vpop.f32.mrf.mxu0  ;;  %v7351_v27 = vld [vmem:[%s11428_s2 + $0x680] ss:$8 sps:$4 sm:$0xff]  }
 0x1c4   : > { %v2306_v6 = vpop.f32.mrf.mxu1  ;;  %4175 = vmatpush2.bf16.msra.mxu0 %v7333_v29  ;;  %4368 = vmatpush2.bf16.msra.mxu1 %v7348_v13 }
 0x1c5   : > { %v9679_v16 = vadd.f32 %v2306_v6, %v2113_v39  ;;  %4176 = vmatprep.subr.bf16.mxu0 %v7344_v59  ;;  %v2117_v29 = vpop.f32.mrf.mxu0  ;;  %4369 = vmatprep.subr.bf16.mxu1 %v7356_v25  ;;  %v7357_v6 = vld [vmem:[%s11428_s2 + $0x780] ss:$8 sps:$4 sm:$0xff]  }
 0x1c6   : > { %v2310_v45 = vpop.f32.mrf.mxu1  ;;  %3288 = vmatmul.mubr.bf16.gmra.mxu0 %v9667_v52  ;;  %6399 = vmatmul.mubr.msk.bf16.gmra.mxu1 %vm8736_vm5, %v9669_v18 }
 0x1c7   : > { %v9694_v36 = vadd.f32 %v2310_v45, %v2117_v29  ;;  %3297 = vmatprep.mubr.bf16.mxu0 %v11712_v55  ;;  %6402 = vmatprep.mubr.msk.bf16.mxu1 %vm8736_vm5, %v9130_v57  ;;  %v2119_v59 = vpop.f32.mrf.mxu0  ;;  %v7362_v57 = vld [vmem:[%s11428_s2 + $0x874] ss:$8 sps:$4 sm:$0xff]  }
 0x1c8   : > { %v2312_v13 = vpop.f32.mrf.mxu1  ;;  %4177 = vmatpush2.bf16.msra.mxu0 %v7342_v50  ;;  %4370 = vmatpush2.bf16.msra.mxu1 %v7354_v17 }
 0x1c9   : > { %11711 = vst [vmem:[#allocation122_spill] sm:$0xff] %v9694_v36  ;;  %v9703_v39 = vadd.f32 %v2312_v13, %v2119_v59  ;;  %4178 = vmatprep.subr.bf16.mxu0 %v7353_v48  ;;  %v2121_v29 = vpop.f32.mrf.mxu0  ;;  %4371 = vmatprep.subr.bf16.mxu1 %v7359_v22  ;;  %v11716_v59 = vld [vmem:[#allocation36_spill] sm:$0xff]  ;;  %v11718_v22 = vld [vmem:[#allocation38_spill] sm:$0xff] }
 0x1ca   : > { %v2314_v45 = vpop.f32.mrf.mxu1  ;;  %v11717_v13 = vld [vmem:[#allocation80_spill] sm:$0xff] }
 0x1cb   : > { %11713 = vst [vmem:[#allocation35_spill] sm:$0xff] %v9703_v39  ;;  %v9711_v50 = vadd.f32 %v2314_v45, %v2121_v29  ;;  %v2123_v55 = vpop.f32.mrf.mxu0  ;;  %v11720_v36 = vld [vmem:[#allocation40_spill] sm:$0xff] }
 0x1cc   : > { %v2316_v18 = vpop.f32.mrf.mxu1  ;;  %4179 = vmatpush2.bf16.msra.mxu0 %v7351_v27  ;;  %4372 = vmatpush2.bf16.msra.mxu1 %v7357_v6 }
 0x1cd   : > { %11714 = vst [vmem:[#allocation123_spill] sm:$0xff] %v9711_v50  ;;  %v9713_v25 = vadd.f32 %v2316_v18, %v2123_v55  ;;  %4534 = vmatprep.subr.bf16.mxu0 %v7362_v57  ;;  %v2353_v48 = vpop.f32.mrf.mxu0  ;;  %v11719_v57 = vld [vmem:[#allocation81_spill] sm:$0xff] }
 0x1ce   : > { %v3026_v17 = vpop.f32.mrf.mxu1  ;;  %3298 = vmatmul.mubr.bf16.gmra.mxu0 %v11716_v59  ;;  %6405 = vmatmul.mubr.msk.bf16.gmra.mxu1 %vm8736_vm5, %v9157_v28  ;;  %v2354_v39 = vadd.f32 %v2353_v48, %v11717_v13 }
 0x1cf   : > { %11715 = vst [vmem:[#allocation124_spill] sm:$0xff] %v9713_v25  ;;  %3307 = vmatprep.mubr.bf16.mxu0 %v11718_v22  ;;  %6408 = vmatprep.mubr.msk.bf16.mxu1 %vm8736_vm5, %v9161_v56  ;;  %v2355_v18 = vpop.f32.mrf.mxu0 }
 0x1d0   : > { %v3028_v27 = vpop.f32.mrf.mxu1  ;;  %v9724_v6 = vadd.f32 %v3026_v17, %v2354_v39  ;;  %v2356_v29 = vadd.f32 %v2355_v18, %v11719_v57  ;;  %v11721_v18 = vld [vmem:[#allocation42_spill] sm:$0xff] }
 0x1d1   : > { %v2357_v45 = vpop.f32.mrf.mxu0 }
 0x1d2   : > { %v3030_v55 = vpop.f32.mrf.mxu1  ;;  %v9727_v59 = vadd.f32 %v3028_v27, %v2356_v29  ;;  %v2358_v28 = vadd.f32 %v2357_v45, %v9159_v3 }
 0x1d3   : > { %v2359_v25 = vpop.f32.mrf.mxu0 }
 0x1d4   : > { %v3032_v48 = vpop.f32.mrf.mxu1  ;;  %v9730_v13 = vadd.f32 %v3030_v55, %v2358_v28  ;;  %v2360_v50 = vadd.f32 %v2359_v25, %v9167_v54 }
 0x1d5   : > { %v2363_v22 = vpop.f32.mrf.mxu0 }
 0x1d6   : > { %v3036_v56 = vpop.f32.mrf.mxu1  ;;  %3308 = vmatmul.mubr.bf16.gmra.mxu0 %v11720_v36  ;;  %6411 = vmatmul.mubr.msk.bf16.gmra.mxu1 %vm8736_vm5, %v9187_v21  ;;  %v9737_v39 = vadd.f32 %v3032_v48, %v2360_v50  ;;  %v2364_v17 = vadd.f32 %v2363_v22, %v9175_v63  ;;  %v11722_v21 = vld [vmem:[#allocation44_spill] sm:$0xff] }
 0x1d7   : > { %3317 = vmatprep.mubr.bf16.mxu0 %v11721_v18  ;;  %6414 = vmatprep.mubr.msk.bf16.mxu1 %vm8736_vm5, %v9191_v34  ;;  %v2365_v3 = vpop.f32.mrf.mxu0 }
 0x1d8   : > { %v3038_v54 = vpop.f32.mrf.mxu1  ;;  %v9744_v25 = vadd.f32 %v3036_v56, %v2364_v17  ;;  %v2366_v27 = vadd.f32 %v2365_v3, %v9185_v41  ;;  %v11723_v17 = vld [vmem:[#allocation46_spill] sm:$0xff] }
 0x1d9   : > { %v2367_v57 = vpop.f32.mrf.mxu0 }
 0x1da   : > { %v3040_v29 = vpop.f32.mrf.mxu1  ;;  %v9747_v45 = vadd.f32 %v3038_v54, %v2366_v27  ;;  %v2368_v50 = vadd.f32 %v2367_v57, %v9189_v19 }
 0x1db   : > { %v2369_v55 = vpop.f32.mrf.mxu0 }
 0x1dc   : > { %v3042_v63 = vpop.f32.mrf.mxu1  ;;  %v9750_v22 = vadd.f32 %v3040_v29, %v2368_v50  ;;  %v2370_v28 = vadd.f32 %v2369_v55, %v9197_v23 }
 0x1dd   : > { %v2373_v48 = vpop.f32.mrf.mxu0 }
 0x1de   : > { %v3046_v34 = vpop.f32.mrf.mxu1  ;;  %3318 = vmatmul.mubr.bf16.gmra.mxu0 %v11722_v21  ;;  %6417 = vmatmul.mubr.msk.bf16.gmra.mxu1 %vm8736_vm5, %v9217_v40  ;;  %v9757_v56 = vadd.f32 %v3042_v63, %v2370_v28  ;;  %v2374_v41 = vadd.f32 %v2373_v48, %v9205_v10  ;;  %v11724_v40 = vld [vmem:[#allocation48_spill] sm:$0xff] }
 0x1df   : > { %3327 = vmatprep.mubr.bf16.mxu0 %v11723_v17  ;;  %6420 = vmatprep.mubr.msk.bf16.mxu1 %vm8736_vm5, %v9221_v44  ;;  %v2375_v19 = vpop.f32.mrf.mxu0 }
 0x1e0   : > { %v3048_v23 = vpop.f32.mrf.mxu1  ;;  %v9764_v3 = vadd.f32 %v3046_v34, %v2374_v41  ;;  %v2376_v54 = vadd.f32 %v2375_v19, %v9215_v12  ;;  %v11725_v41 = vld [vmem:[#allocation50_spill] sm:$0xff] }
 0x1e1   : > { %v2377_v27 = vpop.f32.mrf.mxu0 }
 0x1e2   : > { %v3050_v57 = vpop.f32.mrf.mxu1  ;;  %v9767_v29 = vadd.f32 %v3048_v23, %v2376_v54  ;;  %v2378_v50 = vadd.f32 %v2377_v27, %v9219_v43 }
 0x1e3   : > { %v2379_v55 = vpop.f32.mrf.mxu0 }
 0x1e4   : > { %v3052_v10 = vpop.f32.mrf.mxu1  ;;  %v9770_v63 = vadd.f32 %v3050_v57, %v2378_v50  ;;  %v2380_v28 = vadd.f32 %v2379_v55, %v9227_v38 }
 0x1e5   : > { %v2383_v48 = vpop.f32.mrf.mxu0 }
 0x1e6   : > { %v3056_v44 = vpop.f32.mrf.mxu1  ;;  %3328 = vmatmul.mubr.bf16.gmra.mxu0 %v11724_v40  ;;  %6423 = vmatmul.mubr.msk.bf16.gmra.mxu1 %vm8736_vm5, %v9247_v20  ;;  %v9777_v34 = vadd.f32 %v3052_v10, %v2380_v28  ;;  %v2384_v12 = vadd.f32 %v2383_v48, %v9235_v37  ;;  %v11728_v20 = vld [vmem:[#allocation52_spill] sm:$0xff] }
 0x1e7   : > { %3337 = vmatprep.mubr.bf16.mxu0 %v11725_v41  ;;  %6426 = vmatprep.mubr.msk.bf16.mxu1 %vm8736_vm5, %v9251_v35  ;;  %v2385_v43 = vpop.f32.mrf.mxu0 }
 0x1e8   : > { %v3058_v38 = vpop.f32.mrf.mxu1  ;;  %v9784_v19 = vadd.f32 %v3056_v44, %v2384_v12  ;;  %v2386_v23 = vadd.f32 %v2385_v43, %v9245_v7  ;;  %v11730_v12 = vld [vmem:[#allocation54_spill] sm:$0xff] }
 0x1e9   : > { %v2387_v54 = vpop.f32.mrf.mxu0 }
 0x1ea   : > { %v3060_v27 = vpop.f32.mrf.mxu1  ;;  %v9787_v57 = vadd.f32 %v3058_v38, %v2386_v23  ;;  %v2388_v50 = vadd.f32 %v2387_v54, %v9249_v47  ;;  %v11732_v38 = vld [vmem:[#allocation89_spill] sm:$0xff] }
 0x1eb   : > { %v2389_v55 = vpop.f32.mrf.mxu0 }
 0x1ec   : > { %11726 = vst [vmem:[#allocation36_spill] sm:$0xff] %v9787_v57  ;;  %v3062_v37 = vpop.f32.mrf.mxu1  ;;  %v9790_v10 = vadd.f32 %v3060_v27, %v2388_v50  ;;  %v2390_v28 = vadd.f32 %v2389_v55, %v9257_v5  ;;  %v11734_v55 = vld [vmem:[#allocation93_spill] sm:$0xff] }
 0x1ed   : > { %v2393_v48 = vpop.f32.mrf.mxu0 }
 0x1ee   : > { %11727 = vst [vmem:[#allocation80_spill] sm:$0xff] %v9790_v10  ;;  %v3066_v35 = vpop.f32.mrf.mxu1  ;;  %3338 = vmatmul.mubr.bf16.gmra.mxu0 %v11728_v20  ;;  %6429 = vmatmul.mubr.msk.bf16.gmra.mxu1 %vm8736_vm5, %v9283_v33  ;;  %v9797_v44 = vadd.f32 %v3062_v37, %v2390_v28  ;;  %v2394_v7 = vadd.f32 %v2393_v48, %v9265_v53  ;;  %v11735_v48 = vld [vmem:[#allocation90_spill] sm:$0xff] }
 0x1ef   : > { %3347 = vmatprep.mubr.bf16.mxu0 %v11730_v12  ;;  %6432 = vmatprep.mubr.msk.bf16.mxu1 %vm8736_vm5, %v9287_v62  ;;  %v2395_v47 = vpop.f32.mrf.mxu0  ;;  %v929_v33 = vrot.slane %v11735_v48, 1  ;;  %v11738_v62 = vld [vmem:[#allocation95_spill] sm:$0xff] }
 0x1f0   : > { %11729 = vst [vmem:[#allocation81_spill] sm:$0xff] %v9797_v44  ;;  %v3068_v5 = vpop.f32.mrf.mxu1  ;;  %v9804_v43 = vadd.f32 %v3066_v35, %v2394_v7  ;;  %v2396_v23 = vadd.f32 %v2395_v47, %v11732_v38  ;;  %v11736_v44 = vld [vmem:[#allocation91_spill] sm:$0xff] }
 0x1f1   : > { %v2397_v54 = vpop.f32.mrf.mxu0  ;;  %v930_v10 = vrot.slane %v11736_v44, 1 }
 0x1f2   : > { %11731 = vst [vmem:[#allocation40_spill] sm:$0xff] %v9804_v43  ;;  %v3070_v27 = vpop.f32.mrf.mxu1  ;;  %v9807_v50 = vadd.f32 %v3068_v5, %v2396_v23  ;;  %v2398_v37 = vadd.f32 %v2397_v54, %v11734_v55  ;;  %v11739_v43 = vld [vmem:[#allocation58_spill] sm:$0xff]  ;;  %v11741_v5 = vld [vmem:[#allocation96_spill] sm:$0xff] }
 0x1f3   : > { %v2399_v28 = vpop.f32.mrf.mxu0  ;;  %v11742_v23 = vld [vmem:[#allocation60_spill] sm:$0xff] }
 0x1f4   : > { %11733 = vst [vmem:[#allocation42_spill] sm:$0xff] %v9807_v50  ;;  %v3072_v53 = vpop.f32.mrf.mxu1  ;;  %v9812_v57 = vadd.f32 %v3070_v27, %v2398_v37  ;;  %v2400_v12 = vadd.f32 %v2399_v28, %v11738_v62  ;;  %v931_v27 = vsel %vm835_vm4, %v929_v33, %v930_v10  ;;  %v11744_v37 = vld [vmem:[#allocation97_spill] sm:$0xff] }
 0x1f5   : > { %v2403_v35 = vpop.f32.mrf.mxu0 }
 0x1f6   : > { %11737 = vst [vmem:[#allocation44_spill] sm:$0xff] %v9812_v57  ;;  %v3076_v7 = vpop.f32.mrf.mxu1  ;;  %3348 = vmatmul.mubr.bf16.gmra.mxu0 %v11739_v43  ;;  %6435 = vmatmul.mubr.msk.bf16.gmra.mxu1 %vm8736_vm5, %v9322_v49  ;;  %v9819_v47 = vadd.f32 %v3072_v53, %v2400_v12  ;;  %v2404_v38 = vadd.f32 %v2403_v35, %v11741_v5  ;;  %v926_v12 = vrot.slane %v9313_v61, 1  ;;  %v927_v53 = vrot.slane %v9318_v31, 1 }
 0x1f7   : > { %3357 = vmatprep.mubr.bf16.mxu0 %v11742_v23  ;;  %6438 = vmatprep.mubr.msk.bf16.mxu1 %vm8736_vm5, %v9329_v11  ;;  %v2405_v54 = vpop.f32.mrf.mxu0  ;;  %v9837_v11 = vpack.c.bf16 %v11736_v44, %v11735_v48  ;;  %v11747_v23 = vld [vmem:[#allocation62_spill] sm:$0xff] }
 0x1f8   : > { %11740 = vst [vmem:[#allocation46_spill] sm:$0xff] %v9819_v47  ;;  %v3078_v62 = vpop.f32.mrf.mxu1  ;;  %v9827_v55 = vadd.f32 %v3076_v7, %v2404_v38  ;;  %v2406_v28 = vadd.f32 %v2405_v54, %v11744_v37  ;;  %v9839_v47 = vpack.c.bf16 %v930_v10, %v931_v27  ;;  %v11746_v54 = vld [vmem:[#allocation99_spill] sm:$0xff] }
 0x1f9   : > { %v2407_v57 = vpop.f32.mrf.mxu0 }
 0x1fa   : > { %11743 = vst [vmem:[#allocation48_spill] sm:$0xff] %v9827_v55  ;;  %v3080_v49 = vpop.f32.mrf.mxu1  ;;  %v9832_v35 = vadd.f32 %v3078_v62, %v2406_v28  ;;  %v2408_v5 = vadd.f32 %v2407_v57, %v9327_v46  ;;  %11745 = vst [vmem:[#allocation50_spill] sm:$0xff] %v9839_v47  ;;  %v11748_v57 = vld [vmem:[#allocation100_spill] sm:$0xff] }
 0x1fb   : > { %v2409_v33 = vpop.f32.mrf.mxu0 }
 0x1fc   : > { %v3082_v7 = vpop.f32.mrf.mxu1  ;;  %v9841_v38 = vadd.f32 %v3080_v49, %v2408_v5  ;;  %v2410_v37 = vadd.f32 %v2409_v33, %v11746_v54  ;;  %v928_v49 = vsel %vm835_vm4, %v926_v12, %v927_v53  ;;  %v9861_v33 = vpack.c.bf16 %v9318_v31, %v9313_v61 }
 0x1fd   : > { %v2413_v55 = vpop.f32.mrf.mxu0 }
 0x1fe   : > { %v3086_v50 = vpop.f32.mrf.mxu1  ;;  %3358 = vmatmul.mubr.bf16.gmra.mxu0 %v11747_v23  ;;  %6441 = vmatmul.mubr.msk.bf16.gmra.mxu1 %vm8736_vm5, %v9354_v26  ;;  %v9848_v46 = vadd.f32 %v3082_v7, %v2410_v37  ;;  %v2414_v44 = vadd.f32 %v2413_v55, %v11748_v57  ;;  %v9863_v55 = vpack.c.bf16 %v927_v53, %v928_v49  ;;  %v11750_v53 = vld [vmem:[#allocation12_spill] sm:$0xff] }
 0x1ff   : > { %3367 = vmatprep.mubr.bf16.mxu0 %v9837_v11  ;;  %6444 = vmatprep.mubr.msk.bf16.mxu1 %vm8736_vm5, %v9839_v47  ;;  %v2415_v10 = vpop.f32.mrf.mxu0 }
 0x200   : > { %v3088_v48 = vpop.f32.mrf.mxu1  ;;  %v9856_v62 = vadd.f32 %v3086_v50, %v2414_v44  ;;  %v2416_v27 = vadd.f32 %v2415_v10, %v9352_v9  ;;  %11749 = vst [vmem:[#allocation52_spill] sm:$0xff] %v9863_v55  ;;  %v11751_v10 = vld [vmem:[#allocation9_spill] sm:$0xff] }
 0x201   : > { %v2417_v28 = vpop.f32.mrf.mxu0 }
 0x202   : > { %v3090_v5 = vpop.f32.mrf.mxu1  ;;  %v9865_v7 = vadd.f32 %v3088_v48, %v2416_v27  ;;  %v2418_v54 = vadd.f32 %v2417_v28, %v9358_v14 }
 0x203   : > { %v2419_v37 = vpop.f32.mrf.mxu0 }
 0x204   : > { %v3092_v12 = vpop.f32.mrf.mxu1  ;;  %v9868_v57 = vadd.f32 %v3090_v5, %v2418_v54  ;;  %v2420_v50 = vadd.f32 %v2419_v37, %v9360_v1  ;;  %v11752_v54 = vld [vmem:[#allocation63_spill] sm:$0xff] }
 0x205   : > { %v2423_v44 = vpop.f32.mrf.mxu0 }
 0x206   : > { %v3096_v9 = vpop.f32.mrf.mxu1  ;;  %3368 = vmatmul.mubr.bf16.gmra.mxu0 %v9861_v33  ;;  %6447 = vmatmul.mubr.msk.bf16.gmra.mxu1 %vm8736_vm5, %v9863_v55  ;;  %v9875_v61 = vadd.f32 %v3092_v12, %v2420_v50  ;;  %v2424_v31 = vadd.f32 %v2423_v44, %v9368_v15  ;;  %v7360_v15 = vld [vmem:[%s11428_s2 + $0x870] ss:$8 sps:$4 sm:$0xff]  }
 0x207   : > { %6643 = vmatprep.mubr.msk.bf16.mxu0 %vm8048_vm3, %v11750_v53  ;;  %4373 = vmatprep.mubr.bf16.mxu1 %v11669_v0  ;;  %v2425_v14 = vpop.f32.mrf.mxu0  ;;  %v7365_v0 = vld [vmem:[%s11428_s2 + $0x864] ss:$8 sps:$4 sm:$0xff]  }
 0x208   : > { %v3098_v1 = vpop.f32.mrf.mxu1  ;;  %v9882_v49 = vadd.f32 %v3096_v9, %v2424_v31  ;;  %v2426_v48 = vadd.f32 %v2425_v14, %v11751_v10  ;;  %v11753_v9 = vld [vmem:[#allocation103_spill] sm:$0xff] }
 0x209   : > { %v2427_v27 = vpop.f32.mrf.mxu0 }
 0x20a   : > { %v3100_v28 = vpop.f32.mrf.mxu1  ;;  %v9885_v5 = vadd.f32 %v3098_v1, %v2426_v48  ;;  %v2428_v37 = vadd.f32 %v2427_v27, %v11752_v54  ;;  %v11754_v1 = vld [vmem:[#allocation13_spill] sm:$0xff]  ;;  %v11756_v48 = vld [vmem:[#allocation10_spill] sm:$0xff]  ;;  %v11757_v54 = vld [vmem:[#allocation16_spill] sm:$0xff] }
 0x20b   : > { %v2429_v12 = vpop.f32.mrf.mxu0 }
 0x20c   : > { %v3102_v50 = vpop.f32.mrf.mxu1  ;;  %v9894_v44 = vadd.f32 %v3100_v28, %v2428_v37  ;;  %v2430_v31 = vadd.f32 %v2429_v12, %v11753_v9  ;;  %v7363_v28 = vld [vmem:[%s11428_s2 + $0x860] ss:$8 sps:$4 sm:$0xff]   ;;  %v11758_v9 = vld [vmem:[#allocation15_spill] sm:$0xff] }
 0x20d   : > { %v2433_v53 = vpop.f32.mrf.mxu0 }
 0x20e   : > { %v3106_v14 = vpop.f32.mrf.mxu1  ;;  %6647 = vmatmul.mubr.msk.bf16.vlgmr.msra.gmra.mxu0 %vm8048_vm3, %v11754_v1  ;;  %4374 = vmatmul.mubr.bf16.vlgmr.msra.gmra.mxu1 %v11673_v4  ;;  %v9901_v10 = vadd.f32 %v3102_v50, %v2430_v31  ;;  %v2434_v27 = vadd.f32 %v2433_v53, %v11756_v48  ;;  %v7368_v4 = vld [vmem:[%s11428_s2 + $0x854] ss:$8 sps:$4 sm:$0xff]  }
 0x20f   : > { %4535 = vmatpush1.bf16.msra.mxu0 %v7360_v15  ;;  %6651 = vmatprep.mubr.msk.bf16.mxu0 %vm8048_vm3, %v11757_v54  ;;  %v2435_v37 = vpop.f32.mrf.mxu0  ;;  %v11760_v15 = vld [vmem:[#allocation11_spill] sm:$0xff]  ;;  %v11762_v54 = vld [vmem:[#allocation104_spill] sm:$0xff] }
 0x210   : > { %11755 = vst [vmem:[#allocation89_spill] sm:$0xff] %v9901_v10  ;;  %v3108_v12 = vpop.f32.mrf.mxu1  ;;  %4383 = vmatprep.mubr.bf16.mxu1 %v11758_v9  ;;  %4536 = vmatprep.subr.bf16.mxu0 %v7365_v0  ;;  %v9914_v50 = vadd.f32 %v3106_v14, %v2434_v27  ;;  %v2436_v31 = vadd.f32 %v2435_v37, %v11760_v15  ;;  %v7366_v0 = vld [vmem:[%s11428_s2 + $0x850] ss:$8 sps:$4 sm:$0xff]   ;;  %v11764_v14 = vld [vmem:[#allocation105_spill] sm:$0xff] }
 0x211   : > { %v2437_v53 = vpop.f32.mrf.mxu0  ;;  %v7371_v37 = vld [vmem:[%s11428_s2 + $0x844] ss:$8 sps:$4 sm:$0xff]  }
 0x212   : > { %11759 = vst [vmem:[#allocation93_spill] sm:$0xff] %v9914_v50  ;;  %v3110_v1 = vpop.f32.mrf.mxu1  ;;  %v9917_v48 = vadd.f32 %v3108_v12, %v2436_v31  ;;  %v2438_v55 = vadd.f32 %v2437_v53, %v11762_v54  ;;  %v11765_v31 = vld [vmem:[#allocation17_spill] sm:$0xff]  ;;  %v11767_v53 = vld [vmem:[#allocation14_spill] sm:$0xff] }
 0x213   : > { %4537 = vmatpush1.bf16.msra.mxu0 %v7363_v28  ;;  %v2439_v47 = vpop.f32.mrf.mxu0  ;;  %v7369_v54 = vld [vmem:[%s11428_s2 + $0x840] ss:$8 sps:$4 sm:$0xff]  }
 0x214   : > { %11761 = vst [vmem:[#allocation90_spill] sm:$0xff] %v9917_v48  ;;  %v3112_v26 = vpop.f32.mrf.mxu1  ;;  %4538 = vmatprep.subr.bf16.mxu0 %v7368_v4  ;;  %v9923_v9 = vadd.f32 %v3110_v1, %v2438_v55  ;;  %v2440_v27 = vadd.f32 %v2439_v47, %v11764_v14  ;;  %v11768_v55 = vld [vmem:[#allocation20_spill] sm:$0xff] }
 0x215   : > { %v2443_v12 = vpop.f32.mrf.mxu0 }
 0x216   : > { %11763 = vst [vmem:[#allocation91_spill] sm:$0xff] %v9923_v9  ;;  %v3116_v15 = vpop.f32.mrf.mxu1  ;;  %6655 = vmatmul.mubr.msk.bf16.gmra.mxu0 %vm8048_vm3, %v11765_v31  ;;  %4384 = vmatmul.mubr.bf16.gmra.mxu1 %v11679_v32  ;;  %v9933_v28 = vadd.f32 %v3112_v26, %v2440_v27  ;;  %v2444_v4 = vadd.f32 %v2443_v12, %v11767_v53  ;;  %v11770_v32 = vld [vmem:[#allocation106_spill] sm:$0xff]  ;;  %v7374_v27 = vld [vmem:[%s11428_s2 + $0x834] ss:$8 sps:$4 sm:$0xff]  }
 0x217   : > { %6659 = vmatprep.mubr.msk.bf16.mxu0 %vm8048_vm3, %v11768_v55  ;;  %4393 = vmatprep.mubr.bf16.mxu1 %v11681_v58  ;;  %v2445_v47 = vpop.f32.mrf.mxu0  ;;  %v11772_v58 = vld [vmem:[#allocation107_spill] sm:$0xff]  ;;  %v11812_v9 = vld [vmem:[#allocation72_spill] sm:$0xff] }
 0x218   : > { %11766 = vst [vmem:[#allocation95_spill] sm:$0xff] %v9933_v28  ;;  %v3118_v1 = vpop.f32.mrf.mxu1  ;;  %4539 = vmatpush1.bf16.msra.mxu0 %v7366_v0  ;;  %v9943_v14 = vadd.f32 %v3116_v15, %v2444_v4  ;;  %v2446_v26 = vadd.f32 %v2445_v47, %v11770_v32  ;;  %v7372_v15 = vld [vmem:[%s11428_s2 + $0x830] ss:$8 sps:$4 sm:$0xff]   ;;  %v7377_v32 = vld [vmem:[%s11428_s2 + $0x824] ss:$8 sps:$4 sm:$0xff]  }
 0x219   : > { %4540 = vmatprep.subr.bf16.mxu0 %v7371_v37  ;;  %v2447_v12 = vpop.f32.mrf.mxu0  ;;  %v11774_v37 = vld [vmem:[#allocation108_spill] sm:$0xff] }
 0x21a   : > { %11769 = vst [vmem:[#allocation58_spill] sm:$0xff] %v9943_v14  ;;  %v3120_v31 = vpop.f32.mrf.mxu1  ;;  %v9949_v53 = vadd.f32 %v3118_v1, %v2446_v26  ;;  %v2448_v55 = vadd.f32 %v2447_v12, %v11772_v58  ;;  %v11778_v58 = vld [vmem:[#allocation18_spill] sm:$0xff] }
 0x21b   : > { %v2449_v0 = vpop.f32.mrf.mxu0 }
 0x21c   : > { %11771 = vst [vmem:[#allocation96_spill] sm:$0xff] %v9949_v53  ;;  %v3122_v28 = vpop.f32.mrf.mxu1  ;;  %4541 = vmatpush1.bf16.msra.mxu0 %v7369_v54  ;;  %v9955_v4 = vadd.f32 %v3120_v31, %v2448_v55  ;;  %v2450_v47 = vadd.f32 %v2449_v0, %v11774_v37  ;;  %v11775_v53 = vld [vmem:[#allocation21_spill] sm:$0xff]  ;;  %v11776_v54 = vld [vmem:[#allocation22_spill] sm:$0xff]  ;;  %v11779_v55 = vld [vmem:[#allocation24_spill] sm:$0xff] }
 0x21d   : > { %4542 = vmatprep.subr.bf16.mxu0 %v7374_v27  ;;  %v2453_v1 = vpop.f32.mrf.mxu0  ;;  %v11780_v27 = vld [vmem:[#allocation23_spill] sm:$0xff] }
 0x21e   : > { %11773 = vst [vmem:[#allocation97_spill] sm:$0xff] %v9955_v4  ;;  %v3126_v26 = vpop.f32.mrf.mxu1  ;;  %6663 = vmatmul.mubr.msk.bf16.gmra.mxu0 %vm8048_vm3, %v11775_v53  ;;  %4394 = vmatmul.mubr.bf16.gmra.mxu1 %v11776_v54  ;;  %v9965_v12 = vadd.f32 %v3122_v28, %v2450_v47  ;;  %v2454_v31 = vadd.f32 %v2453_v1, %v11778_v58  ;;  %v7375_v4 = vld [vmem:[%s11428_s2 + $0x820] ss:$8 sps:$4 sm:$0xff]   ;;  %v11782_v54 = vld [vmem:[#allocation19_spill] sm:$0xff] }
 0x21f   : > { %6667 = vmatprep.mubr.msk.bf16.mxu0 %vm8048_vm3, %v11779_v55  ;;  %4403 = vmatprep.mubr.bf16.mxu1 %v11780_v27  ;;  %v2455_v0 = vpop.f32.mrf.mxu0  ;;  %v7380_v47 = vld [vmem:[%s11428_s2 + $0x814] ss:$8 sps:$4 sm:$0xff]   ;;  %v11784_v27 = vld [vmem:[#allocation109_spill] sm:$0xff] }
 0x220   : > { %11777 = vst [vmem:[#allocation99_spill] sm:$0xff] %v9965_v12  ;;  %v3128_v37 = vpop.f32.mrf.mxu1  ;;  %4543 = vmatpush1.bf16.msra.mxu0 %v7372_v15  ;;  %v9975_v53 = vadd.f32 %v3126_v26, %v2454_v31  ;;  %v2456_v28 = vadd.f32 %v2455_v0, %v11782_v54  ;;  %v7378_v26 = vld [vmem:[%s11428_s2 + $0x810] ss:$8 sps:$4 sm:$0xff]   ;;  %v7383_v54 = vld [vmem:[%s11428_s2 + $0x804] ss:$8 sps:$4 sm:$0xff]  }
 0x221   : > { %4544 = vmatprep.subr.bf16.mxu0 %v7377_v32  ;;  %v2457_v1 = vpop.f32.mrf.mxu0  ;;  %v11786_v32 = vld [vmem:[#allocation110_spill] sm:$0xff] }
 0x222   : > { %11781 = vst [vmem:[#allocation62_spill] sm:$0xff] %v9975_v53  ;;  %v3130_v58 = vpop.f32.mrf.mxu1  ;;  %v9981_v55 = vadd.f32 %v3128_v37, %v2456_v28  ;;  %v2458_v12 = vadd.f32 %v2457_v1, %v11784_v27  ;;  %v11790_v27 = vld [vmem:[#allocation111_spill] sm:$0xff] }
 0x223   : > { %v2459_v15 = vpop.f32.mrf.mxu0 }
 0x224   : > { %11783 = vst [vmem:[#allocation100_spill] sm:$0xff] %v9981_v55  ;;  %v3132_v14 = vpop.f32.mrf.mxu1  ;;  %4545 = vmatpush1.bf16.msra.mxu0 %v7375_v4  ;;  %v9987_v31 = vadd.f32 %v3130_v58, %v2458_v12  ;;  %v2460_v0 = vadd.f32 %v2459_v15, %v11786_v32  ;;  %v11787_v55 = vld [vmem:[#allocation25_spill] sm:$0xff]  ;;  %v11788_v4 = vld [vmem:[#allocation26_spill] sm:$0xff]  ;;  %v11791_v58 = vld [vmem:[#allocation28_spill] sm:$0xff] }
 0x225   : > { %4546 = vmatprep.subr.bf16.mxu0 %v7380_v47  ;;  %v2463_v37 = vpop.f32.mrf.mxu0  ;;  %v11792_v47 = vld [vmem:[#allocation27_spill] sm:$0xff] }
 0x226   : > { %11785 = vst [vmem:[#allocation12_spill] sm:$0xff] %v9987_v31  ;;  %v3136_v28 = vpop.f32.mrf.mxu1  ;;  %6671 = vmatmul.mubr.msk.bf16.gmra.mxu0 %vm8048_vm3, %v11787_v55  ;;  %4404 = vmatmul.mubr.bf16.gmra.mxu1 %v11788_v4  ;;  %v9997_v1 = vadd.f32 %v3132_v14, %v2460_v0  ;;  %v2464_v12 = vadd.f32 %v2463_v37, %v11790_v27  ;;  %v7381_v31 = vld [vmem:[%s11428_s2 + $0x800] ss:$8 sps:$4 sm:$0xff]   ;;  %v11794_v4 = vld [vmem:[#allocation112_spill] sm:$0xff] }
 0x227   : > { %6675 = vmatprep.mubr.msk.bf16.mxu0 %vm8048_vm3, %v11791_v58  ;;  %4413 = vmatprep.mubr.bf16.mxu1 %v11792_v47  ;;  %v2465_v15 = vpop.f32.mrf.mxu0  ;;  %v7386_v0 = vld [vmem:[%s11428_s2 + $0x8f4] ss:$8 sps:$4 sm:$0xff]   ;;  %v11796_v47 = vld [vmem:[#allocation113_spill] sm:$0xff] }
 0x228   : > { %11789 = vst [vmem:[#allocation9_spill] sm:$0xff] %v9997_v1  ;;  %v3138_v32 = vpop.f32.mrf.mxu1  ;;  %4547 = vmatpush1.bf16.msra.mxu0 %v7378_v26  ;;  %v10007_v55 = vadd.f32 %v3136_v28, %v2464_v12  ;;  %v2466_v14 = vadd.f32 %v2465_v15, %v11794_v4  ;;  %v7384_v28 = vld [vmem:[%s11428_s2 + $0x8f0] ss:$8 sps:$4 sm:$0xff]  }
 0x229   : > { %4548 = vmatprep.subr.bf16.mxu0 %v7383_v54  ;;  %v2467_v37 = vpop.f32.mrf.mxu0  ;;  %v11798_v54 = vld [vmem:[#allocation114_spill] sm:$0xff] }
 0x22a   : > { %11793 = vst [vmem:[#allocation63_spill] sm:$0xff] %v10007_v55  ;;  %v3140_v27 = vpop.f32.mrf.mxu1  ;;  %v10013_v58 = vadd.f32 %v3138_v32, %v2466_v14  ;;  %v2468_v1 = vadd.f32 %v2467_v37, %v11796_v47  ;;  %v7389_v32 = vld [vmem:[%s11428_s2 + $0x8e4] ss:$8 sps:$4 sm:$0xff]  }
 0x22b   : > { %v2469_v26 = vpop.f32.mrf.mxu0  ;;  %v11799_v37 = vld [vmem:[#allocation29_spill] sm:$0xff] }
 0x22c   : > { %11795 = vst [vmem:[#allocation103_spill] sm:$0xff] %v10013_v58  ;;  %v3142_v53 = vpop.f32.mrf.mxu1  ;;  %4549 = vmatpush1.bf16.msra.mxu0 %v7381_v31  ;;  %v10019_v12 = vadd.f32 %v3140_v27, %v2468_v1  ;;  %v2470_v15 = vadd.f32 %v2469_v26, %v11798_v54  ;;  %v11800_v31 = vld [vmem:[#allocation30_spill] sm:$0xff]  ;;  %v11802_v1 = vld [vmem:[#allocation115_spill] sm:$0xff]  ;;  %v11803_v26 = vld [vmem:[#allocation32_spill] sm:$0xff] }
 0x22d   : > { %4550 = vmatprep.subr.bf16.mxu0 %v7386_v0  ;;  %v2473_v4 = vpop.f32.mrf.mxu0 }
 0x22e   : > { %11797 = vst [vmem:[#allocation13_spill] sm:$0xff] %v10019_v12  ;;  %v3146_v14 = vpop.f32.mrf.mxu1  ;;  %6679 = vmatmul.mubr.msk.bf16.gmra.mxu0 %vm8048_vm3, %v11799_v37  ;;  %4414 = vmatmul.mubr.bf16.gmra.mxu1 %v11800_v31  ;;  %v10029_v47 = vadd.f32 %v3142_v53, %v2470_v15  ;;  %v2474_v27 = vadd.f32 %v2473_v4, %v11802_v1  ;;  %v7387_v12 = vld [vmem:[%s11428_s2 + $0x8e0] ss:$8 sps:$4 sm:$0xff]   ;;  %v11805_v31 = vld [vmem:[#allocation116_spill] sm:$0xff] }
 0x22f   : > { %6683 = vmatprep.mubr.msk.bf16.mxu0 %vm8048_vm3, %v11803_v26  ;;  %4423 = vmatprep.mubr.bf16.mxu1 %v11703_v30  ;;  %v2475_v0 = vpop.f32.mrf.mxu0  ;;  %v10043_v15 = vld [vmem:[%s8021_s14 + $0x28] sm:$0xff]  ;;  %v10046_v4 = vld [vmem:[%s8021_s14 + $0x38] sm:$0xff] }
 0x230   : > { %11801 = vst [vmem:[#allocation10_spill] sm:$0xff] %v10029_v47  ;;  %v3148_v54 = vpop.f32.mrf.mxu1  ;;  %4551 = vmatpush2.bf16.msra.mxu0 %v7384_v28  ;;  %v10039_v37 = vadd.f32 %v3146_v14, %v2474_v27  ;;  %v2476_v53 = vadd.f32 %v2475_v0, %v11805_v31  ;;  %v7392_v30 = vld [vmem:[%s11428_s2 + $0x8d4] ss:$8 sps:$4 sm:$0xff]   ;;  %v11807_v47 = vld [vmem:[#allocation117_spill] sm:$0xff]  ;;  %v1147_v27 = vrot.slane %v10043_v15, 7  ;;  %v1150_v0 = vrot.slane %v10046_v4, 7 }
 0x231   : > { %4552 = vmatprep.subr.bf16.mxu0 %v7389_v32  ;;  %v2477_v1 = vpop.f32.mrf.mxu0  ;;  %v7390_v32 = vld [vmem:[%s11428_s2 + $0x8d0] ss:$8 sps:$4 sm:$0xff]  }
 0x232   : > { %11804 = vst [vmem:[#allocation16_spill] sm:$0xff] %v10039_v37  ;;  %v3150_v26 = vpop.f32.mrf.mxu1  ;;  %v10051_v28 = vadd.f32 %v3148_v54, %v2476_v53  ;;  %v2478_v58 = vadd.f32 %v2477_v1, %v11807_v47  ;;  %v11809_v37 = vld [vmem:[#allocation71_spill] sm:$0xff]  ;;  %v7395_v47 = vld [vmem:[%s11428_s2 + $0x8c4] ss:$8 sps:$4 sm:$0xff]  }
 0x233   : > { %v2479_v55 = vpop.f32.mrf.mxu0 }
 0x234   : > { %11806 = vst [vmem:[#allocation15_spill] sm:$0xff] %v10051_v28  ;;  %v3152_v14 = vpop.f32.mrf.mxu1  ;;  %4553 = vmatpush2.bf16.msra.mxu0 %v7387_v12  ;;  %v10059_v31 = vadd.f32 %v3150_v26, %v2478_v58  ;;  %v2480_v54 = vadd.f32 %v2479_v55, %v11809_v37  ;;  %v11810_v28 = vld [vmem:[#allocation33_spill] sm:$0xff]  ;;  %v10080_v37 = vld [vmem:[%s8021_s14 + $0x30] sm:$0xff] }
 0x235   : > { %4554 = vmatprep.subr.bf16.mxu0 %v7392_v30  ;;  %v2483_v53 = vpop.f32.mrf.mxu0  ;;  %v11813_v26 = vld [vmem:[#allocation77_spill] sm:$0xff] }
 0x236   : > { %11808 = vst [vmem:[#allocation11_spill] sm:$0xff] %v10059_v31  ;;  %v3156_v1 = vpop.f32.mrf.mxu1  ;;  %6687 = vmatmul.mubr.msk.bf16.gmra.mxu0 %vm8048_vm3, %v11810_v28  ;;  %4424 = vmatmul.mubr.bf16.gmra.mxu1 %v11707_v24  ;;  %v10069_v12 = vadd.f32 %v3152_v14, %v2480_v54  ;;  %v2484_v58 = vadd.f32 %v2483_v53, %v11812_v9  ;;  %v10077_v55 = vld [vmem:[%s8021_s14 + $0x20] sm:$0xff]  ;;  %v11815_v14 = vld [vmem:[#allocation31_spill] sm:$0xff] }
 0x237   : > { %6691 = vmatprep.mubr.msk.bf16.mxu0 %vm8048_vm3, %v11813_v26  ;;  %4433 = vmatprep.mubr.bf16.mxu1 %v9621_v51  ;;  %v2485_v30 = vpop.f32.mrf.mxu0  ;;  %v1151_v28 = vsel %vm642_vm0, %v1147_v27, %v1150_v0  ;;  %v7393_v24 = vld [vmem:[%s11428_s2 + $0x8c0] ss:$8 sps:$4 sm:$0xff]   ;;  %v7398_v51 = vld [vmem:[%s11428_s2 + $0x8b4] ss:$8 sps:$4 sm:$0xff]   ;;  %v1148_v0 = vrot.slane %v10080_v37, 7 }
 0x238   : > { %11811 = vst [vmem:[#allocation104_spill] sm:$0xff] %v10069_v12  ;;  %v3158_v31 = vpop.f32.mrf.mxu1  ;;  %4555 = vmatpush2.bf16.msra.mxu0 %v7390_v32  ;;  %v10086_v9 = vadd.f32 %v3156_v1, %v2484_v58  ;;  %v2486_v54 = vadd.f32 %v2485_v30, %v11815_v14  ;;  %v1146_v12 = vrot.slane %v10077_v55, 7  ;;  %v6698_v50 = vpack.c.bf16 %v1151_v28, %v1147_v27  ;;  %v7396_v30 = vld [vmem:[%s11428_s2 + $0x8b0] ss:$8 sps:$4 sm:$0xff]  }
 0x239   : > { %4556 = vmatprep.subr.bf16.mxu0 %v7395_v47  ;;  %v2487_v53 = vpop.f32.mrf.mxu0  ;;  %v1247_v1 = vpack.c.bf16 %v10046_v4, %v10043_v15  ;;  %v11817_v28 = vld [vmem:[#allocation79_spill] sm:$0xff] }
 0x23a   : > { %11814 = vst [vmem:[#allocation105_spill] sm:$0xff] %v10086_v9  ;;  %v3160_v26 = vpop.f32.mrf.mxu1  ;;  %v10094_v32 = vadd.f32 %v3158_v31, %v2486_v54  ;;  %v2488_v48 = vadd.f32 %v2487_v53, %v9617_v42  ;;  %v11816_v9 = vld [vmem:[#allocation119_spill] sm:$0xff]  ;;  %v7401_v42 = vld [vmem:[%s11428_s2 + $0x8a4] ss:$8 sps:$4 sm:$0xff]  }
 0x23b   : > { %v2489_v58 = vpop.f32.mrf.mxu0  ;;  %v11818_v54 = vld [vmem:[#allocation34_spill] sm:$0xff] }
 0x23c   : > { %v3162_v47 = vpop.f32.mrf.mxu1  ;;  %4557 = vmatpush2.bf16.msra.mxu0 %v7393_v24  ;;  %v10102_v14 = vadd.f32 %v3160_v26, %v2488_v48  ;;  %v2490_v10 = vadd.f32 %v2489_v58, %v11816_v9  ;;  %v1149_v9 = vsel %vm642_vm0, %v1146_v12, %v1148_v0  ;;  %v7399_v26 = vld [vmem:[%s11428_s2 + $0x8a0] ss:$8 sps:$4 sm:$0xff]   ;;  %v1246_v0 = vpack.c.bf16 %v10080_v37, %v10077_v55 }
 0x23d   : > { %4558 = vmatprep.subr.bf16.mxu0 %v7398_v51  ;;  %v2493_v27 = vpop.f32.mrf.mxu0 }
 0x23e   : > { %v3166_v31 = vpop.f32.mrf.mxu1  ;;  %6695 = vmatmul.mubr.msk.bf16.gmra.mxu0 %vm8048_vm3, %v11817_v28  ;;  %4434 = vmatmul.mubr.bf16.gmra.mxu1 %v9667_v52  ;;  %v10112_v24 = vadd.f32 %v3162_v47, %v2490_v10  ;;  %v2494_v48 = vadd.f32 %v2493_v27, %v11818_v54  ;;  %v11820_v52 = vld [vmem:[#allocation120_spill] sm:$0xff]  ;;  %v6702_v27 = vpack.c.bf16 %v1149_v9, %v1146_v12  ;;  %v7407_v12 = vld [vmem:[%s11428_s2 + $0x884] ss:$8 sps:$4 sm:$0xff]  }
 0x23f   : > { %6699 = vmatprep.mubr.msk.bf16.mxu0 %vm8048_vm3, %v6698_v50  ;;  %4443 = vmatprep.mubr.bf16.mxu1 %v1247_v1  ;;  %v2495_v51 = vpop.f32.mrf.mxu0  ;;  %v7404_v47 = vld [vmem:[%s11428_s2 + $0x894] ss:$8 sps:$4 sm:$0xff]  }
 0x240   : > { %v3168_v53 = vpop.f32.mrf.mxu1  ;;  %4559 = vmatpush2.bf16.msra.mxu0 %v7396_v30  ;;  %v10121_v58 = vadd.f32 %v3166_v31, %v2494_v48  ;;  %v2496_v10 = vadd.f32 %v2495_v51, %v11820_v52 }
 0x241   : > { %4560 = vmatprep.subr.bf16.mxu0 %v7401_v42  ;;  %v2497_v50 = vpop.f32.mrf.mxu0  ;;  %v7402_v42 = vld [vmem:[%s11428_s2 + $0x890] ss:$8 sps:$4 sm:$0xff]  }
 0x242   : > { %11819 = vst [vmem:[#allocation17_spill] sm:$0xff] %v10121_v58  ;;  %v3170_v1 = vpop.f32.mrf.mxu1  ;;  %v10129_v30 = vadd.f32 %v3168_v53, %v2496_v10  ;;  %v2498_v28 = vadd.f32 %v2497_v50, %v9671_v2  ;;  %v11825_v10 = vld [vmem:[#allocation37_spill] sm:$0xff] }
 0x243   : > { %v2499_v54 = vpop.f32.mrf.mxu0 }
 0x244   : > { %11821 = vst [vmem:[#allocation14_spill] sm:$0xff] %v10129_v30  ;;  %v3172_v31 = vpop.f32.mrf.mxu1  ;;  %4561 = vmatpush2.bf16.msra.mxu0 %v7399_v26  ;;  %v10135_v48 = vadd.f32 %v3170_v1, %v2498_v28  ;;  %v2500_v51 = vadd.f32 %v2499_v54, %v9679_v16  ;;  %v11824_v26 = vld [vmem:[#allocation122_spill] sm:$0xff] }
 0x245   : > { %4562 = vmatprep.subr.bf16.mxu0 %v7404_v47  ;;  %v2503_v9 = vpop.f32.mrf.mxu0  ;;  %v11826_v16 = vld [vmem:[#allocation38_spill] sm:$0xff] }
 0x246   : > { %11822 = vst [vmem:[#allocation20_spill] sm:$0xff] %v10135_v48  ;;  %v3176_v53 = vpop.f32.mrf.mxu1  ;;  %6703 = vmatmul.mubr.msk.bf16.gmra.mxu0 %vm8048_vm3, %v6702_v27  ;;  %4444 = vmatmul.mubr.bf16.gmra.mxu1 %v1246_v0  ;;  %v10143_v2 = vadd.f32 %v3172_v31, %v2500_v51  ;;  %v2504_v52 = vadd.f32 %v2503_v9, %v11824_v26  ;;  %v7405_v1 = vld [vmem:[%s11428_s2 + $0x880] ss:$8 sps:$4 sm:$0xff]   ;;  %v11827_v27 = vld [vmem:[#allocation35_spill] sm:$0xff] }
 0x247   : > { %6707 = vmatprep.mubr.msk.bf16.mxu0 %vm8048_vm3, %v11825_v10  ;;  %4453 = vmatprep.mubr.bf16.mxu1 %v11826_v16  ;;  %v2505_v47 = vpop.f32.mrf.mxu0  ;;  %v11828_v9 = vld [vmem:[#allocation123_spill] sm:$0xff] }
 0x248   : > { %11823 = vst [vmem:[#allocation106_spill] sm:$0xff] %v10143_v2  ;;  %v3178_v50 = vpop.f32.mrf.mxu1  ;;  %4563 = vmatpush2.bf16.msra.mxu0 %v7402_v42  ;;  %v10153_v28 = vadd.f32 %v3176_v53, %v2504_v52  ;;  %v2506_v0 = vadd.f32 %v2505_v47, %v11827_v27  ;;  %v11829_v42 = vld [vmem:[#allocation124_spill] sm:$0xff]  ;;  %v11830_v53 = vld [vmem:[#allocation39_spill] sm:$0xff]  ;;  %v11831_v47 = vld [vmem:[#allocation41_spill] sm:$0xff] }
 0x249   : > { %4564 = vmatprep.subr.bf16.mxu0 %v7407_v12  ;;  %v2507_v54 = vpop.f32.mrf.mxu0 }
 0x24a   : > { %v3180_v31 = vpop.f32.mrf.mxu1  ;;  %v10156_v51 = vadd.f32 %v3178_v50, %v2506_v0  ;;  %v2508_v26 = vadd.f32 %v2507_v54, %v11828_v9 }
 0x24b   : > { %v2509_v10 = vpop.f32.mrf.mxu0 }
 0x24c   : > { %v3182_v16 = vpop.f32.mrf.mxu1  ;;  %4565 = vmatpush2.bf16.msra.mxu0 %v7405_v1  ;;  %v10159_v2 = vadd.f32 %v3180_v31, %v2508_v26  ;;  %v2510_v48 = vadd.f32 %v2509_v10, %v11829_v42  ;;  %v11833_v42 = vld [vmem:[#allocation45_spill] sm:$0xff] }
 0x24d   : > { %v3219_v30 = vpop.f32.mrf.mxu0 }
 0x24e   : > { %v3412_v58 = vpop.f32.mrf.mxu1  ;;  %6711 = vmatmul.mubr.msk.bf16.gmra.mxu0 %vm8048_vm3, %v11830_v53  ;;  %4454 = vmatmul.mubr.bf16.gmra.mxu1 %v11720_v36  ;;  %v10166_v12 = vadd.f32 %v3182_v16, %v2510_v48  ;;  %v3220_v52 = vadd.f32 %v3219_v30, %v9724_v6  ;;  %v11832_v16 = vld [vmem:[#allocation43_spill] sm:$0xff] }
 0x24f   : > { %6715 = vmatprep.mubr.msk.bf16.mxu0 %vm8048_vm3, %v11831_v47  ;;  %4463 = vmatprep.mubr.bf16.mxu1 %v11721_v18  ;;  %v3221_v50 = vpop.f32.mrf.mxu0 }
 0x250   : > { %v3414_v1 = vpop.f32.mrf.mxu1  ;;  %v10173_v27 = vadd.f32 %v3412_v58, %v3220_v52  ;;  %v3222_v0 = vadd.f32 %v3221_v50, %v9727_v59 }
 0x251   : > { %v3223_v54 = vpop.f32.mrf.mxu0 }
 0x252   : > { %v3416_v31 = vpop.f32.mrf.mxu1  ;;  %v10176_v9 = vadd.f32 %v3414_v1, %v3222_v0  ;;  %v3224_v36 = vadd.f32 %v3223_v54, %v9730_v13 }
 0x253   : > { %v3225_v48 = vpop.f32.mrf.mxu0 }
 0x254   : > { %v3418_v6 = vpop.f32.mrf.mxu1  ;;  %v10179_v30 = vadd.f32 %v3416_v31, %v3224_v36  ;;  %v3226_v26 = vadd.f32 %v3225_v48, %v9737_v39  ;;  %v11834_v48 = vld [vmem:[#allocation47_spill] sm:$0xff] }
 0x255   : > { %v3229_v10 = vpop.f32.mrf.mxu0 }
 0x256   : > { %v3422_v18 = vpop.f32.mrf.mxu1  ;;  %6719 = vmatmul.mubr.msk.bf16.gmra.mxu0 %vm8048_vm3, %v11832_v16  ;;  %4464 = vmatmul.mubr.bf16.gmra.mxu1 %v11722_v21  ;;  %v10186_v59 = vadd.f32 %v3418_v6, %v3226_v26  ;;  %v3230_v58 = vadd.f32 %v3229_v10, %v9744_v25  ;;  %v11835_v26 = vld [vmem:[#allocation49_spill] sm:$0xff] }
 0x257   : > { %6723 = vmatprep.mubr.msk.bf16.mxu0 %vm8048_vm3, %v11833_v42  ;;  %4473 = vmatprep.mubr.bf16.mxu1 %v11723_v17  ;;  %v3231_v13 = vpop.f32.mrf.mxu0 }
 0x258   : > { %v3424_v39 = vpop.f32.mrf.mxu1  ;;  %v10193_v53 = vadd.f32 %v3422_v18, %v3230_v58  ;;  %v3232_v52 = vadd.f32 %v3231_v13, %v9747_v45 }
 0x259   : > { %v3233_v47 = vpop.f32.mrf.mxu0 }
 0x25a   : > { %v3426_v50 = vpop.f32.mrf.mxu1  ;;  %v10196_v1 = vadd.f32 %v3424_v39, %v3232_v52  ;;  %v3234_v21 = vadd.f32 %v3233_v47, %v9750_v22 }
 0x25b   : > { %v3235_v0 = vpop.f32.mrf.mxu0 }
 0x25c   : > { %v3428_v25 = vpop.f32.mrf.mxu1  ;;  %v10199_v54 = vadd.f32 %v3426_v50, %v3234_v21  ;;  %v3236_v31 = vadd.f32 %v3235_v0, %v9757_v56  ;;  %v11836_v21 = vld [vmem:[#allocation51_spill] sm:$0xff] }
 0x25d   : > { %v3239_v36 = vpop.f32.mrf.mxu0 }
 0x25e   : > { %v3432_v17 = vpop.f32.mrf.mxu1  ;;  %6727 = vmatmul.mubr.msk.bf16.gmra.mxu0 %vm8048_vm3, %v11834_v48  ;;  %4474 = vmatmul.mubr.bf16.gmra.mxu1 %v11724_v40  ;;  %v10206_v45 = vadd.f32 %v3428_v25, %v3236_v31  ;;  %v3240_v6 = vadd.f32 %v3239_v36, %v9764_v3  ;;  %v7408_v40 = vld [vmem:[%s11430_s4 + $0x70] ss:$8 sps:$4 sm:$0xff]   ;;  %v7410_v3 = vld [vmem:[%s11430_s4 + $0x74] ss:$8 sps:$4 sm:$0xff]   ;;  %v11837_v25 = vld [vmem:[#allocation53_spill] sm:$0xff] }
 0x25f   : > { %6731 = vmatprep.mubr.msk.bf16.mxu0 %vm8048_vm3, %v11835_v26  ;;  %4483 = vmatprep.mubr.bf16.mxu1 %v11725_v41  ;;  %v3241_v22 = vpop.f32.mrf.mxu0  ;;  %v11838_v31 = vld [vmem:[#allocation54_spill] sm:$0xff]  ;;  %v11839_v48 = vld [vmem:[#allocation36_spill] sm:$0xff] }
 0x260   : > { %v3434_v56 = vpop.f32.mrf.mxu1  ;;  %v10213_v10 = vadd.f32 %v3432_v17, %v3240_v6  ;;  %v3242_v18 = vadd.f32 %v3241_v22, %v9767_v29  ;;  %5167 = vmatprep.subr.bf16.mxu1 %v7410_v3 }
 0x261   : > { %v3243_v16 = vpop.f32.mrf.mxu0  ;;  %5168 = vmatpush1.bf16.msra.mxu1 %v7408_v40 }
 0x262   : > { %v3436_v58 = vpop.f32.mrf.mxu1  ;;  %v10222_v42 = vadd.f32 %v3434_v56, %v3242_v18  ;;  %v3244_v41 = vadd.f32 %v3243_v16, %v9770_v63  ;;  %v11840_v18 = vld [vmem:[#allocation80_spill] sm:$0xff] }
 0x263   : > { %v3245_v13 = vpop.f32.mrf.mxu0 }
 0x264   : > { %v3438_v39 = vpop.f32.mrf.mxu1  ;;  %v10225_v52 = vadd.f32 %v3436_v58, %v3244_v41  ;;  %v3246_v29 = vadd.f32 %v3245_v13, %v9777_v34  ;;  %v11841_v41 = vld [vmem:[#allocation81_spill] sm:$0xff] }
 0x265   : > { %v3249_v47 = vpop.f32.mrf.mxu0 }
 0x266   : > { %v3442_v50 = vpop.f32.mrf.mxu1  ;;  %6735 = vmatmul.mubr.msk.bf16.gmra.mxu0 %vm8048_vm3, %v11836_v21  ;;  %4484 = vmatmul.mubr.bf16.gmra.mxu1 %v11728_v20  ;;  %v10232_v0 = vadd.f32 %v3438_v39, %v3246_v29  ;;  %v3250_v63 = vadd.f32 %v3249_v47, %v9784_v19  ;;  %v7411_v20 = vld [vmem:[%s11430_s4 + $0x60] ss:$8 sps:$4 sm:$0xff]   ;;  %v7413_v19 = vld [vmem:[%s11430_s4 + $0x64] ss:$8 sps:$4 sm:$0xff]   ;;  %v11844_v21 = vld [vmem:[#allocation40_spill] sm:$0xff] }
 0x267   : > { %6739 = vmatprep.mubr.msk.bf16.mxu0 %vm8048_vm3, %v11837_v25  ;;  %4493 = vmatprep.mubr.bf16.mxu1 %v11838_v31  ;;  %v3251_v36 = vpop.f32.mrf.mxu0  ;;  %v11842_v47 = vld [vmem:[#allocation57_spill] sm:$0xff]  ;;  %v11845_v25 = vld [vmem:[#allocation59_spill] sm:$0xff]  ;;  %v11846_v31 = vld [vmem:[#allocation60_spill] sm:$0xff] }
 0x268   : > { %v3444_v34 = vpop.f32.mrf.mxu1  ;;  %v10239_v17 = vadd.f32 %v3442_v50, %v3250_v63  ;;  %v3252_v6 = vadd.f32 %v3251_v36, %v11839_v48  ;;  %5169 = vmatprep.subr.bf16.mxu1 %v7413_v19  ;;  %v10266_v48 = vld [vmem:[%s8021_s14 + $0x68] sm:$0xff] }
 0x269   : > { %v3253_v26 = vpop.f32.mrf.mxu0  ;;  %5170 = vmatpush1.bf16.msra.mxu1 %v7411_v20  ;;  %v11848_v20 = vld [vmem:[#allocation42_spill] sm:$0xff] }
 0x26a   : > { %v3446_v22 = vpop.f32.mrf.mxu1  ;;  %v10248_v56 = vadd.f32 %v3444_v34, %v3252_v6  ;;  %v3254_v40 = vadd.f32 %v3253_v26, %v11840_v18  ;;  %v10272_v26 = vld [vmem:[%s8021_s14 + $0x78] sm:$0xff] }
 0x26b   : > { %v3255_v3 = vpop.f32.mrf.mxu0 }
 0x26c   : > { %v3448_v16 = vpop.f32.mrf.mxu1  ;;  %v10251_v58 = vadd.f32 %v3446_v22, %v3254_v40  ;;  %v3256_v13 = vadd.f32 %v3255_v3, %v11841_v41  ;;  %v7416_v22 = vld [vmem:[%s11430_s4 + $0x54] ss:$8 sps:$4 sm:$0xff]  }
 0x26d   : > { %v3259_v39 = vpop.f32.mrf.mxu0  ;;  %5171 = vmatprep.subr.bf16.mxu1 %v7416_v22  ;;  %v11857_v22 = vld [vmem:[#allocation56_spill] sm:$0xff] }
 0x26e   : > { %v3452_v29 = vpop.f32.mrf.mxu1  ;;  %6743 = vmatmul.mubr.msk.bf16.gmra.mxu0 %vm8048_vm3, %v11842_v47  ;;  %4494 = vmatmul.mubr.bf16.gmra.mxu1 %v11739_v43  ;;  %v10258_v50 = vadd.f32 %v3448_v16, %v3256_v13  ;;  %v3260_v63 = vadd.f32 %v3259_v39, %v11844_v21  ;;  %v7414_v43 = vld [vmem:[%s11430_s4 + $0x50] ss:$8 sps:$4 sm:$0xff]   ;;  %v1162_v47 = vrot.slane %v10272_v26, 7 }
 0x26f   : > { %6747 = vmatprep.mubr.msk.bf16.mxu0 %vm8048_vm3, %v11845_v25  ;;  %4503 = vmatprep.mubr.bf16.mxu1 %v11846_v31  ;;  %v3261_v36 = vpop.f32.mrf.mxu0  ;;  %v11850_v16 = vld [vmem:[#allocation44_spill] sm:$0xff] }
 0x270   : > { %11843 = vst [vmem:[#allocation107_spill] sm:$0xff] %v10258_v50  ;;  %v3454_v34 = vpop.f32.mrf.mxu1  ;;  %v10268_v6 = vadd.f32 %v3452_v29, %v3260_v63  ;;  %v3262_v19 = vadd.f32 %v3261_v36, %v11848_v20  ;;  %v1159_v29 = vrot.slane %v10266_v48, 7  ;;  %5172 = vmatpush1.bf16.msra.mxu1 %v7414_v43  ;;  %v11853_v63 = vld [vmem:[#allocation46_spill] sm:$0xff]  ;;  %v11856_v20 = vld [vmem:[#allocation48_spill] sm:$0xff]  ;;  %v10302_v43 = vld [vmem:[%s8021_s14 + $0x60] sm:$0xff] }
 0x271   : > { %v3263_v18 = vpop.f32.mrf.mxu0 }
 0x272   : > { %11847 = vst [vmem:[#allocation108_spill] sm:$0xff] %v10268_v6  ;;  %v3456_v40 = vpop.f32.mrf.mxu1  ;;  %v10280_v3 = vadd.f32 %v3454_v34, %v3262_v19  ;;  %v3264_v41 = vadd.f32 %v3263_v18, %v11850_v16  ;;  %v11855_v34 = vld [vmem:[#allocation61_spill] sm:$0xff]  ;;  %v10305_v18 = vld [vmem:[%s8021_s14 + $0x70] sm:$0xff] }
 0x273   : > { %v3265_v13 = vpop.f32.mrf.mxu0 }
 0x274   : > { %11849 = vst [vmem:[#allocation21_spill] sm:$0xff] %v10280_v3  ;;  %v10283_v39 = vpop.f32.mrf.mxu1  ;;  %v10287_v21 = vadd.f32 %v3456_v40, %v3264_v41  ;;  %v10290_v25 = vadd.f32 %v3265_v13, %v11853_v63  ;;  %v1163_v41 = vsel %vm642_vm0, %v1159_v29, %v1162_v47  ;;  %v7417_v63 = vld [vmem:[%s11430_s4 + $0x40] ss:$8 sps:$4 sm:$0xff]  }
 0x275   : > { %11851 = vst [vmem:[#allocation22_spill] sm:$0xff] %v10283_v39 }
 0x276   : > { %11852 = vst [vmem:[#allocation18_spill] sm:$0xff] %v10287_v21  ;;  %11854 = vst [vmem:[#allocation24_spill] sm:$0xff] %v10290_v25  ;;  %v3269_v31 = vpop.f32.mrf.mxu0  ;;  %v3462_v36 = vpop.f32.mrf.mxu1  ;;  %6751 = vmatmul.mubr.msk.bf16.gmra.mxu0 %vm8048_vm3, %v11855_v34  ;;  %4504 = vmatmul.mubr.bf16.gmra.mxu1 %v11747_v23 }
 0x277   : > { %v3270_v19 = vadd.f32 %v3269_v31, %v11856_v20  ;;  %6755 = vmatprep.mubr.msk.bf16.mxu0 %vm8048_vm3, %v11857_v22  ;;  %4513 = vmatprep.mubr.bf16.mxu1 %v9837_v11  ;;  %v7419_v11 = vld [vmem:[%s11430_s4 + $0x44] ss:$8 sps:$4 sm:$0xff]   ;;  %v1158_v20 = vrot.slane %v10302_v43, 7  ;;  %v1160_v22 = vrot.slane %v10305_v18, 7 }
 0x278   : > { %v3271_v40 = vpop.f32.mrf.mxu0  ;;  %v3464_v16 = vpop.f32.mrf.mxu1  ;;  %5173 = vmatprep.subr.bf16.mxu1 %v7419_v11  ;;  %v7420_v11 = vld [vmem:[%s11430_s4 + $0x30] ss:$8 sps:$4 sm:$0xff]  }
 0x279   : > { %v10308_v13 = vadd.f32 %v3462_v36, %v3270_v19  ;;  %v3272_v23 = vadd.f32 %v3271_v40, %v9832_v35  ;;  %v6762_v36 = vpack.c.bf16 %v1163_v41, %v1159_v29  ;;  %v1251_v35 = vpack.c.bf16 %v10272_v26, %v10266_v48  ;;  %5174 = vmatpush1.bf16.msra.mxu1 %v7417_v63 }
 0x27a   : > { %v3273_v31 = vpop.f32.mrf.mxu0  ;;  %v3466_v34 = vpop.f32.mrf.mxu1  ;;  %v1161_v29 = vsel %vm642_vm0, %v1158_v20, %v1160_v22 }
 0x27b   : > { %11858 = vst [vmem:[#allocation23_spill] sm:$0xff] %v10308_v13  ;;  %v10319_v21 = vadd.f32 %v3464_v16, %v3272_v23  ;;  %v3274_v47 = vadd.f32 %v3273_v31, %v9841_v38  ;;  %v11863_v16 = vld [vmem:[#allocation102_spill] sm:$0xff]  ;;  %v6766_v31 = vpack.c.bf16 %v1161_v29, %v1158_v20 }
 0x27c   : > { %v3275_v19 = vpop.f32.mrf.mxu0  ;;  %v10324_v40 = vpop.f32.mrf.mxu1 }
 0x27d   : > { %11859 = vst [vmem:[#allocation19_spill] sm:$0xff] %v10319_v21  ;;  %11860 = vst [vmem:[#allocation109_spill] sm:$0xff] %v10324_v40  ;;  %v10326_v13 = vadd.f32 %v3466_v34, %v3274_v47  ;;  %v10329_v39 = vadd.f32 %v3275_v19, %v9848_v46  ;;  %v1250_v34 = vpack.c.bf16 %v10305_v18, %v10302_v43  ;;  %v1207_v21 = vrot.slane %v10305_v18, 1 }
 0x27e   : > { %v3279_v25 = vpop.f32.mrf.mxu0  ;;  %v3472_v3 = vpop.f32.mrf.mxu1  ;;  %6759 = vmatmul.mubr.msk.bf16.gmra.mxu0 %vm8048_vm3, %v11863_v16  ;;  %4514 = vmatmul.mubr.bf16.gmra.mxu1 %v9861_v33 }
 0x27f   : > { %11861 = vst [vmem:[#allocation110_spill] sm:$0xff] %v10326_v13  ;;  %11862 = vst [vmem:[#allocation25_spill] sm:$0xff] %v10329_v39  ;;  %v3280_v38 = vadd.f32 %v3279_v25, %v9856_v62  ;;  %6763 = vmatprep.mubr.msk.bf16.mxu0 %vm8048_vm3, %v6762_v36  ;;  %4523 = vmatprep.mubr.bf16.mxu1 %v1251_v35  ;;  %v7422_v62 = vld [vmem:[%s11430_s4 + $0x34] ss:$8 sps:$4 sm:$0xff]   ;;  %v1206_v39 = vrot.slane %v10302_v43, 1 }
 0x280   : > { %v3281_v41 = vpop.f32.mrf.mxu0  ;;  %v3474_v23 = vpop.f32.mrf.mxu1  ;;  %5175 = vmatprep.subr.bf16.mxu1 %v7422_v62 }
 0x281   : > { %v10339_v46 = vadd.f32 %v3472_v3, %v3280_v38  ;;  %v3282_v63 = vadd.f32 %v3281_v41, %v9865_v7  ;;  %5176 = vmatpush1.bf16.msra.mxu1 %v7420_v11  ;;  %v11869_v38 = vld [vmem:[#allocation64_spill] sm:$0xff] }
 0x282   : > { %v3283_v33 = vpop.f32.mrf.mxu0  ;;  %v3476_v25 = vpop.f32.mrf.mxu1  ;;  %5177 = vmatprep.subr.bf16.mxu1 %v7425_v8  ;;  %v7426_v8 = vld [vmem:[%s11430_s4 + $0x10] ss:$8 sps:$4 sm:$0xff]  }
 0x283   : > { %11864 = vst [vmem:[#allocation26_spill] sm:$0xff] %v10339_v46  ;;  %v10350_v22 = vadd.f32 %v3474_v23, %v3282_v63  ;;  %v3284_v3 = vadd.f32 %v3283_v33, %v9868_v57 }
 0x284   : > { %v3285_v7 = vpop.f32.mrf.mxu0  ;;  %v10353_v47 = vpop.f32.mrf.mxu1 }
 0x285   : > { %11865 = vst [vmem:[#allocation111_spill] sm:$0xff] %v10350_v22  ;;  %11866 = vst [vmem:[#allocation28_spill] sm:$0xff] %v10353_v47  ;;  %v10355_v36 = vadd.f32 %v3476_v25, %v3284_v3  ;;  %v10358_v35 = vadd.f32 %v3285_v7, %v9875_v61  ;;  %v7423_v61 = vld [vmem:[%s11430_s4 + $0x20] ss:$8 sps:$4 sm:$0xff]   ;;  %v1210_v47 = vrot.slane %v10272_v26, 1 }
 0x286   : > { %v3289_v19 = vpop.f32.mrf.mxu0  ;;  %v3482_v16 = vpop.f32.mrf.mxu1  ;;  %6767 = vmatmul.mubr.msk.bf16.gmra.mxu0 %vm8048_vm3, %v6766_v31  ;;  %4524 = vmatmul.mubr.bf16.gmra.mxu1 %v1250_v34  ;;  %v11874_v31 = vld [vmem:[#allocation89_spill] sm:$0xff] }
 0x287   : > { %11867 = vst [vmem:[#allocation27_spill] sm:$0xff] %v10355_v36  ;;  %11868 = vst [vmem:[#allocation112_spill] sm:$0xff] %v10358_v35  ;;  %v3290_v20 = vadd.f32 %v3289_v19, %v9882_v49  ;;  %6770 = vmatprep.mubr.msk.bf16.mxu0 %vm8736_vm5, %v11869_v38  ;;  %5178 = vmatpush1.bf16.msra.mxu1 %v7423_v61  ;;  %v11876_v19 = vld [vmem:[#allocation65_spill] sm:$0xff]  ;;  %v11878_v38 = vld [vmem:[#allocation66_spill] sm:$0xff]  ;;  %v1209_v36 = vrot.slane %v10266_v48, 1 }
 0x288   : > { %v3291_v57 = vpop.f32.mrf.mxu0  ;;  %v3484_v29 = vpop.f32.mrf.mxu1 }
 0x289   : > { %v10366_v41 = vadd.f32 %v3482_v16, %v3290_v20  ;;  %v3292_v23 = vadd.f32 %v3291_v57, %v9885_v5  ;;  %v11877_v16 = vld [vmem:[#allocation93_spill] sm:$0xff]  ;;  %v1211_v13 = vsel %vm835_vm4, %v1209_v36, %v1210_v47  ;;  %v1208_v36 = vsel %vm835_vm4, %v1206_v39, %v1207_v21 }
 0x28a   : > { %v3293_v63 = vpop.f32.mrf.mxu0  ;;  %v3486_v49 = vpop.f32.mrf.mxu1  ;;  %v6859_v26 = vpack.c.bf16 %v1210_v47, %v1211_v13  ;;  %v6862_v18 = vpack.c.bf16 %v1207_v21, %v1208_v36 }
 0x28b   : > { %11870 = vst [vmem:[#allocation113_spill] sm:$0xff] %v10366_v41  ;;  %v10375_v11 = vadd.f32 %v3484_v29, %v3292_v23  ;;  %v3294_v62 = vadd.f32 %v3293_v63, %v9894_v44  ;;  %v11880_v23 = vld [vmem:[#allocation90_spill] sm:$0xff]  ;;  %v7428_v63 = vld [vmem:[%s11430_s4 + $0x14] ss:$8 sps:$4 sm:$0xff]  }
 0x28c   : > { %v3295_v33 = vpop.f32.mrf.mxu0  ;;  %v10378_v25 = vpop.f32.mrf.mxu1  ;;  %5179 = vmatprep.subr.bf16.mxu1 %v7428_v63 }
 0x28d   : > { %11871 = vst [vmem:[#allocation114_spill] sm:$0xff] %v10375_v11  ;;  %11872 = vst [vmem:[#allocation29_spill] sm:$0xff] %v10378_v25  ;;  %v10380_v5 = vadd.f32 %v3486_v49, %v3294_v62  ;;  %v10383_v34 = vadd.f32 %v3295_v33, %v11874_v31  ;;  %v11882_v31 = vld [vmem:[#allocation91_spill] sm:$0xff]  ;;  %5180 = vmatpush1.bf16.msra.mxu1 %v7426_v8 }
 0x28e   : > { %v3299_v3 = vpop.f32.mrf.mxu0  ;;  %v3492_v7 = vpop.f32.mrf.mxu1  ;;  %6773 = vmatmul.mubr.msk.bf16.vlgmr.msra.gmra.mxu0 %vm8736_vm5, %v11876_v19  ;;  %v11964_v25 = vld [vmem:[#allocation55_spill] sm:$0xff] }
 0x28f   : > { %11873 = vst [vmem:[#allocation30_spill] sm:$0xff] %v10380_v5  ;;  %11875 = vst [vmem:[#allocation115_spill] sm:$0xff] %v10383_v34  ;;  %v3300_v20 = vadd.f32 %v3299_v3, %v11877_v16  ;;  %6776 = vmatprep.mubr.msk.bf16.mxu0 %vm8736_vm5, %v11878_v38 }
 0x290   : > { %v3301_v44 = vpop.f32.mrf.mxu0  ;;  %v3494_v57 = vpop.f32.mrf.mxu1 }
 0x291   : > { %v10392_v29 = vadd.f32 %v3492_v7, %v3300_v20  ;;  %v3302_v61 = vadd.f32 %v3301_v44, %v11880_v23  ;;  %v11885_v20 = vld [vmem:[#allocation95_spill] sm:$0xff] }
 0x292   : > { %v3303_v49 = vpop.f32.mrf.mxu0  ;;  %v3496_v62 = vpop.f32.mrf.mxu1 }
 0x293   : > { %11879 = vst [vmem:[#allocation32_spill] sm:$0xff] %v10392_v29  ;;  %v10401_v33 = vadd.f32 %v3494_v57, %v3302_v61  ;;  %v3304_v3 = vadd.f32 %v3303_v49, %v11882_v31  ;;  %v11887_v29 = vld [vmem:[#allocation67_spill] sm:$0xff]  ;;  %v11888_v57 = vld [vmem:[#allocation58_spill] sm:$0xff] }
 0x294   : > { %v3305_v19 = vpop.f32.mrf.mxu0  ;;  %v10404_v7 = vpop.f32.mrf.mxu1 }
 0x295   : > { %11881 = vst [vmem:[#allocation116_spill] sm:$0xff] %v10401_v33  ;;  %11883 = vst [vmem:[#allocation117_spill] sm:$0xff] %v10404_v7  ;;  %v10406_v16 = vadd.f32 %v3496_v62, %v3304_v3  ;;  %v10409_v38 = vadd.f32 %v3305_v19, %v11885_v20  ;;  %v11889_v33 = vld [vmem:[#allocation68_spill] sm:$0xff]  ;;  %v7429_v3 = vld [vmem:[%s11430_s4] ss:$8 sps:$4 sm:$0xff]  }
 0x296   : > { %v3309_v44 = vpop.f32.mrf.mxu0  ;;  %v3502_v23 = vpop.f32.mrf.mxu1  ;;  %6779 = vmatmul.mubr.msk.bf16.gmra.mxu0 %vm8736_vm5, %v11887_v29  ;;  %v11891_v62 = vld [vmem:[#allocation96_spill] sm:$0xff]  ;;  %v7431_v29 = vld [vmem:[%s11430_s4 + $0x4] ss:$8 sps:$4 sm:$0xff]  }
 0x297   : > { %11884 = vst [vmem:[#allocation71_spill] sm:$0xff] %v10406_v16  ;;  %11886 = vst [vmem:[#allocation33_spill] sm:$0xff] %v10409_v38  ;;  %v3310_v61 = vadd.f32 %v3309_v44, %v11888_v57  ;;  %6782 = vmatprep.mubr.msk.bf16.mxu0 %vm8736_vm5, %v11889_v33  ;;  %v11893_v57 = vld [vmem:[#allocation97_spill] sm:$0xff]  ;;  %5181 = vmatprep.subr.bf16.mxu1 %v7431_v29 }
 0x298   : > { %v3311_v63 = vpop.f32.mrf.mxu0  ;;  %v3504_v49 = vpop.f32.mrf.mxu1  ;;  %5182 = vmatpush1.bf16.msra.mxu1 %v7429_v3  ;;  %v11898_v38 = vld [vmem:[#allocation69_spill] sm:$0xff] }
 0x299   : > { %v10418_v8 = vadd.f32 %v3502_v23, %v3310_v61  ;;  %v3312_v31 = vadd.f32 %v3311_v63, %v11891_v62  ;;  %v11896_v63 = vld [vmem:[#allocation99_spill] sm:$0xff] }
 0x29a   : > { %v3313_v19 = vpop.f32.mrf.mxu0  ;;  %v3506_v20 = vpop.f32.mrf.mxu1 }
 0x29b   : > { %11890 = vst [vmem:[#allocation72_spill] sm:$0xff] %v10418_v8  ;;  %v10427_v44 = vadd.f32 %v3504_v49, %v3312_v31  ;;  %v3314_v33 = vadd.f32 %v3313_v19, %v11893_v57  ;;  %v11899_v49 = vld [vmem:[#allocation62_spill] sm:$0xff] }
 0x29c   : > { %v3315_v16 = vpop.f32.mrf.mxu0  ;;  %v10430_v23 = vpop.f32.mrf.mxu1 }
 0x29d   : > { %11892 = vst [vmem:[#allocation77_spill] sm:$0xff] %v10427_v44  ;;  %11894 = vst [vmem:[#allocation31_spill] sm:$0xff] %v10430_v23  ;;  %v10432_v61 = vadd.f32 %v3506_v20, %v3314_v33  ;;  %v10435_v62 = vadd.f32 %v3315_v16, %v11896_v63  ;;  %v11900_v44 = vld [vmem:[#allocation70_spill] sm:$0xff]  ;;  %v11902_v20 = vld [vmem:[#allocation100_spill] sm:$0xff] }
 0x29e   : > { %v3319_v8 = vpop.f32.mrf.mxu0  ;;  %v3512_v7 = vpop.f32.mrf.mxu1  ;;  %6785 = vmatmul.mubr.msk.bf16.gmra.mxu0 %vm8736_vm5, %v11898_v38  ;;  %v7432_v16 = vld [vmem:[%s11430_s4 + $0xf0] ss:$8 sps:$4 sm:$0xff]   ;;  %v7434_v38 = vld [vmem:[%s11430_s4 + $0xf4] ss:$8 sps:$4 sm:$0xff]  }
 0x29f   : > { %11895 = vst [vmem:[#allocation119_spill] sm:$0xff] %v10432_v61  ;;  %11897 = vst [vmem:[#allocation79_spill] sm:$0xff] %v10435_v62  ;;  %v3320_v31 = vadd.f32 %v3319_v8, %v11899_v49  ;;  %6788 = vmatprep.mubr.msk.bf16.mxu0 %vm8736_vm5, %v11900_v44  ;;  %v11904_v49 = vld [vmem:[#allocation12_spill] sm:$0xff]  ;;  %5183 = vmatprep.subr.bf16.mxu1 %v7434_v38  ;;  %v11909_v62 = vld [vmem:[#allocation73_spill] sm:$0xff] }
 0x2a0   : > { %v3321_v29 = vpop.f32.mrf.mxu0  ;;  %v3514_v19 = vpop.f32.mrf.mxu1  ;;  %5184 = vmatpush2.bf16.msra.mxu1 %v7432_v16 }
 0x2a1   : > { %v10444_v3 = vadd.f32 %v3512_v7, %v3320_v31  ;;  %v3322_v57 = vadd.f32 %v3321_v29, %v11902_v20  ;;  %v11907_v29 = vld [vmem:[#allocation9_spill] sm:$0xff] }
 0x2a2   : > { %v3323_v33 = vpop.f32.mrf.mxu0  ;;  %v3516_v8 = vpop.f32.mrf.mxu1 }
 0x2a3   : > { %11901 = vst [vmem:[#allocation34_spill] sm:$0xff] %v10444_v3  ;;  %v10453_v63 = vadd.f32 %v3514_v19, %v3322_v57  ;;  %v3324_v44 = vadd.f32 %v3323_v33, %v11904_v49  ;;  %v11910_v19 = vld [vmem:[#allocation63_spill] sm:$0xff] }
 0x2a4   : > { %v3325_v61 = vpop.f32.mrf.mxu0  ;;  %v10456_v7 = vpop.f32.mrf.mxu1 }
 0x2a5   : > { %11903 = vst [vmem:[#allocation120_spill] sm:$0xff] %v10453_v63  ;;  %11905 = vst [vmem:[#allocation122_spill] sm:$0xff] %v10456_v7  ;;  %v10458_v31 = vadd.f32 %v3516_v8, %v3324_v44  ;;  %v10461_v20 = vadd.f32 %v3325_v61, %v11907_v29  ;;  %v11911_v63 = vld [vmem:[#allocation74_spill] sm:$0xff]  ;;  %v11913_v8 = vld [vmem:[#allocation103_spill] sm:$0xff] }
 0x2a6   : > { %v3329_v3 = vpop.f32.mrf.mxu0  ;;  %v3522_v23 = vpop.f32.mrf.mxu1  ;;  %6791 = vmatmul.mubr.msk.bf16.gmra.mxu0 %vm8736_vm5, %v11909_v62  ;;  %v7435_v61 = vld [vmem:[%s11430_s4 + $0xe0] ss:$8 sps:$4 sm:$0xff]   ;;  %v7437_v62 = vld [vmem:[%s11430_s4 + $0xe4] ss:$8 sps:$4 sm:$0xff]  }
 0x2a7   : > { %11906 = vst [vmem:[#allocation37_spill] sm:$0xff] %v10458_v31  ;;  %11908 = vst [vmem:[#allocation38_spill] sm:$0xff] %v10461_v20  ;;  %v3330_v57 = vadd.f32 %v3329_v3, %v11910_v19  ;;  %6794 = vmatprep.mubr.msk.bf16.mxu0 %vm8736_vm5, %v11911_v63  ;;  %v11915_v19 = vld [vmem:[#allocation13_spill] sm:$0xff]  ;;  %5185 = vmatprep.subr.bf16.mxu1 %v7437_v62  ;;  %v11920_v20 = vld [vmem:[#allocation75_spill] sm:$0xff] }
 0x2a8   : > { %v3331_v38 = vpop.f32.mrf.mxu0  ;;  %v3524_v33 = vpop.f32.mrf.mxu1  ;;  %5186 = vmatpush2.bf16.msra.mxu1 %v7435_v61 }
 0x2a9   : > { %v10470_v16 = vadd.f32 %v3522_v23, %v3330_v57  ;;  %v3332_v49 = vadd.f32 %v3331_v38, %v11913_v8  ;;  %v11918_v38 = vld [vmem:[#allocation10_spill] sm:$0xff] }
 0x2aa   : > { %v3333_v44 = vpop.f32.mrf.mxu0  ;;  %v3526_v3 = vpop.f32.mrf.mxu1 }
 0x2ab   : > { %11912 = vst [vmem:[#allocation35_spill] sm:$0xff] %v10470_v16  ;;  %v10479_v29 = vadd.f32 %v3524_v33, %v3332_v49  ;;  %v3334_v63 = vadd.f32 %v3333_v44, %v11915_v19  ;;  %v11921_v33 = vld [vmem:[#allocation16_spill] sm:$0xff] }
 0x2ac   : > { %v3335_v31 = vpop.f32.mrf.mxu0  ;;  %v10482_v23 = vpop.f32.mrf.mxu1 }
 0x2ad   : > { %11914 = vst [vmem:[#allocation123_spill] sm:$0xff] %v10479_v29  ;;  %11916 = vst [vmem:[#allocation124_spill] sm:$0xff] %v10482_v23  ;;  %v10484_v57 = vadd.f32 %v3526_v3, %v3334_v63  ;;  %v10487_v8 = vadd.f32 %v3335_v31, %v11918_v38  ;;  %v11922_v29 = vld [vmem:[#allocation76_spill] sm:$0xff]  ;;  %v11924_v3 = vld [vmem:[#allocation15_spill] sm:$0xff] }
 0x2ae   : > { %v3339_v16 = vpop.f32.mrf.mxu0  ;;  %v3532_v7 = vpop.f32.mrf.mxu1  ;;  %6797 = vmatmul.mubr.msk.bf16.gmra.mxu0 %vm8736_vm5, %v11920_v20  ;;  %v7438_v31 = vld [vmem:[%s11430_s4 + $0xd0] ss:$8 sps:$4 sm:$0xff]   ;;  %v7440_v20 = vld [vmem:[%s11430_s4 + $0xd4] ss:$8 sps:$4 sm:$0xff]  }
 0x2af   : > { %11917 = vst [vmem:[#allocation39_spill] sm:$0xff] %v10484_v57  ;;  %11919 = vst [vmem:[#allocation41_spill] sm:$0xff] %v10487_v8  ;;  %v3340_v49 = vadd.f32 %v3339_v16, %v11921_v33  ;;  %6800 = vmatprep.mubr.msk.bf16.mxu0 %vm8736_vm5, %v11922_v29  ;;  %v11926_v33 = vld [vmem:[#allocation11_spill] sm:$0xff]  ;;  %5187 = vmatprep.subr.bf16.mxu1 %v7440_v20 }
 0x2b0   : > { %v3341_v62 = vpop.f32.mrf.mxu0  ;;  %v3534_v44 = vpop.f32.mrf.mxu1  ;;  %5188 = vmatpush2.bf16.msra.mxu1 %v7438_v31 }
 0x2b1   : > { %v10496_v61 = vadd.f32 %v3532_v7, %v3340_v49  ;;  %v3342_v19 = vadd.f32 %v3341_v62, %v11924_v3  ;;  %v1197_v49 = vrot.slane %v10043_v15, 1  ;;  %v1198_v62 = vrot.slane %v10046_v4, 1 }
 0x2b2   : > { %v3343_v63 = vpop.f32.mrf.mxu0  ;;  %v3536_v16 = vpop.f32.mrf.mxu1 }
 0x2b3   : > { %11923 = vst [vmem:[#allocation43_spill] sm:$0xff] %v10496_v61  ;;  %v10505_v38 = vadd.f32 %v3534_v44, %v3342_v19  ;;  %v3344_v29 = vadd.f32 %v3343_v63, %v11926_v33  ;;  %v11929_v61 = vld [vmem:[#allocation104_spill] sm:$0xff]  ;;  %v11931_v44 = vld [vmem:[#allocation78_spill] sm:$0xff]  ;;  %v11932_v19 = vld [vmem:[#allocation105_spill] sm:$0xff]  ;;  %v1199_v31 = vsel %vm835_vm4, %v1197_v49, %v1198_v62 }
 0x2b4   : > { %v3345_v57 = vpop.f32.mrf.mxu0  ;;  %v10508_v7 = vpop.f32.mrf.mxu1  ;;  %v11933_v63 = vld [vmem:[#allocation118_spill] sm:$0xff] }
 0x2b5   : > { %11925 = vst [vmem:[#allocation45_spill] sm:$0xff] %v10505_v38  ;;  %11927 = vst [vmem:[#allocation47_spill] sm:$0xff] %v10508_v7  ;;  %v10512_v3 = vadd.f32 %v3536_v16, %v3344_v29  ;;  %v10515_v23 = vadd.f32 %v3345_v57, %v11929_v61  ;;  %v7441_v61 = vld [vmem:[%s11430_s4 + $0xc0] ss:$8 sps:$4 sm:$0xff]  }
 0x2b6   : > { %v3349_v8 = vpop.f32.mrf.mxu0  ;;  %v3542_v5 = vpop.f32.mrf.mxu1  ;;  %6803 = vmatmul.mubr.msk.bf16.gmra.mxu0 %vm8736_vm5, %v11931_v44  ;;  %v1194_v44 = vrot.slane %v10077_v55, 1  ;;  %v11939_v55 = vld [vmem:[#allocation121_spill] sm:$0xff]  ;;  %v11963_v38 = vld [vmem:[#allocation98_spill] sm:$0xff] }
 0x2b7   : > { %11928 = vst [vmem:[#allocation49_spill] sm:$0xff] %v10512_v3  ;;  %11930 = vst [vmem:[#allocation51_spill] sm:$0xff] %v10515_v23  ;;  %v3350_v20 = vadd.f32 %v3349_v8, %v11932_v19  ;;  %6806 = vmatprep.mubr.msk.bf16.mxu0 %vm8736_vm5, %v11933_v63  ;;  %v7443_v8 = vld [vmem:[%s11430_s4 + $0xc4] ss:$8 sps:$4 sm:$0xff]  }
 0x2b8   : > { %v3351_v15 = vpop.f32.mrf.mxu0  ;;  %v3544_v4 = vpop.f32.mrf.mxu1  ;;  %5189 = vmatprep.subr.bf16.mxu1 %v7443_v8  ;;  %v7444_v8 = vld [vmem:[%s11430_s4 + $0xb0] ss:$8 sps:$4 sm:$0xff]  }
 0x2b9   : > { %v10525_v16 = vadd.f32 %v3542_v5, %v3350_v20  ;;  %v3352_v57 = vadd.f32 %v3351_v15, %v10094_v32  ;;  %v6811_v5 = vpack.c.bf16 %v1198_v62, %v1199_v31  ;;  %v1195_v20 = vrot.slane %v10080_v37, 1  ;;  %5190 = vmatpush2.bf16.msra.mxu1 %v7441_v61  ;;  %v11942_v61 = vld [vmem:[#allocation14_spill] sm:$0xff] }
 0x2ba   : > { %v3353_v33 = vpop.f32.mrf.mxu0  ;;  %v3546_v29 = vpop.f32.mrf.mxu1 }
 0x2bb   : > { %11934 = vst [vmem:[#allocation53_spill] sm:$0xff] %v10525_v16  ;;  %v10535_v19 = vadd.f32 %v3544_v4, %v3352_v57  ;;  %v3354_v49 = vadd.f32 %v3353_v33, %v10102_v14  ;;  %v11940_v14 = vld [vmem:[#allocation17_spill] sm:$0xff]  ;;  %v1196_v37 = vsel %vm835_vm4, %v1194_v44, %v1195_v20  ;;  %v7446_v33 = vld [vmem:[%s11430_s4 + $0xb4] ss:$8 sps:$4 sm:$0xff]  }
 0x2bc   : > { %v3355_v32 = vpop.f32.mrf.mxu0  ;;  %v10539_v63 = vpop.f32.mrf.mxu1  ;;  %v11944_v44 = vld [vmem:[#allocation20_spill] sm:$0xff]  ;;  %5191 = vmatprep.subr.bf16.mxu1 %v7446_v33 }
 0x2bd   : > { %11935 = vst [vmem:[#allocation54_spill] sm:$0xff] %v10535_v19  ;;  %11936 = vst [vmem:[#allocation36_spill] sm:$0xff] %v10539_v63  ;;  %v10541_v15 = vadd.f32 %v3546_v29, %v3354_v49  ;;  %v10544_v16 = vadd.f32 %v3355_v32, %v10112_v24  ;;  %v6814_v49 = vpack.c.bf16 %v1195_v20, %v1196_v37  ;;  %5192 = vmatpush2.bf16.msra.mxu1 %v7444_v8  ;;  %v11949_v37 = vld [vmem:[#allocation82_spill] sm:$0xff] }
 0x2be   : > { %v3359_v3 = vpop.f32.mrf.mxu0  ;;  %v3552_v7 = vpop.f32.mrf.mxu1  ;;  %6809 = vmatmul.mubr.msk.bf16.gmra.mxu0 %vm8736_vm5, %v11939_v55 }
 0x2bf   : > { %11937 = vst [vmem:[#allocation80_spill] sm:$0xff] %v10541_v15  ;;  %11938 = vst [vmem:[#allocation81_spill] sm:$0xff] %v10544_v16  ;;  %v3360_v62 = vadd.f32 %v3359_v3, %v11940_v14  ;;  %6812 = vmatprep.mubr.msk.bf16.mxu0 %vm8736_vm5, %v6811_v5  ;;  %v11962_v15 = vld [vmem:[#allocation94_spill] sm:$0xff] }
 0x2c0   : > { %v3361_v4 = vpop.f32.mrf.mxu0  ;;  %v3554_v31 = vpop.f32.mrf.mxu1 }
 0x2c1   : > { %v10553_v57 = vadd.f32 %v3552_v7, %v3360_v62  ;;  %v3362_v24 = vadd.f32 %v3361_v4, %v11942_v61  ;;  %v11947_v62 = vld [vmem:[#allocation106_spill] sm:$0xff] }
 0x2c2   : > { %v3363_v3 = vpop.f32.mrf.mxu0  ;;  %v3556_v29 = vpop.f32.mrf.mxu1 }
 0x2c3   : > { %11941 = vst [vmem:[#allocation57_spill] sm:$0xff] %v10553_v57  ;;  %v10562_v5 = vadd.f32 %v3554_v31, %v3362_v24  ;;  %v3364_v32 = vadd.f32 %v3363_v3, %v11944_v44  ;;  %v7447_v3 = vld [vmem:[%s11430_s4 + $0xa0] ss:$8 sps:$4 sm:$0xff]  }
 0x2c4   : > { %v3365_v7 = vpop.f32.mrf.mxu0  ;;  %v10565_v55 = vpop.f32.mrf.mxu1 }
 0x2c5   : > { %11943 = vst [vmem:[#allocation40_spill] sm:$0xff] %v10562_v5  ;;  %11945 = vst [vmem:[#allocation59_spill] sm:$0xff] %v10565_v55  ;;  %v10567_v14 = vadd.f32 %v3556_v29, %v3364_v32  ;;  %v10570_v4 = vadd.f32 %v3365_v7, %v11947_v62  ;;  %v7449_v29 = vld [vmem:[%s11430_s4 + $0xa4] ss:$8 sps:$4 sm:$0xff]   ;;  %v11961_v5 = vld [vmem:[#allocation92_spill] sm:$0xff] }
 0x2c6   : > { %v3369_v61 = vpop.f32.mrf.mxu0  ;;  %v3562_v57 = vpop.f32.mrf.mxu1  ;;  %6815 = vmatmul.mubr.msk.bf16.gmra.mxu0 %vm8736_vm5, %v6814_v49  ;;  %5193 = vmatprep.subr.bf16.mxu1 %v7449_v29 }
 0x2c7   : > { %11946 = vst [vmem:[#allocation60_spill] sm:$0xff] %v10567_v14  ;;  %11948 = vst [vmem:[#allocation42_spill] sm:$0xff] %v10570_v4  ;;  %v3370_v20 = vadd.f32 %v3369_v61, %v10153_v28  ;;  %6818 = vmatprep.mubr.msk.bf16.mxu0 %vm8736_vm5, %v11949_v37  ;;  %5194 = vmatpush2.bf16.msra.mxu1 %v7447_v3  ;;  %v11955_v37 = vld [vmem:[#allocation83_spill] sm:$0xff] }
 0x2c8   : > { %v3371_v31 = vpop.f32.mrf.mxu0  ;;  %v3564_v24 = vpop.f32.mrf.mxu1 }
 0x2c9   : > { %v10578_v33 = vadd.f32 %v3562_v57, %v3370_v20  ;;  %v3372_v8 = vadd.f32 %v3371_v31, %v10156_v51  ;;  %v11956_v31 = vld [vmem:[#allocation84_spill] sm:$0xff] }
 0x2ca   : > { %v3373_v49 = vpop.f32.mrf.mxu0  ;;  %v3566_v28 = vpop.f32.mrf.mxu1 }
 0x2cb   : > { %11950 = vst [vmem:[#allocation44_spill] sm:$0xff] %v10578_v33  ;;  %v10587_v44 = vadd.f32 %v3564_v24, %v3372_v8  ;;  %v3374_v32 = vadd.f32 %v3373_v49, %v10159_v2  ;;  %v11957_v49 = vld [vmem:[#allocation85_spill] sm:$0xff]  ;;  %v11960_v33 = vld [vmem:[#allocation88_spill] sm:$0xff] }
 0x2cc   : > { %v3375_v7 = vpop.f32.mrf.mxu0  ;;  %v10590_v57 = vpop.f32.mrf.mxu1 }
 0x2cd   : > { %11951 = vst [vmem:[#allocation46_spill] sm:$0xff] %v10587_v44  ;;  %11952 = vst [vmem:[#allocation61_spill] sm:$0xff] %v10590_v57  ;;  %v10592_v51 = vadd.f32 %v3566_v28, %v3374_v32  ;;  %v10595_v62 = vadd.f32 %v3375_v7, %v10166_v12  ;;  %v7452_v28 = vld [vmem:[%s11430_s4 + $0x94] ss:$8 sps:$4 sm:$0xff]   ;;  %v11958_v7 = vld [vmem:[#allocation86_spill] sm:$0xff] }
 0x2ce   : > { %v10597_v61 = vpop.f32.mrf.mxu0  ;;  %v10599_v20 = vpop.f32.mrf.mxu1  ;;  %6821 = vmatmul.mubr.msk.bf16.gmra.mxu0 %vm8736_vm5, %v11955_v37  ;;  %v7450_v37 = vld [vmem:[%s11430_s4 + $0x90] ss:$8 sps:$4 sm:$0xff]   ;;  %5195 = vmatprep.subr.bf16.mxu1 %v7452_v28 }
 0x2cf   : > { %11953 = vst [vmem:[#allocation48_spill] sm:$0xff] %v10592_v51  ;;  %11954 = vst [vmem:[#allocation56_spill] sm:$0xff] %v10595_v62  ;;  %6824 = vmatprep.mubr.msk.bf16.mxu0 %vm8736_vm5, %v11956_v31  ;;  %5196 = vmatpush2.bf16.msra.mxu1 %v7450_v37  ;;  %v11959_v28 = vld [vmem:[#allocation87_spill] sm:$0xff] }
 0x2d0   : > { %v10607_v2 = vpop.f32.mrf.mxu0  ;;  %v10609_v24 = vpop.f32.mrf.mxu1 }
 0x2d2   : > { %v10611_v8 = vpop.f32.mrf.mxu0  ;;  %v10613_v12 = vpop.f32.mrf.mxu1 }
 0x2d4   : > { %v10615_v3 = vpop.f32.mrf.mxu0  ;;  %v10625_v32 = vpop.f32.mrf.mxu1 }
 0x2d6   : > { %v10617_v29 = vpop.f32.mrf.mxu0  ;;  %6827 = vmatmul.mubr.msk.bf16.gmra.mxu0 %vm8736_vm5, %v11957_v49  ;;  %v7455_v49 = vld [vmem:[%s11430_s4 + $0x84] ss:$8 sps:$4 sm:$0xff]   ;;  %v10640_v57 = vpop.f32.mrf.mxu1 }
 0x2d7   : > { %6830 = vmatprep.mubr.msk.bf16.mxu0 %vm8736_vm5, %v11958_v7  ;;  %v7453_v7 = vld [vmem:[%s11430_s4 + $0x80] ss:$8 sps:$4 sm:$0xff]   ;;  %5197 = vmatprep.subr.bf16.mxu1 %v7455_v49 }
 0x2d8   : > { %v10633_v31 = vpop.f32.mrf.mxu0  ;;  %5198 = vmatpush2.bf16.msra.mxu1 %v7453_v7  ;;  %v10652_v37 = vpop.f32.mrf.mxu1 }
 0x2da   : > { %v10635_v51 = vpop.f32.mrf.mxu0  ;;  %v10661_v4 = vpop.f32.mrf.mxu1 }
 0x2dc   : > { %v10645_v62 = vpop.f32.mrf.mxu0 }
 0x2de   : > { %v10647_v44 = vpop.f32.mrf.mxu0  ;;  %6833 = vmatmul.mubr.msk.bf16.gmra.mxu0 %vm8736_vm5, %v11959_v28  ;;  %v10670_v28 = vpop.f32.mrf.mxu1 }
 0x2df   : > { %6836 = vmatprep.mubr.msk.bf16.mxu0 %vm8736_vm5, %v11960_v33 }
 0x2e0   : > { %v10657_v14 = vpop.f32.mrf.mxu0  ;;  %v10679_v16 = vpop.f32.mrf.mxu1 }
 0x2e2   : > { %v10659_v55 = vpop.f32.mrf.mxu0 }
 0x2e4   : > { %v10663_v49 = vpop.f32.mrf.mxu0 }
 0x2e6   : > { %v10665_v7 = vpop.f32.mrf.mxu0  ;;  %6839 = vmatmul.mubr.msk.bf16.gmra.mxu0 %vm8736_vm5, %v11961_v5  ;;  %v10688_v5 = vpop.f32.mrf.mxu1 }
 0x2e7   : > { %6842 = vmatprep.mubr.msk.bf16.mxu0 %vm8736_vm5, %v11962_v15 }
 0x2e8   : > { %v10675_v33 = vpop.f32.mrf.mxu0  ;;  %v10697_v11 = vpop.f32.mrf.mxu1 }
 0x2ea   : > { %v10677_v63 = vpop.f32.mrf.mxu0  ;;  %v10708_v22 = vpop.f32.mrf.mxu1 }
 0x2ec   : > { %v10681_v19 = vpop.f32.mrf.mxu0  ;;  %v10718_v48 = vpop.f32.mrf.mxu1 }
 0x2ee   : > { %v10683_v23 = vpop.f32.mrf.mxu0  ;;  %6845 = vmatmul.mubr.msk.bf16.gmra.mxu0 %vm8736_vm5, %v11963_v38  ;;  %v11968_v38 = vld [vmem:[#allocation101_spill] sm:$0xff] }
 0x2ef   : > { %6848 = vmatprep.mubr.msk.bf16.mxu0 %vm8736_vm5, %v11964_v25  ;;  %v11969_v25 = vld [vmem:[#allocation50_spill] sm:$0xff] }
 0x2f0   : > { %v10693_v15 = vpop.f32.mrf.mxu0 }
 0x2f2   : > { %v10695_v34 = vpop.f32.mrf.mxu0 }
 0x2f3   : > { %11965 = vst [vmem:[#allocation102_spill] sm:$0xff] %v10695_v34 }
 0x2f4   : > { %v10699_v41 = vpop.f32.mrf.mxu0 }
 0x2f5   : > { %11966 = vst [vmem:[#allocation64_spill] sm:$0xff] %v10699_v41  ;;  %v11974_v41 = vld [vmem:[#allocation52_spill] sm:$0xff] }
 0x2f6   : > { %v10703_v35 = vpop.f32.mrf.mxu0  ;;  %6851 = vmatmul.mubr.msk.bf16.gmra.mxu0 %vm8736_vm5, %v11968_v38 }
 0x2f7   : > { %11967 = vst [vmem:[#allocation89_spill] sm:$0xff] %v10703_v35  ;;  %6854 = vmatprep.mubr.msk.bf16.mxu0 %vm8736_vm5, %v11969_v25  ;;  %v10729_v25 = vpop.f32.mrf.mxu1 }
 0x2f8   : > { %v10713_v46 = vpop.f32.mrf.mxu0 }
 0x2f9   : > { %11970 = vst [vmem:[#allocation65_spill] sm:$0xff] %v10713_v46  ;;  %v10738_v47 = vpop.f32.mrf.mxu1 }
 0x2fa   : > { %v10716_v40 = vpop.f32.mrf.mxu0 }
 0x2fb   : > { %11971 = vst [vmem:[#allocation93_spill] sm:$0xff] %v10716_v40 }
 0x2fc   : > { %v10722_v38 = vpop.f32.mrf.mxu0 }
 0x2fd   : > { %11972 = vst [vmem:[#allocation66_spill] sm:$0xff] %v10722_v38 }
 0x2fe   : > { %v10724_v35 = vpop.f32.mrf.mxu0  ;;  %6857 = vmatmul.mubr.msk.bf16.gmra.mxu0 %vm8736_vm5, %v11974_v41  ;;  %v10746_v41 = vpop.f32.mrf.mxu1 }
 0x2ff   : > { %11973 = vst [vmem:[#allocation90_spill] sm:$0xff] %v10724_v35  ;;  %6860 = vmatprep.mubr.msk.bf16.mxu0 %vm8736_vm5, %v6859_v26 }
 0x300   : > { %v10734_v13 = vpop.f32.mrf.mxu0  ;;  %v10752_v39 = vpop.f32.mrf.mxu1 }
 0x301   : > { %11975 = vst [vmem:[#allocation91_spill] sm:$0xff] %v10734_v13 }
 0x302   : > { %v10736_v43 = vpop.f32.mrf.mxu0  ;;  %v10758_v36 = vpop.f32.mrf.mxu1 }
 0x303   : > { %11976 = vst [vmem:[#allocation95_spill] sm:$0xff] %v10736_v43  ;;  %11983 = vst [vmem:[#allocation69_spill] sm:$0xff] %v10758_v36 }
 0x304   : > { %v10740_v38 = vpop.f32.mrf.mxu0  ;;  %v10764_v60 = vpop.f32.mrf.mxu1 }
 0x305   : > { %11977 = vst [vmem:[#allocation67_spill] sm:$0xff] %v10740_v38  ;;  %11986 = vst [vmem:[#allocation100_spill] sm:$0xff] %v10764_v60 }
 0x306   : > { %v10742_v35 = vpop.f32.mrf.mxu0  ;;  %6863 = vmatmul.mubr.msk.bf16.gmra.mxu0 %vm8736_vm5, %v6862_v18 }
 0x307   : > { %11978 = vst [vmem:[#allocation58_spill] sm:$0xff] %v10742_v35 }
 0x308   : > { %v10748_v40 = vpop.f32.mrf.mxu0 }
 0x309   : > { %11979 = vst [vmem:[#allocation68_spill] sm:$0xff] %v10748_v40  ;;  %v10770_v40 = vpop.f32.mrf.mxu1 }
 0x30a   : > { %v10750_v26 = vpop.f32.mrf.mxu0  ;;  %11989 = vst [vmem:[#allocation73_spill] sm:$0xff] %v10770_v40 }
 0x30b   : > { %11980 = vst [vmem:[#allocation96_spill] sm:$0xff] %v10750_v26 }
 0x30c   : > { %v10754_v13 = vpop.f32.mrf.mxu0 }
 0x30d   : > { %11981 = vst [vmem:[#allocation97_spill] sm:$0xff] %v10754_v13  ;;  %v10776_v13 = vpop.f32.mrf.mxu1 }
 0x30e   : > { %v10756_v21 = vpop.f32.mrf.mxu0  ;;  %11992 = vst [vmem:[#allocation103_spill] sm:$0xff] %v10776_v13 }
 0x30f   : > { %11982 = vst [vmem:[#allocation99_spill] sm:$0xff] %v10756_v21 }
 0x310   : > { %v10760_v38 = vpop.f32.mrf.mxu0 }
 0x311   : > { %11984 = vst [vmem:[#allocation62_spill] sm:$0xff] %v10760_v38  ;;  %v10782_v38 = vpop.f32.mrf.mxu1 }
 0x312   : > { %v10762_v35 = vpop.f32.mrf.mxu0  ;;  %11995 = vst [vmem:[#allocation75_spill] sm:$0xff] %v10782_v38 }
 0x313   : > { %11985 = vst [vmem:[#allocation70_spill] sm:$0xff] %v10762_v35 }
 0x314   : > { %v10766_v18 = vpop.f32.mrf.mxu0 }
 0x315   : > { %11987 = vst [vmem:[#allocation12_spill] sm:$0xff] %v10766_v18  ;;  %v10788_v18 = vpop.f32.mrf.mxu1 }
 0x316   : > { %v10768_v43 = vpop.f32.mrf.mxu0  ;;  %11998 = vst [vmem:[#allocation15_spill] sm:$0xff] %v10788_v18 }
 0x317   : > { %11988 = vst [vmem:[#allocation9_spill] sm:$0xff] %v10768_v43 }
 0x318   : > { %v10772_v26 = vpop.f32.mrf.mxu0 }
 0x319   : > { %11990 = vst [vmem:[#allocation63_spill] sm:$0xff] %v10772_v26  ;;  %v10794_v26 = vpop.f32.mrf.mxu1 }
 0x31a   : > { %v10774_v46 = vpop.f32.mrf.mxu0  ;;  %12001 = vst [vmem:[#allocation78_spill] sm:$0xff] %v10794_v26 }
 0x31b   : > { %11991 = vst [vmem:[#allocation74_spill] sm:$0xff] %v10774_v46 }
 0x31c   : > { %v10778_v21 = vpop.f32.mrf.mxu0 }
 0x31d   : > { %11993 = vst [vmem:[#allocation13_spill] sm:$0xff] %v10778_v21  ;;  %v10800_v21 = vpop.f32.mrf.mxu1 }
 0x31e   : > { %v10780_v6 = vpop.f32.mrf.mxu0  ;;  %12004 = vst [vmem:[#allocation121_spill] sm:$0xff] %v10800_v21 }
 0x31f   : > { %11994 = vst [vmem:[#allocation10_spill] sm:$0xff] %v10780_v6 }
 0x320   : > { %v10784_v35 = vpop.f32.mrf.mxu0 }
 0x321   : > { %11996 = vst [vmem:[#allocation16_spill] sm:$0xff] %v10784_v35  ;;  %v10806_v35 = vpop.f32.mrf.mxu1 }
 0x322   : > { %v10786_v60 = vpop.f32.mrf.mxu0  ;;  %12007 = vst [vmem:[#allocation20_spill] sm:$0xff] %v10806_v35 }
 0x323   : > { %11997 = vst [vmem:[#allocation76_spill] sm:$0xff] %v10786_v60 }
 0x324   : > { %v10790_v43 = vpop.f32.mrf.mxu0 }
 0x325   : > { %11999 = vst [vmem:[#allocation11_spill] sm:$0xff] %v10790_v43  ;;  %v10812_v43 = vpop.f32.mrf.mxu1 }
 0x326   : > { %v10792_v40 = vpop.f32.mrf.mxu0  ;;  %12010 = vst [vmem:[#allocation83_spill] sm:$0xff] %v10812_v43 }
 0x327   : > { %12000 = vst [vmem:[#allocation104_spill] sm:$0xff] %v10792_v40 }
 0x328   : > { %v10796_v46 = vpop.f32.mrf.mxu0 }
 0x329   : > { %12002 = vst [vmem:[#allocation105_spill] sm:$0xff] %v10796_v46  ;;  %v10818_v46 = vpop.f32.mrf.mxu1 }
 0x32a   : > { %v10798_v13 = vpop.f32.mrf.mxu0  ;;  %12013 = vst [vmem:[#allocation86_spill] sm:$0xff] %v10818_v46  ;;  %v4793_v46 = vlaneseq }
 0x32b   : > { %12003 = vst [vmem:[#allocation118_spill] sm:$0xff] %v10798_v13 }
 0x32c   : > { %v10802_v6 = vpop.f32.mrf.mxu0 }
 0x32d   : > { %12005 = vst [vmem:[#allocation17_spill] sm:$0xff] %v10802_v6  ;;  %v10824_v6 = vpop.f32.mrf.mxu1 }
 0x32e   : > { %v10804_v38 = vpop.f32.mrf.mxu0  ;;  %12016 = vst [vmem:[#allocation92_spill] sm:$0xff] %v10824_v6 }
 0x32f   : > { %12006 = vst [vmem:[#allocation14_spill] sm:$0xff] %v10804_v38 }
 0x330   : > { %v10808_v60 = vpop.f32.mrf.mxu0 }
 0x331   : > { %12008 = vst [vmem:[#allocation106_spill] sm:$0xff] %v10808_v60  ;;  %v10830_v60 = vpop.f32.mrf.mxu1 }
 0x332   : > { %v10810_v18 = vpop.f32.mrf.mxu0  ;;  %12019 = vst [vmem:[#allocation55_spill] sm:$0xff] %v10830_v60 }
 0x333   : > { %12009 = vst [vmem:[#allocation82_spill] sm:$0xff] %v10810_v18 }
 0x334   : > { %v10814_v40 = vpop.f32.mrf.mxu0 }
 0x335   : > { %12011 = vst [vmem:[#allocation84_spill] sm:$0xff] %v10814_v40  ;;  %v10836_v40 = vpop.f32.mrf.mxu1 }
 0x336   : > { %v10816_v26 = vpop.f32.mrf.mxu0  ;;  %12022 = vst [vmem:[#allocation52_spill] sm:$0xff] %v10836_v40 }
 0x337   : > { %12012 = vst [vmem:[#allocation85_spill] sm:$0xff] %v10816_v26 }
 0x338   : > { %v10820_v13 = vpop.f32.mrf.mxu0 }
 0x339   : > { %12014 = vst [vmem:[#allocation87_spill] sm:$0xff] %v10820_v13 }
 0x33a   : > { %v10822_v21 = vpop.f32.mrf.mxu0 }
 0x33b   : > { %12015 = vst [vmem:[#allocation88_spill] sm:$0xff] %v10822_v21  ;;  %v10842_v21 = vpop.f32.mrf.mxu1 }
 0x33c   : > { %v10826_v38 = vpop.f32.mrf.mxu0  ;;  %12025 = vst [vmem:[#allocation127_spill] sm:$0xff] %v10842_v21 }
 0x33d   : > { %12017 = vst [vmem:[#allocation94_spill] sm:$0xff] %v10826_v38  ;;  %v10846_v38 = vshrl.u32 %v4793_v46, 7  ;;  %v10850_v60 = vpop.f32.mrf.mxu1  ;;  %v4378_v46 = vadd.f32 %v10609_v24, %v10607_v2  ;;  %v4382_v2 = vadd.f32 %v10625_v32, %v10615_v3 }
 0x33e   : > { %v10828_v35 = vpop.f32.mrf.mxu0  ;;  %12028 = vst [vmem:[#allocation130_spill] sm:$0xff] %v10850_v60 }
 0x33f   : > { %12018 = vst [vmem:[#allocation98_spill] sm:$0xff] %v10828_v35  ;;  %v4799_v60 = vsub.s32 1, %v10846_v38 }
 0x340   : > { %v10832_v18 = vpop.f32.mrf.mxu0 }
 0x341   : > { %12020 = vst [vmem:[#allocation101_spill] sm:$0xff] %v10832_v18 }
 0x342   : > { %v10834_v43 = vpop.f32.mrf.mxu0 }
 0x343   : > { %12021 = vst [vmem:[#allocation50_spill] sm:$0xff] %v10834_v43  ;;  %v11555_v43 = vsub.s32 0, %v10846_v38 }
 0x344   : > { %v10838_v26 = vpop.f32.mrf.mxu0 }
 0x345   : > { %12023 = vst [vmem:[#allocation125_spill] sm:$0xff] %v10838_v26  ;;  %v4376_v26 = vadd.f32 %v10599_v20, %v10597_v61  ;;  %v4380_v61 = vadd.f32 %v10613_v12, %v10611_v8  ;;  %v4388_v8 = vadd.f32 %v10652_v37, %v10633_v31  ;;  %v4390_v31 = vadd.f32 %v10661_v4, %v10635_v51 }
 0x346   : > { %v10840_v13 = vpop.f32.mrf.mxu0  ;;  %v4392_v37 = vadd.f32 %v10670_v28, %v10645_v62  ;;  %v4398_v28 = vadd.f32 %v10688_v5, %v10657_v14 }
 0x347   : > { %12024 = vst [vmem:[#allocation126_spill] sm:$0xff] %v10840_v13  ;;  %v4791_v13 = vld [vmem:[%s11429_s3] sm:$0x3] }
 0x348   : > { %v10844_v6 = vpop.f32.mrf.mxu0 }
 0x349   : > { %12026 = vst [vmem:[#allocation128_spill] sm:$0xff] %v10844_v6  ;;  %v10862_v6 = vpop.f32.mrf.mxu1 }
 0x34a   : > { %v10848_v35 = vpop.f32.mrf.mxu0  ;;  %12030 = vst [vmem:[#allocation132_spill] sm:$0xff] %v10862_v6 }
 0x34b   : > { %12027 = vst [vmem:[#allocation129_spill] sm:$0xff] %v10848_v35  ;;  %v10874_v24 = vpop.f32.mrf.mxu1 }
 0x34c   : > { %v10852_v18 = vpop.f32.mrf.mxu0 }
 0x34d   : > { %12029 = vst [vmem:[#allocation131_spill] sm:$0xff] %v10852_v18  ;;  %v10867_v18 = vrot.slane %v4791_v13, %v11555_v43  ;;  %v10887_v3 = vpop.f32.mrf.mxu1 }
 0x34e   : > { %v4568_v21 = vpop.f32.mrf.mxu0 }
 0x34f   : > { %v4569_v35 = vadd.f32 %v4568_v21, %v4376_v26  ;;  %v10879_v21 = vrot.slane %v4791_v13, %v4799_v60 }
 0x350   : > { %v4570_v40 = vpop.f32.mrf.mxu0 }
 0x351   : > { %v4727_v20 = vadd.f32 %v4569_v35, %v10173_v27  ;;  %v4571_v34 = vadd.f32 %v4570_v40, %v4378_v46  ;;  %v4386_v27 = vadd.f32 %v10640_v57, %v10617_v29 }
 0x352   : > { %v4572_v50 = vpop.f32.mrf.mxu0 }
 0x353   : > { %v4728_v26 = vadd.f32 %v4571_v34, %v10176_v9  ;;  %v4573_v43 = vadd.f32 %v4572_v50, %v4380_v61  ;;  %v4803_v6 = vadd.f32 %v10867_v18, %v4727_v20 }
 0x354   : > { %v4574_v36 = vpop.f32.mrf.mxu0 }
 0x355   : > { %v4729_v40 = vadd.f32 %v4573_v43, %v10179_v30  ;;  %v4575_v35 = vadd.f32 %v4574_v36, %v4382_v2  ;;  %v4804_v9 = vadd.f32 %v10879_v21, %v4728_v26  ;;  %v4867_v13 = vmax.f32 %v4803_v6, 0.0  ;;  %v10898_v36 = vpop.f32.mrf.mxu1 }
 0x356   : > { %v4578_v12 = vpop.f32.mrf.mxu0 }
 0x357   : > { %v4805_v34 = vadd.f32 %v10867_v18, %v4729_v40  ;;  %v4730_v50 = vadd.f32 %v4575_v35, %v10186_v59  ;;  %v4579_v32 = vadd.f32 %v4578_v12, %v4386_v27  ;;  %v4868_v20 = vmax.f32 %v4804_v9, 0.0 }
 0x358   : > { %v4580_v46 = vpop.f32.mrf.mxu0 }
 0x359   : > { %v4869_v61 = vmax.f32 %v4805_v34, 0.0  ;;  %v4806_v57 = vadd.f32 %v10879_v21, %v4730_v50  ;;  %v4731_v30 = vadd.f32 %v4579_v32, %v10193_v53  ;;  %v4581_v29 = vadd.f32 %v4580_v46, %v4388_v8  ;;  %v10907_v8 = vpop.f32.mrf.mxu1 }
 0x35a   : > { %v4582_v43 = vpop.f32.mrf.mxu0  ;;  %v4396_v53 = vadd.f32 %v10679_v16, %v10647_v44  ;;  %v4400_v34 = vadd.f32 %v10697_v11, %v10659_v55 }
 0x35b   : > { %v4931_v59 = vpack.c.bf16 %v4869_v61, %v4867_v13  ;;  %v4870_v2 = vmax.f32 %v4806_v57, 0.0  ;;  %v4732_v6 = vadd.f32 %v4581_v29, %v10196_v1  ;;  %v4583_v26 = vadd.f32 %v4582_v43, %v4390_v31  ;;  %v10918_v46 = vpop.f32.mrf.mxu1 }
 0x35c   : > { %v4584_v27 = vpop.f32.mrf.mxu0  ;;  %v4807_v4 = vadd.f32 %v10867_v18, %v4731_v30 }
 0x35d   : > { %v4585_v40 = vadd.f32 %v4584_v27, %v4392_v37  ;;  %v4932_v35 = vpack.c.bf16 %v4870_v2, %v4868_v20  ;;  %v4733_v51 = vadd.f32 %v4583_v26, %v10199_v54  ;;  %v4808_v9 = vadd.f32 %v10879_v21, %v4732_v6 }
 0x35e   : > { %v4588_v62 = vpop.f32.mrf.mxu0  ;;  %v4871_v5 = vmax.f32 %v4807_v4, 0.0 }
 0x35f   : > { %v4734_v12 = vadd.f32 %v4585_v40, %v10206_v45  ;;  %v4589_v1 = vadd.f32 %v4588_v62, %v4396_v53  ;;  %5199 = vmatprep.mubr.bf16.mxu1 %v4932_v35  ;;  %v4809_v16 = vadd.f32 %v10867_v18, %v4733_v51  ;;  %v4402_v45 = vadd.f32 %v10708_v22, %v10663_v49 }
 0x360   : > { %v4590_v44 = vpop.f32.mrf.mxu0  ;;  %5200 = vmatmul.mubr.bf16.vlgmr.msra.gmra.mxu1 %v4931_v59  ;;  %v4872_v29 = vmax.f32 %v4808_v9, 0.0  ;;  %v4408_v22 = vadd.f32 %v10729_v25, %v10675_v33  ;;  %v10927_v59 = vpop.f32.mrf.mxu1  ;;  %v4410_v25 = vadd.f32 %v10738_v47, %v10677_v63  ;;  %v4412_v40 = vadd.f32 %v10746_v41, %v10681_v19  ;;  %v12031_v41 = vld [vmem:[#allocation69_spill] sm:$0xff] }
 0x361   : > { %v4810_v54 = vadd.f32 %v10879_v21, %v4734_v12  ;;  %v4735_v50 = vadd.f32 %v4589_v1, %v10213_v10  ;;  %v4591_v14 = vadd.f32 %v4590_v44, %v4398_v28  ;;  %v4873_v32 = vmax.f32 %v4809_v16, 0.0 }
 0x362   : > { %v4592_v13 = vpop.f32.mrf.mxu0  ;;  %v4406_v10 = vadd.f32 %v10718_v48, %v10665_v7  ;;  %v10938_v4 = vpop.f32.mrf.mxu1  ;;  %v4418_v44 = vadd.f32 %v12031_v41, %v10693_v15 }
 0x363   : > { %v4874_v61 = vmax.f32 %v4810_v54, 0.0  ;;  %v4736_v57 = vadd.f32 %v4591_v14, %v10222_v42  ;;  %v4593_v30 = vadd.f32 %v4592_v13, %v4400_v34  ;;  %v4933_v31 = vpack.c.bf16 %v4873_v32, %v4871_v5  ;;  %v12032_v54 = vld [vmem:[#allocation107_spill] sm:$0xff]  ;;  %v12033_v5 = vld [vmem:[#allocation102_spill] sm:$0xff]  ;;  %v12034_v32 = vld [vmem:[#allocation100_spill] sm:$0xff] }
 0x364   : > { %v4811_v11 = vadd.f32 %v10867_v18, %v4735_v50  ;;  %v4594_v55 = vpop.f32.mrf.mxu0  ;;  %v10947_v34 = vpop.f32.mrf.mxu1  ;;  %v4420_v13 = vadd.f32 %v12034_v32, %v12033_v5  ;;  %v12050_v5 = vld [vmem:[#allocation78_spill] sm:$0xff] }
 0x365   : > { %v4737_v37 = vadd.f32 %v4593_v30, %v10225_v52  ;;  %v4595_v43 = vadd.f32 %v4594_v55, %v4402_v45  ;;  %v4934_v20 = vpack.c.bf16 %v4874_v61, %v4872_v29  ;;  %v4812_v42 = vadd.f32 %v10879_v21, %v4736_v57  ;;  %v12035_v45 = vld [vmem:[#allocation108_spill] sm:$0xff] }
 0x366   : > { %v4598_v49 = vpop.f32.mrf.mxu0  ;;  %v4875_v27 = vmax.f32 %v4811_v11, 0.0  ;;  %v12037_v11 = vld [vmem:[#allocation73_spill] sm:$0xff] }
 0x367   : > { %v4813_v2 = vadd.f32 %v10867_v18, %v4737_v37  ;;  %v4738_v6 = vadd.f32 %v4595_v43, %v10232_v0  ;;  %v4599_v26 = vadd.f32 %v4598_v49, %v4406_v10  ;;  %5209 = vmatprep.mubr.bf16.mxu1 %v4934_v20  ;;  %v4876_v0 = vmax.f32 %v4812_v42, 0.0  ;;  %v10958_v10 = vpop.f32.mrf.mxu1  ;;  %v12038_v43 = vld [vmem:[#allocation21_spill] sm:$0xff] }
 0x368   : > { %v4600_v7 = vpop.f32.mrf.mxu0  ;;  %5210 = vmatmul.mubr.bf16.gmra.mxu1 %v4933_v31  ;;  %v12036_v31 = vld [vmem:[#allocation64_spill] sm:$0xff] }
 0x369   : > { %v4877_v48 = vmax.f32 %v4813_v2, 0.0  ;;  %v4814_v52 = vadd.f32 %v10879_v21, %v4738_v6  ;;  %v4739_v53 = vadd.f32 %v4599_v26, %v10239_v17  ;;  %v4601_v33 = vadd.f32 %v4600_v7, %v4408_v22  ;;  %v12039_v26 = vld [vmem:[#allocation24_spill] sm:$0xff] }
 0x36a   : > { %v4602_v35 = vpop.f32.mrf.mxu0  ;;  %v4416_v17 = vadd.f32 %v10752_v39, %v10683_v23  ;;  %v4422_v55 = vadd.f32 %v12037_v11, %v12036_v31  ;;  %v12052_v11 = vld [vmem:[#allocation25_spill] sm:$0xff] }
 0x36b   : > { %v4935_v51 = vpack.c.bf16 %v4877_v48, %v4875_v27  ;;  %v4878_v62 = vmax.f32 %v4814_v52, 0.0  ;;  %v4740_v28 = vadd.f32 %v4601_v33, %v10248_v56  ;;  %v4603_v12 = vadd.f32 %v4602_v35, %v4410_v25  ;;  %v12040_v27 = vld [vmem:[#allocation22_spill] sm:$0xff]  ;;  %v12041_v48 = vld [vmem:[#allocation89_spill] sm:$0xff]  ;;  %v12042_v52 = vld [vmem:[#allocation103_spill] sm:$0xff] }
 0x36c   : > { %v4604_v1 = vpop.f32.mrf.mxu0  ;;  %v4815_v63 = vadd.f32 %v10867_v18, %v4739_v53  ;;  %v3459_v7 = vadd.f32 %v12040_v27, %v12039_v26  ;;  %v4426_v53 = vadd.f32 %v12042_v52, %v12041_v48  ;;  %v12043_v33 = vld [vmem:[#allocation18_spill] sm:$0xff]  ;;  %v12044_v35 = vld [vmem:[#allocation65_spill] sm:$0xff]  ;;  %v12058_v48 = vld [vmem:[#allocation20_spill] sm:$0xff] }
 0x36d   : > { %v4605_v9 = vadd.f32 %v4604_v1, %v4412_v40  ;;  %v4936_v16 = vpack.c.bf16 %v4878_v62, %v4876_v0  ;;  %v4741_v47 = vadd.f32 %v4603_v12, %v10251_v58  ;;  %v4816_v14 = vadd.f32 %v10879_v21, %v4740_v28  ;;  %v12045_v0 = vld [vmem:[#allocation75_spill] sm:$0xff]  ;;  %v10969_v12 = vpop.f32.mrf.mxu1 }
 0x36e   : > { %v4608_v19 = vpop.f32.mrf.mxu0  ;;  %v4879_v15 = vmax.f32 %v4815_v63, 0.0 }
 0x36f   : > { %v4742_v50 = vadd.f32 %v4605_v9, %v12032_v54  ;;  %v4609_v56 = vadd.f32 %v4608_v19, %v4416_v17  ;;  %5219 = vmatprep.mubr.bf16.mxu1 %v4936_v16  ;;  %v4817_v23 = vadd.f32 %v10867_v18, %v4741_v47  ;;  %v4880_v20 = vmax.f32 %v4816_v14, 0.0  ;;  %v12048_v14 = vld [vmem:[#allocation15_spill] sm:$0xff] }
 0x370   : > { %v4610_v39 = vpop.f32.mrf.mxu0  ;;  %5220 = vmatmul.mubr.bf16.gmra.mxu1 %v4935_v51  ;;  %v4428_v51 = vadd.f32 %v12045_v0, %v12044_v35 }
 0x371   : > { %v4818_v58 = vadd.f32 %v10879_v21, %v4742_v50  ;;  %v4743_v61 = vadd.f32 %v4609_v56, %v12035_v45  ;;  %v4611_v57 = vadd.f32 %v4610_v39, %v4418_v44  ;;  %v4881_v30 = vmax.f32 %v4817_v23, 0.0  ;;  %v12046_v44 = vld [vmem:[#allocation23_spill] sm:$0xff]  ;;  %v12047_v56 = vld [vmem:[#allocation93_spill] sm:$0xff]  ;;  %v12049_v39 = vld [vmem:[#allocation66_spill] sm:$0xff] }
 0x372   : > { %v4612_v29 = vpop.f32.mrf.mxu0  ;;  %v4430_v23 = vadd.f32 %v12048_v14, %v12047_v56  ;;  %v4432_v32 = vadd.f32 %v12050_v5, %v12049_v39  ;;  %v12064_v14 = vld [vmem:[#allocation111_spill] sm:$0xff] }
 0x373   : > { %v4882_v37 = vmax.f32 %v4818_v58, 0.0  ;;  %v4744_v22 = vadd.f32 %v4611_v57, %v12038_v43  ;;  %v4613_v49 = vadd.f32 %v4612_v29, %v4420_v13  ;;  %v4937_v42 = vpack.c.bf16 %v4881_v30, %v4879_v15  ;;  %v10979_v58 = vpop.f32.mrf.mxu1  ;;  %v12051_v15 = vld [vmem:[#allocation19_spill] sm:$0xff]  ;;  %v12054_v43 = vld [vmem:[#allocation90_spill] sm:$0xff] }
 0x374   : > { %v4819_v2 = vadd.f32 %v10867_v18, %v4743_v61  ;;  %v4614_v6 = vpop.f32.mrf.mxu0 }
 0x375   : > { %v4745_v25 = vadd.f32 %v4613_v49, %v12043_v33  ;;  %v4615_v40 = vadd.f32 %v4614_v6, %v4422_v55  ;;  %v4938_v28 = vpack.c.bf16 %v4882_v37, %v4880_v20  ;;  %v4820_v1 = vadd.f32 %v10879_v21, %v4744_v22  ;;  %v12053_v55 = vld [vmem:[#allocation109_spill] sm:$0xff]  ;;  %v12056_v6 = vld [vmem:[#allocation110_spill] sm:$0xff] }
 0x376   : > { %v4618_v62 = vpop.f32.mrf.mxu0  ;;  %v4883_v63 = vmax.f32 %v4819_v2, 0.0  ;;  %v3469_v37 = vadd.f32 %v12053_v55, %v12052_v11  ;;  %v12055_v22 = vld [vmem:[#allocation121_spill] sm:$0xff]  ;;  %v12069_v11 = vld [vmem:[#allocation27_spill] sm:$0xff] }
 0x377   : > { %v4821_v17 = vadd.f32 %v10867_v18, %v4745_v25  ;;  %v4746_v9 = vadd.f32 %v4615_v40, %v3459_v7  ;;  %v4619_v16 = vadd.f32 %v4618_v62, %v4426_v53  ;;  %5229 = vmatprep.mubr.bf16.mxu1 %v4938_v28  ;;  %v4884_v45 = vmax.f32 %v4820_v1, 0.0  ;;  %v12057_v7 = vld [vmem:[#allocation91_spill] sm:$0xff]  ;;  %v10990_v53 = vpop.f32.mrf.mxu1 }
 0x378   : > { %v4620_v47 = vpop.f32.mrf.mxu0  ;;  %5230 = vmatmul.mubr.bf16.gmra.mxu1 %v4937_v42  ;;  %v4436_v49 = vadd.f32 %v12055_v22, %v12054_v43  ;;  %v4438_v52 = vadd.f32 %v12058_v48, %v12057_v7  ;;  %v12060_v62 = vld [vmem:[#allocation83_spill] sm:$0xff]  ;;  %v12070_v43 = vld [vmem:[#allocation68_spill] sm:$0xff] }
 0x379   : > { %v4885_v19 = vmax.f32 %v4821_v17, 0.0  ;;  %v4822_v41 = vadd.f32 %v10879_v21, %v4746_v9  ;;  %v4747_v54 = vadd.f32 %v4619_v16, %v12046_v44  ;;  %v4621_v50 = vadd.f32 %v4620_v47, %v4428_v51  ;;  %v12059_v51 = vld [vmem:[#allocation95_spill] sm:$0xff]  ;;  %v12061_v17 = vld [vmem:[#allocation26_spill] sm:$0xff] }
 0x37a   : > { %v4622_v13 = vpop.f32.mrf.mxu0  ;;  %v4440_v28 = vadd.f32 %v12060_v62, %v12059_v51  ;;  %v12063_v44 = vld [vmem:[#allocation86_spill] sm:$0xff]  ;;  %v12071_v22 = vld [vmem:[#allocation55_spill] sm:$0xff]  ;;  %v12073_v51 = vld [vmem:[#allocation96_spill] sm:$0xff] }
 0x37b   : > { %v4939_v61 = vpack.c.bf16 %v4885_v19, %v4883_v63  ;;  %v4886_v57 = vmax.f32 %v4822_v41, 0.0  ;;  %v4748_v30 = vadd.f32 %v4621_v50, %v12051_v15  ;;  %v4623_v29 = vadd.f32 %v4622_v13, %v4430_v23  ;;  %v12062_v41 = vld [vmem:[#allocation67_spill] sm:$0xff]  ;;  %v11000_v50 = vpop.f32.mrf.mxu1  ;;  %v12066_v15 = vld [vmem:[#allocation28_spill] sm:$0xff] }
 0x37c   : > { %v4624_v31 = vpop.f32.mrf.mxu0  ;;  %v4823_v2 = vadd.f32 %v10867_v18, %v4747_v54  ;;  %v4442_v54 = vadd.f32 %v12063_v44, %v12062_v41  ;;  %v12074_v62 = vld [vmem:[#allocation52_spill] sm:$0xff]  ;;  %v12077_v44 = vld [vmem:[#allocation114_spill] sm:$0xff] }
 0x37d   : > { %v4625_v20 = vadd.f32 %v4624_v31, %v4432_v32  ;;  %v4940_v42 = vpack.c.bf16 %v4886_v57, %v4884_v45  ;;  %v4749_v26 = vadd.f32 %v4623_v29, %v12056_v6  ;;  %v4824_v40 = vadd.f32 %v10879_v21, %v4748_v30  ;;  %v12065_v57 = vld [vmem:[#allocation112_spill] sm:$0xff]  ;;  %v12067_v30 = vld [vmem:[#allocation58_spill] sm:$0xff] }
 0x37e   : > { %v4628_v27 = vpop.f32.mrf.mxu0  ;;  %v4887_v63 = vmax.f32 %v4823_v2, 0.0  ;;  %v12068_v29 = vld [vmem:[#allocation92_spill] sm:$0xff]  ;;  %v11011_v2 = vpop.f32.mrf.mxu1 }
 0x37f   : > { %v4750_v33 = vadd.f32 %v4625_v20, %v3469_v37  ;;  %v4629_v25 = vadd.f32 %v4628_v27, %v4436_v49  ;;  %5239 = vmatprep.mubr.bf16.mxu1 %v4940_v42  ;;  %v4825_v35 = vadd.f32 %v10867_v18, %v4749_v26  ;;  %v4888_v5 = vmax.f32 %v4824_v40, 0.0  ;;  %v12072_v40 = vld [vmem:[#allocation113_spill] sm:$0xff] }
 0x380   : > { %v4630_v0 = vpop.f32.mrf.mxu0  ;;  %5240 = vmatmul.mubr.bf16.gmra.mxu1 %v4939_v61  ;;  %v3479_v61 = vadd.f32 %v12066_v15, %v12065_v57  ;;  %v4446_v31 = vadd.f32 %v12068_v29, %v12067_v30  ;;  %v4448_v49 = vadd.f32 %v12071_v22, %v12070_v43  ;;  %v12082_v30 = vld [vmem:[#allocation30_spill] sm:$0xff] }
 0x381   : > { %v4826_v1 = vadd.f32 %v10879_v21, %v4750_v33  ;;  %v4751_v9 = vadd.f32 %v4629_v25, %v12061_v17  ;;  %v4631_v16 = vadd.f32 %v4630_v0, %v4438_v52  ;;  %v4889_v47 = vmax.f32 %v4825_v35, 0.0  ;;  %v12076_v17 = vld [vmem:[#allocation127_spill] sm:$0xff] }
 0x382   : > { %v4632_v19 = vpop.f32.mrf.mxu0 }
 0x383   : > { %v4890_v56 = vmax.f32 %v4826_v1, 0.0  ;;  %v4752_v23 = vadd.f32 %v4631_v16, %v12064_v14  ;;  %v4633_v39 = vadd.f32 %v4632_v19, %v4440_v28  ;;  %v4941_v32 = vpack.c.bf16 %v4889_v47, %v4887_v63  ;;  %v12075_v1 = vld [vmem:[#allocation97_spill] sm:$0xff]  ;;  %v11021_v63 = vpop.f32.mrf.mxu1 }
 0x384   : > { %v4827_v13 = vadd.f32 %v10867_v18, %v4751_v9  ;;  %v4634_v45 = vpop.f32.mrf.mxu0  ;;  %v4450_v28 = vadd.f32 %v12074_v62, %v12073_v51  ;;  %v4452_v9 = vadd.f32 %v12076_v17, %v12075_v1  ;;  %v12088_v1 = vld [vmem:[#allocation116_spill] sm:$0xff] }
 0x385   : > { %v4753_v55 = vadd.f32 %v4633_v39, %v12069_v11  ;;  %v4635_v37 = vadd.f32 %v4634_v45, %v4442_v54  ;;  %v4942_v42 = vpack.c.bf16 %v4890_v56, %v4888_v5  ;;  %v4828_v6 = vadd.f32 %v10879_v21, %v4752_v23  ;;  %v12078_v23 = vld [vmem:[#allocation115_spill] sm:$0xff]  ;;  %v12079_v39 = vld [vmem:[#allocation29_spill] sm:$0xff]  ;;  %v12083_v11 = vld [vmem:[#allocation62_spill] sm:$0xff]  ;;  %v11032_v43 = vpop.f32.mrf.mxu1 }
 0x386   : > { %v4638_v20 = vpop.f32.mrf.mxu0  ;;  %v4891_v48 = vmax.f32 %v4827_v13, 0.0  ;;  %v3489_v5 = vadd.f32 %v12079_v39, %v12078_v23  ;;  %v12081_v13 = vld [vmem:[#allocation130_spill] sm:$0xff]  ;;  %v12092_v23 = vld [vmem:[#allocation71_spill] sm:$0xff] }
 0x387   : > { %v4829_v26 = vadd.f32 %v10867_v18, %v4753_v55  ;;  %v4754_v27 = vadd.f32 %v4635_v37, %v3479_v61  ;;  %v4639_v7 = vadd.f32 %v4638_v20, %v4446_v31  ;;  %5249 = vmatprep.mubr.bf16.mxu1 %v4942_v42  ;;  %v4892_v47 = vmax.f32 %v4828_v6, 0.0  ;;  %v12084_v55 = vld [vmem:[#allocation132_spill] sm:$0xff]  ;;  %v11042_v62 = vpop.f32.mrf.mxu1 }
 0x388   : > { %v4640_v52 = vpop.f32.mrf.mxu0  ;;  %5250 = vmatmul.mubr.bf16.gmra.mxu1 %v4941_v32  ;;  %v12080_v32 = vld [vmem:[#allocation99_spill] sm:$0xff]  ;;  %v4458_v37 = vadd.f32 %v12084_v55, %v12083_v11 }
 0x389   : > { %v4893_v33 = vmax.f32 %v4829_v26, 0.0  ;;  %v4830_v25 = vadd.f32 %v10879_v21, %v4754_v27  ;;  %v4755_v35 = vadd.f32 %v4639_v7, %v12072_v40  ;;  %v4641_v0 = vadd.f32 %v4640_v52, %v4448_v49  ;;  %v12085_v26 = vld [vmem:[#allocation70_spill] sm:$0xff] }
 0x38a   : > { %v4642_v16 = vpop.f32.mrf.mxu0  ;;  %v4456_v45 = vadd.f32 %v12081_v13, %v12080_v32  ;;  %v4460_v27 = vadd.f32 %v10874_v24, %v12085_v26 }
 0x38b   : > { %v4943_v19 = vpack.c.bf16 %v4893_v33, %v4891_v48  ;;  %v4894_v41 = vmax.f32 %v4830_v25, 0.0  ;;  %v4756_v54 = vadd.f32 %v4641_v0, %v12077_v44  ;;  %v4643_v56 = vadd.f32 %v4642_v16, %v4450_v28  ;;  %v12086_v48 = vld [vmem:[#allocation32_spill] sm:$0xff]  ;;  %v12089_v44 = vld [vmem:[#allocation33_spill] sm:$0xff] }
 0x38c   : > { %v4644_v14 = vpop.f32.mrf.mxu0  ;;  %v4831_v61 = vadd.f32 %v10867_v18, %v4755_v35  ;;  %v12087_v0 = vld [vmem:[#allocation12_spill] sm:$0xff] }
 0x38d   : > { %v4645_v57 = vadd.f32 %v4644_v14, %v4452_v9  ;;  %v4944_v15 = vpack.c.bf16 %v4894_v41, %v4892_v47  ;;  %v4757_v29 = vadd.f32 %v4643_v56, %v12082_v30  ;;  %v4832_v20 = vadd.f32 %v10879_v21, %v4756_v54  ;;  %v12090_v54 = vld [vmem:[#allocation117_spill] sm:$0xff] }
 0x38e   : > { %v4648_v31 = vpop.f32.mrf.mxu0  ;;  %v4895_v25 = vmax.f32 %v4831_v61, 0.0  ;;  %v4462_v51 = vadd.f32 %v10887_v3, %v12087_v0  ;;  %v12091_v56 = vld [vmem:[#allocation9_spill] sm:$0xff]  ;;  %v12098_v0 = vld [vmem:[#allocation79_spill] sm:$0xff] }
 0x38f   : > { %v4758_v22 = vadd.f32 %v4645_v57, %v3489_v5  ;;  %v4649_v49 = vadd.f32 %v4648_v31, %v4456_v45  ;;  %5259 = vmatprep.mubr.bf16.mxu1 %v4944_v15  ;;  %v4833_v42 = vadd.f32 %v10867_v18, %v4757_v29  ;;  %v4896_v16 = vmax.f32 %v4832_v20, 0.0  ;;  %v12093_v5 = vld [vmem:[#allocation63_spill] sm:$0xff]  ;;  %v11053_v57 = vpop.f32.mrf.mxu1 }
 0x390   : > { %v4650_v6 = vpop.f32.mrf.mxu0  ;;  %5260 = vmatmul.mubr.bf16.gmra.mxu1 %v4943_v19  ;;  %v3499_v19 = vadd.f32 %v12090_v54, %v12089_v44  ;;  %v4466_v14 = vadd.f32 %v10898_v36, %v12091_v56  ;;  %v4468_v32 = vadd.f32 %v10907_v8, %v12093_v5  ;;  %v12095_v8 = vld [vmem:[#allocation74_spill] sm:$0xff] }
 0x391   : > { %v4834_v7 = vadd.f32 %v10879_v21, %v4758_v22  ;;  %v4759_v52 = vadd.f32 %v4649_v49, %v12086_v48  ;;  %v4651_v33 = vadd.f32 %v4650_v6, %v4458_v37  ;;  %v4897_v40 = vmax.f32 %v4833_v42, 0.0  ;;  %v12094_v37 = vld [vmem:[#allocation72_spill] sm:$0xff]  ;;  %v12096_v42 = vld [vmem:[#allocation13_spill] sm:$0xff] }
 0x392   : > { %v4652_v35 = vpop.f32.mrf.mxu0  ;;  %v4470_v20 = vadd.f32 %v10918_v46, %v12095_v8  ;;  %v4472_v6 = vadd.f32 %v10927_v59, %v12096_v42  ;;  %v12108_v42 = vld [vmem:[#allocation122_spill] sm:$0xff] }
 0x393   : > { %v4898_v28 = vmax.f32 %v4834_v7, 0.0  ;;  %v4760_v17 = vadd.f32 %v4651_v33, %v12088_v1  ;;  %v4653_v9 = vadd.f32 %v4652_v35, %v4460_v27  ;;  %v4945_v24 = vpack.c.bf16 %v4897_v40, %v4895_v25  ;;  %v11063_v27 = vpop.f32.mrf.mxu1  ;;  %v12097_v33 = vld [vmem:[#allocation77_spill] sm:$0xff]  ;;  %v12100_v1 = vld [vmem:[#allocation10_spill] sm:$0xff] }
 0x394   : > { %v4835_v47 = vadd.f32 %v10867_v18, %v4759_v52  ;;  %v4654_v41 = vpop.f32.mrf.mxu0 }
 0x395   : > { %v4761_v39 = vadd.f32 %v4653_v9, %v12092_v23  ;;  %v4655_v3 = vadd.f32 %v4654_v41, %v4462_v51  ;;  %v4946_v45 = vpack.c.bf16 %v4898_v28, %v4896_v16  ;;  %v4836_v15 = vadd.f32 %v10879_v21, %v4760_v17  ;;  %v12099_v51 = vld [vmem:[#allocation31_spill] sm:$0xff]  ;;  %v12102_v41 = vld [vmem:[#allocation16_spill] sm:$0xff]  ;;  %v11074_v54 = vpop.f32.mrf.mxu1 }
 0x396   : > { %v4658_v13 = vpop.f32.mrf.mxu0  ;;  %v4899_v31 = vmax.f32 %v4835_v47, 0.0  ;;  %v3509_v28 = vadd.f32 %v12099_v51, %v12098_v0  ;;  %v4476_v17 = vadd.f32 %v10938_v4, %v12100_v1  ;;  %v12101_v16 = vld [vmem:[#allocation119_spill] sm:$0xff]  ;;  %v4478_v44 = vadd.f32 %v10947_v34, %v12102_v41 }
 0x397   : > { %v4837_v61 = vadd.f32 %v10867_v18, %v4761_v39  ;;  %v4762_v30 = vadd.f32 %v4655_v3, %v3499_v19  ;;  %v4659_v29 = vadd.f32 %v4658_v13, %v4466_v14  ;;  %5269 = vmatprep.mubr.bf16.mxu1 %v4946_v45  ;;  %v4900_v7 = vmax.f32 %v4836_v15, 0.0  ;;  %v12103_v39 = vld [vmem:[#allocation76_spill] sm:$0xff] }
 0x398   : > { %v4660_v11 = vpop.f32.mrf.mxu0  ;;  %5270 = vmatmul.mubr.bf16.gmra.mxu1 %v4945_v24  ;;  %v4480_v3 = vadd.f32 %v10958_v10, %v12103_v39 }
 0x399   : > { %v4901_v36 = vmax.f32 %v4837_v61, 0.0  ;;  %v4838_v55 = vadd.f32 %v10879_v21, %v4762_v30  ;;  %v4763_v22 = vadd.f32 %v4659_v29, %v12094_v37  ;;  %v4661_v49 = vadd.f32 %v4660_v11, %v4468_v32  ;;  %v12104_v32 = vld [vmem:[#allocation34_spill] sm:$0xff]  ;;  %v12105_v30 = vld [vmem:[#allocation11_spill] sm:$0xff] }
 0x39a   : > { %v4662_v26 = vpop.f32.mrf.mxu0  ;;  %v4482_v29 = vadd.f32 %v10969_v12, %v12105_v30 }
 0x39b   : > { %v4947_v48 = vpack.c.bf16 %v4901_v36, %v4899_v31  ;;  %v4902_v52 = vmax.f32 %v4838_v55, 0.0  ;;  %v4764_v25 = vadd.f32 %v4661_v49, %v12097_v33  ;;  %v4663_v40 = vadd.f32 %v4662_v26, %v4470_v20  ;;  %v11084_v31 = vpop.f32.mrf.mxu1  ;;  %v12106_v36 = vld [vmem:[#allocation120_spill] sm:$0xff]  ;;  %v12107_v20 = vld [vmem:[#allocation38_spill] sm:$0xff]  ;;  %v12111_v33 = vld [vmem:[#allocation105_spill] sm:$0xff] }
 0x39c   : > { %v4664_v35 = vpop.f32.mrf.mxu0  ;;  %v4839_v59 = vadd.f32 %v10867_v18, %v4763_v22  ;;  %v12109_v26 = vld [vmem:[#allocation104_spill] sm:$0xff] }
 0x39d   : > { %v4665_v46 = vadd.f32 %v4664_v35, %v4472_v6  ;;  %v4948_v9 = vpack.c.bf16 %v4902_v52, %v4900_v7  ;;  %v4765_v24 = vadd.f32 %v4663_v40, %v12101_v16  ;;  %v4840_v14 = vadd.f32 %v10879_v21, %v4764_v25  ;;  %v11095_v0 = vpop.f32.mrf.mxu1  ;;  %v12112_v16 = vld [vmem:[#allocation35_spill] sm:$0xff] }
 0x39e   : > { %v4668_v47 = vpop.f32.mrf.mxu0  ;;  %v4903_v34 = vmax.f32 %v4839_v59, 0.0  ;;  %v3519_v6 = vadd.f32 %v12108_v42, %v12107_v20  ;;  %v4486_v7 = vadd.f32 %v10979_v58, %v12109_v26  ;;  %v4488_v25 = vadd.f32 %v10990_v53, %v12111_v33  ;;  %v12113_v53 = vld [vmem:[#allocation118_spill] sm:$0xff] }
 0x39f   : > { %v4766_v19 = vadd.f32 %v4665_v46, %v3509_v28  ;;  %v4669_v56 = vadd.f32 %v4668_v47, %v4476_v17  ;;  %5279 = vmatprep.mubr.bf16.mxu1 %v4948_v9  ;;  %v4841_v23 = vadd.f32 %v10867_v18, %v4765_v24  ;;  %v4904_v22 = vmax.f32 %v4840_v14, 0.0  ;;  %v11105_v14 = vpop.f32.mrf.mxu1 }
 0x3a0   : > { %v4670_v4 = vpop.f32.mrf.mxu0  ;;  %5280 = vmatmul.mubr.bf16.gmra.mxu1 %v4947_v48  ;;  %v12110_v48 = vld [vmem:[#allocation37_spill] sm:$0xff]  ;;  %v4490_v41 = vadd.f32 %v11000_v50, %v12113_v53 }
 0x3a1   : > { %v4842_v5 = vadd.f32 %v10879_v21, %v4766_v19  ;;  %v4767_v13 = vadd.f32 %v4669_v56, %v12104_v32  ;;  %v4671_v45 = vadd.f32 %v4670_v4, %v4478_v44  ;;  %v4905_v15 = vmax.f32 %v4841_v23, 0.0  ;;  %v12114_v44 = vld [vmem:[#allocation17_spill] sm:$0xff] }
 0x3a2   : > { %v4672_v61 = vpop.f32.mrf.mxu0  ;;  %v4492_v19 = vadd.f32 %v11011_v2, %v12114_v44  ;;  %v12127_v53 = vld [vmem:[#allocation85_spill] sm:$0xff] }
 0x3a3   : > { %v4906_v11 = vmax.f32 %v4842_v5, 0.0  ;;  %v4768_v55 = vadd.f32 %v4671_v45, %v12106_v36  ;;  %v4673_v37 = vadd.f32 %v4672_v61, %v4480_v3  ;;  %v4949_v10 = vpack.c.bf16 %v4905_v15, %v4903_v34  ;;  %v12115_v3 = vld [vmem:[#allocation123_spill] sm:$0xff]  ;;  %v12116_v45 = vld [vmem:[#allocation41_spill] sm:$0xff]  ;;  %v12117_v34 = vld [vmem:[#allocation124_spill] sm:$0xff] }
 0x3a4   : > { %v4843_v49 = vadd.f32 %v10867_v18, %v4767_v13  ;;  %v4674_v8 = vpop.f32.mrf.mxu0  ;;  %v3529_v15 = vadd.f32 %v12117_v34, %v12116_v45  ;;  %v12118_v61 = vld [vmem:[#allocation14_spill] sm:$0xff]  ;;  %v12128_v44 = vld [vmem:[#allocation49_spill] sm:$0xff] }
 0x3a5   : > { %v4769_v52 = vadd.f32 %v4673_v37, %v12110_v48  ;;  %v4675_v12 = vadd.f32 %v4674_v8, %v4482_v29  ;;  %v4950_v35 = vpack.c.bf16 %v4906_v11, %v4904_v22  ;;  %v4844_v51 = vadd.f32 %v10879_v21, %v4768_v55  ;;  %v12119_v11 = vld [vmem:[#allocation39_spill] sm:$0xff]  ;;  %v12120_v37 = vld [vmem:[#allocation106_spill] sm:$0xff] }
 0x3a6   : > { %v4678_v40 = vpop.f32.mrf.mxu0  ;;  %v4907_v46 = vmax.f32 %v4843_v49, 0.0  ;;  %v4496_v30 = vadd.f32 %v11021_v63, %v12118_v61  ;;  %v4498_v22 = vadd.f32 %v11032_v43, %v12120_v37  ;;  %v12121_v63 = vld [vmem:[#allocation82_spill] sm:$0xff]  ;;  %v12122_v48 = vld [vmem:[#allocation43_spill] sm:$0xff] }
 0x3a7   : > { %v4845_v28 = vadd.f32 %v10867_v18, %v4769_v52  ;;  %v4770_v1 = vadd.f32 %v4675_v12, %v3519_v6  ;;  %v4679_v17 = vadd.f32 %v4678_v40, %v4486_v7  ;;  %5289 = vmatprep.mubr.bf16.mxu1 %v4950_v35  ;;  %v4908_v23 = vmax.f32 %v4844_v51, 0.0  ;;  %v12123_v40 = vld [vmem:[#allocation84_spill] sm:$0xff] }
 0x3a8   : > { %v4680_v9 = vpop.f32.mrf.mxu0  ;;  %5290 = vmatmul.mubr.bf16.gmra.mxu1 %v4949_v10  ;;  %v4517_v10 = vpop.f32.mrf.mxu1  ;;  %v4500_v26 = vadd.f32 %v11042_v62, %v12121_v63  ;;  %v4502_v35 = vadd.f32 %v11053_v57, %v12123_v40  ;;  %v12129_v57 = vld [vmem:[#allocation87_spill] sm:$0xff] }
 0x3a9   : > { %v4909_v58 = vmax.f32 %v4845_v28, 0.0  ;;  %v4846_v59 = vadd.f32 %v10879_v21, %v4770_v1  ;;  %v4771_v24 = vadd.f32 %v4679_v17, %v12112_v16  ;;  %v4681_v47 = vadd.f32 %v4680_v9, %v4488_v25  ;;  %v12124_v1 = vld [vmem:[#allocation45_spill] sm:$0xff]  ;;  %v12125_v16 = vld [vmem:[#allocation51_spill] sm:$0xff] }
 0x3aa   : > { %v4682_v56 = vpop.f32.mrf.mxu0  ;;  %v4519_v51 = vpop.f32.mrf.mxu1 }
 0x3ab   : > { %v4951_v4 = vpack.c.bf16 %v4909_v58, %v4907_v46  ;;  %v4910_v39 = vmax.f32 %v4846_v59, 0.0  ;;  %v4772_v5 = vadd.f32 %v4681_v47, %v12115_v3  ;;  %v4683_v32 = vadd.f32 %v4682_v56, %v4490_v41 }
 0x3ac   : > { %v4684_v13 = vpop.f32.mrf.mxu0  ;;  %v4847_v2 = vadd.f32 %v10867_v18, %v4771_v24  ;;  %v12126_v24 = vld [vmem:[#allocation47_spill] sm:$0xff]  ;;  %v4506_v41 = vadd.f32 %v11063_v27, %v12127_v53  ;;  %v4521_v3 = vpop.f32.mrf.mxu1 }
 0x3ad   : > { %v4685_v50 = vadd.f32 %v4684_v13, %v4492_v19  ;;  %v4952_v29 = vpack.c.bf16 %v4910_v39, %v4908_v23  ;;  %v4773_v36 = vadd.f32 %v4683_v32, %v12119_v11  ;;  %v4848_v20 = vadd.f32 %v10879_v21, %v4772_v5  ;;  %v12132_v11 = vld [vmem:[#allocation94_spill] sm:$0xff] }
 0x3ae   : > { %v4688_v55 = vpop.f32.mrf.mxu0  ;;  %v4911_v33 = vmax.f32 %v4847_v2, 0.0  ;;  %v3539_v47 = vadd.f32 %v12126_v24, %v12125_v16  ;;  %v4508_v23 = vadd.f32 %v11074_v54, %v12129_v57  ;;  %v12131_v54 = vld [vmem:[#allocation88_spill] sm:$0xff]  ;;  %v4525_v37 = vpop.f32.mrf.mxu1  ;;  %v12140_v24 = vld [vmem:[#allocation57_spill] sm:$0xff] }
 0x3af   : > { %v4774_v49 = vadd.f32 %v4685_v50, %v3529_v15  ;;  %v4689_v8 = vadd.f32 %v4688_v55, %v4496_v30  ;;  %5299 = vmatprep.mubr.bf16.mxu1 %v4952_v29  ;;  %v4849_v42 = vadd.f32 %v10867_v18, %v4773_v36  ;;  %v4912_v9 = vmax.f32 %v4848_v20, 0.0  ;;  %v12130_v30 = vld [vmem:[#allocation53_spill] sm:$0xff]  ;;  %v12133_v20 = vld [vmem:[#allocation54_spill] sm:$0xff] }
 0x3b0   : > { %v4690_v6 = vpop.f32.mrf.mxu0  ;;  %5300 = vmatmul.mubr.bf16.gmra.mxu1 %v4951_v4  ;;  %v4510_v2 = vadd.f32 %v11084_v31, %v12131_v54  ;;  %v4512_v36 = vadd.f32 %v11095_v0, %v12132_v11  ;;  %v12137_v0 = vld [vmem:[#allocation80_spill] sm:$0xff] }
 0x3b1   : > { %v4850_v7 = vadd.f32 %v10879_v21, %v4774_v49  ;;  %v4775_v52 = vadd.f32 %v4689_v8, %v12122_v48  ;;  %v4691_v12 = vadd.f32 %v4690_v6, %v4498_v22  ;;  %v4913_v43 = vmax.f32 %v4849_v42, 0.0 }
 0x3b2   : > { %v4692_v25 = vpop.f32.mrf.mxu0 }
 0x3b3   : > { %v4914_v28 = vmax.f32 %v4850_v7, 0.0  ;;  %v4776_v17 = vadd.f32 %v4691_v12, %v12124_v1  ;;  %v4693_v46 = vadd.f32 %v4692_v25, %v4500_v26  ;;  %v4953_v58 = vpack.c.bf16 %v4913_v43, %v4911_v33  ;;  %v12134_v26 = vld [vmem:[#allocation81_spill] sm:$0xff]  ;;  %v12135_v7 = vld [vmem:[#allocation36_spill] sm:$0xff]  ;;  %v4527_v1 = vpop.f32.mrf.mxu1 }
 0x3b4   : > { %v4851_v62 = vadd.f32 %v10867_v18, %v4775_v52  ;;  %v4694_v59 = vpop.f32.mrf.mxu0  ;;  %v3549_v48 = vadd.f32 %v12135_v7, %v12134_v26  ;;  %v12136_v52 = vld [vmem:[#allocation98_spill] sm:$0xff]  ;;  %v12148_v26 = vld [vmem:[#allocation44_spill] sm:$0xff] }
 0x3b5   : > { %v4777_v19 = vadd.f32 %v4693_v46, %v12128_v44  ;;  %v4695_v56 = vadd.f32 %v4694_v59, %v4502_v35  ;;  %v4954_v39 = vpack.c.bf16 %v4914_v28, %v4912_v9  ;;  %v4852_v5 = vadd.f32 %v10879_v21, %v4776_v17  ;;  %v12138_v35 = vld [vmem:[#allocation101_spill] sm:$0xff]  ;;  %v12139_v59 = vld [vmem:[#allocation50_spill] sm:$0xff]  ;;  %v4529_v57 = vpop.f32.mrf.mxu1 }
 0x3b6   : > { %v4698_v4 = vpop.f32.mrf.mxu0  ;;  %v4915_v34 = vmax.f32 %v4851_v62, 0.0  ;;  %v4516_v12 = vadd.f32 %v11105_v14, %v12136_v52  ;;  %v4518_v28 = vadd.f32 %v4517_v10, %v12138_v35  ;;  %v4520_v14 = vadd.f32 %v4519_v51, %v12139_v59  ;;  %v12149_v52 = vld [vmem:[#allocation129_spill] sm:$0xff]  ;;  %v12151_v35 = vld [vmem:[#allocation46_spill] sm:$0xff] }
 0x3b7   : > { %v4853_v32 = vadd.f32 %v10867_v18, %v4777_v19  ;;  %v4778_v13 = vadd.f32 %v4695_v56, %v3539_v47  ;;  %v4699_v45 = vadd.f32 %v4698_v4, %v4506_v41  ;;  %5309 = vmatprep.mubr.bf16.mxu1 %v4954_v39  ;;  %v4916_v22 = vmax.f32 %v4852_v5, 0.0  ;;  %v12141_v19 = vld [vmem:[#allocation125_spill] sm:$0xff]  ;;  %v12142_v4 = vld [vmem:[#allocation40_spill] sm:$0xff] }
 0x3b8   : > { %v4700_v15 = vpop.f32.mrf.mxu0  ;;  %5310 = vmatmul.mubr.bf16.gmra.mxu1 %v4953_v58  ;;  %v4522_v56 = vadd.f32 %v4521_v3, %v12141_v19 }
 0x3b9   : > { %v4917_v61 = vmax.f32 %v4853_v32, 0.0  ;;  %v4854_v27 = vadd.f32 %v10879_v21, %v4778_v13  ;;  %v4779_v50 = vadd.f32 %v4699_v45, %v12130_v30  ;;  %v4701_v29 = vadd.f32 %v4700_v15, %v4508_v23  ;;  %v12144_v15 = vld [vmem:[#allocation59_spill] sm:$0xff] }
 0x3ba   : > { %v4702_v55 = vpop.f32.mrf.mxu0 }
 0x3bb   : > { %v4955_v49 = vpack.c.bf16 %v4917_v61, %v4915_v34  ;;  %v4918_v8 = vmax.f32 %v4854_v27, 0.0  ;;  %v4780_v42 = vadd.f32 %v4701_v29, %v12133_v20  ;;  %v4703_v6 = vadd.f32 %v4702_v55, %v4510_v2  ;;  %v12143_v34 = vld [vmem:[#allocation42_spill] sm:$0xff]  ;;  %v12147_v2 = vld [vmem:[#allocation128_spill] sm:$0xff]  ;;  %v4531_v55 = vpop.f32.mrf.mxu1 }
 0x3bc   : > { %v4704_v63 = vpop.f32.mrf.mxu0  ;;  %v4855_v43 = vadd.f32 %v10867_v18, %v4779_v50  ;;  %v3559_v61 = vadd.f32 %v12144_v15, %v12143_v34  ;;  %v12145_v27 = vld [vmem:[#allocation126_spill] sm:$0xff]  ;;  %v12146_v50 = vld [vmem:[#allocation60_spill] sm:$0xff]  ;;  %v4528_v3 = vadd.f32 %v4527_v1, %v12147_v2 }
 0x3bd   : > { %v4705_v33 = vadd.f32 %v4704_v63, %v4512_v36  ;;  %v4956_v31 = vpack.c.bf16 %v4918_v8, %v4916_v22  ;;  %v4781_v25 = vadd.f32 %v4703_v6, %v12137_v0  ;;  %v4856_v9 = vadd.f32 %v10879_v21, %v4780_v42 }
 0x3be   : > { %v4708_v40 = vpop.f32.mrf.mxu0  ;;  %v4919_v41 = vmax.f32 %v4855_v43, 0.0  ;;  %v4526_v30 = vadd.f32 %v4525_v37, %v12145_v27 }
 0x3bf   : > { %v4782_v17 = vadd.f32 %v4705_v33, %v3549_v48  ;;  %v4709_v46 = vadd.f32 %v4708_v40, %v4516_v12  ;;  %5319 = vmatprep.mubr.bf16.mxu1 %v4956_v31  ;;  %v4857_v58 = vadd.f32 %v10867_v18, %v4781_v25  ;;  %v4920_v32 = vmax.f32 %v4856_v9, 0.0  ;;  %v12150_v33 = vld [vmem:[#allocation131_spill] sm:$0xff]  ;;  %v12153_v9 = vld [vmem:[#allocation61_spill] sm:$0xff] }
 0x3c0   : > { %v4710_v62 = vpop.f32.mrf.mxu0  ;;  %5320 = vmatmul.mubr.bf16.gmra.mxu1 %v4955_v49  ;;  %v4530_v12 = vadd.f32 %v4529_v57, %v12149_v52  ;;  %v4532_v31 = vadd.f32 %v4531_v55, %v12150_v33 }
 0x3c1   : > { %v4858_v16 = vadd.f32 %v10879_v21, %v4782_v17  ;;  %v4783_v47 = vadd.f32 %v4709_v46, %v12140_v24  ;;  %v4711_v53 = vadd.f32 %v4710_v62, %v4518_v28  ;;  %v4921_v44 = vmax.f32 %v4857_v58, 0.0  ;;  %v12152_v46 = vld [vmem:[#allocation56_spill] sm:$0xff] }
 0x3c2   : > { %v4712_v10 = vpop.f32.mrf.mxu0  ;;  %v3569_v58 = vadd.f32 %v12153_v9, %v12152_v46 }
 0x3c3   : > { %v4922_v23 = vmax.f32 %v4858_v16, 0.0  ;;  %v4784_v39 = vadd.f32 %v4711_v53, %v12142_v4  ;;  %v4713_v5 = vadd.f32 %v4712_v10, %v4520_v14  ;;  %v4957_v13 = vpack.c.bf16 %v4921_v44, %v4919_v41  ;;  %v12154_v16 = vld [vmem:[#allocation48_spill] sm:$0xff] }
 0x3c4   : > { %v4859_v51 = vadd.f32 %v10867_v18, %v4783_v47  ;;  %v4714_v45 = vpop.f32.mrf.mxu0 }
 0x3c5   : > { %v4785_v29 = vadd.f32 %v4713_v5, %v12146_v50  ;;  %v4715_v54 = vadd.f32 %v4714_v45, %v4522_v56  ;;  %v4958_v36 = vpack.c.bf16 %v4922_v23, %v4920_v32  ;;  %v4860_v22 = vadd.f32 %v10879_v21, %v4784_v39  ;;  %v4995_v39 = vld [vmem:[%s11431_s5] sm:$0x3] }
 0x3c6   : > { %v4718_v11 = vpop.f32.mrf.mxu0  ;;  %v4923_v42 = vmax.f32 %v4859_v51, 0.0  ;;  %v12155_v5 = vsub.s32 0, %v10846_v38  ;;  %v7495_v38 = vld [vmem:[%s8087_s18 + $0x8] sm:$0xff] }
 0x3c7   : > { %v4861_v49 = vadd.f32 %v10867_v18, %v4785_v29  ;;  %v4786_v8 = vadd.f32 %v4715_v54, %v3559_v61  ;;  %v4719_v20 = vadd.f32 %v4718_v11, %v4526_v30  ;;  %5329 = vmatprep.mubr.bf16.mxu1 %v4958_v36  ;;  %v4924_v0 = vmax.f32 %v4860_v22, 0.0  ;;  %v7494_v61 = vld [vmem:[%s8087_s18] sm:$0xff] }
 0x3c8   : > { %v4720_v6 = vpop.f32.mrf.mxu0  ;;  %5330 = vmatmul.mubr.bf16.gmra.mxu1 %v4957_v13 }
 0x3c9   : > { %v4925_v63 = vmax.f32 %v4861_v49, 0.0  ;;  %v4862_v37 = vadd.f32 %v10879_v21, %v4786_v8  ;;  %v4787_v7 = vadd.f32 %v4719_v20, %v12148_v26  ;;  %v4721_v48 = vadd.f32 %v4720_v6, %v4528_v3  ;;  %v7496_v3 = vld [vmem:[%s8087_s18 + $0x10] sm:$0xff]  ;;  %v7497_v49 = vld [vmem:[%s8087_s18 + $0x18] sm:$0xff] }
 0x3ca   : > { %v4722_v43 = vpop.f32.mrf.mxu0 }
 0x3cb   : > { %v4959_v25 = vpack.c.bf16 %v4925_v63, %v4923_v42  ;;  %v4926_v40 = vmax.f32 %v4862_v37, 0.0  ;;  %v4788_v28 = vadd.f32 %v4721_v48, %v12151_v35  ;;  %v4723_v1 = vadd.f32 %v4722_v43, %v4530_v12  ;;  %v7498_v37 = vld [vmem:[%s8087_s18 + $0x20] sm:$0xff]  ;;  %v7499_v12 = vld [vmem:[%s8087_s18 + $0x28] sm:$0xff] }
 0x3cc   : > { %v4724_v17 = vpop.f32.mrf.mxu0  ;;  %v4863_v14 = vadd.f32 %v10867_v18, %v4787_v7 }
 0x3cd   : > { %v4725_v62 = vadd.f32 %v4724_v17, %v4532_v31  ;;  %v4960_v59 = vpack.c.bf16 %v4926_v40, %v4924_v0  ;;  %v4789_v24 = vadd.f32 %v4723_v1, %v12154_v16  ;;  %v4864_v47 = vadd.f32 %v10879_v21, %v4788_v28  ;;  %v7501_v17 = vld [vmem:[%s8087_s18 + $0x38] sm:$0xff] }
 0x3ce   : > { %v4927_v10 = vmax.f32 %v4863_v14, 0.0 }
 0x3cf   : > { %v4790_v53 = vadd.f32 %v4725_v62, %v3569_v58  ;;  %5339 = vmatprep.mubr.bf16.mxu1 %v4960_v59  ;;  %v4865_v41 = vadd.f32 %v10867_v18, %v4789_v24  ;;  %v4928_v56 = vmax.f32 %v4864_v47, 0.0  ;;  %v11181_v18 = vrot.slane %v4995_v39, %v12155_v5  ;;  %v7502_v59 = vld [vmem:[%s8087_s18 + $0x40] sm:$0xff]  ;;  %v7505_v5 = vld [vmem:[%s8087_s18 + $0x58] sm:$0xff] }
 0x3d0   : > { %5340 = vmatmul.mubr.bf16.gmra.mxu1 %v4959_v25  ;;  %v7500_v25 = vld [vmem:[%s8087_s18 + $0x30] sm:$0xff] }
 0x3d1   : > { %v4866_v44 = vadd.f32 %v10879_v21, %v4790_v53  ;;  %v4929_v19 = vmax.f32 %v4865_v41, 0.0  ;;  %v11185_v21 = vrot.slane %v4995_v39, %v4799_v60  ;;  %v7503_v53 = vld [vmem:[%s8087_s18 + $0x48] sm:$0xff] }
 0x3d3   : > { %v4930_v57 = vmax.f32 %v4866_v44, 0.0  ;;  %v4961_v23 = vpack.c.bf16 %v4929_v19, %v4927_v10 }
 0x3d5   : > { %v4962_v4 = vpack.c.bf16 %v4930_v57, %v4928_v56  ;;  %v7504_v56 = vld [vmem:[%s8087_s18 + $0x50] sm:$0xff] }
 0x3d7   : > { %5349 = vmatprep.mubr.bf16.mxu1 %v4962_v4 }
 0x3d8   : > { %5350 = vmatmul.mubr.bf16.gmra.mxu1 %v4961_v23 }
 0x420   : > { %v5201_v32 = vpop.f32.mrf.mxu1 }
 0x421   : > { %v5202_v13 = vadd.f32 %v5201_v32, %v11181_v18 }
 0x422   : > { %v5203_v51 = vpop.f32.mrf.mxu1 }
 0x423   : > { %v5360_v45 = vmax.f32 %v5202_v13, 0.0  ;;  %v5204_v34 = vadd.f32 %v5203_v51, %v11185_v21 }
 0x424   : > { %v5205_v15 = vpop.f32.mrf.mxu1 }
 0x425   : > { %v5424_v27 = vadd.f32 %v7494_v61, %v5360_v45  ;;  %v5361_v30 = vmax.f32 %v5204_v34, 0.0  ;;  %v5206_v50 = vadd.f32 %v5205_v15, %v11181_v18  ;;  %v7506_v34 = vld [vmem:[%s8087_s18 + $0x60] sm:$0xff] }
 0x426   : > { %v5207_v29 = vpop.f32.mrf.mxu1 }
 0x427   : > { %5488 = vst [vmem:[%s11193_s28] sm:$0xff] %v5424_v27  ;;  %v5425_v60 = vadd.f32 %v7495_v38, %v5361_v30  ;;  %v5362_v54 = vmax.f32 %v5206_v50, 0.0  ;;  %v5208_v2 = vadd.f32 %v5207_v29, %v11185_v21  ;;  %v7507_v50 = vld [vmem:[%s8087_s18 + $0x68] sm:$0xff] }
 0x428   : > { %v5211_v55 = vpop.f32.mrf.mxu1 }
 0x429   : > { %5489 = vst [vmem:[%s11193_s28 + $0x8] sm:$0xff] %v5425_v60  ;;  %v5426_v11 = vadd.f32 %v7496_v3, %v5362_v54  ;;  %v5363_v36 = vmax.f32 %v5208_v2, 0.0  ;;  %v5212_v22 = vadd.f32 %v5211_v55, %v11181_v18  ;;  %v7508_v2 = vld [vmem:[%s8087_s18 + $0x70] sm:$0xff] }
 0x42a   : > { %v5213_v20 = vpop.f32.mrf.mxu1 }
 0x42b   : > { %5490 = vst [vmem:[%s11193_s28 + $0x10] sm:$0xff] %v5426_v11  ;;  %v5427_v8 = vadd.f32 %v7497_v49, %v5363_v36  ;;  %v5364_v42 = vmax.f32 %v5212_v22, 0.0  ;;  %v5214_v6 = vadd.f32 %v5213_v20, %v11185_v21  ;;  %v7509_v22 = vld [vmem:[%s8087_s18 + $0x78] sm:$0xff] }
 0x42c   : > { %v5215_v63 = vpop.f32.mrf.mxu1 }
 0x42d   : > { %5491 = vst [vmem:[%s11193_s28 + $0x18] sm:$0xff] %v5427_v8  ;;  %v5428_v26 = vadd.f32 %v7498_v37, %v5364_v42  ;;  %v5365_v7 = vmax.f32 %v5214_v6, 0.0  ;;  %v5216_v48 = vadd.f32 %v5215_v63, %v11181_v18  ;;  %v7510_v6 = vld [vmem:[%s8087_s18 + $0x80] sm:$0xff] }
 0x42e   : > { %v5217_v52 = vpop.f32.mrf.mxu1 }
 0x42f   : > { %5492 = vst [vmem:[%s11193_s28 + $0x20] sm:$0xff] %v5428_v26  ;;  %v5429_v33 = vadd.f32 %v7499_v12, %v5365_v7  ;;  %v5366_v31 = vmax.f32 %v5216_v48, 0.0  ;;  %v5218_v43 = vadd.f32 %v5217_v52, %v11185_v21  ;;  %v7511_v48 = vld [vmem:[%s8087_s18 + $0x88] sm:$0xff] }
 0x430   : > { %v5221_v0 = vpop.f32.mrf.mxu1 }
 0x431   : > { %5493 = vst [vmem:[%s11193_s28 + $0x28] sm:$0xff] %v5429_v33  ;;  %v5430_v40 = vadd.f32 %v7500_v25, %v5366_v31  ;;  %v5367_v35 = vmax.f32 %v5218_v43, 0.0  ;;  %v5222_v28 = vadd.f32 %v5221_v0, %v11181_v18  ;;  %v7512_v43 = vld [vmem:[%s8087_s18 + $0x90] sm:$0xff] }
 0x432   : > { %v5223_v1 = vpop.f32.mrf.mxu1 }
 0x433   : > { %5494 = vst [vmem:[%s11193_s28 + $0x30] sm:$0xff] %v5430_v40  ;;  %v5431_v46 = vadd.f32 %v7501_v17, %v5367_v35  ;;  %v5368_v9 = vmax.f32 %v5222_v28, 0.0  ;;  %v5224_v58 = vadd.f32 %v5223_v1, %v11185_v21  ;;  %v7513_v28 = vld [vmem:[%s8087_s18 + $0x98] sm:$0xff] }
 0x434   : > { %v5225_v62 = vpop.f32.mrf.mxu1 }
 0x435   : > { %5495 = vst [vmem:[%s11193_s28 + $0x38] sm:$0xff] %v5431_v46  ;;  %v5432_v14 = vadd.f32 %v7502_v59, %v5368_v9  ;;  %v5369_v16 = vmax.f32 %v5224_v58, 0.0  ;;  %v5226_v24 = vadd.f32 %v5225_v62, %v11181_v18  ;;  %v7514_v58 = vld [vmem:[%s8087_s18 + $0xa0] sm:$0xff] }
 0x436   : > { %v5227_v47 = vpop.f32.mrf.mxu1 }
 0x437   : > { %5496 = vst [vmem:[%s11193_s28 + $0x40] sm:$0xff] %v5432_v14  ;;  %v5433_v41 = vadd.f32 %v7503_v53, %v5369_v16  ;;  %v5370_v44 = vmax.f32 %v5226_v24, 0.0  ;;  %v5228_v10 = vadd.f32 %v5227_v47, %v11185_v21  ;;  %v7515_v24 = vld [vmem:[%s8087_s18 + $0xa8] sm:$0xff] }
 0x438   : > { %v5231_v19 = vpop.f32.mrf.mxu1 }
 0x439   : > { %5497 = vst [vmem:[%s11193_s28 + $0x48] sm:$0xff] %v5433_v41  ;;  %v5434_v57 = vadd.f32 %v7504_v56, %v5370_v44  ;;  %v5371_v23 = vmax.f32 %v5228_v10, 0.0  ;;  %v5232_v4 = vadd.f32 %v5231_v19, %v11181_v18  ;;  %v7516_v10 = vld [vmem:[%s8087_s18 + $0xb0] sm:$0xff] }
 0x43a   : > { %v5233_v39 = vpop.f32.mrf.mxu1 }
 0x43b   : > { %5498 = vst [vmem:[%s11193_s28 + $0x50] sm:$0xff] %v5434_v57  ;;  %v5435_v32 = vadd.f32 %v7505_v5, %v5371_v23  ;;  %v5372_v13 = vmax.f32 %v5232_v4, 0.0  ;;  %v5234_v51 = vadd.f32 %v5233_v39, %v11185_v21  ;;  %v7517_v4 = vld [vmem:[%s8087_s18 + $0xb8] sm:$0xff] }
 0x43c   : > { %v5235_v45 = vpop.f32.mrf.mxu1 }
 0x43d   : > { %5499 = vst [vmem:[%s11193_s28 + $0x58] sm:$0xff] %v5435_v32  ;;  %v5436_v15 = vadd.f32 %v7506_v34, %v5372_v13  ;;  %v5373_v61 = vmax.f32 %v5234_v51, 0.0  ;;  %v5236_v27 = vadd.f32 %v5235_v45, %v11181_v18  ;;  %v7518_v51 = vld [vmem:[%s8087_s18 + $0xc0] sm:$0xff] }
 0x43e   : > { %v5237_v30 = vpop.f32.mrf.mxu1 }
 0x43f   : > { %5500 = vst [vmem:[%s11193_s28 + $0x60] sm:$0xff] %v5436_v15  ;;  %v5437_v29 = vadd.f32 %v7507_v50, %v5373_v61  ;;  %v5374_v38 = vmax.f32 %v5236_v27, 0.0  ;;  %v5238_v60 = vadd.f32 %v5237_v30, %v11185_v21  ;;  %v7519_v27 = vld [vmem:[%s8087_s18 + $0xc8] sm:$0xff] }
 0x440   : > { %v5241_v54 = vpop.f32.mrf.mxu1 }
 0x441   : > { %5501 = vst [vmem:[%s11193_s28 + $0x68] sm:$0xff] %v5437_v29  ;;  %v5438_v3 = vadd.f32 %v7508_v2, %v5374_v38  ;;  %v5375_v11 = vmax.f32 %v5238_v60, 0.0  ;;  %v5242_v36 = vadd.f32 %v5241_v54, %v11181_v18  ;;  %v7520_v60 = vld [vmem:[%s8087_s18 + $0xd0] sm:$0xff] }
 0x442   : > { %v5243_v55 = vpop.f32.mrf.mxu1 }
 0x443   : > { %5502 = vst [vmem:[%s11193_s28 + $0x70] sm:$0xff] %v5438_v3  ;;  %v5439_v49 = vadd.f32 %v7509_v22, %v5375_v11  ;;  %v5376_v8 = vmax.f32 %v5242_v36, 0.0  ;;  %v5244_v20 = vadd.f32 %v5243_v55, %v11185_v21  ;;  %v7521_v36 = vld [vmem:[%s8087_s18 + $0xd8] sm:$0xff] }
 0x444   : > { %v5245_v42 = vpop.f32.mrf.mxu1 }
 0x445   : > { %5503 = vst [vmem:[%s11193_s28 + $0x78] sm:$0xff] %v5439_v49  ;;  %v5440_v63 = vadd.f32 %v7510_v6, %v5376_v8  ;;  %v5377_v37 = vmax.f32 %v5244_v20, 0.0  ;;  %v5246_v26 = vadd.f32 %v5245_v42, %v11181_v18  ;;  %v7522_v20 = vld [vmem:[%s8087_s18 + $0xe0] sm:$0xff] }
 0x446   : > { %v5247_v7 = vpop.f32.mrf.mxu1 }
 0x447   : > { %5504 = vst [vmem:[%s11193_s28 + $0x80] sm:$0xff] %v5440_v63  ;;  %v5441_v52 = vadd.f32 %v7511_v48, %v5377_v37  ;;  %v5378_v12 = vmax.f32 %v5246_v26, 0.0  ;;  %v5248_v33 = vadd.f32 %v5247_v7, %v11185_v21  ;;  %v7523_v26 = vld [vmem:[%s8087_s18 + $0xe8] sm:$0xff] }
 0x448   : > { %v5251_v31 = vpop.f32.mrf.mxu1 }
 0x449   : > { %5505 = vst [vmem:[%s11193_s28 + $0x88] sm:$0xff] %v5441_v52  ;;  %v5442_v0 = vadd.f32 %v7512_v43, %v5378_v12  ;;  %v5379_v25 = vmax.f32 %v5248_v33, 0.0  ;;  %v5252_v40 = vadd.f32 %v5251_v31, %v11181_v18  ;;  %v7524_v33 = vld [vmem:[%s8087_s18 + $0xf0] sm:$0xff] }
 0x44a   : > { %v5253_v35 = vpop.f32.mrf.mxu1 }
 0x44b   : > { %5506 = vst [vmem:[%s11193_s28 + $0x90] sm:$0xff] %v5442_v0  ;;  %v5443_v1 = vadd.f32 %v7513_v28, %v5379_v25  ;;  %v5380_v17 = vmax.f32 %v5252_v40, 0.0  ;;  %v5254_v46 = vadd.f32 %v5253_v35, %v11185_v21  ;;  %v7525_v40 = vld [vmem:[%s8087_s18 + $0xf8] sm:$0xff] }
 0x44c   : > { %v5255_v9 = vpop.f32.mrf.mxu1 }
 0x44d   : > { %5507 = vst [vmem:[%s11193_s28 + $0x98] sm:$0xff] %v5443_v1  ;;  %v5444_v62 = vadd.f32 %v7514_v58, %v5380_v17  ;;  %v5381_v59 = vmax.f32 %v5254_v46, 0.0  ;;  %v5256_v14 = vadd.f32 %v5255_v9, %v11181_v18  ;;  %v7526_v46 = vld [vmem:[%s8087_s18 + $0x100] sm:$0xff] }
 0x44e   : > { %v5257_v16 = vpop.f32.mrf.mxu1 }
 0x44f   : > { %5508 = vst [vmem:[%s11193_s28 + $0xa0] sm:$0xff] %v5444_v62  ;;  %v5445_v47 = vadd.f32 %v7515_v24, %v5381_v59  ;;  %v5382_v53 = vmax.f32 %v5256_v14, 0.0  ;;  %v5258_v41 = vadd.f32 %v5257_v16, %v11185_v21  ;;  %v7527_v14 = vld [vmem:[%s8087_s18 + $0x108] sm:$0xff] }
 0x450   : > { %v5261_v44 = vpop.f32.mrf.mxu1 }
 0x451   : > { %5509 = vst [vmem:[%s11193_s28 + $0xa8] sm:$0xff] %v5445_v47  ;;  %v5446_v19 = vadd.f32 %v7516_v10, %v5382_v53  ;;  %v5383_v56 = vmax.f32 %v5258_v41, 0.0  ;;  %v5262_v57 = vadd.f32 %v5261_v44, %v11181_v18  ;;  %v7528_v41 = vld [vmem:[%s8087_s18 + $0x110] sm:$0xff] }
 0x452   : > { %v5263_v23 = vpop.f32.mrf.mxu1 }
 0x453   : > { %5510 = vst [vmem:[%s11193_s28 + $0xb0] sm:$0xff] %v5446_v19  ;;  %v5447_v39 = vadd.f32 %v7517_v4, %v5383_v56  ;;  %v5384_v5 = vmax.f32 %v5262_v57, 0.0  ;;  %v5264_v32 = vadd.f32 %v5263_v23, %v11185_v21  ;;  %v7529_v57 = vld [vmem:[%s8087_s18 + $0x118] sm:$0xff] }
 0x454   : > { %v5265_v13 = vpop.f32.mrf.mxu1 }
 0x455   : > { %5511 = vst [vmem:[%s11193_s28 + $0xb8] sm:$0xff] %v5447_v39  ;;  %v5448_v45 = vadd.f32 %v7518_v51, %v5384_v5  ;;  %v5385_v34 = vmax.f32 %v5264_v32, 0.0  ;;  %v5266_v15 = vadd.f32 %v5265_v13, %v11181_v18  ;;  %v7530_v32 = vld [vmem:[%s8087_s18 + $0x120] sm:$0xff] }
 0x456   : > { %v5267_v61 = vpop.f32.mrf.mxu1 }
 0x457   : > { %5512 = vst [vmem:[%s11193_s28 + $0xc0] sm:$0xff] %v5448_v45  ;;  %v5449_v30 = vadd.f32 %v7519_v27, %v5385_v34  ;;  %v5386_v50 = vmax.f32 %v5266_v15, 0.0  ;;  %v5268_v29 = vadd.f32 %v5267_v61, %v11185_v21  ;;  %v7531_v15 = vld [vmem:[%s8087_s18 + $0x128] sm:$0xff] }
 0x458   : > { %v5271_v38 = vpop.f32.mrf.mxu1 }
 0x459   : > { %5513 = vst [vmem:[%s11193_s28 + $0xc8] sm:$0xff] %v5449_v30  ;;  %v5450_v54 = vadd.f32 %v7520_v60, %v5386_v50  ;;  %v5387_v2 = vmax.f32 %v5268_v29, 0.0  ;;  %v5272_v3 = vadd.f32 %v5271_v38, %v11181_v18  ;;  %v7532_v29 = vld [vmem:[%s8087_s18 + $0x130] sm:$0xff] }
 0x45a   : > { %v5273_v11 = vpop.f32.mrf.mxu1 }
 0x45b   : > { %5514 = vst [vmem:[%s11193_s28 + $0xd0] sm:$0xff] %v5450_v54  ;;  %v5451_v55 = vadd.f32 %v7521_v36, %v5387_v2  ;;  %v5388_v22 = vmax.f32 %v5272_v3, 0.0  ;;  %v5274_v49 = vadd.f32 %v5273_v11, %v11185_v21  ;;  %v7533_v3 = vld [vmem:[%s8087_s18 + $0x138] sm:$0xff] }
 0x45c   : > { %v5275_v8 = vpop.f32.mrf.mxu1 }
 0x45d   : > { %5515 = vst [vmem:[%s11193_s28 + $0xd8] sm:$0xff] %v5451_v55  ;;  %v5452_v42 = vadd.f32 %v7522_v20, %v5388_v22  ;;  %v5389_v6 = vmax.f32 %v5274_v49, 0.0  ;;  %v5276_v63 = vadd.f32 %v5275_v8, %v11181_v18  ;;  %v7534_v49 = vld [vmem:[%s8087_s18 + $0x140] sm:$0xff] }
 0x45e   : > { %v5277_v37 = vpop.f32.mrf.mxu1 }
 0x45f   : > { %5516 = vst [vmem:[%s11193_s28 + $0xe0] sm:$0xff] %v5452_v42  ;;  %v5453_v7 = vadd.f32 %v7523_v26, %v5389_v6  ;;  %v5390_v48 = vmax.f32 %v5276_v63, 0.0  ;;  %v5278_v52 = vadd.f32 %v5277_v37, %v11185_v21  ;;  %v7535_v63 = vld [vmem:[%s8087_s18 + $0x148] sm:$0xff] }
 0x460   : > { %v5281_v12 = vpop.f32.mrf.mxu1 }
 0x461   : > { %5517 = vst [vmem:[%s11193_s28 + $0xe8] sm:$0xff] %v5453_v7  ;;  %v5454_v31 = vadd.f32 %v7524_v33, %v5390_v48  ;;  %v5391_v43 = vmax.f32 %v5278_v52, 0.0  ;;  %v5282_v0 = vadd.f32 %v5281_v12, %v11181_v18  ;;  %v7536_v52 = vld [vmem:[%s8087_s18 + $0x150] sm:$0xff] }
 0x462   : > { %v5283_v25 = vpop.f32.mrf.mxu1 }
 0x463   : > { %5518 = vst [vmem:[%s11193_s28 + $0xf0] sm:$0xff] %v5454_v31  ;;  %v5455_v35 = vadd.f32 %v7525_v40, %v5391_v43  ;;  %v5392_v28 = vmax.f32 %v5282_v0, 0.0  ;;  %v5284_v1 = vadd.f32 %v5283_v25, %v11185_v21  ;;  %v7537_v0 = vld [vmem:[%s8087_s18 + $0x158] sm:$0xff] }
 0x464   : > { %v5285_v17 = vpop.f32.mrf.mxu1 }
 0x465   : > { %5519 = vst [vmem:[%s11193_s28 + $0xf8] sm:$0xff] %v5455_v35  ;;  %v5456_v9 = vadd.f32 %v7526_v46, %v5392_v28  ;;  %v5393_v58 = vmax.f32 %v5284_v1, 0.0  ;;  %v5286_v62 = vadd.f32 %v5285_v17, %v11181_v18  ;;  %v7538_v1 = vld [vmem:[%s8087_s18 + $0x160] sm:$0xff] }
 0x466   : > { %v5287_v59 = vpop.f32.mrf.mxu1 }
 0x467   : > { %5520 = vst [vmem:[%s11193_s28 + $0x100] sm:$0xff] %v5456_v9  ;;  %v5457_v16 = vadd.f32 %v7527_v14, %v5393_v58  ;;  %v5394_v24 = vmax.f32 %v5286_v62, 0.0  ;;  %v5288_v47 = vadd.f32 %v5287_v59, %v11185_v21  ;;  %v7539_v62 = vld [vmem:[%s8087_s18 + $0x168] sm:$0xff] }
 0x468   : > { %v5291_v53 = vpop.f32.mrf.mxu1 }
 0x469   : > { %5521 = vst [vmem:[%s11193_s28 + $0x108] sm:$0xff] %v5457_v16  ;;  %v5458_v44 = vadd.f32 %v7528_v41, %v5394_v24  ;;  %v5395_v10 = vmax.f32 %v5288_v47, 0.0  ;;  %v5292_v19 = vadd.f32 %v5291_v53, %v11181_v18  ;;  %v7540_v47 = vld [vmem:[%s8087_s18 + $0x170] sm:$0xff] }
 0x46a   : > { %v5293_v56 = vpop.f32.mrf.mxu1 }
 0x46b   : > { %5522 = vst [vmem:[%s11193_s28 + $0x110] sm:$0xff] %v5458_v44  ;;  %v5459_v23 = vadd.f32 %v7529_v57, %v5395_v10  ;;  %v5396_v4 = vmax.f32 %v5292_v19, 0.0  ;;  %v5294_v39 = vadd.f32 %v5293_v56, %v11185_v21  ;;  %v7541_v19 = vld [vmem:[%s8087_s18 + $0x178] sm:$0xff] }
 0x46c   : > { %v5295_v5 = vpop.f32.mrf.mxu1 }
 0x46d   : > { %5523 = vst [vmem:[%s11193_s28 + $0x118] sm:$0xff] %v5459_v23  ;;  %v5460_v13 = vadd.f32 %v7530_v32, %v5396_v4  ;;  %v5397_v51 = vmax.f32 %v5294_v39, 0.0  ;;  %v5296_v45 = vadd.f32 %v5295_v5, %v11181_v18  ;;  %v7542_v39 = vld [vmem:[%s8087_s18 + $0x180] sm:$0xff] }
 0x46e   : > { %v5297_v34 = vpop.f32.mrf.mxu1 }
 0x46f   : > { %5524 = vst [vmem:[%s11193_s28 + $0x120] sm:$0xff] %v5460_v13  ;;  %v5461_v61 = vadd.f32 %v7531_v15, %v5397_v51  ;;  %v5398_v27 = vmax.f32 %v5296_v45, 0.0  ;;  %v5298_v30 = vadd.f32 %v5297_v34, %v11185_v21  ;;  %v7543_v45 = vld [vmem:[%s8087_s18 + $0x188] sm:$0xff] }
 0x470   : > { %v5301_v50 = vpop.f32.mrf.mxu1 }
 0x471   : > { %5525 = vst [vmem:[%s11193_s28 + $0x128] sm:$0xff] %v5461_v61  ;;  %v5462_v38 = vadd.f32 %v7532_v29, %v5398_v27  ;;  %v5399_v60 = vmax.f32 %v5298_v30, 0.0  ;;  %v5302_v54 = vadd.f32 %v5301_v50, %v11181_v18  ;;  %v7544_v30 = vld [vmem:[%s8087_s18 + $0x190] sm:$0xff] }
 0x472   : > { %v5303_v2 = vpop.f32.mrf.mxu1 }
 0x473   : > { %5526 = vst [vmem:[%s11193_s28 + $0x130] sm:$0xff] %v5462_v38  ;;  %v5463_v11 = vadd.f32 %v7533_v3, %v5399_v60  ;;  %v5400_v36 = vmax.f32 %v5302_v54, 0.0  ;;  %v5304_v55 = vadd.f32 %v5303_v2, %v11185_v21  ;;  %v7545_v54 = vld [vmem:[%s8087_s18 + $0x198] sm:$0xff] }
 0x474   : > { %v5305_v22 = vpop.f32.mrf.mxu1 }
 0x475   : > { %5527 = vst [vmem:[%s11193_s28 + $0x138] sm:$0xff] %v5463_v11  ;;  %v5464_v8 = vadd.f32 %v7534_v49, %v5400_v36  ;;  %v5401_v20 = vmax.f32 %v5304_v55, 0.0  ;;  %v5306_v42 = vadd.f32 %v5305_v22, %v11181_v18  ;;  %v7546_v55 = vld [vmem:[%s8087_s18 + $0x1a0] sm:$0xff] }
 0x476   : > { %v5307_v6 = vpop.f32.mrf.mxu1 }
 0x477   : > { %5528 = vst [vmem:[%s11193_s28 + $0x140] sm:$0xff] %v5464_v8  ;;  %v5465_v37 = vadd.f32 %v7535_v63, %v5401_v20  ;;  %v5402_v26 = vmax.f32 %v5306_v42, 0.0  ;;  %v5308_v7 = vadd.f32 %v5307_v6, %v11185_v21  ;;  %v7547_v42 = vld [vmem:[%s8087_s18 + $0x1a8] sm:$0xff] }
 0x478   : > { %v5311_v48 = vpop.f32.mrf.mxu1 }
 0x479   : > { %5529 = vst [vmem:[%s11193_s28 + $0x148] sm:$0xff] %v5465_v37  ;;  %v5466_v12 = vadd.f32 %v7536_v52, %v5402_v26  ;;  %v5403_v33 = vmax.f32 %v5308_v7, 0.0  ;;  %v5312_v31 = vadd.f32 %v5311_v48, %v11181_v18  ;;  %v7548_v7 = vld [vmem:[%s8087_s18 + $0x1b0] sm:$0xff] }
 0x47a   : > { %v5313_v43 = vpop.f32.mrf.mxu1 }
 0x47b   : > { %5530 = vst [vmem:[%s11193_s28 + $0x150] sm:$0xff] %v5466_v12  ;;  %v5467_v25 = vadd.f32 %v7537_v0, %v5403_v33  ;;  %v5404_v40 = vmax.f32 %v5312_v31, 0.0  ;;  %v5314_v35 = vadd.f32 %v5313_v43, %v11185_v21  ;;  %v7549_v31 = vld [vmem:[%s8087_s18 + $0x1b8] sm:$0xff] }
 0x47c   : > { %v5315_v28 = vpop.f32.mrf.mxu1 }
 0x47d   : > { %5531 = vst [vmem:[%s11193_s28 + $0x158] sm:$0xff] %v5467_v25  ;;  %v5468_v17 = vadd.f32 %v7538_v1, %v5404_v40  ;;  %v5405_v46 = vmax.f32 %v5314_v35, 0.0  ;;  %v5316_v9 = vadd.f32 %v5315_v28, %v11181_v18  ;;  %v7550_v35 = vld [vmem:[%s8087_s18 + $0x1c0] sm:$0xff] }
 0x47e   : > { %v5317_v58 = vpop.f32.mrf.mxu1 }
 0x47f   : > { %5532 = vst [vmem:[%s11193_s28 + $0x160] sm:$0xff] %v5468_v17  ;;  %v5469_v59 = vadd.f32 %v7539_v62, %v5405_v46  ;;  %v5406_v14 = vmax.f32 %v5316_v9, 0.0  ;;  %v5318_v16 = vadd.f32 %v5317_v58, %v11185_v21  ;;  %v7551_v9 = vld [vmem:[%s8087_s18 + $0x1c8] sm:$0xff] }
 0x480   : > { %v5321_v24 = vpop.f32.mrf.mxu1 }
 0x481   : > { %5533 = vst [vmem:[%s11193_s28 + $0x168] sm:$0xff] %v5469_v59  ;;  %v5470_v53 = vadd.f32 %v7540_v47, %v5406_v14  ;;  %v5407_v41 = vmax.f32 %v5318_v16, 0.0  ;;  %v5322_v44 = vadd.f32 %v5321_v24, %v11181_v18  ;;  %v7552_v16 = vld [vmem:[%s8087_s18 + $0x1d0] sm:$0xff] }
 0x482   : > { %v5323_v10 = vpop.f32.mrf.mxu1 }
 0x483   : > { %5534 = vst [vmem:[%s11193_s28 + $0x170] sm:$0xff] %v5470_v53  ;;  %v5471_v56 = vadd.f32 %v7541_v19, %v5407_v41  ;;  %v5408_v57 = vmax.f32 %v5322_v44, 0.0  ;;  %v5324_v23 = vadd.f32 %v5323_v10, %v11185_v21  ;;  %v7553_v44 = vld [vmem:[%s8087_s18 + $0x1d8] sm:$0xff] }
 0x484   : > { %v5325_v4 = vpop.f32.mrf.mxu1 }
 0x485   : > { %5535 = vst [vmem:[%s11193_s28 + $0x178] sm:$0xff] %v5471_v56  ;;  %v5472_v5 = vadd.f32 %v7542_v39, %v5408_v57  ;;  %v5409_v32 = vmax.f32 %v5324_v23, 0.0  ;;  %v5326_v13 = vadd.f32 %v5325_v4, %v11181_v18  ;;  %v7554_v23 = vld [vmem:[%s8087_s18 + $0x1e0] sm:$0xff] }
 0x486   : > { %v5327_v51 = vpop.f32.mrf.mxu1 }
 0x487   : > { %5536 = vst [vmem:[%s11193_s28 + $0x180] sm:$0xff] %v5472_v5  ;;  %v5473_v34 = vadd.f32 %v7543_v45, %v5409_v32  ;;  %v5410_v15 = vmax.f32 %v5326_v13, 0.0  ;;  %v5328_v61 = vadd.f32 %v5327_v51, %v11185_v21  ;;  %v7555_v13 = vld [vmem:[%s8087_s18 + $0x1e8] sm:$0xff] }
 0x488   : > { %v5331_v27 = vpop.f32.mrf.mxu1 }
 0x489   : > { %5537 = vst [vmem:[%s11193_s28 + $0x188] sm:$0xff] %v5473_v34  ;;  %v5474_v50 = vadd.f32 %v7544_v30, %v5410_v15  ;;  %v5411_v29 = vmax.f32 %v5328_v61, 0.0  ;;  %v5332_v38 = vadd.f32 %v5331_v27, %v11181_v18  ;;  %v7556_v15 = vld [vmem:[%s8087_s18 + $0x1f0] sm:$0xff]  ;;  %v7557_v30 = vld [vmem:[%s8087_s18 + $0x1f8] sm:$0xff] }
 0x48a   : > { %v5333_v60 = vpop.f32.mrf.mxu1 }
 0x48b   : > { %5538 = vst [vmem:[%s11193_s28 + $0x190] sm:$0xff] %v5474_v50  ;;  %v5475_v2 = vadd.f32 %v7545_v54, %v5411_v29  ;;  %v5412_v3 = vmax.f32 %v5332_v38, 0.0  ;;  %v5334_v11 = vadd.f32 %v5333_v60, %v11185_v21 }
 0x48c   : > { %v5335_v36 = vpop.f32.mrf.mxu1 }
 0x48d   : > { %5539 = vst [vmem:[%s11193_s28 + $0x198] sm:$0xff] %v5475_v2  ;;  %v5476_v22 = vadd.f32 %v7546_v55, %v5412_v3  ;;  %v5413_v49 = vmax.f32 %v5334_v11, 0.0  ;;  %v5336_v8 = vadd.f32 %v5335_v36, %v11181_v18 }
 0x48e   : > { %v5337_v20 = vpop.f32.mrf.mxu1 }
 0x48f   : > { %5540 = vst [vmem:[%s11193_s28 + $0x1a0] sm:$0xff] %v5476_v22  ;;  %v5477_v6 = vadd.f32 %v7547_v42, %v5413_v49  ;;  %v5414_v63 = vmax.f32 %v5336_v8, 0.0  ;;  %v5338_v37 = vadd.f32 %v5337_v20, %v11185_v21 }
 0x490   : > { %v5341_v26 = vpop.f32.mrf.mxu1 }
 0x491   : > { %5541 = vst [vmem:[%s11193_s28 + $0x1a8] sm:$0xff] %v5477_v6  ;;  %v5478_v48 = vadd.f32 %v7548_v7, %v5414_v63  ;;  %v5415_v52 = vmax.f32 %v5338_v37, 0.0  ;;  %v5342_v12 = vadd.f32 %v5341_v26, %v11181_v18 }
 0x492   : > { %v5343_v33 = vpop.f32.mrf.mxu1 }
 0x493   : > { %5542 = vst [vmem:[%s11193_s28 + $0x1b0] sm:$0xff] %v5478_v48  ;;  %v5479_v43 = vadd.f32 %v7549_v31, %v5415_v52  ;;  %v5416_v0 = vmax.f32 %v5342_v12, 0.0  ;;  %v5344_v25 = vadd.f32 %v5343_v33, %v11185_v21 }
 0x494   : > { %v5345_v40 = vpop.f32.mrf.mxu1 }
 0x495   : > { %5543 = vst [vmem:[%s11193_s28 + $0x1b8] sm:$0xff] %v5479_v43  ;;  %v5480_v28 = vadd.f32 %v7550_v35, %v5416_v0  ;;  %v5417_v1 = vmax.f32 %v5344_v25, 0.0  ;;  %v5346_v17 = vadd.f32 %v5345_v40, %v11181_v18 }
 0x496   : > { %v5347_v46 = vpop.f32.mrf.mxu1 }
 0x497   : > { %5544 = vst [vmem:[%s11193_s28 + $0x1c0] sm:$0xff] %v5480_v28  ;;  %v5481_v58 = vadd.f32 %v7551_v9, %v5417_v1  ;;  %v5418_v62 = vmax.f32 %v5346_v17, 0.0  ;;  %v5348_v59 = vadd.f32 %v5347_v46, %v11185_v21 }
 0x498   : > { %v5351_v14 = vpop.f32.mrf.mxu1 }
 0x499   : > { %5545 = vst [vmem:[%s11193_s28 + $0x1c8] sm:$0xff] %v5481_v58  ;;  %v5482_v24 = vadd.f32 %v7552_v16, %v5418_v62  ;;  %v5419_v47 = vmax.f32 %v5348_v59, 0.0  ;;  %v5352_v53 = vadd.f32 %v5351_v14, %v11181_v18 }
 0x49a   : > { %v5353_v41 = vpop.f32.mrf.mxu1 }
 0x49b   : > { %5546 = vst [vmem:[%s11193_s28 + $0x1d0] sm:$0xff] %v5482_v24  ;;  %v5483_v10 = vadd.f32 %v7553_v44, %v5419_v47  ;;  %v5420_v19 = vmax.f32 %v5352_v53, 0.0  ;;  %v5354_v56 = vadd.f32 %v5353_v41, %v11185_v21 }
 0x49c   : > { %v5355_v57 = vpop.f32.mrf.mxu1 }
 0x49d   : > { %5547 = vst [vmem:[%s11193_s28 + $0x1d8] sm:$0xff] %v5483_v10  ;;  %v5484_v4 = vadd.f32 %v7554_v23, %v5420_v19  ;;  %v5421_v39 = vmax.f32 %v5354_v56, 0.0  ;;  %v5356_v5 = vadd.f32 %v5355_v57, %v11181_v18 }
 0x49e   : > { %v5357_v32 = vpop.f32.mrf.mxu1 }
 0x49f   : > { %5548 = vst [vmem:[%s11193_s28 + $0x1e0] sm:$0xff] %v5484_v4  ;;  %v5485_v51 = vadd.f32 %v7555_v13, %v5421_v39  ;;  %v5422_v45 = vmax.f32 %v5356_v5, 0.0  ;;  %v5358_v34 = vadd.f32 %v5357_v32, %v11185_v21 }
 0x4a1   : > { %5549 = vst [vmem:[%s11193_s28 + $0x1e8] sm:$0xff] %v5485_v51  ;;  %v5486_v61 = vadd.f32 %v7556_v15, %v5422_v45  ;;  %v5423_v27 = vmax.f32 %v5358_v34, 0.0 }
 0x4a3   : > { %5550 = vst [vmem:[%s11193_s28 + $0x1f0] sm:$0xff] %v5486_v61  ;;  %v5487_v50 = vadd.f32 %v7557_v30, %v5423_v27 }
 0x4a5   : > { %5551 = vst [vmem:[%s11193_s28 + $0x1f8] sm:$0xff] %v5487_v50 }
 0x4a6   : > { %s6907_s30 = sshll.u32 %s7600_s24, 12  ;;  %s5580_s9 = sshll.u32 %s11193_s28, 4  ;;  %s5581_s9 = int_to_ptr.vmem [resolvable:$true] %s5580_s9 }
 0x4a7   : > { %s5569_s12 = scalar_lea.hbm %s11432_s6, %s6907_s30  ;;  %s7611_s18 = smov 4096  }
 0x4a8   : > { %6908 = sst [smem:[#allocation7]] (%p7695_p5), %s7611_s18  ;;  %s7612_s20 = smov 8192  }
 0x4a9   : > { %6909 = sst [smem:[#allocation7 + $0x1]] (%p7695_p5), %s7612_s20  ;;  %s7613_s13 = smov 16  }
 0x4aa   : > { %6910 = sst [smem:[#allocation7 + $0x2]] (%p7695_p5), %s7613_s13  ;;  %s7614_s17 = smov 256  }
 0x4ab   : > { %6911 = sst [smem:[#allocation7 + $0x3]] (%p7695_p5), %s7614_s17  ;;  %s7615_s24 = smov 131072  }
 0x4ac   : > { %6912 = sst [smem:[#allocation7 + $0x4]] (%p7695_p5), %s7614_s17  ;;  %s7616_s19 = smov 0  }
 0x4ad   : > { %6913 = sst [smem:[#allocation7 + $0x5]] (%p7695_p5), %s7613_s13 }
 0x4ae   : > { %6914 = dma.general (%p7695_p5), %s5581_s9, 8192, %s5569_s12, %s5553_s15, %s7615_s24, [#allocation7], %s7616_s19, 0  }
 0x4af PF: > { %s5608_s16 = sand.u32 1, %s7588_s21   ;;  %p6917_p0 = pnand %p5699_p10, %p7706_p9 }
 0x4b0   : > { %s5609_s27 = scalar_lea.sflag [#allocation5], %s5608_s16 }
 0x4b1   : > { %p6918_p1 = pneg %p6917_p0 }
 0x4b3   : > { %7583 = dma.done.wait (%p6918_p1), %s5609_s27, 8192  }
 0x4b4   : > { %7585 = vsyncadd (%p6918_p1), %s5609_s27, 4294959104  ;;  %s19_s26 = sadd.s32 1, %s7608_s26   ;;  %s12156_s21 = smov %s7592_s22 }
 0x4b5   : > { %p16_p2 = scmp.ge.s32.totalorder %s19_s26, 4   ;;  %s12157_s22 = smov %s7596_s23 }
 0x4b6   : > { %s12158_s23 = smov %s7704_s10  ;;  %s12159_s24 = smov %s7604_s25 }
 0x4b7   : > { %s12160_s25 = smov %s12162_s29  ;;  %18 = sbr.rel (!%p16_p2) target bundleno = 4 (0x4), region = 145 }
 0x4bc   :  { %5614 = vsyncpa [#allocation5], 1 }
 0x4bd   :  { %5616 = vsyncpa [#allocation5 + $0x1], 1 }

</bundles_post_ra>
